<compile_context>
chip_gen: v7x
topology: tpu7x:2x2x1
jax: 0.10.0
libtpu: 0.0.40
codegen_flags: <defaults>
</compile_context>

<pallas_src>
import functools

import jax
import jax.numpy as jnp
from jax.experimental import pallas as pl
from jax.experimental.pallas import tpu as pltpu


# ----------------------------------------------------------------------------
# Kernel 1-3: single-shot fused GEMM + bias (+ ReLU).  Everything lives in
# VMEM for one invocation (largest instance, conv2, is ~3.5 MB of operands).
# ----------------------------------------------------------------------------
def _dense_kernel(x_ref, w_ref, b_ref, o_ref, *, relu):
    y = jnp.dot(x_ref[...], w_ref[...], preferred_element_type=jnp.float32)
    y = y + b_ref[...]
    if relu:
        y = jnp.maximum(y, 0.0)
    o_ref[...] = y.astype(o_ref.dtype)


def pallas_dense(x, w, b2d, relu=False):
    """y = maybe_relu(x @ w + b).  x:(M,K), w:(K,N), b2d:(1,N), all f32."""
    M, K = x.shape
    K2, N = w.shape
    assert K == K2 and b2d.shape == (1, N)
    vmem = pl.BlockSpec(memory_space=pltpu.MemorySpace.VMEM)
    return pl.pallas_call(
        functools.partial(_dense_kernel, relu=relu),
        out_shape=jax.ShapeDtypeStruct((M, N), jnp.float32),
        in_specs=[vmem, vmem, vmem],
        out_specs=vmem,
    )(x, w, b2d)


# ----------------------------------------------------------------------------
# Kernel 4: fused tail.
#   grid=(n_k,) streams the 12.8 MB b_l1 weight in (tk,128) blocks and
#   accumulates (B,128) in VMEM scratch.  At the last grid step it finishes
#   b_l1 (bias+ReLU), runs b_l2, the whole trunk MLP, the per-batch einsum
#   and adds the scalar bias -- all without touching HBM for intermediates.
# ----------------------------------------------------------------------------
def _tail_kernel(x_ref, w1_ref, b1_ref, w2_ref, b2_ref,
                 l_ref, tw0_ref, tb0_ref, tw1_ref, tb1_ref,
                 tw2_ref, tb2_ref, tw3_ref, tb3_ref, bb_ref,
                 o_ref, acc_ref, *, batch, n_query):
    k = pl.program_id(0)

    @pl.when(k == 0)
    def _():
        acc_ref[...] = jnp.zeros_like(acc_ref)

    # b_l1 partial reduction over this K block.
    acc_ref[...] += jnp.dot(x_ref[...], w1_ref[...],
                            preferred_element_type=jnp.float32)

    @pl.when(k == pl.num_programs(0) - 1)
    def _():
        f32 = jnp.float32
        # finish branch: b_l1 bias + ReLU, then b_l2
        h = jnp.maximum(acc_ref[...] + b1_ref[...], 0.0)               # (B,128)
        xb = jnp.dot(h, w2_ref[...], preferred_element_type=f32)
        xb = xb + b2_ref[...]                                          # (B,256)

        # trunk MLP on (B*K, t_dim)
        t = jnp.dot(l_ref[...], tw0_ref[...], preferred_element_type=f32)
        t = jnp.maximum(t + tb0_ref[...], 0.0)
        t = jnp.dot(t, tw1_ref[...], preferred_element_type=f32)
        t = jnp.maximum(t + tb1_ref[...], 0.0)
        t = jnp.dot(t, tw2_ref[...], preferred_element_type=f32)
        t = jnp.maximum(t + tb2_ref[...], 0.0)
        t = jnp.dot(t, tw3_ref[...], preferred_element_type=f32)
        t = t + tb3_ref[...]                                           # (B*K,256)

        # res[b,k] = sum_i xb[b,i] * t[b*K+k, i]  (+ scalar bias)
        for b in range(batch):                                         # static B
            tb = t[b * n_query:(b + 1) * n_query, :]                   # (K,256)
            r = jnp.sum(tb * xb[b:b + 1, :], axis=-1, keepdims=True)   # (K,1)
            o_ref[b * n_query:(b + 1) * n_query, :] = r + bb_ref[...]


def pallas_tail(x_flat, l2d, prep, *, batch, n_query):
    """x_flat:(B, 25088) in (h,w,c) order, l2d:(B*K, t_dim) -> (B*K, 1)."""
    D = x_flat.shape[1]
    n_k = 4 if D % (4 * 128) == 0 else 1      # 4 steps of 6272 (3.2 MB blocks)
    tk = D // n_k

    def resident(a):                          # constant block, fetched once
        assert a.ndim == 2
        return pl.BlockSpec(a.shape, lambda k: (0, 0))

    in_specs = [
        pl.BlockSpec((batch, tk), lambda k: (0, k)),        # x_flat (streamed)
        pl.BlockSpec((tk, 128), lambda k: (k, 0)),          # b_l1 weight (streamed)
        resident(prep['b1']), resident(prep['w2']), resident(prep['b2']),
        resident(l2d),
        resident(prep['tw0']), resident(prep['tb0']),
        resident(prep['tw1']), resident(prep['tb1']),
        resident(prep['tw2']), resident(prep['tb2']),
        resident(prep['tw3']), resident(prep['tb3']),
        resident(prep['bconst']),
    ]

    return pl.pallas_call(
        functools.partial(_tail_kernel, batch=batch, n_query=n_query),
        out_shape=jax.ShapeDtypeStruct((batch * n_query, 1), jnp.float32),
        grid_spec=pltpu.PrefetchScalarGridSpec(
            num_scalar_prefetch=0,
            grid=(n_k,),
            in_specs=in_specs,
            out_specs=pl.BlockSpec((batch * n_query, 1), lambda k: (0, 0)),
            scratch_shapes=[pltpu.VMEM((batch, 128), jnp.float32)],
        ),
        compiler_params=pltpu.CompilerParams(
            dimension_semantics=("arbitrary",)),
    )(x_flat, prep['w1'], prep['b1'], prep['w2'], prep['b2'],
      l2d, prep['tw0'], prep['tb0'], prep['tw1'], prep['tb1'],
      prep['tw2'], prep['tb2'], prep['tw3'], prep['tb3'], prep['bconst'])


# ----------------------------------------------------------------------------
# Glue: NHWC im2col (pure strided slicing / stacking, stays in plain JAX)
# column order = (kh, kw, cin), matching the preprocessed conv weights.
# ----------------------------------------------------------------------------
def im2col_nhwc(x, k, s):
    B, H, W, C = x.shape
    Ho = (H - k) // s + 1
    Wo = (W - k) // s + 1
    cols = []
    for i in range(k):
        for j in range(k):
            cols.append(x[:, i:i + s * (Ho - 1) + 1:s,
                             j:j + s * (Wo - 1) + 1:s, :])   # (B,Ho,Wo,C)
    p = jnp.stack(cols, axis=3)                               # (B,Ho,Wo,k*k,C)
    return p.reshape(B * Ho * Wo, k * k * C), Ho, Wo


# ----------------------------------------------------------------------------
# Parameter init (deterministic, PyTorch-default-style uniform) + one-time
# weight preprocessing (done OUTSIDE the jitted forward path).
# ----------------------------------------------------------------------------
def _uniform(key, shape, fan_in):
    bound = 1.0 / (fan_in ** 0.5)
    return jax.random.uniform(key, shape, jnp.float32, -bound, bound)


def init_params(key, b_dim, t_dim):
    ks = jax.random.split(key, 20)
    p = {}
    p['b_l0_w'] = _uniform(ks[0], (b_dim, 65 * 65), b_dim)
    p['b_l0_b'] = _uniform(ks[1], (65 * 65,), b_dim)
    p['conv1_w'] = _uniform(ks[2], (64, 1, 5, 5), 1 * 5 * 5)      # OIHW
    p['conv1_b'] = _uniform(ks[3], (64,), 1 * 5 * 5)
    p['conv2_w'] = _uniform(ks[4], (128, 64, 5, 5), 64 * 5 * 5)   # OIHW
    p['conv2_b'] = _uniform(ks[5], (128,), 64 * 5 * 5)
    p['b_l1_w'] = _uniform(ks[6], (128 * 14 * 14, 128), 128 * 14 * 14)  # (c,h,w) rows
    p['b_l1_b'] = _uniform(ks[7], (128,), 128 * 14 * 14)
    p['b_l2_w'] = _uniform(ks[8], (128, 256), 128)
    p['b_l2_b'] = _uniform(ks[9], (256,), 128)
    p['t0_w'] = _uniform(ks[10], (t_dim, 128), t_dim)
    p['t0_b'] = _uniform(ks[11], (128,), t_dim)
    p['t1_w'] = _uniform(ks[12], (128, 128), 128)
    p['t1_b'] = _uniform(ks[13], (128,), 128)
    p['t2_w'] = _uniform(ks[14], (128, 128), 128)
    p['t2_b'] = _uniform(ks[15], (128,), 128)
    p['t3_w'] = _uniform(ks[16], (128, 256), 128)
    p['t3_b'] = _uniform(ks[17], (256,), 128)
    p['b'] = jnp.zeros((1,), jnp.float32)
    return p


def prepare_params(params):
    """One-time (outside jit) weight layout prep for the Pallas path."""
    p = {}
    p['w0'] = params['b_l0_w']
    p['b0'] = params['b_l0_b'].reshape(1, -1)
    # conv weights OIHW -> (kh, kw, cin, cout) -> GEMM matrix (kh*kw*cin, cout)
    p['wc1'] = params['conv1_w'].transpose(2, 3, 1, 0).reshape(5 * 5 * 1, 64)
    p['bc1'] = params['conv1_b'].reshape(1, -1)
    p['wc2'] = params['conv2_w'].transpose(2, 3, 1, 0).reshape(5 * 5 * 64, 128)
    p['bc2'] = params['conv2_b'].reshape(1, -1)
    # b_l1 rows are in PyTorch (c,h,w) flatten order; permute to (h,w,c) to
    # match the NHWC flatten used by the Pallas path.
    p['w1'] = (params['b_l1_w'].reshape(128, 14, 14, 128)
               .transpose(1, 2, 0, 3).reshape(14 * 14 * 128, 128))
    p['b1'] = params['b_l1_b'].reshape(1, -1)
    p['w2'] = params['b_l2_w']
    p['b2'] = params['b_l2_b'].reshape(1, -1)
    for i in range(4):
        p[f'tw{i}'] = params[f't{i}_w']
        p[f'tb{i}'] = params[f't{i}_b'].reshape(1, -1)
    p['bconst'] = params['b'].reshape(1, 1)
    return p


# ----------------------------------------------------------------------------
# Forward pass (4 Pallas calls, NHWC activations, no runtime weight prep)
# ----------------------------------------------------------------------------
def deeponet_forward(prep, x, l):
    B = x.shape[0]
    _, Kq, t_dim = l.shape

    # branch head: Linear(b_dim -> 65*65)
    h = pallas_dense(x, prep['w0'], prep['b0'], relu=False)      # (B, 4225)
    h = h.reshape(B, 65, 65, 1)                                  # NHWC

    # conv1: 1 -> 64, 5x5 stride 2, ReLU
    p1, Ho, Wo = im2col_nhwc(h, 5, 2)                            # (B*31*31, 25)
    h = pallas_dense(p1, prep['wc1'], prep['bc1'], relu=True)    # (B*961, 64)
    h = h.reshape(B, Ho, Wo, 64)

    # conv2: 64 -> 128, 5x5 stride 2, ReLU
    # TODO(synk): gather these patches inside the GEMM kernel with strided ref
    # reads to avoid materialising the (B*196, 1600) im2col matrix in HBM.
    p2, Ho, Wo = im2col_nhwc(h, 5, 2)                            # (B*196, 1600)
    h = pallas_dense(p2, prep['wc2'], prep['bc2'], relu=True)    # (B*196, 128)
    x_flat = h.reshape(B, Ho * Wo * 128)                         # (h,w,c) flatten

    # fused tail: b_l1 (streamed weight) + b_l2 + trunk + einsum + bias
    l2d = l.reshape(B * Kq, t_dim)
    out = pallas_tail(x_flat, l2d, prep, batch=B, n_query=Kq)    # (B*Kq, 1)
    return out.reshape(B, Kq, 1)


# ----------------------------------------------------------------------------
# Pure-JAX reference (PyTorch semantics: NCHW conv, (c,h,w) flatten)
# ----------------------------------------------------------------------------
def ref_forward(params, x, l):
    def lin(v, w, b, relu=False):
        y = v @ w + b
        return jnp.maximum(y, 0.0) if relu else y

    B = x.shape[0]
    h = lin(x, params['b_l0_w'], params['b_l0_b']).reshape(B, 1, 65, 65)
    h = jax.lax.conv_general_dilated(
        h, params['conv1_w'], (2, 2), 'VALID',
        dimension_numbers=('NCHW', 'OIHW', 'NCHW'))
    h = jnp.maximum(h + params['conv1_b'][None, :, None, None], 0.0)
    h = jax.lax.conv_general_dilated(
        h, params['conv2_w'], (2, 2), 'VALID',
        dimension_numbers=('NCHW', 'OIHW', 'NCHW'))
    h = jnp.maximum(h + params['conv2_b'][None, :, None, None], 0.0)
    h = h.reshape(B, 128 * 14 * 14)
    h = lin(h, params['b_l1_w'], params['b_l1_b'], relu=True)
    xb = lin(h, params['b_l2_w'], params['b_l2_b'])

    _, K, t_dim = l.shape
    t = l.reshape(B * K, t_dim)
    t = lin(t, params['t0_w'], params['t0_b'], relu=True)
    t = lin(t, params['t1_w'], params['t1_b'], relu=True)
    t = lin(t, params['t2_w'], params['t2_b'], relu=True)
    t = lin(t, params['t3_w'], params['t3_b']).reshape(B, K, 256)

    res = jnp.einsum('bi,bki->bk', xb, t)
    return res[..., None] + params['b']


# ----------------------------------------------------------------------------
if __name__ == "__main__":
    B, b_dim, t_dim, K = 2, 16, 8, 8

    key = jax.random.PRNGKey(0)
    kp, kx, kl = jax.random.split(key, 3)
    params = init_params(kp, b_dim, t_dim)
    prep = prepare_params(params)            # one-time weight prep (outside jit)
    x = jax.random.normal(kx, (B, b_dim), jnp.float32)
    l = jax.random.normal(kl, (B, K, t_dim), jnp.float32)

    fwd = jax.jit(deeponet_forward)
    out = jax.block_until_ready(fwd(prep, x, l))

    ref = ref_forward(params, x, l)
    assert out.shape == (B, K, 1), out.shape
    max_err = float(jnp.max(jnp.abs(out - ref)))
    assert jnp.allclose(out, ref, rtol=2e-3, atol=2e-3), max_err

    print("KERNEL_OK")
</pallas_src>

<mosaic_0001>
module attributes {stable_mosaic.version = 11 : i64} {
  func.func @_dense_kernel(%arg0: memref<2x16xf32, #tpu.memory_space<vmem>>, %arg1: memref<16x4225xf32, #tpu.memory_space<vmem>>, %arg2: memref<1x4225xf32, #tpu.memory_space<vmem>>, %arg3: memref<2x4225xf32, #tpu.memory_space<vmem>>) attributes {dimension_semantics = [], scalar_prefetch = 0 : i64, scratch_operands = 0 : i64, tpu.core_type = #tpu.core_type<tc>} {
    %c0 = arith.constant 0 : index
    %c0_0 = arith.constant 0 : index
    %0 = vector.load %arg0[%c0, %c0_0] : memref<2x16xf32, #tpu.memory_space<vmem>>, vector<2x16xf32>
    %c0_1 = arith.constant 0 : index
    %c0_2 = arith.constant 0 : index
    %1 = vector.load %arg1[%c0_1, %c0_2] : memref<16x4225xf32, #tpu.memory_space<vmem>>, vector<16x4225xf32>
    %cst = arith.constant dense<0.000000e+00> : vector<2x4225xf32>
    %2 = tpu.matmul %0, %1, %cst {dimension_numbers = #tpu.dot_dimension_numbers<[1], [0], [0], [1], [0, 0, 1, 1], [], []>} : vector<2x16xf32>, vector<16x4225xf32>, vector<2x4225xf32> -> vector<2x4225xf32>
    %c0_3 = arith.constant 0 : index
    %c0_4 = arith.constant 0 : index
    %3 = vector.load %arg2[%c0_3, %c0_4] : memref<1x4225xf32, #tpu.memory_space<vmem>>, vector<1x4225xf32>
    %4 = vector.broadcast %3 : vector<1x4225xf32> to vector<2x4225xf32>
    %5 = arith.addf %2, %4 : vector<2x4225xf32>
    %c0_5 = arith.constant 0 : index
    %c0_6 = arith.constant 0 : index
    %6 = vector.load %arg3[%c0_5, %c0_6] : memref<2x4225xf32, #tpu.memory_space<vmem>>, vector<2x4225xf32>
    tpu.vector_store %arg3[%c0_5, %c0_6], %5 {strides = array<i32>} : memref<2x4225xf32, #tpu.memory_space<vmem>>, vector<2x4225xf32>,
    return
  }
}

module attributes {stable_mosaic.version = 11 : i64} {
  func.func @_dense_kernel(%arg0: memref<1922x25xf32, #tpu.memory_space<vmem>>, %arg1: memref<25x64xf32, #tpu.memory_space<vmem>>, %arg2: memref<1x64xf32, #tpu.memory_space<vmem>>, %arg3: memref<1922x64xf32, #tpu.memory_space<vmem>>) attributes {dimension_semantics = [], scalar_prefetch = 0 : i64, scratch_operands = 0 : i64, tpu.core_type = #tpu.core_type<tc>} {
    %c0 = arith.constant 0 : index
    %c0_0 = arith.constant 0 : index
    %0 = vector.load %arg0[%c0, %c0_0] : memref<1922x25xf32, #tpu.memory_space<vmem>>, vector<1922x25xf32>
    %c0_1 = arith.constant 0 : index
    %c0_2 = arith.constant 0 : index
    %1 = vector.load %arg1[%c0_1, %c0_2] : memref<25x64xf32, #tpu.memory_space<vmem>>, vector<25x64xf32>
    %cst = arith.constant dense<0.000000e+00> : vector<1922x64xf32>
    %2 = tpu.matmul %0, %1, %cst {dimension_numbers = #tpu.dot_dimension_numbers<[1], [0], [0], [1], [0, 0, 1, 1], [], []>} : vector<1922x25xf32>, vector<25x64xf32>, vector<1922x64xf32> -> vector<1922x64xf32>
    %c0_3 = arith.constant 0 : index
    %c0_4 = arith.constant 0 : index
    %3 = vector.load %arg2[%c0_3, %c0_4] : memref<1x64xf32, #tpu.memory_space<vmem>>, vector<1x64xf32>
    %4 = vector.broadcast %3 : vector<1x64xf32> to vector<1922x64xf32>
    %5 = arith.addf %2, %4 : vector<1922x64xf32>
    %cst_5 = arith.constant 0.000000e+00 : f32
    %6 = vector.broadcast %cst_5 : f32 to vector<1922x64xf32>
    %7 = arith.maximumf %5, %6 : vector<1922x64xf32>
    %c0_6 = arith.constant 0 : index
    %c0_7 = arith.constant 0 : index
    %8 = vector.load %arg3[%c0_6, %c0_7] : memref<1922x64xf32, #tpu.memory_space<vmem>>, vector<1922x64xf32>
    tpu.vector_store %arg3[%c0_6, %c0_7], %7 {strides = array<i32>} : memref<1922x64xf32, #tpu.memory_space<vmem>>, vector<1922x64xf32>,
    return
  }
}

module attributes {stable_mosaic.version = 11 : i64} {
  func.func @_dense_kernel(%arg0: memref<392x1600xf32, #tpu.memory_space<vmem>>, %arg1: memref<1600x128xf32, #tpu.memory_space<vmem>>, %arg2: memref<1x128xf32, #tpu.memory_space<vmem>>, %arg3: memref<392x128xf32, #tpu.memory_space<vmem>>) attributes {dimension_semantics = [], scalar_prefetch = 0 : i64, scratch_operands = 0 : i64, tpu.core_type = #tpu.core_type<tc>} {
    %c0 = arith.constant 0 : index
    %c0_0 = arith.constant 0 : index
    %0 = vector.load %arg0[%c0, %c0_0] : memref<392x1600xf32, #tpu.memory_space<vmem>>, vector<392x1600xf32>
    %c0_1 = arith.constant 0 : index
    %c0_2 = arith.constant 0 : index
    %1 = vector.load %arg1[%c0_1, %c0_2] : memref<1600x128xf32, #tpu.memory_space<vmem>>, vector<1600x128xf32>
    %cst = arith.constant dense<0.000000e+00> : vector<392x128xf32>
    %2 = tpu.matmul %0, %1, %cst {dimension_numbers = #tpu.dot_dimension_numbers<[1], [0], [0], [1], [0, 0, 1, 1], [], []>} : vector<392x1600xf32>, vector<1600x128xf32>, vector<392x128xf32> -> vector<392x128xf32>
    %c0_3 = arith.constant 0 : index
    %c0_4 = arith.constant 0 : index
    %3 = vector.load %arg2[%c0_3, %c0_4] : memref<1x128xf32, #tpu.memory_space<vmem>>, vector<1x128xf32>
    %4 = vector.broadcast %3 : vector<1x128xf32> to vector<392x128xf32>
    %5 = arith.addf %2, %4 : vector<392x128xf32>
    %cst_5 = arith.constant 0.000000e+00 : f32
    %6 = vector.broadcast %cst_5 : f32 to vector<392x128xf32>
    %7 = arith.maximumf %5, %6 : vector<392x128xf32>
    %c0_6 = arith.constant 0 : index
    %c0_7 = arith.constant 0 : index
    %8 = vector.load %arg3[%c0_6, %c0_7] : memref<392x128xf32, #tpu.memory_space<vmem>>, vector<392x128xf32>
    tpu.vector_store %arg3[%c0_6, %c0_7], %7 {strides = array<i32>} : memref<392x128xf32, #tpu.memory_space<vmem>>, vector<392x128xf32>,
    return
  }
}

module attributes {stable_mosaic.version = 11 : i64} {
  func.func @_tail_kernel(%arg0: i32, %arg1: memref<2x6272xf32, #tpu.memory_space<vmem>>, %arg2: memref<6272x128xf32, #tpu.memory_space<vmem>>, %arg3: memref<1x128xf32, #tpu.memory_space<vmem>>, %arg4: memref<128x256xf32, #tpu.memory_space<vmem>>, %arg5: memref<1x256xf32, #tpu.memory_space<vmem>>, %arg6: memref<16x8xf32, #tpu.memory_space<vmem>>, %arg7: memref<8x128xf32, #tpu.memory_space<vmem>>, %arg8: memref<1x128xf32, #tpu.memory_space<vmem>>, %arg9: memref<128x128xf32, #tpu.memory_space<vmem>>, %arg10: memref<1x128xf32, #tpu.memory_space<vmem>>, %arg11: memref<128x128xf32, #tpu.memory_space<vmem>>, %arg12: memref<1x128xf32, #tpu.memory_space<vmem>>, %arg13: memref<128x256xf32, #tpu.memory_space<vmem>>, %arg14: memref<1x256xf32, #tpu.memory_space<vmem>>, %arg15: memref<1x1xf32, #tpu.memory_space<vmem>>, %arg16: memref<16x1xf32, #tpu.memory_space<vmem>>, %arg17: memref<2x128xf32, #tpu.memory_space<vmem>>) attributes {dimension_semantics = [#tpu.dimension_semantics<arbitrary>], iteration_bounds = array<i64: 4>, scalar_prefetch = 0 : i64, scratch_operands = 1 : i64, tpu.core_type = #tpu.core_type<tc>, window_params = [{transform_indices = @transform_0, window_bounds = array<i64: 2, 6272>}, {transform_indices = @transform_1, window_bounds = array<i64: 6272, 128>}, {pipeline_mode = #tpu.pipeline_mode<synchronous>, transform_indices = @transform_2, window_bounds = array<i64: 1, 128>}, {pipeline_mode = #tpu.pipeline_mode<synchronous>, transform_indices = @transform_3, window_bounds = array<i64: 128, 256>}, {pipeline_mode = #tpu.pipeline_mode<synchronous>, transform_indices = @transform_4, window_bounds = array<i64: 1, 256>}, {pipeline_mode = #tpu.pipeline_mode<synchronous>, transform_indices = @transform_5, window_bounds = array<i64: 16, 8>}, {pipeline_mode = #tpu.pipeline_mode<synchronous>, transform_indices = @transform_6, window_bounds = array<i64: 8, 128>}, {pipeline_mode = #tpu.pipeline_mode<synchronous>, transform_indices = @transform_7, window_bounds = array<i64: 1, 128>}, {pipeline_mode = #tpu.pipeline_mode<synchronous>, transform_indices = @transform_8, window_bounds = array<i64: 128, 128>}, {pipeline_mode = #tpu.pipeline_mode<synchronous>, transform_indices = @transform_9, window_bounds = array<i64: 1, 128>}, {pipeline_mode = #tpu.pipeline_mode<synchronous>, transform_indices = @transform_10, window_bounds = array<i64: 128, 128>}, {pipeline_mode = #tpu.pipeline_mode<synchronous>, transform_indices = @transform_11, window_bounds = array<i64: 1, 128>}, {pipeline_mode = #tpu.pipeline_mode<synchronous>, transform_indices = @transform_12, window_bounds = array<i64: 128, 256>}, {pipeline_mode = #tpu.pipeline_mode<synchronous>, transform_indices = @transform_13, window_bounds = array<i64: 1, 256>}, {pipeline_mode = #tpu.pipeline_mode<synchronous>, transform_indices = @transform_14, window_bounds = array<i64: 1, 1>}, {pipeline_mode = #tpu.pipeline_mode<synchronous>, transform_indices = @transform_15, window_bounds = array<i64: 16, 1>}]} {
    %c0_i32 = arith.constant 0 : i32
    %0 = arith.cmpi eq, %arg0, %c0_i32 : i32
    %1 = arith.extui %0 : i1 to i32
    %c0_i32_0 = arith.constant 0 : i32
    %2 = arith.cmpi ne, %1, %c0_i32_0 : i32
    scf.if %2 {
      %cst_9 = arith.constant 0.000000e+00 : f32
      %12 = vector.broadcast %cst_9 : f32 to vector<2x128xf32>
      %c0_10 = arith.constant 0 : index
      %c0_11 = arith.constant 0 : index
      %13 = vector.load %arg17[%c0_10, %c0_11] : memref<2x128xf32, #tpu.memory_space<vmem>>, vector<2x128xf32>
      tpu.vector_store %arg17[%c0_10, %c0_11], %12 {strides = array<i32>} : memref<2x128xf32, #tpu.memory_space<vmem>>, vector<2x128xf32>,
    } else {
    }
    %c0 = arith.constant 0 : index
    %c0_1 = arith.constant 0 : index
    %3 = vector.load %arg17[%c0, %c0_1] : memref<2x128xf32, #tpu.memory_space<vmem>>, vector<2x128xf32>
    %c0_2 = arith.constant 0 : index
    %c0_3 = arith.constant 0 : index
    %4 = vector.load %arg1[%c0_2, %c0_3] : memref<2x6272xf32, #tpu.memory_space<vmem>>, vector<2x6272xf32>
    %c0_4 = arith.constant 0 : index
    %c0_5 = arith.constant 0 : index
    %5 = vector.load %arg2[%c0_4, %c0_5] : memref<6272x128xf32, #tpu.memory_space<vmem>>, vector<6272x128xf32>
    %cst = arith.constant dense<0.000000e+00> : vector<2x128xf32>
    %6 = tpu.matmul %4, %5, %cst {dimension_numbers = #tpu.dot_dimension_numbers<[1], [0], [0], [1], [0, 0, 1, 1], [], []>} : vector<2x6272xf32>, vector<6272x128xf32>, vector<2x128xf32> -> vector<2x128xf32>
    %7 = arith.addf %3, %6 : vector<2x128xf32>
    %c0_6 = arith.constant 0 : index
    %c0_7 = arith.constant 0 : index
    %8 = vector.load %arg17[%c0_6, %c0_7] : memref<2x128xf32, #tpu.memory_space<vmem>>, vector<2x128xf32>
    tpu.vector_store %arg17[%c0_6, %c0_7], %7 {strides = array<i32>} : memref<2x128xf32, #tpu.memory_space<vmem>>, vector<2x128xf32>,
    %c3_i32 = arith.constant 3 : i32
    %9 = arith.cmpi eq, %arg0, %c3_i32 : i32
    %10 = arith.extui %9 : i1 to i32
    %c0_i32_8 = arith.constant 0 : i32
    %11 = arith.cmpi ne, %10, %c0_i32_8 : i32
    scf.if %11 {
      %c0_9 = arith.constant 0 : index
      %c0_10 = arith.constant 0 : index
      %12 = vector.load %arg17[%c0_9, %c0_10] : memref<2x128xf32, #tpu.memory_space<vmem>>, vector<2x128xf32>
      %c0_11 = arith.constant 0 : index
      %c0_12 = arith.constant 0 : index
      %13 = vector.load %arg3[%c0_11, %c0_12] : memref<1x128xf32, #tpu.memory_space<vmem>>, vector<1x128xf32>
      %14 = vector.broadcast %13 : vector<1x128xf32> to vector<2x128xf32>
      %15 = arith.addf %12, %14 : vector<2x128xf32>
      %cst_13 = arith.constant 0.000000e+00 : f32
      %16 = vector.broadcast %cst_13 : f32 to vector<2x128xf32>
      %17 = arith.maximumf %15, %16 : vector<2x128xf32>
      %c0_14 = arith.constant 0 : index
      %c0_15 = arith.constant 0 : index
      %18 = vector.load %arg4[%c0_14, %c0_15] : memref<128x256xf32, #tpu.memory_space<vmem>>, vector<128x256xf32>
      %cst_16 = arith.constant dense<0.000000e+00> : vector<2x256xf32>
      %19 = tpu.matmul %17, %18, %cst_16 {dimension_numbers = #tpu.dot_dimension_numbers<[1], [0], [0], [1], [0, 0, 1, 1], [], []>} : vector<2x128xf32>, vector<128x256xf32>, vector<2x256xf32> -> vector<2x256xf32>
      %c0_17 = arith.constant 0 : index
      %c0_18 = arith.constant 0 : index
      %20 = vector.load %arg5[%c0_17, %c0_18] : memref<1x256xf32, #tpu.memory_space<vmem>>, vector<1x256xf32>
      %21 = vector.broadcast %20 : vector<1x256xf32> to vector<2x256xf32>
      %22 = arith.addf %19, %21 : vector<2x256xf32>
      %c0_19 = arith.constant 0 : index
      %c0_20 = arith.constant 0 : index
      %23 = vector.load %arg6[%c0_19, %c0_20] : memref<16x8xf32, #tpu.memory_space<vmem>>, vector<16x8xf32>
      %c0_21 = arith.constant 0 : index
      %c0_22 = arith.constant 0 : index
      %24 = vector.load %arg7[%c0_21, %c0_22] : memref<8x128xf32, #tpu.memory_space<vmem>>, vector<8x128xf32>
      %cst_23 = arith.constant dense<0.000000e+00> : vector<16x128xf32>
      %25 = tpu.matmul %23, %24, %cst_23 {dimension_numbers = #tpu.dot_dimension_numbers<[1], [0], [0], [1], [0, 0, 1, 1], [], []>} : vector<16x8xf32>, vector<8x128xf32>, vector<16x128xf32> -> vector<16x128xf32>
      %c0_24 = arith.constant 0 : index
      %c0_25 = arith.constant 0 : index
      %26 = vector.load %arg8[%c0_24, %c0_25] : memref<1x128xf32, #tpu.memory_space<vmem>>, vector<1x128xf32>
      %27 = vector.broadcast %26 : vector<1x128xf32> to vector<16x128xf32>
      %28 = arith.addf %25, %27 : vector<16x128xf32>
      %cst_26 = arith.constant 0.000000e+00 : f32
      %29 = vector.broadcast %cst_26 : f32 to vector<16x128xf32>
      %30 = arith.maximumf %28, %29 : vector<16x128xf32>
      %c0_27 = arith.constant 0 : index
      %c0_28 = arith.constant 0 : index
      %31 = vector.load %arg9[%c0_27, %c0_28] : memref<128x128xf32, #tpu.memory_space<vmem>>, vector<128x128xf32>
      %cst_29 = arith.constant dense<0.000000e+00> : vector<16x128xf32>
      %32 = tpu.matmul %30, %31, %cst_29 {dimension_numbers = #tpu.dot_dimension_numbers<[1], [0], [0], [1], [0, 0, 1, 1], [], []>} : vector<16x128xf32>, vector<128x128xf32>, vector<16x128xf32> -> vector<16x128xf32>
      %c0_30 = arith.constant 0 : index
      %c0_31 = arith.constant 0 : index
      %33 = vector.load %arg10[%c0_30, %c0_31] : memref<1x128xf32, #tpu.memory_space<vmem>>, vector<1x128xf32>
      %34 = vector.broadcast %33 : vector<1x128xf32> to vector<16x128xf32>
      %35 = arith.addf %32, %34 : vector<16x128xf32>
      %cst_32 = arith.constant 0.000000e+00 : f32
      %36 = vector.broadcast %cst_32 : f32 to vector<16x128xf32>
      %37 = arith.maximumf %35, %36 : vector<16x128xf32>
      %c0_33 = arith.constant 0 : index
      %c0_34 = arith.constant 0 : index
      %38 = vector.load %arg11[%c0_33, %c0_34] : memref<128x128xf32, #tpu.memory_space<vmem>>, vector<128x128xf32>
      %cst_35 = arith.constant dense<0.000000e+00> : vector<16x128xf32>
      %39 = tpu.matmul %37, %38, %cst_35 {dimension_numbers = #tpu.dot_dimension_numbers<[1], [0], [0], [1], [0, 0, 1, 1], [], []>} : vector<16x128xf32>, vector<128x128xf32>, vector<16x128xf32> -> vector<16x128xf32>
      %c0_36 = arith.constant 0 : index
      %c0_37 = arith.constant 0 : index
      %40 = vector.load %arg12[%c0_36, %c0_37] : memref<1x128xf32, #tpu.memory_space<vmem>>, vector<1x128xf32>
      %41 = vector.broadcast %40 : vector<1x128xf32> to vector<16x128xf32>
      %42 = arith.addf %39, %41 : vector<16x128xf32>
      %cst_38 = arith.constant 0.000000e+00 : f32
      %43 = vector.broadcast %cst_38 : f32 to vector<16x128xf32>
      %44 = arith.maximumf %42, %43 : vector<16x128xf32>
      %c0_39 = arith.constant 0 : index
      %c0_40 = arith.constant 0 : index
      %45 = vector.load %arg13[%c0_39, %c0_40] : memref<128x256xf32, #tpu.memory_space<vmem>>, vector<128x256xf32>
      %cst_41 = arith.constant dense<0.000000e+00> : vector<16x256xf32>
      %46 = tpu.matmul %44, %45, %cst_41 {dimension_numbers = #tpu.dot_dimension_numbers<[1], [0], [0], [1], [0, 0, 1, 1], [], []>} : vector<16x128xf32>, vector<128x256xf32>, vector<16x256xf32> -> vector<16x256xf32>
      %c0_42 = arith.constant 0 : index
      %c0_43 = arith.constant 0 : index
      %47 = vector.load %arg14[%c0_42, %c0_43] : memref<1x256xf32, #tpu.memory_space<vmem>>, vector<1x256xf32>
      %48 = vector.broadcast %47 : vector<1x256xf32> to vector<16x256xf32>
      %49 = arith.addf %46, %48 : vector<16x256xf32>
      %50 = vector.extract_strided_slice %49 {offsets = [0, 0], sizes = [8, 256], strides = [1, 1]} : vector<16x256xf32> to vector<8x256xf32>
      %51 = vector.extract_strided_slice %22 {offsets = [0, 0], sizes = [1, 256], strides = [1, 1]} : vector<2x256xf32> to vector<1x256xf32>
      %52 = vector.broadcast %51 : vector<1x256xf32> to vector<8x256xf32>
      %53 = arith.mulf %50, %52 : vector<8x256xf32>
      %cst_44 = arith.constant dense<0.000000e+00> : vector<8xf32>
      %54 = vector.multi_reduction <add>, %53, %cst_44 [1] : vector<8x256xf32> to vector<8xf32>
      %55 = vector.shape_cast %54 : vector<8xf32> to vector<8x1xf32>
      %c0_45 = arith.constant 0 : index
      %c0_46 = arith.constant 0 : index
      %56 = vector.load %arg15[%c0_45, %c0_46] : memref<1x1xf32, #tpu.memory_space<vmem>>, vector<1x1xf32>
      %57 = vector.broadcast %56 : vector<1x1xf32> to vector<8x1xf32>
      %58 = arith.addf %55, %57 : vector<8x1xf32>
      %c0_47 = arith.constant 0 : index
      %c0_48 = arith.constant 0 : index
      %59 = vector.load %arg16[%c0_47, %c0_48] : memref<16x1xf32, #tpu.memory_space<vmem>>, vector<8x1xf32>
      tpu.vector_store %arg16[%c0_47, %c0_48], %58 {strides = array<i32>} : memref<16x1xf32, #tpu.memory_space<vmem>>, vector<8x1xf32>,
      %60 = vector.extract_strided_slice %49 {offsets = [8, 0], sizes = [8, 256], strides = [1, 1]} : vector<16x256xf32> to vector<8x256xf32>
      %61 = vector.extract_strided_slice %22 {offsets = [1, 0], sizes = [1, 256], strides = [1, 1]} : vector<2x256xf32> to vector<1x256xf32>
      %62 = vector.broadcast %61 : vector<1x256xf32> to vector<8x256xf32>
      %63 = arith.mulf %60, %62 : vector<8x256xf32>
      %cst_49 = arith.constant dense<0.000000e+00> : vector<8xf32>
      %64 = vector.multi_reduction <add>, %63, %cst_49 [1] : vector<8x256xf32> to vector<8xf32>
      %65 = vector.shape_cast %64 : vector<8xf32> to vector<8x1xf32>
      %c0_50 = arith.constant 0 : index
      %c0_51 = arith.constant 0 : index
      %66 = vector.load %arg15[%c0_50, %c0_51] : memref<1x1xf32, #tpu.memory_space<vmem>>, vector<1x1xf32>
      %67 = vector.broadcast %66 : vector<1x1xf32> to vector<8x1xf32>
      %68 = arith.addf %65, %67 : vector<8x1xf32>
      %c8 = arith.constant 8 : index
      %c0_52 = arith.constant 0 : index
      %69 = vector.load %arg16[%c8, %c0_52] : memref<16x1xf32, #tpu.memory_space<vmem>>, vector<8x1xf32>
      tpu.vector_store %arg16[%c8, %c0_52], %68 {strides = array<i32>} : memref<16x1xf32, #tpu.memory_space<vmem>>, vector<8x1xf32>,
    } else {
    }
    return
  }
  func.func @transform_0(%arg0: i32) -> (i32, i32) {
    %c0_i32 = arith.constant 0 : i32
    %c0_i32_0 = arith.constant 0 : i32
    return %c0_i32, %arg0 : i32, i32
  }
  func.func @transform_1(%arg0: i32) -> (i32, i32) {
    %c0_i32 = arith.constant 0 : i32
    %c0_i32_0 = arith.constant 0 : i32
    return %arg0, %c0_i32 : i32, i32
  }
  func.func @transform_2(%arg0: i32) -> (i32, i32) {
    %c0_i32 = arith.constant 0 : i32
    %c0_i32_0 = arith.constant 0 : i32
    %c0_i32_1 = arith.constant 0 : i32
    return %c0_i32, %c0_i32_0 : i32, i32
  }
  func.func @transform_3(%arg0: i32) -> (i32, i32) {
    %c0_i32 = arith.constant 0 : i32
    %c0_i32_0 = arith.constant 0 : i32
    %c0_i32_1 = arith.constant 0 : i32
    return %c0_i32, %c0_i32_0 : i32, i32
  }
  func.func @transform_4(%arg0: i32) -> (i32, i32) {
    %c0_i32 = arith.constant 0 : i32
    %c0_i32_0 = arith.constant 0 : i32
    %c0_i32_1 = arith.constant 0 : i32
    return %c0_i32, %c0_i32_0 : i32, i32
  }
  func.func @transform_5(%arg0: i32) -> (i32, i32) {
    %c0_i32 = arith.constant 0 : i32
    %c0_i32_0 = arith.constant 0 : i32
    %c0_i32_1 = arith.constant 0 : i32
    return %c0_i32, %c0_i32_0 : i32, i32
  }
  func.func @transform_6(%arg0: i32) -> (i32, i32) {
    %c0_i32 = arith.constant 0 : i32
    %c0_i32_0 = arith.constant 0 : i32
    %c0_i32_1 = arith.constant 0 : i32
    return %c0_i32, %c0_i32_0 : i32, i32
  }
  func.func @transform_7(%arg0: i32) -> (i32, i32) {
    %c0_i32 = arith.constant 0 : i32
    %c0_i32_0 = arith.constant 0 : i32
    %c0_i32_1 = arith.constant 0 : i32
    return %c0_i32, %c0_i32_0 : i32, i32
  }
  func.func @transform_8(%arg0: i32) -> (i32, i32) {
    %c0_i32 = arith.constant 0 : i32
    %c0_i32_0 = arith.constant 0 : i32
    %c0_i32_1 = arith.constant 0 : i32
    return %c0_i32, %c0_i32_0 : i32, i32
  }
  func.func @transform_9(%arg0: i32) -> (i32, i32) {
    %c0_i32 = arith.constant 0 : i32
    %c0_i32_0 = arith.constant 0 : i32
    %c0_i32_1 = arith.constant 0 : i32
    return %c0_i32, %c0_i32_0 : i32, i32
  }
  func.func @transform_10(%arg0: i32) -> (i32, i32) {
    %c0_i32 = arith.constant 0 : i32
    %c0_i32_0 = arith.constant 0 : i32
    %c0_i32_1 = arith.constant 0 : i32
    return %c0_i32, %c0_i32_0 : i32, i32
  }
  func.func @transform_11(%arg0: i32) -> (i32, i32) {
    %c0_i32 = arith.constant 0 : i32
    %c0_i32_0 = arith.constant 0 : i32
    %c0_i32_1 = arith.constant 0 : i32
    return %c0_i32, %c0_i32_0 : i32, i32
  }
  func.func @transform_12(%arg0: i32) -> (i32, i32) {
    %c0_i32 = arith.constant 0 : i32
    %c0_i32_0 = arith.constant 0 : i32
    %c0_i32_1 = arith.constant 0 : i32
    return %c0_i32, %c0_i32_0 : i32, i32
  }
  func.func @transform_13(%arg0: i32) -> (i32, i32) {
    %c0_i32 = arith.constant 0 : i32
    %c0_i32_0 = arith.constant 0 : i32
    %c0_i32_1 = arith.constant 0 : i32
    return %c0_i32, %c0_i32_0 : i32, i32
  }
  func.func @transform_14(%arg0: i32) -> (i32, i32) {
    %c0_i32 = arith.constant 0 : i32
    %c0_i32_0 = arith.constant 0 : i32
    %c0_i32_1 = arith.constant 0 : i32
    return %c0_i32, %c0_i32_0 : i32, i32
  }
  func.func @transform_15(%arg0: i32) -> (i32, i32) {
    %c0_i32 = arith.constant 0 : i32
    %c0_i32_0 = arith.constant 0 : i32
    %c0_i32_1 = arith.constant 0 : i32
    return %c0_i32, %c0_i32_0 : i32, i32
  }
}

</mosaic_0001>

<bundles_post_ra>
// kernel: deeponet_forward.4
= control target key start
LH: loop header
LB: loop body
LE: loop exit
PB: predicated region body
PF: predicated region fallthrough
CT: control target
= control target key end

     0   :  { %8 = vsyncpa [#allocation3], 0  ;;  %s2110_s0 = inlined_call_operand.hbm [shape: f32[2,16], index: 0, kind: input, shape index: {}]   ;;  %s2111_s1 = inlined_call_operand.hbm [shape: f32[16,4225], index: 1, kind: input, shape index: {}]   ;;  %s2112_s2 = inlined_call_operand.hbm [shape: f32[1,4225], index: 2, kind: input, shape index: {}]   ;;  %s2113_s3 = inlined_call_operand.vmem [shape: f32[2,4225], index: 3, kind: output, shape index: {}]  }
   0x1   :  { %9 = vsyncpa [#allocation5], 0  ;;  %s1878_s12 = smov [#allocation4]   ;;  %s1808_s16 = scalar_lea.hbm %s2111_s1, 8704 }
   0x2   :  { %s25_s13 = sshll.u32 %s1878_s12, 4  ;;  %p1809_p0 = scmp.ne.s32.totalorder %s2111_s1, %s1808_s16  ;;  %s26_s13 = int_to_ptr.vmem [resolvable:$true] %s25_s13 }
   0x3   :  { %p1812_p1 = scmp.lt.u32.totalorder %s1808_s16, %s2111_s1 }
   0x5   :  { %p1814_p2 = pnand %p1812_p1, %p1809_p0 }
   0x7   :  { %1817 = shalt.err (!%p1814_p2)
}
   0x8   :  { %s1818_s21 = scalar_lea.vmem %s26_s13, 8704  ;;  %p1823_p4 = scmp.lt.s32.totalorder %s26_s13, %s26_s13 }
   0x9   :  { %p1819_p3 = scmp.ne.s32.totalorder %s26_s13, %s1818_s21  ;;  %p1824_p5 = scmp.lt.s32.totalorder %s1818_s21, %s1818_s21 }
   0xb   :  { %p1825_p6 = por %p1824_p5, %p1823_p4 }
   0xd   :  { %p1826_p7 = pnand %p1825_p6, %p1819_p3 }
   0xf   :  { %1829 = shalt.err (!%p1826_p7)
}
  0x10   :  { %s1879_s22 = smov 4352   ;;  %s1880_s23 = smov 272  }
  0x11   :  { %31 = dma.hbm_to_vmem [thread:$0]  %s2111_s1, 8704, %s26_s13, [#allocation5], %s1879_s22, %s1879_s22, %s1880_s23  }
  0x12   :  { %s1881_s26 = smov [#allocation2]   ;;  %s1882_s28 = smov [#allocation6]  }
  0x13   :  { %s16_s27 = sshll.u32 %s1881_s26, 4  ;;  %s38_s29 = sshll.u32 %s1882_s28, 4  ;;  %s17_s27 = int_to_ptr.vmem [resolvable:$true] %s16_s27  ;;  %s39_s29 = int_to_ptr.vmem [resolvable:$true] %s38_s29 }
  0x14   :  { %s1830_s5 = scalar_lea.hbm %s2110_s0, 32 }
  0x15   :  { %p1831_p8 = scmp.ne.s32.totalorder %s2110_s0, %s1830_s5  ;;  %p1834_p9 = scmp.lt.u32.totalorder %s1830_s5, %s2110_s0 }
  0x17   :  { %p1836_p10 = pnand %p1834_p9, %p1831_p8 }
  0x19   :  { %1839 = shalt.err (!%p1836_p10)
}
  0x1a   :  { %s1840_s1 = scalar_lea.vmem %s17_s27, 32  ;;  %p1845_p12 = scmp.lt.s32.totalorder %s17_s27, %s17_s27 }
  0x1b   :  { %p1841_p11 = scmp.ne.s32.totalorder %s17_s27, %s1840_s1  ;;  %p1846_p13 = scmp.lt.s32.totalorder %s1840_s1, %s1840_s1 }
  0x1d   :  { %p1847_p0 = por %p1846_p13, %p1845_p12 }
  0x1f   :  { %p1848_p1 = pnand %p1847_p0, %p1841_p11 }
  0x21   :  { %1851 = shalt.err (!%p1848_p1)
}
  0x22   :  { %19 = dma.hbm_to_vmem [thread:$0]  %s2110_s0, 32, %s17_s27, [#allocation3]  }
  0x23   :  { %s1852_s14 = scalar_lea.hbm %s2112_s2, 544 }
  0x24   :  { %p1853_p2 = scmp.ne.s32.totalorder %s2112_s2, %s1852_s14  ;;  %p1856_p3 = scmp.lt.u32.totalorder %s1852_s14, %s2112_s2 }
  0x26   :  { %p1858_p4 = pnand %p1856_p3, %p1853_p2 }
  0x28   :  { %1861 = shalt.err (!%p1858_p4)
}
  0x29   :  { %s1862_s19 = scalar_lea.vmem %s39_s29, 544  ;;  %p1867_p6 = scmp.lt.s32.totalorder %s39_s29, %s39_s29 }
  0x2a   :  { %p1863_p5 = scmp.ne.s32.totalorder %s39_s29, %s1862_s19  ;;  %p1868_p7 = scmp.lt.s32.totalorder %s1862_s19, %s1862_s19 }
  0x2c   :  { %p1869_p8 = por %p1868_p7, %p1867_p6 }
  0x2e   :  { %p1870_p9 = pnand %p1869_p8, %p1863_p5 }
  0x30   :  { %1873 = shalt.err (!%p1870_p9)
}
  0x31   :  { %41 = dma.hbm_to_vmem [thread:$0]  %s2112_s2, 544, %s39_s29, [#allocation5]  }
  0x32   :  { %1874 = dma.done.wait [#allocation3], 32  }
  0x33   :  { %1875 = vsyncadd [#allocation3], 4294967264 }
  0x34   :  { %1876 = dma.done.wait [#allocation5], 9248  }
  0x35   :  { %1877 = vsyncadd [#allocation5], 4294958048  ;;  %v1883_v0 = vmov 0.0   ;;  %v53_v1 = vld [vmem:[#allocation4 + $0x8] sm:$0xff]  ;;  %v87_v2 = vld [vmem:[#allocation4 + $0x118] sm:$0xff]  ;;  %vm300_vm0 = vcmask 130048  }
  0x36   :  { %368 = vmatprep.mubr.f32.mxu0 %v1883_v0  ;;  %439 = vmatprep.mubr.f32.mxu1 %v1883_v0  ;;  %v55_v3 = vld [vmem:[#allocation4 + $0x18] sm:$0xff]  ;;  %v1733_v4 = vpack.c.bf16 %v87_v2, %v53_v1  ;;  %v89_v5 = vld [vmem:[#allocation4 + $0x128] sm:$0xff]  ;;  %v52_v6 = vld [vmem:[#allocation4] sm:$0xff]  ;;  %vm1706_vm1 = vcmask 1041408   ;;  %vm1707_vm2 = vcmask 3074  }
  0x37   :  { %v86_v7 = vld [vmem:[#allocation4 + $0x110] sm:$0xff]  ;;  %v1737_v8 = vpack.c.bf16 %v89_v5, %v55_v3  ;;  %v88_v11 = vld [vmem:[#allocation4 + $0x120] sm:$0xff]  ;;  %v1943_v12 = vld [vmem:[#allocation2] sm:$0x3] }
  0x38   :  { %v1735_v9 = vpack.c.bf16 %v86_v7, %v52_v6  ;;  %v54_v10 = vld [vmem:[#allocation4 + $0x10] sm:$0xff]  ;;  %1734 = vmatprep.subr.bf16.mxu0 %v1733_v4  ;;  %v57_v14 = vld [vmem:[#allocation4 + $0x28] sm:$0xff]  ;;  %v91_v15 = vld [vmem:[#allocation4 + $0x138] sm:$0xff] }
  0x39   :  { %v1739_v13 = vpack.c.bf16 %v88_v11, %v54_v10  ;;  %v59_v16 = vld [vmem:[#allocation4 + $0x38] sm:$0xff]  ;;  %1738 = vmatprep.subr.bf16.mxu1 %v1737_v8  ;;  %v1741_v17 = vpack.c.bf16 %v91_v15, %v57_v14  ;;  %v93_v18 = vld [vmem:[#allocation4 + $0x148] sm:$0xff]  ;;  %v56_v19 = vld [vmem:[#allocation4 + $0x20] sm:$0xff] }
  0x3a   :  { %1736 = vmatpush1.bf16.msra.mxu0 %v1735_v9  ;;  %v90_v20 = vld [vmem:[#allocation4 + $0x130] sm:$0xff]  ;;  %v1745_v21 = vpack.c.bf16 %v93_v18, %v59_v16  ;;  %v92_v24 = vld [vmem:[#allocation4 + $0x140] sm:$0xff]  ;;  %v61_v25 = vld [vmem:[#allocation4 + $0x48] sm:$0xff] }
  0x3b   :  { %1740 = vmatpush1.bf16.msra.mxu1 %v1739_v13  ;;  %v1743_v22 = vpack.c.bf16 %v90_v20, %v56_v19  ;;  %v58_v23 = vld [vmem:[#allocation4 + $0x30] sm:$0xff]  ;;  %1742 = vmatprep.subr.bf16.mxu0 %v1741_v17  ;;  %v95_v27 = vld [vmem:[#allocation4 + $0x158] sm:$0xff]  ;;  %v97_v29 = vld [vmem:[#allocation4 + $0x168] sm:$0xff] }
  0x3c   :  { %v1747_v26 = vpack.c.bf16 %v92_v24, %v58_v23  ;;  %v63_v28 = vld [vmem:[#allocation4 + $0x58] sm:$0xff]  ;;  %1746 = vmatprep.subr.bf16.mxu1 %v1745_v21  ;;  %v1749_v30 = vpack.c.bf16 %v95_v27, %v61_v25  ;;  %v60_v32 = vld [vmem:[#allocation4 + $0x40] sm:$0xff]  ;;  %v94_v33 = vld [vmem:[#allocation4 + $0x150] sm:$0xff] }
  0x3d   :  { %1716 = vmatmul.mubr.msk.f32.vlgmr.msra.gmra.mrb[0].mxu0 %vm300_vm0, %v1943_v12  ;;  %v1753_v31 = vpack.c.bf16 %v97_v29, %v63_v28  ;;  %v62_v34 = vld [vmem:[#allocation4 + $0x50] sm:$0xff]  ;;  %v1751_v35 = vpack.c.bf16 %v94_v33, %v60_v32  ;;  %v96_v36 = vld [vmem:[#allocation4 + $0x160] sm:$0xff]  ;;  %v65_v37 = vld [vmem:[#allocation4 + $0x68] sm:$0xff] }
  0x3e   :  { %1717 = vmatmul.mubr.msk.f32.vlgmr.msra.gmra.mrb[0].mxu1 %vm300_vm0, %v1943_v12  ;;  %1744 = vmatpush1.bf16.msra.mxu0 %v1743_v22  ;;  %v99_v38 = vld [vmem:[#allocation4 + $0x178] sm:$0xff]  ;;  %v1755_v39 = vpack.c.bf16 %v96_v36, %v62_v34  ;;  %v101_v41 = vld [vmem:[#allocation4 + $0x188] sm:$0xff]  ;;  %v64_v42 = vld [vmem:[#allocation4 + $0x60] sm:$0xff] }
  0x3f   :  { %1748 = vmatpush1.bf16.msra.mxu1 %v1747_v26  ;;  %510 = vmatprep.mubr.f32.mxu0 %v1883_v0  ;;  %v67_v40 = vld [vmem:[#allocation4 + $0x78] sm:$0xff]  ;;  %v1757_v43 = vpack.c.bf16 %v99_v38, %v65_v37  ;;  %v98_v44 = vld [vmem:[#allocation4 + $0x170] sm:$0xff]  ;;  %v100_v46 = vld [vmem:[#allocation4 + $0x180] sm:$0xff] }
  0x40   :  { %581 = vmatprep.mubr.f32.mxu1 %v1883_v0  ;;  %1750 = vmatprep.subr.bf16.mxu0 %v1749_v30  ;;  %v66_v45 = vld [vmem:[#allocation4 + $0x70] sm:$0xff]  ;;  %v1761_v47 = vpack.c.bf16 %v101_v41, %v67_v40  ;;  %v69_v48 = vld [vmem:[#allocation4 + $0x88] sm:$0xff]  ;;  %v103_v49 = vld [vmem:[#allocation4 + $0x198] sm:$0xff]  ;;  %v1759_v50 = vpack.c.bf16 %v98_v44, %v64_v42  ;;  %v130_v42 = vlaneseq }
  0x41   :  { %1718 = vmatmul.mubr.msk.f32.vlgmr.msra.gmra.mrb[2].mxu0 %vm300_vm0, %v1943_v12  ;;  %1754 = vmatprep.subr.bf16.mxu1 %v1753_v31  ;;  %v71_v51 = vld [vmem:[#allocation4 + $0x98] sm:$0xff]  ;;  %v105_v52 = vld [vmem:[#allocation4 + $0x1a8] sm:$0xff]  ;;  %v1763_v53 = vpack.c.bf16 %v100_v46, %v66_v45  ;;  %v68_v54 = vld [vmem:[#allocation4 + $0x80] sm:$0xff]  ;;  %v1765_v56 = vpack.c.bf16 %v103_v49, %v69_v48  ;;  %v1884_v45 = vmov 1983009808  }
  0x42   :  { %1719 = vmatmul.mubr.msk.f32.vlgmr.msra.gmra.mrb[2].mxu1 %vm300_vm0, %v1943_v12  ;;  %1752 = vmatpush1.bf16.msra.mxu0 %v1751_v35  ;;  %v102_v55 = vld [vmem:[#allocation4 + $0x190] sm:$0xff]  ;;  %v104_v58 = vld [vmem:[#allocation4 + $0x1a0] sm:$0xff]  ;;  %v1769_v59 = vpack.c.bf16 %v105_v52, %v71_v51  ;;  %v73_v60 = vld [vmem:[#allocation4 + $0xa8] sm:$0xff]  ;;  %v1548_v46 = vunpack.c.l.s4 %v1884_v45 }
  0x43   :  { %1756 = vmatpush1.bf16.msra.mxu1 %v1755_v39  ;;  %652 = vmatprep.mubr.f32.mxu0 %v1883_v0  ;;  %v70_v57 = vld [vmem:[#allocation4 + $0x90] sm:$0xff]  ;;  %v107_v61 = vld [vmem:[#allocation4 + $0x1b8] sm:$0xff]  ;;  %v1767_v62 = vpack.c.bf16 %v102_v55, %v68_v54  ;;  %v109_v1 = vld [vmem:[#allocation4 + $0x1c8] sm:$0xff] }
  0x44   :  { %723 = vmatprep.mubr.f32.mxu1 %v1883_v0  ;;  %1758 = vmatprep.subr.bf16.mxu0 %v1757_v43  ;;  %v75_v63 = vld [vmem:[#allocation4 + $0xb8] sm:$0xff]  ;;  %v1771_v2 = vpack.c.bf16 %v104_v58, %v70_v57  ;;  %v72_v3 = vld [vmem:[#allocation4 + $0xa0] sm:$0xff]  ;;  %v106_v4 = vld [vmem:[#allocation4 + $0x1b0] sm:$0xff]  ;;  %v1773_v5 = vpack.c.bf16 %v107_v61, %v73_v60  ;;  %v131_v43 = vshrl.u32 %v130_v42, 7  ;;  %v1549_v52 = vunpack.c.0.s8 %v1548_v46 }
  0x45   :  { %1720 = vmatmul.mubr.msk.f32.vlgmr.msra.gmra.mrb[4].mxu0 %vm300_vm0, %v1943_v12  ;;  %1762 = vmatprep.subr.bf16.mxu1 %v1761_v47  ;;  %v74_v6 = vld [vmem:[#allocation4 + $0xb0] sm:$0xff]  ;;  %v108_v7 = vld [vmem:[#allocation4 + $0x1c0] sm:$0xff]  ;;  %v1777_v8 = vpack.c.bf16 %v109_v1, %v75_v63  ;;  %v77_v9 = vld [vmem:[#allocation4 + $0xc8] sm:$0xff]  ;;  %v1775_v11 = vpack.c.bf16 %v106_v4, %v72_v3 }
  0x46   :  { %1721 = vmatmul.mubr.msk.f32.vlgmr.msra.gmra.mrb[4].mxu1 %vm300_vm0, %v1943_v12  ;;  %1760 = vmatpush1.bf16.msra.mxu0 %v1759_v50  ;;  %v111_v10 = vld [vmem:[#allocation4 + $0x1d8] sm:$0xff]  ;;  %v113_v14 = vld [vmem:[#allocation4 + $0x1e8] sm:$0xff]  ;;  %v1779_v15 = vpack.c.bf16 %v108_v7, %v74_v6  ;;  %v76_v16 = vld [vmem:[#allocation4 + $0xc0] sm:$0xff]  ;;  %v1994_v44 = vsub.s32 0, %v131_v43  ;;  %v1996_v48 = vsub.s32 2, %v131_v43  ;;  %v1998_v49 = vsub.s32 1, %v131_v43 }
  0x47   :  { %1764 = vmatpush1.bf16.msra.mxu1 %v1763_v53  ;;  %794 = vmatprep.mubr.f32.mxu0 %v1883_v0  ;;  %v79_v13 = vld [vmem:[#allocation4 + $0xd8] sm:$0xff]  ;;  %v110_v17 = vld [vmem:[#allocation4 + $0x1d0] sm:$0xff]  ;;  %v1781_v18 = vpack.c.bf16 %v111_v10, %v77_v9  ;;  %v112_v20 = vld [vmem:[#allocation4 + $0x1e0] sm:$0xff]  ;;  %v2000_v50 = vsub.s32 3, %v131_v43  ;;  %v2007_v54 = vsub.s32 6, %v131_v43  ;;  %v2009_v55 = vsub.s32 5, %v131_v43 }
  0x48   :  { %865 = vmatprep.mubr.f32.mxu1 %v1883_v0  ;;  %1766 = vmatprep.subr.bf16.mxu0 %v1765_v56  ;;  %v78_v19 = vld [vmem:[#allocation4 + $0xd0] sm:$0xff]  ;;  %v1785_v21 = vpack.c.bf16 %v113_v14, %v79_v13  ;;  %v81_v22 = vld [vmem:[#allocation4 + $0xe8] sm:$0xff]  ;;  %v115_v23 = vld [vmem:[#allocation4 + $0x1f8] sm:$0xff]  ;;  %v1783_v24 = vpack.c.bf16 %v110_v17, %v76_v16  ;;  %v2012_v57 = vsub.s32 7, %v131_v43 }
  0x49   :  { %1722 = vmatmul.mubr.msk.f32.vlgmr.msra.gmra.mrb[6].mxu0 %vm300_vm0, %v1943_v12  ;;  %1770 = vmatprep.subr.bf16.mxu1 %v1769_v59  ;;  %v83_v25 = vld [vmem:[#allocation4 + $0xf8] sm:$0xff]  ;;  %v117_v26 = vld [vmem:[#allocation4 + $0x208] sm:$0xff]  ;;  %v1787_v27 = vpack.c.bf16 %v112_v20, %v78_v19  ;;  %v80_v28 = vld [vmem:[#allocation4 + $0xe0] sm:$0xff]  ;;  %v1789_v30 = vpack.c.bf16 %v115_v23, %v81_v22 }
  0x4a   :  { %1723 = vmatmul.mubr.msk.f32.vlgmr.msra.gmra.mrb[6].mxu1 %vm300_vm0, %v1943_v12  ;;  %1768 = vmatpush1.bf16.msra.mxu0 %v1767_v62  ;;  %v114_v29 = vld [vmem:[#allocation4 + $0x1f0] sm:$0xff]  ;;  %v116_v32 = vld [vmem:[#allocation4 + $0x200] sm:$0xff]  ;;  %v1793_v33 = vpack.c.bf16 %v117_v26, %v83_v25  ;;  %v85_v34 = vld [vmem:[#allocation4 + $0x108] sm:$0xff]  ;;  %v2014_v62 = vsub.s32 %v1549_v52, %v131_v43 }
  0x4b   :  { %1772 = vmatpush1.bf16.msra.mxu1 %v1771_v2  ;;  %936 = vmatprep.mubr.f32.mxu0 %v1883_v0  ;;  %v82_v31 = vld [vmem:[#allocation4 + $0xf0] sm:$0xff]  ;;  %v119_v35 = vld [vmem:[#allocation4 + $0x218] sm:$0xff]  ;;  %v1791_v36 = vpack.c.bf16 %v114_v29, %v80_v28  ;;  %v84_v38 = vld [vmem:[#allocation4 + $0x100] sm:$0xff] }
  0x4c   :  { %1007 = vmatprep.mubr.f32.mxu1 %v1883_v0  ;;  %1774 = vmatprep.subr.bf16.mxu0 %v1773_v5  ;;  %v1795_v37 = vpack.c.bf16 %v116_v32, %v82_v31  ;;  %v118_v39 = vld [vmem:[#allocation4 + $0x210] sm:$0xff]  ;;  %v1797_v40 = vpack.c.bf16 %v119_v35, %v85_v34  ;;  %v120_v47 = vld [vmem:[#allocation6] sm:$0xff]  ;;  %v121_v6 = vld [vmem:[#allocation6 + $0x8] sm:$0xff] }
  0x4d   :  { %1724 = vmatmul.mubr.msk.f32.vlgmr.msra.gmra.mrb[8].mxu0 %vm300_vm0, %v1943_v12  ;;  %1778 = vmatprep.subr.bf16.mxu1 %v1777_v8  ;;  %v1799_v41 = vpack.c.bf16 %v118_v39, %v84_v38  ;;  %v133_v51 = vrot.slane %v120_v47, %v1994_v44  ;;  %v137_v53 = vrot.slane %v120_v47, %v1998_v49  ;;  %v2028_v35 = vld [vmem:[#allocation6 + $0x10] sm:$0xff]  ;;  %vm1708_vm3 = vmor %vm1707_vm2, %vm1706_vm1 }
  0x4e   :  { %1725 = vmatmul.mubr.msk.f32.vlgmr.msra.gmra.mrb[8].mxu1 %vm300_vm0, %v1943_v12  ;;  %1776 = vmatpush1.bf16.msra.mxu0 %v1775_v11  ;;  %v145_v56 = vrot.slane %v120_v47, %v2000_v50  ;;  %v157_v4 = vrot.slane %v120_v47, %v2007_v54  ;;  %v153_v5 = vrot.slane %v120_v47, %v2009_v55 }
  0x4f   :  { %1780 = vmatpush1.bf16.msra.mxu1 %v1779_v15  ;;  %1078 = vmatprep.mubr.f32.mxu0 %v1883_v0  ;;  %v161_v8 = vrot.slane %v120_v47, %v2012_v57  ;;  %v165_v16 = vrot.slane %v121_v6, %v1994_v44  ;;  %v173_v17 = vrot.slane %v121_v6, %v1996_v48 }
  0x50   :  { %1149 = vmatprep.mubr.f32.mxu1 %v1883_v0  ;;  %1782 = vmatprep.subr.bf16.mxu0 %v1781_v18  ;;  %v169_v22 = vrot.slane %v121_v6, %v1998_v49  ;;  %v177_v25 = vrot.slane %v121_v6, %v2000_v50  ;;  %v189_v34 = vrot.slane %v121_v6, %v2007_v54 }
  0x51   :  { %1726 = vmatmul.mubr.msk.f32.vlgmr.msra.gmra.mrb[10].mxu0 %vm300_vm0, %v1943_v12  ;;  %1786 = vmatprep.subr.bf16.mxu1 %v1785_v21 }
  0x52   :  { %1727 = vmatmul.mubr.msk.f32.vlgmr.msra.gmra.mrb[10].mxu1 %vm300_vm0, %v1943_v12  ;;  %1784 = vmatpush1.bf16.msra.mxu0 %v1783_v24 }
  0x53   :  { %1788 = vmatpush1.bf16.msra.mxu1 %v1787_v27  ;;  %1220 = vmatprep.mubr.f32.mxu0 %v1883_v0 }
  0x54   :  { %1291 = vmatprep.mubr.f32.mxu1 %v1883_v0  ;;  %1790 = vmatprep.subr.bf16.mxu0 %v1789_v30 }
  0x55   :  { %1728 = vmatmul.mubr.msk.f32.vlgmr.msra.gmra.mrb[12].mxu0 %vm300_vm0, %v1943_v12  ;;  %1794 = vmatprep.subr.bf16.mxu1 %v1793_v33 }
  0x56   :  { %1729 = vmatmul.mubr.msk.f32.vlgmr.msra.gmra.mrb[12].mxu1 %vm300_vm0, %v1943_v12  ;;  %1792 = vmatpush1.bf16.msra.mxu0 %v1791_v36 }
  0x57   :  { %1796 = vmatpush1.bf16.msra.mxu1 %v1795_v37  ;;  %1362 = vmatprep.mubr.f32.mxu0 %v1883_v0 }
  0x58   :  { %1433 = vmatprep.mubr.f32.mxu1 %v1883_v0  ;;  %1798 = vmatprep.subr.bf16.mxu0 %v1797_v40  ;;  %v185_v40 = vrot.slane %v121_v6, %v2009_v55 }
  0x59   :  { %1730 = vmatmul.mubr.msk.f32.vlgmr.msra.gmra.mrb[14].mxu0 %vm300_vm0, %v1943_v12 }
  0x5a   :  { %1731 = vmatmul.mubr.msk.f32.vlgmr.msra.gmra.mrb[14].mxu1 %vm300_vm0, %v1943_v12  ;;  %1800 = vmatpush1.bf16.msra.mxu0 %v1799_v41 }
  0x5b   :  { %1504 = vmatprep.mubr.f32.mxu0 %v1883_v0  ;;  %v2003_v0 = vsub.s32 4, %v131_v43  ;;  %v193_v43 = vrot.slane %v121_v6, %v2012_v57 }
  0x5d   :  { %1732 = vmatmul.mubr.msk.f32.vlgmr.msra.gmra.mrb[16].mxu0 %vm300_vm0, %v1943_v12  ;;  %v141_v12 = vrot.slane %v120_v47, %v1996_v48  ;;  %v149_v63 = vrot.slane %v120_v47, %v2003_v0  ;;  %v181_v28 = vrot.slane %v121_v6, %v2003_v0  ;;  %v197_v47 = vrot.slane %v2028_v35, %v1994_v44 }
 0x110   :  { %v370_v58 = vpop.f32.mrb[0].mxu0 }
 0x111   :  { %v371_v59 = vadd.f32 %v370_v58, %v133_v51  ;;  %v441_v60 = vpop.f32.mrb[0].mxu1  ;;  %v372_v61 = vpop.f32.mrb[1].mxu0  ;;  %v205_v58 = vrot.slane %v2028_v35, %v1996_v48 }
 0x112   :  { %v442_v1 = vadd.f32 %v441_v60, %v141_v12  ;;  %v373_v2 = vadd.f32 %v372_v61, %v137_v53  ;;  %v443_v3 = vpop.f32.mrb[1].mxu1 }
 0x113   :  { %v444_v7 = vadd.f32 %v443_v3, %v145_v56 }
 0x114   :  { %v1545_v9 = vcombine.low %v371_v59, %v373_v2  ;;  %v512_v10 = vpop.f32.mrb[2].mxu0 }
 0x115   :  { %v1546_v11 = vcombine.low %v442_v1, %v444_v7  ;;  %v513_v13 = vadd.f32 %v512_v10, %v149_v63  ;;  %v583_v14 = vpop.f32.mrb[2].mxu1  ;;  %v514_v15 = vpop.f32.mrb[3].mxu0  ;;  %v201_v1 = vrot.slane %v2028_v35, %v1998_v49  ;;  %v213_v7 = vrot.slane %v2028_v35, %v2003_v0 }
 0x116   :  { %v1553_v18 = vrot.slane %v1545_v9, %v2014_v62  ;;  %v584_v19 = vadd.f32 %v583_v14, %v157_v4  ;;  %v515_v20 = vadd.f32 %v514_v15, %v153_v5  ;;  %v585_v21 = vpop.f32.mrb[3].mxu1  ;;  %v209_v4 = vrot.slane %v2028_v35, %v2000_v50  ;;  %v2054_v15 = vld [vmem:[#allocation6 + $0x18] sm:$0xff] }
 0x117   :  { %v1560_v23 = vrot.slane %v1546_v11, %v2014_v62  ;;  %v586_v24 = vadd.f32 %v585_v21, %v161_v8  ;;  %v221_v14 = vrot.slane %v2028_v35, %v2007_v54 }
 0x118   :  { %v1562_v26 = vcombine.low %v513_v13, %v515_v20  ;;  %v654_v27 = vpop.f32.mrb[4].mxu0  ;;  %v217_v20 = vrot.slane %v2028_v35, %v2009_v55 }
 0x119   :  { %v1561_v29 = vcombine.low %v1553_v18, %v1560_v23  ;;  %v1563_v30 = vcombine.low %v584_v19, %v586_v24  ;;  %v655_v31 = vadd.f32 %v654_v27, %v165_v16  ;;  %v725_v32 = vpop.f32.mrb[4].mxu1  ;;  %v656_v33 = vpop.f32.mrb[5].mxu0  ;;  %v225_v23 = vrot.slane %v2028_v35, %v2012_v57 }
 0x11a   :  { %v1570_v36 = vrot.slane %v1562_v26, %v2014_v62  ;;  %v726_v37 = vadd.f32 %v725_v32, %v173_v17  ;;  %v657_v38 = vadd.f32 %v656_v33, %v169_v22  ;;  %v727_v39 = vpop.f32.mrb[5].mxu1  ;;  %v229_v26 = vrot.slane %v2054_v15, %v1994_v44 }
 0x11b   :  { %1698 = vst [vmem:[%s2113_s3] sm:$0xff] %v1561_v29  ;;  %v1577_v41 = vrot.slane %v1563_v30, %v2014_v62  ;;  %v728_v42 = vadd.f32 %v727_v39, %v177_v25  ;;  %v237_v32 = vrot.slane %v2054_v15, %v1996_v48  ;;  %v233_v35 = vrot.slane %v2054_v15, %v1998_v49 }
 0x11c   :  { %v1579_v45 = vcombine.low %v655_v31, %v657_v38  ;;  %v796_v46 = vpop.f32.mrb[6].mxu0 }
 0x11d   :  { %v1578_v51 = vcombine.low %v1570_v36, %v1577_v41  ;;  %v1580_v52 = vcombine.low %v726_v37, %v728_v42  ;;  %v797_v12 = vadd.f32 %v796_v46, %v181_v28  ;;  %v867_v53 = vpop.f32.mrb[6].mxu1  ;;  %v798_v56 = vpop.f32.mrb[7].mxu0  ;;  %v245_v42 = vrot.slane %v2054_v15, %v2003_v0 }
 0x11e   :  { %v1587_v59 = vrot.slane %v1579_v45, %v2014_v62  ;;  %v868_v60 = vadd.f32 %v867_v53, %v189_v34  ;;  %v799_v61 = vadd.f32 %v798_v56, %v185_v40  ;;  %v869_v63 = vpop.f32.mrb[7].mxu1  ;;  %v241_v40 = vrot.slane %v2054_v15, %v2000_v50 }
 0x11f   :  { %1699 = vst [vmem:[%s2113_s3 + $0x8] sm:$0xff] %v1578_v51  ;;  %v1594_v2 = vrot.slane %v1580_v52, %v2014_v62  ;;  %v870_v3 = vadd.f32 %v869_v63, %v193_v43  ;;  %v253_v52 = vrot.slane %v2054_v15, %v2007_v54  ;;  %v249_v50 = vrot.slane %v2054_v15, %v2009_v55 }
 0x120   :  { %v1596_v5 = vcombine.low %v797_v12, %v799_v61  ;;  %v938_v6 = vpop.f32.mrb[8].mxu0  ;;  %v257_v61 = vrot.slane %v2054_v15, %v2012_v57 }
 0x121   :  { %v1595_v8 = vcombine.low %v1587_v59, %v1594_v2  ;;  %v1597_v9 = vcombine.low %v868_v60, %v870_v3  ;;  %v939_v10 = vadd.f32 %v938_v6, %v197_v47  ;;  %v1009_v11 = vpop.f32.mrb[8].mxu1  ;;  %v940_v13 = vpop.f32.mrb[9].mxu0  ;;  %v124_v59 = vld [vmem:[#allocation6 + $0x20] sm:$0x3] }
 0x122   :  { %v1604_v16 = vrot.slane %v1596_v5, %v2014_v62  ;;  %v1010_v17 = vadd.f32 %v1009_v11, %v205_v58  ;;  %v941_v18 = vadd.f32 %v940_v13, %v201_v1  ;;  %v1011_v19 = vpop.f32.mrb[9].mxu1  ;;  %v261_v55 = vrot.slane %v124_v59, %v1994_v44 }
 0x123   :  { %1700 = vst [vmem:[%s2113_s3 + $0x10] sm:$0xff] %v1595_v8  ;;  %v1611_v21 = vrot.slane %v1597_v9, %v2014_v62  ;;  %v1012_v22 = vadd.f32 %v1011_v19, %v209_v4 }
 0x124   :  { %v1613_v24 = vcombine.low %v939_v10, %v941_v18  ;;  %v1080_v25 = vpop.f32.mrb[10].mxu0  ;;  %v265_v10 = vrot.slane %v124_v59, %v1998_v49 }
 0x125   :  { %v1612_v27 = vcombine.low %v1604_v16, %v1611_v21  ;;  %v1614_v28 = vcombine.low %v1010_v17, %v1012_v22  ;;  %v1081_v29 = vadd.f32 %v1080_v25, %v213_v7  ;;  %v1151_v30 = vpop.f32.mrb[10].mxu1  ;;  %v1082_v31 = vpop.f32.mrb[11].mxu0 }
 0x126   :  { %v1621_v33 = vrot.slane %v1613_v24, %v2014_v62  ;;  %v1152_v34 = vadd.f32 %v1151_v30, %v221_v14  ;;  %v1083_v36 = vadd.f32 %v1082_v31, %v217_v20  ;;  %v1153_v37 = vpop.f32.mrb[11].mxu1 }
 0x127   :  { %1701 = vst [vmem:[%s2113_s3 + $0x18] sm:$0xff] %v1612_v27  ;;  %v1628_v38 = vrot.slane %v1614_v28, %v2014_v62  ;;  %v1154_v39 = vadd.f32 %v1153_v37, %v225_v23 }
 0x128   :  { %v1630_v41 = vcombine.low %v1081_v29, %v1083_v36  ;;  %v1222_v48 = vpop.f32.mrb[12].mxu0 }
 0x129   :  { %v1629_v43 = vcombine.low %v1621_v33, %v1628_v38  ;;  %v1631_v45 = vcombine.low %v1152_v34, %v1154_v39  ;;  %v1223_v46 = vadd.f32 %v1222_v48, %v229_v26  ;;  %v1293_v47 = vpop.f32.mrb[12].mxu1  ;;  %v1224_v51 = vpop.f32.mrb[13].mxu0 }
 0x12a   :  { %v1638_v12 = vrot.slane %v1630_v41, %v2014_v62  ;;  %v1294_v53 = vadd.f32 %v1293_v47, %v237_v32  ;;  %v1225_v56 = vadd.f32 %v1224_v51, %v233_v35  ;;  %v1295_v58 = vpop.f32.mrb[13].mxu1 }
 0x12b   :  { %1702 = vst [vmem:[%s2113_s3 + $0x20] sm:$0xff] %v1629_v43  ;;  %v1645_v0 = vrot.slane %v1631_v45, %v2014_v62  ;;  %v1296_v60 = vadd.f32 %v1295_v58, %v241_v40 }
 0x12c   :  { %v1647_v54 = vcombine.low %v1223_v46, %v1225_v56  ;;  %v1364_v63 = vpop.f32.mrb[14].mxu0 }
 0x12d   :  { %v1646_v1 = vcombine.low %v1638_v12, %v1645_v0  ;;  %v1648_v2 = vcombine.low %v1294_v53, %v1296_v60  ;;  %v1365_v3 = vadd.f32 %v1364_v63, %v245_v42  ;;  %v1435_v4 = vpop.f32.mrb[14].mxu1  ;;  %v1366_v5 = vpop.f32.mrb[15].mxu0 }
 0x12e   :  { %v1655_v6 = vrot.slane %v1647_v54, %v2014_v62  ;;  %v1436_v7 = vadd.f32 %v1435_v4, %v253_v52  ;;  %v1367_v8 = vadd.f32 %v1366_v5, %v249_v50  ;;  %v1437_v9 = vpop.f32.mrb[15].mxu1 }
 0x12f   :  { %1703 = vst [vmem:[%s2113_s3 + $0x28] sm:$0xff] %v1646_v1  ;;  %v1662_v57 = vrot.slane %v1648_v2, %v2014_v62  ;;  %v1438_v11 = vadd.f32 %v1437_v9, %v257_v61 }
 0x130   :  { %v1664_v13 = vcombine.low %v1365_v3, %v1367_v8  ;;  %v1506_v14 = vpop.f32.mrb[16].mxu0 }
 0x131   :  { %v1663_v15 = vcombine.low %v1655_v6, %v1662_v57  ;;  %v1665_v16 = vcombine.low %v1436_v7, %v1438_v11  ;;  %v1507_v17 = vadd.f32 %v1506_v14, %v261_v55  ;;  %v1508_v44 = vpop.f32.mrb[17].mxu0 }
 0x132   :  { %v1672_v18 = vrot.slane %v1664_v13, %v2014_v62  ;;  %v1509_v19 = vadd.f32 %v1508_v44, %v265_v10 }
 0x133   :  { %1704 = vst [vmem:[%s2113_s3 + $0x30] sm:$0xff] %v1663_v15  ;;  %v1679_v49 = vrot.slane %v1665_v16, %v2014_v62 }
 0x134   :  { %v1681_v20 = vcombine.low %v1507_v17, %v1509_v19 }
 0x135   :  { %v1680_v21 = vcombine.low %v1672_v18, %v1679_v49 }
 0x136   :  { %v1688_v22 = vrot.slane %v1681_v20, %v2014_v62 }
 0x137   :  { %1705 = vst [vmem:[%s2113_s3 + $0x38] sm:$0xff] %v1680_v21 }
 0x138   :  { %1709 = vst.msk [vmem:[%s2113_s3 + $0x40] sm:$0xf] %vm1708_vm3, %v1688_v22 }
 0x139   :  { %1714 = vsyncpa [#allocation3], 1 }
 0x13a   :  { %1715 = vsyncpa [#allocation5], 1 }

// kernel: deeponet_forward.5
= control target key start
LH: loop header
LB: loop body
LE: loop exit
PB: predicated region body
PF: predicated region fallthrough
CT: control target
= control target key end

     0   :  { %8 = vsyncpa [#allocation3], 0  ;;  %s6764_s0 = inlined_call_operand.vmem [shape: f32[1922,25], index: 0, kind: input, shape index: {}]   ;;  %s6765_s1 = inlined_call_operand.hbm [shape: f32[25,64], index: 1, kind: input, shape index: {}]   ;;  %s6766_s2 = inlined_call_operand.hbm [shape: f32[1,64], index: 2, kind: input, shape index: {}]   ;;  %s6767_s3 = inlined_call_operand.vmem [shape: f32[1922,64], index: 3, kind: output, shape index: {}]  }
   0x1   :  { %9 = vsyncpa [#allocation5], 0  ;;  %s4069_s12 = smov [#allocation2]   ;;  %s4021_s16 = scalar_lea.hbm %s6765_s1, 512 }
   0x2   :  { %s17_s13 = sshll.u32 %s4069_s12, 4  ;;  %p4022_p0 = scmp.ne.s32.totalorder %s6765_s1, %s4021_s16  ;;  %s18_s13 = int_to_ptr.vmem [resolvable:$true] %s17_s13 }
   0x3   :  { %p4025_p1 = scmp.lt.u32.totalorder %s4021_s16, %s6765_s1 }
   0x5   :  { %p4027_p2 = pnand %p4025_p1, %p4022_p0 }
   0x7   :  { %4030 = shalt.err (!%p4027_p2)
}
   0x8   :  { %s4031_s21 = scalar_lea.vmem %s18_s13, 512  ;;  %p4036_p4 = scmp.lt.s32.totalorder %s18_s13, %s18_s13 }
   0x9   :  { %p4032_p3 = scmp.ne.s32.totalorder %s18_s13, %s4031_s21  ;;  %p4037_p5 = scmp.lt.s32.totalorder %s4031_s21, %s4031_s21 }
   0xb   :  { %p4038_p6 = por %p4037_p5, %p4036_p4 }
   0xd   :  { %p4039_p7 = pnand %p4038_p6, %p4032_p3 }
   0xf   :  { %4042 = shalt.err (!%p4039_p7)
}
  0x10   :  { %s4070_s22 = smov 128   ;;  %s4071_s23 = smov 8  }
  0x11   :  { %23 = dma.hbm_to_vmem [thread:$0]  %s6765_s1, 512, %s18_s13, [#allocation3], %s4070_s22, %s4070_s22, %s4071_s23  }
  0x12   :  { %s4072_s26 = smov [#allocation4]   ;;  %s4043_s30 = scalar_lea.hbm %s6766_s2, 16 }
  0x13   :  { %s30_s27 = sshll.u32 %s4072_s26, 4  ;;  %p4044_p8 = scmp.ne.s32.totalorder %s6766_s2, %s4043_s30  ;;  %s31_s27 = int_to_ptr.vmem [resolvable:$true] %s30_s27 }
  0x14   :  { %p4047_p9 = scmp.lt.u32.totalorder %s4043_s30, %s6766_s2 }
  0x16   :  { %p4049_p10 = pnand %p4047_p9, %p4044_p8 }
  0x18   :  { %4052 = shalt.err (!%p4049_p10)
}
  0x19   :  { %s4053_s8 = scalar_lea.vmem %s31_s27, 16  ;;  %s4057_s1 = scalar_lea.vmem %s31_s27, 32 }
  0x1a   :  { %p4054_p11 = scmp.ne.s32.totalorder %s31_s27, %s4053_s8  ;;  %p4058_p12 = scmp.lt.s32.totalorder %s31_s27, %s31_s27 }
  0x1b   :  { %p4059_p13 = scmp.lt.s32.totalorder %s4057_s1, %s4053_s8 }
  0x1d   :  { %p4060_p0 = por %p4059_p13, %p4058_p12 }
  0x1f   :  { %p4061_p1 = pnand %p4060_p0, %p4054_p11 }
  0x21   :  { %4064 = shalt.err (!%p4061_p1)
}
  0x22   :  { %33 = dma.hbm_to_vmem [thread:$0]  %s6766_s2, 16, %s31_s27, [#allocation5]  }
  0x23   :  { %4065 = dma.done.wait [#allocation3], 512  }
  0x24   :  { %4066 = vsyncadd [#allocation3], 4294966784 }
  0x25   :  { %4067 = dma.done.wait [#allocation5], 16  }
  0x26   :  { %4068 = vsyncadd [#allocation5], 4294967280  ;;  %v4073_v0 = vmov 0.0|0.0   ;;  %vm4074_vm0 = vmmov 0   ;;  %v4075_v1 = vmov 0.0   ;;  %v281_v2 = vld [vmem:[#allocation2] sm:$0xff] }
  0x27   :  { %3999 = vmatprep.subr.bf16.mxu0 %v4073_v0  ;;  %4006 = vmatprep.subr.bf16.mxu1 %v4073_v0  ;;  %v282_v3 = vld [vmem:[#allocation2 + $0x8] sm:$0xff]  ;;  %v283_v4 = vld [vmem:[#allocation2 + $0x10] sm:$0xff]  ;;  %v284_v6 = vld [vmem:[#allocation2 + $0x18] sm:$0x1]  ;;  %vm1016_vm1 = vcmask 1040384   ;;  %vm4076_vm2 = vmmov 1  }
  0x28   :  { %3276 = vmatprep.mubr.msk.f32.mxu0 %vm4074_vm0, %v4075_v1  ;;  %3639 = vmatprep.mubr.msk.f32.mxu1 %vm4074_vm0, %v4075_v1  ;;  %v4000_v5 = vpack.c.bf16 %v282_v3, %v281_v2  ;;  %v4003_v7 = vpack.c.bf16 %v284_v6, %v283_v4  ;;  %vm4004_vm3 = vmpackc.low %vm1016_vm1, %vm4076_vm2  ;;  %v40_v8 = vld [vmem:[%s6764_s0] sm:$0xff]  ;;  %vm292_vm4 = vcmask 203776   ;;  %v161_v9 = vld [vmem:[%s6764_s0 + $0x3c8] sm:$0xff]  ;;  %vm2531_vm5 = vcmask 523264  }
  0x29   :  { %v41_v10 = vld [vmem:[%s6764_s0 + $0x8] sm:$0xff]  ;;  %v162_v11 = vld [vmem:[%s6764_s0 + $0x3d0] sm:$0xff]  ;;  %v163_v13 = vld [vmem:[%s6764_s0 + $0x3d8] sm:$0xff]  ;;  %vm2772_vm6 = vcmask 517120  }
  0x2a   :  { %4001 = vmatpush3.bf16.msra.mxu0 %v4000_v5  ;;  %4008 = vmatpush3.bf16.msra.mxu1 %v4000_v5  ;;  %v42_v12 = vld [vmem:[%s6764_s0 + $0x10] sm:$0xff]  ;;  %v43_v14 = vld [vmem:[%s6764_s0 + $0x18] sm:$0xff]  ;;  %v164_v15 = vld [vmem:[%s6764_s0 + $0x3e0] sm:$0xff] }
  0x2b   :  { %4002 = vmatprep.subr.bf16.mxu0 %v4073_v0  ;;  %4007 = vmatprep.subr.bf16.mxu1 %v4073_v0  ;;  %v44_v16 = vld [vmem:[%s6764_s0 + $0x20] sm:$0xff]  ;;  %v165_v17 = vld [vmem:[%s6764_s0 + $0x3e8] sm:$0xff]  ;;  %v166_v19 = vld [vmem:[%s6764_s0 + $0x3f0] sm:$0xff] }
  0x2c   :  { %v45_v18 = vld [vmem:[%s6764_s0 + $0x28] sm:$0xff]  ;;  %v46_v20 = vld [vmem:[%s6764_s0 + $0x30] sm:$0xff]  ;;  %v167_v21 = vld [vmem:[%s6764_s0 + $0x3f8] sm:$0xff] }
  0x2d   :  { %v47_v22 = vld [vmem:[%s6764_s0 + $0x38] sm:$0xff]  ;;  %v168_v23 = vld [vmem:[%s6764_s0 + $0x400] sm:$0xff]  ;;  %v169_v25 = vld [vmem:[%s6764_s0 + $0x408] sm:$0xff] }
  0x2e   :  { %4005 = vmatpush3.bf16.msk.msra.mxu0 %vm4004_vm3, %v4003_v7  ;;  %4009 = vmatpush3.bf16.msk.msra.mxu1 %vm4004_vm3, %v4003_v7  ;;  %v48_v24 = vld [vmem:[%s6764_s0 + $0x40] sm:$0xff]  ;;  %v49_v26 = vld [vmem:[%s6764_s0 + $0x48] sm:$0xff]  ;;  %v170_v27 = vld [vmem:[%s6764_s0 + $0x410] sm:$0xff] }
  0x2f   :  { %v50_v28 = vld [vmem:[%s6764_s0 + $0x50] sm:$0xff]  ;;  %v171_v29 = vld [vmem:[%s6764_s0 + $0x418] sm:$0xff]  ;;  %v172_v31 = vld [vmem:[%s6764_s0 + $0x420] sm:$0xff] }
  0x30   :  { %v51_v30 = vld [vmem:[%s6764_s0 + $0x58] sm:$0xff]  ;;  %v52_v32 = vld [vmem:[%s6764_s0 + $0x60] sm:$0xff]  ;;  %v173_v33 = vld [vmem:[%s6764_s0 + $0x428] sm:$0xff] }
  0x31   :  { %3277 = vmatmul.mubr.msk.f32.vlgmr.msra.gmra.mrb[0].mxu0 %vm292_vm4, %v40_v8  ;;  %3640 = vmatmul.mubr.msk.f32.vlgmr.msra.gmra.mrb[0].mxu1 %vm292_vm4, %v161_v9  ;;  %v53_v34 = vld [vmem:[%s6764_s0 + $0x68] sm:$0xff]  ;;  %v174_v35 = vld [vmem:[%s6764_s0 + $0x430] sm:$0xff]  ;;  %v175_v37 = vld [vmem:[%s6764_s0 + $0x438] sm:$0xff] }
  0x32   :  { %3279 = vmatprep.mubr.msk.f32.mxu0 %vm4074_vm0, %v4075_v1  ;;  %3642 = vmatprep.mubr.msk.f32.mxu1 %vm4074_vm0, %v4075_v1  ;;  %v54_v36 = vld [vmem:[%s6764_s0 + $0x70] sm:$0xff]  ;;  %v55_v38 = vld [vmem:[%s6764_s0 + $0x78] sm:$0xff]  ;;  %v176_v39 = vld [vmem:[%s6764_s0 + $0x440] sm:$0xff] }
  0x33   :  { %v56_v40 = vld [vmem:[%s6764_s0 + $0x80] sm:$0xff]  ;;  %v177_v41 = vld [vmem:[%s6764_s0 + $0x448] sm:$0xff]  ;;  %v178_v43 = vld [vmem:[%s6764_s0 + $0x450] sm:$0xff] }
  0x34   :  { %v57_v42 = vld [vmem:[%s6764_s0 + $0x88] sm:$0xff]  ;;  %v58_v44 = vld [vmem:[%s6764_s0 + $0x90] sm:$0xff]  ;;  %v179_v45 = vld [vmem:[%s6764_s0 + $0x458] sm:$0xff] }
  0x35   :  { %3280 = vmatmul.mubr.msk.f32.gmra.mrb[2].mxu0 %vm292_vm4, %v41_v10  ;;  %3643 = vmatmul.mubr.msk.f32.gmra.mrb[2].mxu1 %vm292_vm4, %v162_v11  ;;  %v59_v46 = vld [vmem:[%s6764_s0 + $0x98] sm:$0xff]  ;;  %v180_v47 = vld [vmem:[%s6764_s0 + $0x460] sm:$0xff]  ;;  %v181_v49 = vld [vmem:[%s6764_s0 + $0x468] sm:$0xff] }
  0x36   :  { %3282 = vmatprep.mubr.msk.f32.mxu0 %vm4074_vm0, %v4075_v1  ;;  %3645 = vmatprep.mubr.msk.f32.mxu1 %vm4074_vm0, %v4075_v1  ;;  %v60_v48 = vld [vmem:[%s6764_s0 + $0xa0] sm:$0xff]  ;;  %v61_v50 = vld [vmem:[%s6764_s0 + $0xa8] sm:$0xff]  ;;  %v182_v51 = vld [vmem:[%s6764_s0 + $0x470] sm:$0xff] }
  0x37   :  { %v62_v52 = vld [vmem:[%s6764_s0 + $0xb0] sm:$0xff]  ;;  %v183_v53 = vld [vmem:[%s6764_s0 + $0x478] sm:$0xff]  ;;  %v184_v55 = vld [vmem:[%s6764_s0 + $0x480] sm:$0xff] }
  0x38   :  { %v63_v54 = vld [vmem:[%s6764_s0 + $0xb8] sm:$0xff]  ;;  %v64_v56 = vld [vmem:[%s6764_s0 + $0xc0] sm:$0xff]  ;;  %v185_v57 = vld [vmem:[%s6764_s0 + $0x488] sm:$0xff] }
  0x39   :  { %3283 = vmatmul.mubr.msk.f32.gmra.mrb[4].mxu0 %vm292_vm4, %v42_v12  ;;  %3646 = vmatmul.mubr.msk.f32.gmra.mrb[4].mxu1 %vm292_vm4, %v163_v13  ;;  %v65_v58 = vld [vmem:[%s6764_s0 + $0xc8] sm:$0xff]  ;;  %v186_v59 = vld [vmem:[%s6764_s0 + $0x490] sm:$0xff]  ;;  %v187_v61 = vld [vmem:[%s6764_s0 + $0x498] sm:$0xff] }
  0x3a   :  { %3285 = vmatprep.mubr.msk.f32.mxu0 %vm4074_vm0, %v4075_v1  ;;  %3648 = vmatprep.mubr.msk.f32.mxu1 %vm4074_vm0, %v4075_v1  ;;  %v66_v60 = vld [vmem:[%s6764_s0 + $0xd0] sm:$0xff]  ;;  %v67_v62 = vld [vmem:[%s6764_s0 + $0xd8] sm:$0xff]  ;;  %v188_v63 = vld [vmem:[%s6764_s0 + $0x4a0] sm:$0xff] }
  0x3b   :  { %v68_v0 = vld [vmem:[%s6764_s0 + $0xe0] sm:$0xff]  ;;  %v189_v2 = vld [vmem:[%s6764_s0 + $0x4a8] sm:$0xff]  ;;  %v190_v4 = vld [vmem:[%s6764_s0 + $0x4b0] sm:$0xff] }
  0x3c   :  { %v69_v3 = vld [vmem:[%s6764_s0 + $0xe8] sm:$0xff]  ;;  %v70_v5 = vld [vmem:[%s6764_s0 + $0xf0] sm:$0xff]  ;;  %v191_v6 = vld [vmem:[%s6764_s0 + $0x4b8] sm:$0xff] }
  0x3d   :  { %3286 = vmatmul.mubr.msk.f32.gmra.mrb[6].mxu0 %vm292_vm4, %v43_v14  ;;  %3649 = vmatmul.mubr.msk.f32.gmra.mrb[6].mxu1 %vm292_vm4, %v164_v15  ;;  %v71_v7 = vld [vmem:[%s6764_s0 + $0xf8] sm:$0xff]  ;;  %v192_v8 = vld [vmem:[%s6764_s0 + $0x4c0] sm:$0xff]  ;;  %v193_v10 = vld [vmem:[%s6764_s0 + $0x4c8] sm:$0xff] }
  0x3e   :  { %3288 = vmatprep.mubr.msk.f32.mxu0 %vm4074_vm0, %v4075_v1  ;;  %3651 = vmatprep.mubr.msk.f32.mxu1 %vm4074_vm0, %v4075_v1  ;;  %v72_v9 = vld [vmem:[%s6764_s0 + $0x100] sm:$0xff]  ;;  %v73_v11 = vld [vmem:[%s6764_s0 + $0x108] sm:$0xff]  ;;  %v194_v12 = vld [vmem:[%s6764_s0 + $0x4d0] sm:$0xff] }
  0x3f   :  { %v74_v13 = vld [vmem:[%s6764_s0 + $0x110] sm:$0xff]  ;;  %v195_v14 = vld [vmem:[%s6764_s0 + $0x4d8] sm:$0xff] }
  0x40   :  { %v75_v15 = vld [vmem:[%s6764_s0 + $0x118] sm:$0xff] }
  0x41   :  { %3289 = vmatmul.mubr.msk.f32.gmra.mrb[8].mxu0 %vm292_vm4, %v44_v16  ;;  %3652 = vmatmul.mubr.msk.f32.gmra.mrb[8].mxu1 %vm292_vm4, %v165_v17  ;;  %v196_v16 = vld [vmem:[%s6764_s0 + $0x4e0] sm:$0xff] }
  0x42   :  { %3291 = vmatprep.mubr.msk.f32.mxu0 %vm4074_vm0, %v4075_v1  ;;  %3654 = vmatprep.mubr.msk.f32.mxu1 %vm4074_vm0, %v4075_v1  ;;  %v76_v17 = vld [vmem:[%s6764_s0 + $0x120] sm:$0xff] }
  0x45   :  { %3292 = vmatmul.mubr.msk.f32.gmra.mrb[10].mxu0 %vm292_vm4, %v45_v18  ;;  %3655 = vmatmul.mubr.msk.f32.gmra.mrb[10].mxu1 %vm292_vm4, %v166_v19  ;;  %v197_v18 = vld [vmem:[%s6764_s0 + $0x4e8] sm:$0xff] }
  0x46   :  { %3294 = vmatprep.mubr.msk.f32.mxu0 %vm4074_vm0, %v4075_v1  ;;  %3657 = vmatprep.mubr.msk.f32.mxu1 %vm4074_vm0, %v4075_v1  ;;  %v77_v19 = vld [vmem:[%s6764_s0 + $0x128] sm:$0xff] }
  0x49   :  { %3295 = vmatmul.mubr.msk.f32.gmra.mrb[12].mxu0 %vm292_vm4, %v46_v20  ;;  %3658 = vmatmul.mubr.msk.f32.gmra.mrb[12].mxu1 %vm292_vm4, %v167_v21  ;;  %v198_v20 = vld [vmem:[%s6764_s0 + $0x4f0] sm:$0xff] }
  0x4a   :  { %3297 = vmatprep.mubr.msk.f32.mxu0 %vm4074_vm0, %v4075_v1  ;;  %3660 = vmatprep.mubr.msk.f32.mxu1 %vm4074_vm0, %v4075_v1  ;;  %v78_v21 = vld [vmem:[%s6764_s0 + $0x130] sm:$0xff] }
  0x4d   :  { %3298 = vmatmul.mubr.msk.f32.gmra.mrb[14].mxu0 %vm292_vm4, %v47_v22  ;;  %3661 = vmatmul.mubr.msk.f32.gmra.mrb[14].mxu1 %vm292_vm4, %v168_v23  ;;  %v199_v22 = vld [vmem:[%s6764_s0 + $0x4f8] sm:$0xff] }
  0x4e   :  { %3300 = vmatprep.mubr.msk.f32.mxu0 %vm4074_vm0, %v4075_v1  ;;  %3663 = vmatprep.mubr.msk.f32.mxu1 %vm4074_vm0, %v4075_v1  ;;  %v79_v23 = vld [vmem:[%s6764_s0 + $0x138] sm:$0xff] }
  0x51   :  { %3301 = vmatmul.mubr.msk.f32.gmra.mrb[16].mxu0 %vm292_vm4, %v48_v24  ;;  %3664 = vmatmul.mubr.msk.f32.gmra.mrb[16].mxu1 %vm292_vm4, %v169_v25  ;;  %v200_v24 = vld [vmem:[%s6764_s0 + $0x500] sm:$0xff] }
  0x52   :  { %3303 = vmatprep.mubr.msk.f32.mxu0 %vm4074_vm0, %v4075_v1  ;;  %3666 = vmatprep.mubr.msk.f32.mxu1 %vm4074_vm0, %v4075_v1  ;;  %v80_v25 = vld [vmem:[%s6764_s0 + $0x140] sm:$0xff] }
  0x55   :  { %3304 = vmatmul.mubr.msk.f32.gmra.mrb[18].mxu0 %vm292_vm4, %v49_v26  ;;  %3667 = vmatmul.mubr.msk.f32.gmra.mrb[18].mxu1 %vm292_vm4, %v170_v27  ;;  %v201_v26 = vld [vmem:[%s6764_s0 + $0x508] sm:$0xff] }
  0x56   :  { %3306 = vmatprep.mubr.msk.f32.mxu0 %vm4074_vm0, %v4075_v1  ;;  %3669 = vmatprep.mubr.msk.f32.mxu1 %vm4074_vm0, %v4075_v1  ;;  %v81_v27 = vld [vmem:[%s6764_s0 + $0x148] sm:$0xff] }
  0x59   :  { %3307 = vmatmul.mubr.msk.f32.gmra.mrb[20].mxu0 %vm292_vm4, %v50_v28  ;;  %3670 = vmatmul.mubr.msk.f32.gmra.mrb[20].mxu1 %vm292_vm4, %v171_v29  ;;  %v202_v28 = vld [vmem:[%s6764_s0 + $0x510] sm:$0xff] }
  0x5a   :  { %3309 = vmatprep.mubr.msk.f32.mxu0 %vm4074_vm0, %v4075_v1  ;;  %3672 = vmatprep.mubr.msk.f32.mxu1 %vm4074_vm0, %v4075_v1  ;;  %v82_v29 = vld [vmem:[%s6764_s0 + $0x150] sm:$0xff] }
  0x5d   :  { %3310 = vmatmul.mubr.msk.f32.gmra.mrb[22].mxu0 %vm292_vm4, %v51_v30  ;;  %3673 = vmatmul.mubr.msk.f32.gmra.mrb[22].mxu1 %vm292_vm4, %v172_v31  ;;  %v203_v30 = vld [vmem:[%s6764_s0 + $0x518] sm:$0xff] }
  0x5e   :  { %3312 = vmatprep.mubr.msk.f32.mxu0 %vm4074_vm0, %v4075_v1  ;;  %3675 = vmatprep.mubr.msk.f32.mxu1 %vm4074_vm0, %v4075_v1  ;;  %v83_v31 = vld [vmem:[%s6764_s0 + $0x158] sm:$0xff] }
  0x61   :  { %3313 = vmatmul.mubr.msk.f32.gmra.mrb[24].mxu0 %vm292_vm4, %v52_v32  ;;  %3676 = vmatmul.mubr.msk.f32.gmra.mrb[24].mxu1 %vm292_vm4, %v173_v33  ;;  %v204_v32 = vld [vmem:[%s6764_s0 + $0x520] sm:$0xff] }
  0x62   :  { %3315 = vmatprep.mubr.msk.f32.mxu0 %vm4074_vm0, %v4075_v1  ;;  %3678 = vmatprep.mubr.msk.f32.mxu1 %vm4074_vm0, %v4075_v1  ;;  %v84_v33 = vld [vmem:[%s6764_s0 + $0x160] sm:$0xff] }
  0x65   :  { %3316 = vmatmul.mubr.msk.f32.gmra.mrb[26].mxu0 %vm292_vm4, %v53_v34  ;;  %3679 = vmatmul.mubr.msk.f32.gmra.mrb[26].mxu1 %vm292_vm4, %v174_v35  ;;  %v205_v34 = vld [vmem:[%s6764_s0 + $0x528] sm:$0xff] }
  0x66   :  { %3318 = vmatprep.mubr.msk.f32.mxu0 %vm4074_vm0, %v4075_v1  ;;  %3681 = vmatprep.mubr.msk.f32.mxu1 %vm4074_vm0, %v4075_v1  ;;  %v85_v35 = vld [vmem:[%s6764_s0 + $0x168] sm:$0xff] }
  0x69   :  { %3319 = vmatmul.mubr.msk.f32.gmra.mrb[28].mxu0 %vm292_vm4, %v54_v36  ;;  %3682 = vmatmul.mubr.msk.f32.gmra.mrb[28].mxu1 %vm292_vm4, %v175_v37  ;;  %v206_v36 = vld [vmem:[%s6764_s0 + $0x530] sm:$0xff] }
  0x6a   :  { %3321 = vmatprep.mubr.msk.f32.mxu0 %vm4074_vm0, %v4075_v1  ;;  %3684 = vmatprep.mubr.msk.f32.mxu1 %vm4074_vm0, %v4075_v1  ;;  %v86_v37 = vld [vmem:[%s6764_s0 + $0x170] sm:$0xff] }
  0x6d   :  { %3322 = vmatmul.mubr.msk.f32.gmra.mrb[30].mxu0 %vm292_vm4, %v55_v38  ;;  %3685 = vmatmul.mubr.msk.f32.gmra.mrb[30].mxu1 %vm292_vm4, %v176_v39  ;;  %v207_v38 = vld [vmem:[%s6764_s0 + $0x538] sm:$0xff] }
  0x6e   :  { %3324 = vmatprep.mubr.msk.f32.mxu0 %vm4074_vm0, %v4075_v1  ;;  %3687 = vmatprep.mubr.msk.f32.mxu1 %vm4074_vm0, %v4075_v1  ;;  %v87_v39 = vld [vmem:[%s6764_s0 + $0x178] sm:$0xff] }
  0x71   :  { %3325 = vmatmul.mubr.msk.f32.gmra.mrb[32].mxu0 %vm292_vm4, %v56_v40  ;;  %3688 = vmatmul.mubr.msk.f32.gmra.mrb[32].mxu1 %vm292_vm4, %v177_v41  ;;  %v208_v40 = vld [vmem:[%s6764_s0 + $0x540] sm:$0xff] }
  0x72   :  { %3327 = vmatprep.mubr.msk.f32.mxu0 %vm4074_vm0, %v4075_v1  ;;  %3690 = vmatprep.mubr.msk.f32.mxu1 %vm4074_vm0, %v4075_v1  ;;  %v88_v41 = vld [vmem:[%s6764_s0 + $0x180] sm:$0xff] }
  0x75   :  { %3328 = vmatmul.mubr.msk.f32.gmra.mrb[34].mxu0 %vm292_vm4, %v57_v42  ;;  %3691 = vmatmul.mubr.msk.f32.gmra.mrb[34].mxu1 %vm292_vm4, %v178_v43  ;;  %v209_v42 = vld [vmem:[%s6764_s0 + $0x548] sm:$0xff] }
  0x76   :  { %3330 = vmatprep.mubr.msk.f32.mxu0 %vm4074_vm0, %v4075_v1  ;;  %3693 = vmatprep.mubr.msk.f32.mxu1 %vm4074_vm0, %v4075_v1  ;;  %v89_v43 = vld [vmem:[%s6764_s0 + $0x188] sm:$0xff] }
  0x79   :  { %3331 = vmatmul.mubr.msk.f32.gmra.mrb[36].mxu0 %vm292_vm4, %v58_v44  ;;  %3694 = vmatmul.mubr.msk.f32.gmra.mrb[36].mxu1 %vm292_vm4, %v179_v45  ;;  %v210_v44 = vld [vmem:[%s6764_s0 + $0x550] sm:$0xff] }
  0x7a   :  { %3333 = vmatprep.mubr.msk.f32.mxu0 %vm4074_vm0, %v4075_v1  ;;  %3696 = vmatprep.mubr.msk.f32.mxu1 %vm4074_vm0, %v4075_v1  ;;  %v90_v45 = vld [vmem:[%s6764_s0 + $0x190] sm:$0xff] }
  0x7d   :  { %3334 = vmatmul.mubr.msk.f32.gmra.mrb[38].mxu0 %vm292_vm4, %v59_v46  ;;  %3697 = vmatmul.mubr.msk.f32.gmra.mrb[38].mxu1 %vm292_vm4, %v180_v47  ;;  %v211_v46 = vld [vmem:[%s6764_s0 + $0x558] sm:$0xff] }
  0x7e   :  { %3336 = vmatprep.mubr.msk.f32.mxu0 %vm4074_vm0, %v4075_v1  ;;  %3699 = vmatprep.mubr.msk.f32.mxu1 %vm4074_vm0, %v4075_v1  ;;  %v91_v47 = vld [vmem:[%s6764_s0 + $0x198] sm:$0xff] }
  0x81   :  { %3337 = vmatmul.mubr.msk.f32.gmra.mrb[40].mxu0 %vm292_vm4, %v60_v48  ;;  %3700 = vmatmul.mubr.msk.f32.gmra.mrb[40].mxu1 %vm292_vm4, %v181_v49  ;;  %v212_v48 = vld [vmem:[%s6764_s0 + $0x560] sm:$0xff] }
  0x82   :  { %3339 = vmatprep.mubr.msk.f32.mxu0 %vm4074_vm0, %v4075_v1  ;;  %3702 = vmatprep.mubr.msk.f32.mxu1 %vm4074_vm0, %v4075_v1  ;;  %v92_v49 = vld [vmem:[%s6764_s0 + $0x1a0] sm:$0xff] }
  0x85   :  { %3340 = vmatmul.mubr.msk.f32.gmra.mrb[42].mxu0 %vm292_vm4, %v61_v50  ;;  %3703 = vmatmul.mubr.msk.f32.gmra.mrb[42].mxu1 %vm292_vm4, %v182_v51  ;;  %v213_v50 = vld [vmem:[%s6764_s0 + $0x568] sm:$0xff]  ;;  %v4757_v51 = vld [vmem:[#allocation4] ss:$0 sm:$0xff] }
  0x86   :  { %3342 = vmatprep.mubr.msk.f32.mxu0 %vm4074_vm0, %v4075_v1  ;;  %3705 = vmatprep.mubr.msk.f32.mxu1 %vm4074_vm0, %v4075_v1 }
  0x89   :  { %3343 = vmatmul.mubr.msk.f32.gmra.mrb[44].mxu0 %vm292_vm4, %v62_v52  ;;  %3706 = vmatmul.mubr.msk.f32.gmra.mrb[44].mxu1 %vm292_vm4, %v183_v53  ;;  %v93_v52 = vld [vmem:[%s6764_s0 + $0x1a8] sm:$0xff]  ;;  %v214_v53 = vld [vmem:[%s6764_s0 + $0x570] sm:$0xff] }
  0x8a   :  { %3345 = vmatprep.mubr.msk.f32.mxu0 %vm4074_vm0, %v4075_v1  ;;  %3708 = vmatprep.mubr.msk.f32.mxu1 %vm4074_vm0, %v4075_v1 }
  0x8d   :  { %3346 = vmatmul.mubr.msk.f32.gmra.mrb[46].mxu0 %vm292_vm4, %v63_v54  ;;  %3709 = vmatmul.mubr.msk.f32.gmra.mrb[46].mxu1 %vm292_vm4, %v184_v55 }
  0x8e   :  { %3348 = vmatprep.mubr.msk.f32.mxu0 %vm4074_vm0, %v4075_v1  ;;  %3711 = vmatprep.mubr.msk.f32.mxu1 %vm4074_vm0, %v4075_v1 }
  0x91   :  { %3349 = vmatmul.mubr.msk.f32.gmra.mrb[48].mxu0 %vm292_vm4, %v64_v56  ;;  %3712 = vmatmul.mubr.msk.f32.gmra.mrb[48].mxu1 %vm292_vm4, %v185_v57 }
  0x92   :  { %3351 = vmatprep.mubr.msk.f32.mxu0 %vm4074_vm0, %v4075_v1  ;;  %3714 = vmatprep.mubr.msk.f32.mxu1 %vm4074_vm0, %v4075_v1 }
  0x95   :  { %3352 = vmatmul.mubr.msk.f32.gmra.mrb[50].mxu0 %vm292_vm4, %v65_v58  ;;  %3715 = vmatmul.mubr.msk.f32.gmra.mrb[50].mxu1 %vm292_vm4, %v186_v59 }
  0x96   :  { %3354 = vmatprep.mubr.msk.f32.mxu0 %vm4074_vm0, %v4075_v1  ;;  %3717 = vmatprep.mubr.msk.f32.mxu1 %vm4074_vm0, %v4075_v1 }
  0x99   :  { %3355 = vmatmul.mubr.msk.f32.gmra.mrb[52].mxu0 %vm292_vm4, %v66_v60  ;;  %3718 = vmatmul.mubr.msk.f32.gmra.mrb[52].mxu1 %vm292_vm4, %v187_v61  ;;  %v94_v60 = vld [vmem:[%s6764_s0 + $0x1b0] sm:$0xff]  ;;  %v215_v61 = vld [vmem:[%s6764_s0 + $0x578] sm:$0xff] }
  0x9a   :  { %3357 = vmatprep.mubr.msk.f32.mxu0 %vm4074_vm0, %v4075_v1  ;;  %3720 = vmatprep.mubr.msk.f32.mxu1 %vm4074_vm0, %v4075_v1 }
  0x9d   :  { %3358 = vmatmul.mubr.msk.f32.gmra.mrb[54].mxu0 %vm292_vm4, %v67_v62  ;;  %3721 = vmatmul.mubr.msk.f32.gmra.mrb[54].mxu1 %vm292_vm4, %v188_v63 }
  0x9e   :  { %3360 = vmatprep.mubr.msk.f32.mxu0 %vm4074_vm0, %v4075_v1  ;;  %3723 = vmatprep.mubr.msk.f32.mxu1 %vm4074_vm0, %v4075_v1 }
  0xa1   :  { %3361 = vmatmul.mubr.msk.f32.gmra.mrb[56].mxu0 %vm292_vm4, %v68_v0  ;;  %3724 = vmatmul.mubr.msk.f32.gmra.mrb[56].mxu1 %vm292_vm4, %v189_v2 }
  0xa2   :  { %3363 = vmatprep.mubr.msk.f32.mxu0 %vm4074_vm0, %v4075_v1  ;;  %3726 = vmatprep.mubr.msk.f32.mxu1 %vm4074_vm0, %v4075_v1 }
  0xa5   :  { %3364 = vmatmul.mubr.msk.f32.gmra.mrb[58].mxu0 %vm292_vm4, %v69_v3  ;;  %3727 = vmatmul.mubr.msk.f32.gmra.mrb[58].mxu1 %vm292_vm4, %v190_v4 }
  0xa6   :  { %3366 = vmatprep.mubr.msk.f32.mxu0 %vm4074_vm0, %v4075_v1  ;;  %3729 = vmatprep.mubr.msk.f32.mxu1 %vm4074_vm0, %v4075_v1 }
  0xa9   :  { %3367 = vmatmul.mubr.msk.f32.gmra.mrb[60].mxu0 %vm292_vm4, %v70_v5  ;;  %3730 = vmatmul.mubr.msk.f32.gmra.mrb[60].mxu1 %vm292_vm4, %v191_v6 }
  0xaa   :  { %3369 = vmatprep.mubr.msk.f32.mxu0 %vm4074_vm0, %v4075_v1  ;;  %3732 = vmatprep.mubr.msk.f32.mxu1 %vm4074_vm0, %v4075_v1 }
  0xad   :  { %3370 = vmatmul.mubr.msk.f32.gmra.mrb[62].mxu0 %vm292_vm4, %v71_v7  ;;  %3733 = vmatmul.mubr.msk.f32.gmra.mrb[62].mxu1 %vm292_vm4, %v192_v8  ;;  %v95_v7 = vld [vmem:[%s6764_s0 + $0x1b8] sm:$0xff]  ;;  %v216_v8 = vld [vmem:[%s6764_s0 + $0x580] sm:$0xff] }
  0xae   :  { %3372 = vmatprep.mubr.msk.f32.mxu0 %vm4074_vm0, %v4075_v1  ;;  %3735 = vmatprep.mubr.msk.f32.mxu1 %vm4074_vm0, %v4075_v1 }
  0xb1   :  { %3373 = vmatmul.mubr.msk.f32.gmra.mrb[64].mxu0 %vm292_vm4, %v72_v9  ;;  %3736 = vmatmul.mubr.msk.f32.gmra.mrb[64].mxu1 %vm292_vm4, %v193_v10 }
  0xb2   :  { %3375 = vmatprep.mubr.msk.f32.mxu0 %vm4074_vm0, %v4075_v1  ;;  %3738 = vmatprep.mubr.msk.f32.mxu1 %vm4074_vm0, %v4075_v1 }
  0xb5   :  { %3376 = vmatmul.mubr.msk.f32.gmra.mrb[66].mxu0 %vm292_vm4, %v73_v11  ;;  %3739 = vmatmul.mubr.msk.f32.gmra.mrb[66].mxu1 %vm292_vm4, %v194_v12 }
  0xb6   :  { %3378 = vmatprep.mubr.msk.f32.mxu0 %vm4074_vm0, %v4075_v1  ;;  %3741 = vmatprep.mubr.msk.f32.mxu1 %vm4074_vm0, %v4075_v1 }
  0xb9   :  { %3379 = vmatmul.mubr.msk.f32.gmra.mrb[68].mxu0 %vm292_vm4, %v74_v13  ;;  %3742 = vmatmul.mubr.msk.f32.gmra.mrb[68].mxu1 %vm292_vm4, %v195_v14 }
  0xba   :  { %3381 = vmatprep.mubr.msk.f32.mxu0 %vm4074_vm0, %v4075_v1  ;;  %3744 = vmatprep.mubr.msk.f32.mxu1 %vm4074_vm0, %v4075_v1 }
  0xbd   :  { %3382 = vmatmul.mubr.msk.f32.gmra.mrb[70].mxu0 %vm292_vm4, %v75_v15  ;;  %3745 = vmatmul.mubr.msk.f32.gmra.mrb[70].mxu1 %vm292_vm4, %v196_v16 }
  0xbe   :  { %3384 = vmatprep.mubr.msk.f32.mxu0 %vm4074_vm0, %v4075_v1  ;;  %3747 = vmatprep.mubr.msk.f32.mxu1 %vm4074_vm0, %v4075_v1 }
  0xc1   :  { %3385 = vmatmul.mubr.msk.f32.gmra.mrb[72].mxu0 %vm292_vm4, %v76_v17  ;;  %3748 = vmatmul.mubr.msk.f32.gmra.mrb[72].mxu1 %vm292_vm4, %v197_v18  ;;  %v96_v17 = vld [vmem:[%s6764_s0 + $0x1c0] sm:$0xff]  ;;  %v217_v18 = vld [vmem:[%s6764_s0 + $0x588] sm:$0xff] }
  0xc2   :  { %3387 = vmatprep.mubr.msk.f32.mxu0 %vm4074_vm0, %v4075_v1  ;;  %3750 = vmatprep.mubr.msk.f32.mxu1 %vm4074_vm0, %v4075_v1 }
  0xc5   :  { %3388 = vmatmul.mubr.msk.f32.gmra.mrb[74].mxu0 %vm292_vm4, %v77_v19  ;;  %3751 = vmatmul.mubr.msk.f32.gmra.mrb[74].mxu1 %vm292_vm4, %v198_v20 }
  0xc6   :  { %3390 = vmatprep.mubr.msk.f32.mxu0 %vm4074_vm0, %v4075_v1  ;;  %3753 = vmatprep.mubr.msk.f32.mxu1 %vm4074_vm0, %v4075_v1 }
  0xc9   :  { %3391 = vmatmul.mubr.msk.f32.gmra.mrb[76].mxu0 %vm292_vm4, %v78_v21  ;;  %3754 = vmatmul.mubr.msk.f32.gmra.mrb[76].mxu1 %vm292_vm4, %v199_v22 }
  0xca   :  { %3393 = vmatprep.mubr.msk.f32.mxu0 %vm4074_vm0, %v4075_v1  ;;  %3756 = vmatprep.mubr.msk.f32.mxu1 %vm4074_vm0, %v4075_v1 }
  0xcd   :  { %3394 = vmatmul.mubr.msk.f32.gmra.mrb[78].mxu0 %vm292_vm4, %v79_v23  ;;  %3757 = vmatmul.mubr.msk.f32.gmra.mrb[78].mxu1 %vm292_vm4, %v200_v24 }
  0xce   :  { %3396 = vmatprep.mubr.msk.f32.mxu0 %vm4074_vm0, %v4075_v1  ;;  %3759 = vmatprep.mubr.msk.f32.mxu1 %vm4074_vm0, %v4075_v1 }
  0xd1   :  { %3397 = vmatmul.mubr.msk.f32.gmra.mrb[80].mxu0 %vm292_vm4, %v80_v25  ;;  %3760 = vmatmul.mubr.msk.f32.gmra.mrb[80].mxu1 %vm292_vm4, %v201_v26 }
  0xd2   :  { %3399 = vmatprep.mubr.msk.f32.mxu0 %vm4074_vm0, %v4075_v1  ;;  %3762 = vmatprep.mubr.msk.f32.mxu1 %vm4074_vm0, %v4075_v1 }
  0xd5   :  { %3400 = vmatmul.mubr.msk.f32.gmra.mrb[82].mxu0 %vm292_vm4, %v81_v27  ;;  %3763 = vmatmul.mubr.msk.f32.gmra.mrb[82].mxu1 %vm292_vm4, %v202_v28  ;;  %v97_v27 = vld [vmem:[%s6764_s0 + $0x1c8] sm:$0xff]  ;;  %v218_v28 = vld [vmem:[%s6764_s0 + $0x590] sm:$0xff] }
  0xd6   :  { %3402 = vmatprep.mubr.msk.f32.mxu0 %vm4074_vm0, %v4075_v1  ;;  %3765 = vmatprep.mubr.msk.f32.mxu1 %vm4074_vm0, %v4075_v1 }
  0xd9   :  { %3403 = vmatmul.mubr.msk.f32.gmra.mrb[84].mxu0 %vm292_vm4, %v82_v29  ;;  %3766 = vmatmul.mubr.msk.f32.gmra.mrb[84].mxu1 %vm292_vm4, %v203_v30 }
  0xda   :  { %3405 = vmatprep.mubr.msk.f32.mxu0 %vm4074_vm0, %v4075_v1  ;;  %3768 = vmatprep.mubr.msk.f32.mxu1 %vm4074_vm0, %v4075_v1 }
  0xdd   :  { %3406 = vmatmul.mubr.msk.f32.gmra.mrb[86].mxu0 %vm292_vm4, %v83_v31  ;;  %3769 = vmatmul.mubr.msk.f32.gmra.mrb[86].mxu1 %vm292_vm4, %v204_v32 }
  0xde   :  { %3408 = vmatprep.mubr.msk.f32.mxu0 %vm4074_vm0, %v4075_v1  ;;  %3771 = vmatprep.mubr.msk.f32.mxu1 %vm4074_vm0, %v4075_v1 }
  0xe1   :  { %3409 = vmatmul.mubr.msk.f32.gmra.mrb[88].mxu0 %vm292_vm4, %v84_v33  ;;  %3772 = vmatmul.mubr.msk.f32.gmra.mrb[88].mxu1 %vm292_vm4, %v205_v34 }
  0xe2   :  { %3411 = vmatprep.mubr.msk.f32.mxu0 %vm4074_vm0, %v4075_v1  ;;  %3774 = vmatprep.mubr.msk.f32.mxu1 %vm4074_vm0, %v4075_v1 }
  0xe5   :  { %3412 = vmatmul.mubr.msk.f32.gmra.mrb[90].mxu0 %vm292_vm4, %v85_v35  ;;  %3775 = vmatmul.mubr.msk.f32.gmra.mrb[90].mxu1 %vm292_vm4, %v206_v36 }
  0xe6   :  { %3414 = vmatprep.mubr.msk.f32.mxu0 %vm4074_vm0, %v4075_v1  ;;  %3777 = vmatprep.mubr.msk.f32.mxu1 %vm4074_vm0, %v4075_v1 }
  0xe9   :  { %3415 = vmatmul.mubr.msk.f32.gmra.mrb[92].mxu0 %vm292_vm4, %v86_v37  ;;  %3778 = vmatmul.mubr.msk.f32.gmra.mrb[92].mxu1 %vm292_vm4, %v207_v38  ;;  %v98_v37 = vld [vmem:[%s6764_s0 + $0x1d0] sm:$0xff]  ;;  %v219_v38 = vld [vmem:[%s6764_s0 + $0x598] sm:$0xff] }
  0xea   :  { %3417 = vmatprep.mubr.msk.f32.mxu0 %vm4074_vm0, %v4075_v1  ;;  %3780 = vmatprep.mubr.msk.f32.mxu1 %vm4074_vm0, %v4075_v1 }
  0xed   :  { %3418 = vmatmul.mubr.msk.f32.gmra.mrb[94].mxu0 %vm292_vm4, %v87_v39  ;;  %3781 = vmatmul.mubr.msk.f32.gmra.mrb[94].mxu1 %vm292_vm4, %v208_v40 }
  0xee   :  { %3420 = vmatprep.mubr.msk.f32.mxu0 %vm4074_vm0, %v4075_v1  ;;  %3783 = vmatprep.mubr.msk.f32.mxu1 %vm4074_vm0, %v4075_v1 }
  0xf1   :  { %3421 = vmatmul.mubr.msk.f32.gmra.mrb[96].mxu0 %vm292_vm4, %v88_v41  ;;  %3784 = vmatmul.mubr.msk.f32.gmra.mrb[96].mxu1 %vm292_vm4, %v209_v42 }
  0xf2   :  { %3423 = vmatprep.mubr.msk.f32.mxu0 %vm4074_vm0, %v4075_v1  ;;  %3786 = vmatprep.mubr.msk.f32.mxu1 %vm4074_vm0, %v4075_v1 }
  0xf5   :  { %3424 = vmatmul.mubr.msk.f32.gmra.mrb[98].mxu0 %vm292_vm4, %v89_v43  ;;  %3787 = vmatmul.mubr.msk.f32.gmra.mrb[98].mxu1 %vm292_vm4, %v210_v44 }
  0xf6   :  { %3426 = vmatprep.mubr.msk.f32.mxu0 %vm4074_vm0, %v4075_v1  ;;  %3789 = vmatprep.mubr.msk.f32.mxu1 %vm4074_vm0, %v4075_v1 }
  0xf9   :  { %3427 = vmatmul.mubr.msk.f32.gmra.mrb[100].mxu0 %vm292_vm4, %v90_v45  ;;  %3790 = vmatmul.mubr.msk.f32.gmra.mrb[100].mxu1 %vm292_vm4, %v211_v46 }
  0xfa   :  { %3429 = vmatprep.mubr.msk.f32.mxu0 %vm4074_vm0, %v4075_v1  ;;  %3792 = vmatprep.mubr.msk.f32.mxu1 %vm4074_vm0, %v4075_v1 }
  0xfd   :  { %3430 = vmatmul.mubr.msk.f32.gmra.mrb[102].mxu0 %vm292_vm4, %v91_v47  ;;  %3793 = vmatmul.mubr.msk.f32.gmra.mrb[102].mxu1 %vm292_vm4, %v212_v48  ;;  %v99_v47 = vld [vmem:[%s6764_s0 + $0x1d8] sm:$0xff]  ;;  %v220_v48 = vld [vmem:[%s6764_s0 + $0x5a0] sm:$0xff] }
  0xfe   :  { %3432 = vmatprep.mubr.msk.f32.mxu0 %vm4074_vm0, %v4075_v1  ;;  %3795 = vmatprep.mubr.msk.f32.mxu1 %vm4074_vm0, %v4075_v1 }
 0x101   :  { %3433 = vmatmul.mubr.msk.f32.gmra.mrb[104].mxu0 %vm292_vm4, %v92_v49  ;;  %3796 = vmatmul.mubr.msk.f32.gmra.mrb[104].mxu1 %vm292_vm4, %v213_v50 }
 0x102   :  { %3435 = vmatprep.mubr.msk.f32.mxu0 %vm4074_vm0, %v4075_v1  ;;  %3798 = vmatprep.mubr.msk.f32.mxu1 %vm4074_vm0, %v4075_v1 }
 0x104   :  { %v1086_v54 = vpop.f32.mrb[0].mxu0  ;;  %v1691_v55 = vpop.f32.mrb[0].mxu1 }
 0x105   :  { %v1087_v56 = vadd.f32 %v4757_v51, %v1086_v54  ;;  %v3278_v57 = vpop.f32.mrb[1].mxu0  ;;  %3436 = vmatmul.mubr.msk.f32.gmra.mrb[106].mxu0 %vm292_vm4, %v93_v52  ;;  %v1692_v58 = vadd.f32 %v4757_v51, %v1691_v55  ;;  %v3641_v59 = vpop.f32.mrb[1].mxu1  ;;  %3799 = vmatmul.mubr.msk.f32.gmra.mrb[106].mxu1 %vm292_vm4, %v214_v53 }
 0x106   :  { %3438 = vmatprep.mubr.msk.f32.mxu0 %vm4074_vm0, %v4075_v1  ;;  %3801 = vmatprep.mubr.msk.f32.mxu1 %vm4074_vm0, %v4075_v1  ;;  %v221_v59 = vld [vmem:[%s6764_s0 + $0x5a8] sm:$0xff] }
 0x107   :  { %v2290_v62 = vmax.f32 %v1087_v56, 0.0  ;;  %v2411_v63 = vmax.f32 %v1692_v58, 0.0  ;;  %v100_v58 = vld [vmem:[%s6764_s0 + $0x1e0] sm:$0xff] }
 0x108   :  { %v1091_v0 = vpop.f32.mrb[2].mxu0  ;;  %v1696_v2 = vpop.f32.mrb[2].mxu1 }
 0x109   :  { %2532 = vst.msk [vmem:[%s6767_s3] sm:$0xff] %vm2531_vm5, %v2290_v62  ;;  %2653 = vst.msk [vmem:[%s6767_s3 + $0x3c8] sm:$0xff] %vm2531_vm5, %v2411_v63  ;;  %v1092_v3 = vadd.f32 %v4757_v51, %v1091_v0  ;;  %v3281_v4 = vpop.f32.mrb[3].mxu0  ;;  %3439 = vmatmul.mubr.msk.f32.gmra.mrb[108].mxu0 %vm292_vm4, %v94_v60  ;;  %v1697_v5 = vadd.f32 %v4757_v51, %v1696_v2  ;;  %v3644_v6 = vpop.f32.mrb[3].mxu1  ;;  %3802 = vmatmul.mubr.msk.f32.gmra.mrb[108].mxu1 %vm292_vm4, %v215_v61 }
 0x10a   :  { %3441 = vmatprep.mubr.msk.f32.mxu0 %vm4074_vm0, %v4075_v1  ;;  %3804 = vmatprep.mubr.msk.f32.mxu1 %vm4074_vm0, %v4075_v1  ;;  %v222_v6 = vld [vmem:[%s6764_s0 + $0x5b0] sm:$0xff] }
 0x10b   :  { %v2291_v9 = vmax.f32 %v1092_v3, 0.0  ;;  %v2412_v10 = vmax.f32 %v1697_v5, 0.0  ;;  %v101_v5 = vld [vmem:[%s6764_s0 + $0x1e8] sm:$0xff] }
 0x10c   :  { %v1096_v11 = vpop.f32.mrb[4].mxu0  ;;  %v1701_v12 = vpop.f32.mrb[4].mxu1 }
 0x10d   :  { %2533 = vst.msk [vmem:[%s6767_s3 + $0x8] sm:$0xff] %vm2531_vm5, %v2291_v9  ;;  %2654 = vst.msk [vmem:[%s6767_s3 + $0x3d0] sm:$0xff] %vm2531_vm5, %v2412_v10  ;;  %v1097_v13 = vadd.f32 %v4757_v51, %v1096_v11  ;;  %v3284_v14 = vpop.f32.mrb[5].mxu0  ;;  %3442 = vmatmul.mubr.msk.f32.gmra.mrb[110].mxu0 %vm292_vm4, %v95_v7  ;;  %v1702_v15 = vadd.f32 %v4757_v51, %v1701_v12  ;;  %v3647_v16 = vpop.f32.mrb[5].mxu1  ;;  %3805 = vmatmul.mubr.msk.f32.gmra.mrb[110].mxu1 %vm292_vm4, %v216_v8 }
 0x10e   :  { %3444 = vmatprep.mubr.msk.f32.mxu0 %vm4074_vm0, %v4075_v1  ;;  %3807 = vmatprep.mubr.msk.f32.mxu1 %vm4074_vm0, %v4075_v1  ;;  %v223_v16 = vld [vmem:[%s6764_s0 + $0x5b8] sm:$0xff] }
 0x10f   :  { %v2292_v19 = vmax.f32 %v1097_v13, 0.0  ;;  %v2413_v20 = vmax.f32 %v1702_v15, 0.0  ;;  %v102_v15 = vld [vmem:[%s6764_s0 + $0x1f0] sm:$0xff] }
 0x110   :  { %v1101_v21 = vpop.f32.mrb[6].mxu0  ;;  %v1706_v22 = vpop.f32.mrb[6].mxu1 }
 0x111   :  { %2534 = vst.msk [vmem:[%s6767_s3 + $0x10] sm:$0xff] %vm2531_vm5, %v2292_v19  ;;  %2655 = vst.msk [vmem:[%s6767_s3 + $0x3d8] sm:$0xff] %vm2531_vm5, %v2413_v20  ;;  %v1102_v23 = vadd.f32 %v4757_v51, %v1101_v21  ;;  %v3287_v24 = vpop.f32.mrb[7].mxu0  ;;  %3445 = vmatmul.mubr.msk.f32.gmra.mrb[112].mxu0 %vm292_vm4, %v96_v17  ;;  %v1707_v25 = vadd.f32 %v4757_v51, %v1706_v22  ;;  %v3650_v26 = vpop.f32.mrb[7].mxu1  ;;  %3808 = vmatmul.mubr.msk.f32.gmra.mrb[112].mxu1 %vm292_vm4, %v217_v18 }
 0x112   :  { %3447 = vmatprep.mubr.msk.f32.mxu0 %vm4074_vm0, %v4075_v1  ;;  %3810 = vmatprep.mubr.msk.f32.mxu1 %vm4074_vm0, %v4075_v1  ;;  %v224_v26 = vld [vmem:[%s6764_s0 + $0x5c0] sm:$0xff] }
 0x113   :  { %v2293_v29 = vmax.f32 %v1102_v23, 0.0  ;;  %v2414_v30 = vmax.f32 %v1707_v25, 0.0  ;;  %v103_v25 = vld [vmem:[%s6764_s0 + $0x1f8] sm:$0xff] }
 0x114   :  { %v1106_v31 = vpop.f32.mrb[8].mxu0  ;;  %v1711_v32 = vpop.f32.mrb[8].mxu1 }
 0x115   :  { %2535 = vst.msk [vmem:[%s6767_s3 + $0x18] sm:$0xff] %vm2531_vm5, %v2293_v29  ;;  %2656 = vst.msk [vmem:[%s6767_s3 + $0x3e0] sm:$0xff] %vm2531_vm5, %v2414_v30  ;;  %v1107_v33 = vadd.f32 %v4757_v51, %v1106_v31  ;;  %v3290_v34 = vpop.f32.mrb[9].mxu0  ;;  %3448 = vmatmul.mubr.msk.f32.gmra.mrb[114].mxu0 %vm292_vm4, %v97_v27  ;;  %v1712_v35 = vadd.f32 %v4757_v51, %v1711_v32  ;;  %v3653_v36 = vpop.f32.mrb[9].mxu1  ;;  %3811 = vmatmul.mubr.msk.f32.gmra.mrb[114].mxu1 %vm292_vm4, %v218_v28 }
 0x116   :  { %3450 = vmatprep.mubr.msk.f32.mxu0 %vm4074_vm0, %v4075_v1  ;;  %3813 = vmatprep.mubr.msk.f32.mxu1 %vm4074_vm0, %v4075_v1  ;;  %v225_v36 = vld [vmem:[%s6764_s0 + $0x5c8] sm:$0xff] }
 0x117   :  { %v2294_v39 = vmax.f32 %v1107_v33, 0.0  ;;  %v2415_v40 = vmax.f32 %v1712_v35, 0.0  ;;  %v104_v35 = vld [vmem:[%s6764_s0 + $0x200] sm:$0xff] }
 0x118   :  { %v1111_v41 = vpop.f32.mrb[10].mxu0  ;;  %v1716_v42 = vpop.f32.mrb[10].mxu1 }
 0x119   :  { %2536 = vst.msk [vmem:[%s6767_s3 + $0x20] sm:$0xff] %vm2531_vm5, %v2294_v39  ;;  %2657 = vst.msk [vmem:[%s6767_s3 + $0x3e8] sm:$0xff] %vm2531_vm5, %v2415_v40  ;;  %v1112_v43 = vadd.f32 %v4757_v51, %v1111_v41  ;;  %v3293_v44 = vpop.f32.mrb[11].mxu0  ;;  %3451 = vmatmul.mubr.msk.f32.gmra.mrb[116].mxu0 %vm292_vm4, %v98_v37  ;;  %v1717_v45 = vadd.f32 %v4757_v51, %v1716_v42  ;;  %v3656_v46 = vpop.f32.mrb[11].mxu1  ;;  %3814 = vmatmul.mubr.msk.f32.gmra.mrb[116].mxu1 %vm292_vm4, %v219_v38 }
 0x11a   :  { %3453 = vmatprep.mubr.msk.f32.mxu0 %vm4074_vm0, %v4075_v1  ;;  %3816 = vmatprep.mubr.msk.f32.mxu1 %vm4074_vm0, %v4075_v1  ;;  %v226_v46 = vld [vmem:[%s6764_s0 + $0x5d0] sm:$0xff] }
 0x11b   :  { %v2295_v49 = vmax.f32 %v1112_v43, 0.0  ;;  %v2416_v50 = vmax.f32 %v1717_v45, 0.0  ;;  %v105_v45 = vld [vmem:[%s6764_s0 + $0x208] sm:$0xff] }
 0x11c   :  { %v1116_v52 = vpop.f32.mrb[12].mxu0  ;;  %v1721_v53 = vpop.f32.mrb[12].mxu1 }
 0x11d   :  { %2537 = vst.msk [vmem:[%s6767_s3 + $0x28] sm:$0xff] %vm2531_vm5, %v2295_v49  ;;  %2658 = vst.msk [vmem:[%s6767_s3 + $0x3f0] sm:$0xff] %vm2531_vm5, %v2416_v50  ;;  %v1117_v54 = vadd.f32 %v4757_v51, %v1116_v52  ;;  %v3296_v55 = vpop.f32.mrb[13].mxu0  ;;  %3454 = vmatmul.mubr.msk.f32.gmra.mrb[118].mxu0 %vm292_vm4, %v99_v47  ;;  %v1722_v56 = vadd.f32 %v4757_v51, %v1721_v53  ;;  %v3659_v57 = vpop.f32.mrb[13].mxu1  ;;  %3817 = vmatmul.mubr.msk.f32.gmra.mrb[118].mxu1 %vm292_vm4, %v220_v48 }
 0x11e   :  { %3456 = vmatprep.mubr.msk.f32.mxu0 %vm4074_vm0, %v4075_v1  ;;  %3819 = vmatprep.mubr.msk.f32.mxu1 %vm4074_vm0, %v4075_v1  ;;  %v227_v57 = vld [vmem:[%s6764_s0 + $0x5d8] sm:$0xff] }
 0x11f   :  { %v2296_v60 = vmax.f32 %v1117_v54, 0.0  ;;  %v2417_v61 = vmax.f32 %v1722_v56, 0.0  ;;  %v106_v56 = vld [vmem:[%s6764_s0 + $0x210] sm:$0xff] }
 0x120   :  { %v1121_v62 = vpop.f32.mrb[14].mxu0  ;;  %v1726_v63 = vpop.f32.mrb[14].mxu1 }
 0x121   :  { %2538 = vst.msk [vmem:[%s6767_s3 + $0x30] sm:$0xff] %vm2531_vm5, %v2296_v60  ;;  %2659 = vst.msk [vmem:[%s6767_s3 + $0x3f8] sm:$0xff] %vm2531_vm5, %v2417_v61  ;;  %v1122_v0 = vadd.f32 %v4757_v51, %v1121_v62  ;;  %v3299_v2 = vpop.f32.mrb[15].mxu0  ;;  %3457 = vmatmul.mubr.msk.f32.gmra.mrb[120].mxu0 %vm292_vm4, %v100_v58  ;;  %v1727_v3 = vadd.f32 %v4757_v51, %v1726_v63  ;;  %v3662_v4 = vpop.f32.mrb[15].mxu1  ;;  %3820 = vmatmul.mubr.msk.f32.gmra.mrb[120].mxu1 %vm292_vm4, %v221_v59 }
 0x122   :  { %3459 = vmatprep.mubr.msk.f32.mxu0 %vm4074_vm0, %v4075_v1  ;;  %3822 = vmatprep.mubr.msk.f32.mxu1 %vm4074_vm0, %v4075_v1  ;;  %v228_v4 = vld [vmem:[%s6764_s0 + $0x5e0] sm:$0xff] }
 0x123   :  { %v2297_v7 = vmax.f32 %v1122_v0, 0.0  ;;  %v2418_v8 = vmax.f32 %v1727_v3, 0.0  ;;  %v107_v3 = vld [vmem:[%s6764_s0 + $0x218] sm:$0xff] }
 0x124   :  { %v1126_v9 = vpop.f32.mrb[16].mxu0  ;;  %v1731_v10 = vpop.f32.mrb[16].mxu1 }
 0x125   :  { %2539 = vst.msk [vmem:[%s6767_s3 + $0x38] sm:$0xff] %vm2531_vm5, %v2297_v7  ;;  %2660 = vst.msk [vmem:[%s6767_s3 + $0x400] sm:$0xff] %vm2531_vm5, %v2418_v8  ;;  %v1127_v11 = vadd.f32 %v4757_v51, %v1126_v9  ;;  %v3302_v12 = vpop.f32.mrb[17].mxu0  ;;  %3460 = vmatmul.mubr.msk.f32.gmra.mrb[122].mxu0 %vm292_vm4, %v101_v5  ;;  %v1732_v13 = vadd.f32 %v4757_v51, %v1731_v10  ;;  %v3665_v14 = vpop.f32.mrb[17].mxu1  ;;  %3823 = vmatmul.mubr.msk.f32.gmra.mrb[122].mxu1 %vm292_vm4, %v222_v6 }
 0x126   :  { %3462 = vmatprep.mubr.msk.f32.mxu0 %vm4074_vm0, %v4075_v1  ;;  %3825 = vmatprep.mubr.msk.f32.mxu1 %vm4074_vm0, %v4075_v1  ;;  %v229_v14 = vld [vmem:[%s6764_s0 + $0x5e8] sm:$0xff] }
 0x127   :  { %v2298_v17 = vmax.f32 %v1127_v11, 0.0  ;;  %v2419_v18 = vmax.f32 %v1732_v13, 0.0  ;;  %v108_v13 = vld [vmem:[%s6764_s0 + $0x220] sm:$0xff] }
 0x128   :  { %v1131_v19 = vpop.f32.mrb[18].mxu0  ;;  %v1736_v20 = vpop.f32.mrb[18].mxu1 }
 0x129   :  { %2540 = vst.msk [vmem:[%s6767_s3 + $0x40] sm:$0xff] %vm2531_vm5, %v2298_v17  ;;  %2661 = vst.msk [vmem:[%s6767_s3 + $0x408] sm:$0xff] %vm2531_vm5, %v2419_v18  ;;  %v1132_v21 = vadd.f32 %v4757_v51, %v1131_v19  ;;  %v3305_v22 = vpop.f32.mrb[19].mxu0  ;;  %3463 = vmatmul.mubr.msk.f32.gmra.mrb[124].mxu0 %vm292_vm4, %v102_v15  ;;  %v1737_v23 = vadd.f32 %v4757_v51, %v1736_v20  ;;  %v3668_v24 = vpop.f32.mrb[19].mxu1  ;;  %3826 = vmatmul.mubr.msk.f32.gmra.mrb[124].mxu1 %vm292_vm4, %v223_v16 }
 0x12a   :  { %3465 = vmatprep.mubr.msk.f32.mxu0 %vm4074_vm0, %v4075_v1  ;;  %3828 = vmatprep.mubr.msk.f32.mxu1 %vm4074_vm0, %v4075_v1  ;;  %v230_v24 = vld [vmem:[%s6764_s0 + $0x5f0] sm:$0xff] }
 0x12b   :  { %v2299_v27 = vmax.f32 %v1132_v21, 0.0  ;;  %v2420_v28 = vmax.f32 %v1737_v23, 0.0  ;;  %v109_v23 = vld [vmem:[%s6764_s0 + $0x228] sm:$0xff] }
 0x12c   :  { %v1136_v29 = vpop.f32.mrb[20].mxu0  ;;  %v1741_v30 = vpop.f32.mrb[20].mxu1 }
 0x12d   :  { %2541 = vst.msk [vmem:[%s6767_s3 + $0x48] sm:$0xff] %vm2531_vm5, %v2299_v27  ;;  %2662 = vst.msk [vmem:[%s6767_s3 + $0x410] sm:$0xff] %vm2531_vm5, %v2420_v28  ;;  %v1137_v31 = vadd.f32 %v4757_v51, %v1136_v29  ;;  %v3308_v32 = vpop.f32.mrb[21].mxu0  ;;  %3466 = vmatmul.mubr.msk.f32.gmra.mrb[126].mxu0 %vm292_vm4, %v103_v25  ;;  %v1742_v33 = vadd.f32 %v4757_v51, %v1741_v30  ;;  %v3671_v34 = vpop.f32.mrb[21].mxu1  ;;  %3829 = vmatmul.mubr.msk.f32.gmra.mrb[126].mxu1 %vm292_vm4, %v224_v26 }
 0x12e   :  { %3468 = vmatprep.mubr.msk.f32.mxu0 %vm4074_vm0, %v4075_v1  ;;  %3831 = vmatprep.mubr.msk.f32.mxu1 %vm4074_vm0, %v4075_v1  ;;  %v231_v34 = vld [vmem:[%s6764_s0 + $0x5f8] sm:$0xff] }
 0x12f   :  { %v2300_v37 = vmax.f32 %v1137_v31, 0.0  ;;  %v2421_v38 = vmax.f32 %v1742_v33, 0.0  ;;  %v110_v33 = vld [vmem:[%s6764_s0 + $0x230] sm:$0xff] }
 0x130   :  { %v1141_v39 = vpop.f32.mrb[22].mxu0  ;;  %v1746_v40 = vpop.f32.mrb[22].mxu1 }
 0x131   :  { %2542 = vst.msk [vmem:[%s6767_s3 + $0x50] sm:$0xff] %vm2531_vm5, %v2300_v37  ;;  %2663 = vst.msk [vmem:[%s6767_s3 + $0x418] sm:$0xff] %vm2531_vm5, %v2421_v38  ;;  %v1142_v41 = vadd.f32 %v4757_v51, %v1141_v39  ;;  %v3311_v42 = vpop.f32.mrb[23].mxu0  ;;  %3469 = vmatmul.mubr.msk.f32.gmra.mrb[128].mxu0 %vm292_vm4, %v104_v35  ;;  %v1747_v43 = vadd.f32 %v4757_v51, %v1746_v40  ;;  %v3674_v44 = vpop.f32.mrb[23].mxu1  ;;  %3832 = vmatmul.mubr.msk.f32.gmra.mrb[128].mxu1 %vm292_vm4, %v225_v36 }
 0x132   :  { %3471 = vmatprep.mubr.msk.f32.mxu0 %vm4074_vm0, %v4075_v1  ;;  %3834 = vmatprep.mubr.msk.f32.mxu1 %vm4074_vm0, %v4075_v1  ;;  %v232_v44 = vld [vmem:[%s6764_s0 + $0x600] sm:$0xff] }
 0x133   :  { %v2301_v47 = vmax.f32 %v1142_v41, 0.0  ;;  %v2422_v48 = vmax.f32 %v1747_v43, 0.0  ;;  %v111_v43 = vld [vmem:[%s6764_s0 + $0x238] sm:$0xff] }
 0x134   :  { %v1146_v49 = vpop.f32.mrb[24].mxu0  ;;  %v1751_v50 = vpop.f32.mrb[24].mxu1 }
 0x135   :  { %2543 = vst.msk [vmem:[%s6767_s3 + $0x58] sm:$0xff] %vm2531_vm5, %v2301_v47  ;;  %2664 = vst.msk [vmem:[%s6767_s3 + $0x420] sm:$0xff] %vm2531_vm5, %v2422_v48  ;;  %v1147_v52 = vadd.f32 %v4757_v51, %v1146_v49  ;;  %v3314_v53 = vpop.f32.mrb[25].mxu0  ;;  %3472 = vmatmul.mubr.msk.f32.gmra.mrb[130].mxu0 %vm292_vm4, %v105_v45  ;;  %v1752_v54 = vadd.f32 %v4757_v51, %v1751_v50  ;;  %v3677_v55 = vpop.f32.mrb[25].mxu1  ;;  %3835 = vmatmul.mubr.msk.f32.gmra.mrb[130].mxu1 %vm292_vm4, %v226_v46 }
 0x136   :  { %3474 = vmatprep.mubr.msk.f32.mxu0 %vm4074_vm0, %v4075_v1  ;;  %3837 = vmatprep.mubr.msk.f32.mxu1 %vm4074_vm0, %v4075_v1  ;;  %v233_v55 = vld [vmem:[%s6764_s0 + $0x608] sm:$0xff] }
 0x137   :  { %v2302_v58 = vmax.f32 %v1147_v52, 0.0  ;;  %v2423_v59 = vmax.f32 %v1752_v54, 0.0  ;;  %v112_v54 = vld [vmem:[%s6764_s0 + $0x240] sm:$0xff] }
 0x138   :  { %v1151_v60 = vpop.f32.mrb[26].mxu0  ;;  %v1756_v61 = vpop.f32.mrb[26].mxu1 }
 0x139   :  { %2544 = vst.msk [vmem:[%s6767_s3 + $0x60] sm:$0xff] %vm2531_vm5, %v2302_v58  ;;  %2665 = vst.msk [vmem:[%s6767_s3 + $0x428] sm:$0xff] %vm2531_vm5, %v2423_v59  ;;  %v1152_v62 = vadd.f32 %v4757_v51, %v1151_v60  ;;  %v3317_v63 = vpop.f32.mrb[27].mxu0  ;;  %3475 = vmatmul.mubr.msk.f32.gmra.mrb[132].mxu0 %vm292_vm4, %v106_v56  ;;  %v1757_v0 = vadd.f32 %v4757_v51, %v1756_v61  ;;  %v3680_v2 = vpop.f32.mrb[27].mxu1  ;;  %3838 = vmatmul.mubr.msk.f32.gmra.mrb[132].mxu1 %vm292_vm4, %v227_v57 }
 0x13a   :  { %3477 = vmatprep.mubr.msk.f32.mxu0 %vm4074_vm0, %v4075_v1  ;;  %3840 = vmatprep.mubr.msk.f32.mxu1 %vm4074_vm0, %v4075_v1  ;;  %v234_v2 = vld [vmem:[%s6764_s0 + $0x610] sm:$0xff] }
 0x13b   :  { %v2303_v5 = vmax.f32 %v1152_v62, 0.0  ;;  %v2424_v6 = vmax.f32 %v1757_v0, 0.0  ;;  %v113_v0 = vld [vmem:[%s6764_s0 + $0x248] sm:$0xff] }
 0x13c   :  { %v1156_v7 = vpop.f32.mrb[28].mxu0  ;;  %v1761_v8 = vpop.f32.mrb[28].mxu1 }
 0x13d   :  { %2545 = vst.msk [vmem:[%s6767_s3 + $0x68] sm:$0xff] %vm2531_vm5, %v2303_v5  ;;  %2666 = vst.msk [vmem:[%s6767_s3 + $0x430] sm:$0xff] %vm2531_vm5, %v2424_v6  ;;  %v1157_v9 = vadd.f32 %v4757_v51, %v1156_v7  ;;  %v3320_v10 = vpop.f32.mrb[29].mxu0  ;;  %3478 = vmatmul.mubr.msk.f32.gmra.mrb[134].mxu0 %vm292_vm4, %v107_v3  ;;  %v1762_v11 = vadd.f32 %v4757_v51, %v1761_v8  ;;  %v3683_v12 = vpop.f32.mrb[29].mxu1  ;;  %3841 = vmatmul.mubr.msk.f32.gmra.mrb[134].mxu1 %vm292_vm4, %v228_v4 }
 0x13e   :  { %3480 = vmatprep.mubr.msk.f32.mxu0 %vm4074_vm0, %v4075_v1  ;;  %3843 = vmatprep.mubr.msk.f32.mxu1 %vm4074_vm0, %v4075_v1  ;;  %v235_v12 = vld [vmem:[%s6764_s0 + $0x618] sm:$0xff] }
 0x13f   :  { %v2304_v15 = vmax.f32 %v1157_v9, 0.0  ;;  %v2425_v16 = vmax.f32 %v1762_v11, 0.0  ;;  %v114_v11 = vld [vmem:[%s6764_s0 + $0x250] sm:$0xff] }
 0x140   :  { %v1161_v17 = vpop.f32.mrb[30].mxu0  ;;  %v1766_v18 = vpop.f32.mrb[30].mxu1 }
 0x141   :  { %2546 = vst.msk [vmem:[%s6767_s3 + $0x70] sm:$0xff] %vm2531_vm5, %v2304_v15  ;;  %2667 = vst.msk [vmem:[%s6767_s3 + $0x438] sm:$0xff] %vm2531_vm5, %v2425_v16  ;;  %v1162_v19 = vadd.f32 %v4757_v51, %v1161_v17  ;;  %v3323_v20 = vpop.f32.mrb[31].mxu0  ;;  %3481 = vmatmul.mubr.msk.f32.gmra.mrb[136].mxu0 %vm292_vm4, %v108_v13  ;;  %v1767_v21 = vadd.f32 %v4757_v51, %v1766_v18  ;;  %v3686_v22 = vpop.f32.mrb[31].mxu1  ;;  %3844 = vmatmul.mubr.msk.f32.gmra.mrb[136].mxu1 %vm292_vm4, %v229_v14 }
 0x142   :  { %3483 = vmatprep.mubr.msk.f32.mxu0 %vm4074_vm0, %v4075_v1  ;;  %3846 = vmatprep.mubr.msk.f32.mxu1 %vm4074_vm0, %v4075_v1  ;;  %v236_v22 = vld [vmem:[%s6764_s0 + $0x620] sm:$0xff] }
 0x143   :  { %v2305_v25 = vmax.f32 %v1162_v19, 0.0  ;;  %v2426_v26 = vmax.f32 %v1767_v21, 0.0  ;;  %v115_v21 = vld [vmem:[%s6764_s0 + $0x258] sm:$0xff] }
 0x144   :  { %v1166_v27 = vpop.f32.mrb[32].mxu0  ;;  %v1771_v28 = vpop.f32.mrb[32].mxu1 }
 0x145   :  { %2547 = vst.msk [vmem:[%s6767_s3 + $0x78] sm:$0xff] %vm2531_vm5, %v2305_v25  ;;  %2668 = vst.msk [vmem:[%s6767_s3 + $0x440] sm:$0xff] %vm2531_vm5, %v2426_v26  ;;  %v1167_v29 = vadd.f32 %v4757_v51, %v1166_v27  ;;  %v3326_v30 = vpop.f32.mrb[33].mxu0  ;;  %3484 = vmatmul.mubr.msk.f32.gmra.mrb[138].mxu0 %vm292_vm4, %v109_v23  ;;  %v1772_v31 = vadd.f32 %v4757_v51, %v1771_v28  ;;  %v3689_v32 = vpop.f32.mrb[33].mxu1  ;;  %3847 = vmatmul.mubr.msk.f32.gmra.mrb[138].mxu1 %vm292_vm4, %v230_v24 }
 0x146   :  { %3486 = vmatprep.mubr.msk.f32.mxu0 %vm4074_vm0, %v4075_v1  ;;  %3849 = vmatprep.mubr.msk.f32.mxu1 %vm4074_vm0, %v4075_v1  ;;  %v237_v32 = vld [vmem:[%s6764_s0 + $0x628] sm:$0xff] }
 0x147   :  { %v2306_v35 = vmax.f32 %v1167_v29, 0.0  ;;  %v2427_v36 = vmax.f32 %v1772_v31, 0.0  ;;  %v116_v31 = vld [vmem:[%s6764_s0 + $0x260] sm:$0xff] }
 0x148   :  { %v1171_v37 = vpop.f32.mrb[34].mxu0  ;;  %v1776_v38 = vpop.f32.mrb[34].mxu1 }
 0x149   :  { %2548 = vst.msk [vmem:[%s6767_s3 + $0x80] sm:$0xff] %vm2531_vm5, %v2306_v35  ;;  %2669 = vst.msk [vmem:[%s6767_s3 + $0x448] sm:$0xff] %vm2531_vm5, %v2427_v36  ;;  %v1172_v39 = vadd.f32 %v4757_v51, %v1171_v37  ;;  %v3329_v40 = vpop.f32.mrb[35].mxu0  ;;  %3487 = vmatmul.mubr.msk.f32.gmra.mrb[140].mxu0 %vm292_vm4, %v110_v33  ;;  %v1777_v41 = vadd.f32 %v4757_v51, %v1776_v38  ;;  %v3692_v42 = vpop.f32.mrb[35].mxu1  ;;  %3850 = vmatmul.mubr.msk.f32.gmra.mrb[140].mxu1 %vm292_vm4, %v231_v34 }
 0x14a   :  { %3489 = vmatprep.mubr.msk.f32.mxu0 %vm4074_vm0, %v4075_v1  ;;  %3852 = vmatprep.mubr.msk.f32.mxu1 %vm4074_vm0, %v4075_v1  ;;  %v238_v42 = vld [vmem:[%s6764_s0 + $0x630] sm:$0xff] }
 0x14b   :  { %v2307_v45 = vmax.f32 %v1172_v39, 0.0  ;;  %v2428_v46 = vmax.f32 %v1777_v41, 0.0  ;;  %v117_v41 = vld [vmem:[%s6764_s0 + $0x268] sm:$0xff] }
 0x14c   :  { %v1176_v47 = vpop.f32.mrb[36].mxu0  ;;  %v1781_v48 = vpop.f32.mrb[36].mxu1 }
 0x14d   :  { %2549 = vst.msk [vmem:[%s6767_s3 + $0x88] sm:$0xff] %vm2531_vm5, %v2307_v45  ;;  %2670 = vst.msk [vmem:[%s6767_s3 + $0x450] sm:$0xff] %vm2531_vm5, %v2428_v46  ;;  %v1177_v49 = vadd.f32 %v4757_v51, %v1176_v47  ;;  %v3332_v50 = vpop.f32.mrb[37].mxu0  ;;  %3490 = vmatmul.mubr.msk.f32.gmra.mrb[142].mxu0 %vm292_vm4, %v111_v43  ;;  %v1782_v52 = vadd.f32 %v4757_v51, %v1781_v48  ;;  %v3695_v53 = vpop.f32.mrb[37].mxu1  ;;  %3853 = vmatmul.mubr.msk.f32.gmra.mrb[142].mxu1 %vm292_vm4, %v232_v44 }
 0x14e   :  { %3492 = vmatprep.mubr.msk.f32.mxu0 %vm4074_vm0, %v4075_v1  ;;  %3855 = vmatprep.mubr.msk.f32.mxu1 %vm4074_vm0, %v4075_v1  ;;  %v239_v53 = vld [vmem:[%s6764_s0 + $0x638] sm:$0xff] }
 0x14f   :  { %v2308_v56 = vmax.f32 %v1177_v49, 0.0  ;;  %v2429_v57 = vmax.f32 %v1782_v52, 0.0  ;;  %v118_v52 = vld [vmem:[%s6764_s0 + $0x270] sm:$0xff] }
 0x150   :  { %v1181_v58 = vpop.f32.mrb[38].mxu0  ;;  %v1786_v59 = vpop.f32.mrb[38].mxu1 }
 0x151   :  { %2550 = vst.msk [vmem:[%s6767_s3 + $0x90] sm:$0xff] %vm2531_vm5, %v2308_v56  ;;  %2671 = vst.msk [vmem:[%s6767_s3 + $0x458] sm:$0xff] %vm2531_vm5, %v2429_v57  ;;  %v1182_v60 = vadd.f32 %v4757_v51, %v1181_v58  ;;  %v3335_v61 = vpop.f32.mrb[39].mxu0  ;;  %3493 = vmatmul.mubr.msk.f32.gmra.mrb[144].mxu0 %vm292_vm4, %v112_v54  ;;  %v1787_v62 = vadd.f32 %v4757_v51, %v1786_v59  ;;  %v3698_v63 = vpop.f32.mrb[39].mxu1  ;;  %3856 = vmatmul.mubr.msk.f32.gmra.mrb[144].mxu1 %vm292_vm4, %v233_v55 }
 0x152   :  { %3495 = vmatprep.mubr.msk.f32.mxu0 %vm4074_vm0, %v4075_v1  ;;  %3858 = vmatprep.mubr.msk.f32.mxu1 %vm4074_vm0, %v4075_v1  ;;  %v240_v63 = vld [vmem:[%s6764_s0 + $0x640] sm:$0xff] }
 0x153   :  { %v2309_v3 = vmax.f32 %v1182_v60, 0.0  ;;  %v2430_v4 = vmax.f32 %v1787_v62, 0.0  ;;  %v119_v62 = vld [vmem:[%s6764_s0 + $0x278] sm:$0xff] }
 0x154   :  { %v1186_v5 = vpop.f32.mrb[40].mxu0  ;;  %v1791_v6 = vpop.f32.mrb[40].mxu1 }
 0x155   :  { %2551 = vst.msk [vmem:[%s6767_s3 + $0x98] sm:$0xff] %vm2531_vm5, %v2309_v3  ;;  %2672 = vst.msk [vmem:[%s6767_s3 + $0x460] sm:$0xff] %vm2531_vm5, %v2430_v4  ;;  %v1187_v7 = vadd.f32 %v4757_v51, %v1186_v5  ;;  %v3338_v8 = vpop.f32.mrb[41].mxu0  ;;  %3496 = vmatmul.mubr.msk.f32.gmra.mrb[146].mxu0 %vm292_vm4, %v113_v0  ;;  %v1792_v9 = vadd.f32 %v4757_v51, %v1791_v6  ;;  %v3701_v10 = vpop.f32.mrb[41].mxu1  ;;  %3859 = vmatmul.mubr.msk.f32.gmra.mrb[146].mxu1 %vm292_vm4, %v234_v2 }
 0x156   :  { %3498 = vmatprep.mubr.msk.f32.mxu0 %vm4074_vm0, %v4075_v1  ;;  %3861 = vmatprep.mubr.msk.f32.mxu1 %vm4074_vm0, %v4075_v1  ;;  %v241_v10 = vld [vmem:[%s6764_s0 + $0x648] sm:$0xff] }
 0x157   :  { %v2310_v13 = vmax.f32 %v1187_v7, 0.0  ;;  %v2431_v14 = vmax.f32 %v1792_v9, 0.0  ;;  %v120_v9 = vld [vmem:[%s6764_s0 + $0x280] sm:$0xff] }
 0x158   :  { %v1191_v15 = vpop.f32.mrb[42].mxu0  ;;  %v1796_v16 = vpop.f32.mrb[42].mxu1 }
 0x159   :  { %2552 = vst.msk [vmem:[%s6767_s3 + $0xa0] sm:$0xff] %vm2531_vm5, %v2310_v13  ;;  %2673 = vst.msk [vmem:[%s6767_s3 + $0x468] sm:$0xff] %vm2531_vm5, %v2431_v14  ;;  %v1192_v17 = vadd.f32 %v4757_v51, %v1191_v15  ;;  %v3341_v18 = vpop.f32.mrb[43].mxu0  ;;  %3499 = vmatmul.mubr.msk.f32.gmra.mrb[148].mxu0 %vm292_vm4, %v114_v11  ;;  %v1797_v19 = vadd.f32 %v4757_v51, %v1796_v16  ;;  %v3704_v20 = vpop.f32.mrb[43].mxu1  ;;  %3862 = vmatmul.mubr.msk.f32.gmra.mrb[148].mxu1 %vm292_vm4, %v235_v12 }
 0x15a   :  { %3501 = vmatprep.mubr.msk.f32.mxu0 %vm4074_vm0, %v4075_v1  ;;  %3864 = vmatprep.mubr.msk.f32.mxu1 %vm4074_vm0, %v4075_v1  ;;  %v242_v20 = vld [vmem:[%s6764_s0 + $0x650] sm:$0xff] }
 0x15b   :  { %v2311_v23 = vmax.f32 %v1192_v17, 0.0  ;;  %v2432_v24 = vmax.f32 %v1797_v19, 0.0  ;;  %v121_v19 = vld [vmem:[%s6764_s0 + $0x288] sm:$0xff] }
 0x15c   :  { %v1196_v25 = vpop.f32.mrb[44].mxu0  ;;  %v1801_v26 = vpop.f32.mrb[44].mxu1 }
 0x15d   :  { %2553 = vst.msk [vmem:[%s6767_s3 + $0xa8] sm:$0xff] %vm2531_vm5, %v2311_v23  ;;  %2674 = vst.msk [vmem:[%s6767_s3 + $0x470] sm:$0xff] %vm2531_vm5, %v2432_v24  ;;  %v1197_v27 = vadd.f32 %v4757_v51, %v1196_v25  ;;  %v3344_v28 = vpop.f32.mrb[45].mxu0  ;;  %3502 = vmatmul.mubr.msk.f32.gmra.mrb[150].mxu0 %vm292_vm4, %v115_v21  ;;  %v1802_v29 = vadd.f32 %v4757_v51, %v1801_v26  ;;  %v3707_v30 = vpop.f32.mrb[45].mxu1  ;;  %3865 = vmatmul.mubr.msk.f32.gmra.mrb[150].mxu1 %vm292_vm4, %v236_v22 }
 0x15e   :  { %3504 = vmatprep.mubr.msk.f32.mxu0 %vm4074_vm0, %v4075_v1  ;;  %3867 = vmatprep.mubr.msk.f32.mxu1 %vm4074_vm0, %v4075_v1  ;;  %v243_v30 = vld [vmem:[%s6764_s0 + $0x658] sm:$0xff] }
 0x15f   :  { %v2312_v33 = vmax.f32 %v1197_v27, 0.0  ;;  %v2433_v34 = vmax.f32 %v1802_v29, 0.0  ;;  %v122_v29 = vld [vmem:[%s6764_s0 + $0x290] sm:$0xff] }
 0x160   :  { %v1201_v35 = vpop.f32.mrb[46].mxu0  ;;  %v1806_v36 = vpop.f32.mrb[46].mxu1 }
 0x161   :  { %2554 = vst.msk [vmem:[%s6767_s3 + $0xb0] sm:$0xff] %vm2531_vm5, %v2312_v33  ;;  %2675 = vst.msk [vmem:[%s6767_s3 + $0x478] sm:$0xff] %vm2531_vm5, %v2433_v34  ;;  %v1202_v37 = vadd.f32 %v4757_v51, %v1201_v35  ;;  %v3347_v38 = vpop.f32.mrb[47].mxu0  ;;  %3505 = vmatmul.mubr.msk.f32.gmra.mrb[152].mxu0 %vm292_vm4, %v116_v31  ;;  %v1807_v39 = vadd.f32 %v4757_v51, %v1806_v36  ;;  %v3710_v40 = vpop.f32.mrb[47].mxu1  ;;  %3868 = vmatmul.mubr.msk.f32.gmra.mrb[152].mxu1 %vm292_vm4, %v237_v32 }
 0x162   :  { %3507 = vmatprep.mubr.msk.f32.mxu0 %vm4074_vm0, %v4075_v1  ;;  %3870 = vmatprep.mubr.msk.f32.mxu1 %vm4074_vm0, %v4075_v1  ;;  %v244_v40 = vld [vmem:[%s6764_s0 + $0x660] sm:$0xff] }
 0x163   :  { %v2313_v43 = vmax.f32 %v1202_v37, 0.0  ;;  %v2434_v44 = vmax.f32 %v1807_v39, 0.0  ;;  %v123_v39 = vld [vmem:[%s6764_s0 + $0x298] sm:$0xff] }
 0x164   :  { %v1206_v45 = vpop.f32.mrb[48].mxu0  ;;  %v1811_v46 = vpop.f32.mrb[48].mxu1 }
 0x165   :  { %2555 = vst.msk [vmem:[%s6767_s3 + $0xb8] sm:$0xff] %vm2531_vm5, %v2313_v43  ;;  %2676 = vst.msk [vmem:[%s6767_s3 + $0x480] sm:$0xff] %vm2531_vm5, %v2434_v44  ;;  %v1207_v47 = vadd.f32 %v4757_v51, %v1206_v45  ;;  %v3350_v48 = vpop.f32.mrb[49].mxu0  ;;  %3508 = vmatmul.mubr.msk.f32.gmra.mrb[154].mxu0 %vm292_vm4, %v117_v41  ;;  %v1812_v49 = vadd.f32 %v4757_v51, %v1811_v46  ;;  %v3713_v50 = vpop.f32.mrb[49].mxu1  ;;  %3871 = vmatmul.mubr.msk.f32.gmra.mrb[154].mxu1 %vm292_vm4, %v238_v42 }
 0x166   :  { %3510 = vmatprep.mubr.msk.f32.mxu0 %vm4074_vm0, %v4075_v1  ;;  %3873 = vmatprep.mubr.msk.f32.mxu1 %vm4074_vm0, %v4075_v1  ;;  %v245_v50 = vld [vmem:[%s6764_s0 + $0x668] sm:$0xff] }
 0x167   :  { %v2314_v54 = vmax.f32 %v1207_v47, 0.0  ;;  %v2435_v55 = vmax.f32 %v1812_v49, 0.0  ;;  %v124_v49 = vld [vmem:[%s6764_s0 + $0x2a0] sm:$0xff] }
 0x168   :  { %v1211_v56 = vpop.f32.mrb[50].mxu0  ;;  %v1816_v57 = vpop.f32.mrb[50].mxu1 }
 0x169   :  { %2556 = vst.msk [vmem:[%s6767_s3 + $0xc0] sm:$0xff] %vm2531_vm5, %v2314_v54  ;;  %2677 = vst.msk [vmem:[%s6767_s3 + $0x488] sm:$0xff] %vm2531_vm5, %v2435_v55  ;;  %v1212_v58 = vadd.f32 %v4757_v51, %v1211_v56  ;;  %v3353_v59 = vpop.f32.mrb[51].mxu0  ;;  %3511 = vmatmul.mubr.msk.f32.gmra.mrb[156].mxu0 %vm292_vm4, %v118_v52  ;;  %v1817_v60 = vadd.f32 %v4757_v51, %v1816_v57  ;;  %v3716_v61 = vpop.f32.mrb[51].mxu1  ;;  %3874 = vmatmul.mubr.msk.f32.gmra.mrb[156].mxu1 %vm292_vm4, %v239_v53 }
 0x16a   :  { %3513 = vmatprep.mubr.msk.f32.mxu0 %vm4074_vm0, %v4075_v1  ;;  %3876 = vmatprep.mubr.msk.f32.mxu1 %vm4074_vm0, %v4075_v1  ;;  %v246_v61 = vld [vmem:[%s6764_s0 + $0x670] sm:$0xff] }
 0x16b   :  { %v2315_v0 = vmax.f32 %v1212_v58, 0.0  ;;  %v2436_v2 = vmax.f32 %v1817_v60, 0.0  ;;  %v125_v60 = vld [vmem:[%s6764_s0 + $0x2a8] sm:$0xff] }
 0x16c   :  { %v1216_v3 = vpop.f32.mrb[52].mxu0  ;;  %v1821_v4 = vpop.f32.mrb[52].mxu1 }
 0x16d   :  { %2557 = vst.msk [vmem:[%s6767_s3 + $0xc8] sm:$0xff] %vm2531_vm5, %v2315_v0  ;;  %2678 = vst.msk [vmem:[%s6767_s3 + $0x490] sm:$0xff] %vm2531_vm5, %v2436_v2  ;;  %v1217_v5 = vadd.f32 %v4757_v51, %v1216_v3  ;;  %v3356_v6 = vpop.f32.mrb[53].mxu0  ;;  %3514 = vmatmul.mubr.msk.f32.gmra.mrb[158].mxu0 %vm292_vm4, %v119_v62  ;;  %v1822_v7 = vadd.f32 %v4757_v51, %v1821_v4  ;;  %v3719_v8 = vpop.f32.mrb[53].mxu1  ;;  %3877 = vmatmul.mubr.msk.f32.gmra.mrb[158].mxu1 %vm292_vm4, %v240_v63  ;;  %v5473_v2 = vld [vmem:[#allocation4] ss:$0 sm:$0xff] }
 0x16e   :  { %3516 = vmatprep.mubr.msk.f32.mxu0 %vm4074_vm0, %v4075_v1  ;;  %3879 = vmatprep.mubr.msk.f32.mxu1 %vm4074_vm0, %v4075_v1  ;;  %v247_v8 = vld [vmem:[%s6764_s0 + $0x678] sm:$0xff] }
 0x16f   :  { %v2316_v11 = vmax.f32 %v1217_v5, 0.0  ;;  %v2437_v12 = vmax.f32 %v1822_v7, 0.0  ;;  %v126_v7 = vld [vmem:[%s6764_s0 + $0x2b0] sm:$0xff] }
 0x170   :  { %v1221_v13 = vpop.f32.mrb[54].mxu0  ;;  %v1826_v14 = vpop.f32.mrb[54].mxu1 }
 0x171   :  { %2558 = vst.msk [vmem:[%s6767_s3 + $0xd0] sm:$0xff] %vm2531_vm5, %v2316_v11  ;;  %2679 = vst.msk [vmem:[%s6767_s3 + $0x498] sm:$0xff] %vm2531_vm5, %v2437_v12  ;;  %v1222_v15 = vadd.f32 %v4757_v51, %v1221_v13  ;;  %v3359_v16 = vpop.f32.mrb[55].mxu0  ;;  %3517 = vmatmul.mubr.msk.f32.gmra.mrb[160].mxu0 %vm292_vm4, %v120_v9  ;;  %v1827_v17 = vadd.f32 %v4757_v51, %v1826_v14  ;;  %v3722_v18 = vpop.f32.mrb[55].mxu1  ;;  %3880 = vmatmul.mubr.msk.f32.gmra.mrb[160].mxu1 %vm292_vm4, %v241_v10 }
 0x172   :  { %3519 = vmatprep.mubr.msk.f32.mxu0 %vm4074_vm0, %v4075_v1  ;;  %3882 = vmatprep.mubr.msk.f32.mxu1 %vm4074_vm0, %v4075_v1  ;;  %v248_v18 = vld [vmem:[%s6764_s0 + $0x680] sm:$0xff] }
 0x173   :  { %v2317_v21 = vmax.f32 %v1222_v15, 0.0  ;;  %v2438_v22 = vmax.f32 %v1827_v17, 0.0  ;;  %v127_v17 = vld [vmem:[%s6764_s0 + $0x2b8] sm:$0xff] }
 0x174   :  { %v1226_v23 = vpop.f32.mrb[56].mxu0  ;;  %v1831_v24 = vpop.f32.mrb[56].mxu1 }
 0x175   :  { %2559 = vst.msk [vmem:[%s6767_s3 + $0xd8] sm:$0xff] %vm2531_vm5, %v2317_v21  ;;  %2680 = vst.msk [vmem:[%s6767_s3 + $0x4a0] sm:$0xff] %vm2531_vm5, %v2438_v22  ;;  %v1227_v25 = vadd.f32 %v4757_v51, %v1226_v23  ;;  %v3362_v26 = vpop.f32.mrb[57].mxu0  ;;  %3520 = vmatmul.mubr.msk.f32.gmra.mrb[162].mxu0 %vm292_vm4, %v121_v19  ;;  %v1832_v27 = vadd.f32 %v4757_v51, %v1831_v24  ;;  %v3725_v28 = vpop.f32.mrb[57].mxu1  ;;  %3883 = vmatmul.mubr.msk.f32.gmra.mrb[162].mxu1 %vm292_vm4, %v242_v20 }
 0x176   :  { %3522 = vmatprep.mubr.msk.f32.mxu0 %vm4074_vm0, %v4075_v1  ;;  %3885 = vmatprep.mubr.msk.f32.mxu1 %vm4074_vm0, %v4075_v1  ;;  %v249_v28 = vld [vmem:[%s6764_s0 + $0x688] sm:$0xff] }
 0x177   :  { %v2318_v31 = vmax.f32 %v1227_v25, 0.0  ;;  %v2439_v32 = vmax.f32 %v1832_v27, 0.0  ;;  %v128_v27 = vld [vmem:[%s6764_s0 + $0x2c0] sm:$0xff] }
 0x178   :  { %v1231_v33 = vpop.f32.mrb[58].mxu0  ;;  %v1836_v34 = vpop.f32.mrb[58].mxu1 }
 0x179   :  { %2560 = vst.msk [vmem:[%s6767_s3 + $0xe0] sm:$0xff] %vm2531_vm5, %v2318_v31  ;;  %2681 = vst.msk [vmem:[%s6767_s3 + $0x4a8] sm:$0xff] %vm2531_vm5, %v2439_v32  ;;  %v1232_v35 = vadd.f32 %v4757_v51, %v1231_v33  ;;  %v3365_v36 = vpop.f32.mrb[59].mxu0  ;;  %3523 = vmatmul.mubr.msk.f32.gmra.mrb[164].mxu0 %vm292_vm4, %v122_v29  ;;  %v1837_v37 = vadd.f32 %v4757_v51, %v1836_v34  ;;  %v3728_v38 = vpop.f32.mrb[59].mxu1  ;;  %3886 = vmatmul.mubr.msk.f32.gmra.mrb[164].mxu1 %vm292_vm4, %v243_v30 }
 0x17a   :  { %3525 = vmatprep.mubr.msk.f32.mxu0 %vm4074_vm0, %v4075_v1  ;;  %3888 = vmatprep.mubr.msk.f32.mxu1 %vm4074_vm0, %v4075_v1  ;;  %v250_v38 = vld [vmem:[%s6764_s0 + $0x690] sm:$0xff] }
 0x17b   :  { %v2319_v41 = vmax.f32 %v1232_v35, 0.0  ;;  %v2440_v42 = vmax.f32 %v1837_v37, 0.0  ;;  %v129_v37 = vld [vmem:[%s6764_s0 + $0x2c8] sm:$0xff] }
 0x17c   :  { %v1236_v43 = vpop.f32.mrb[60].mxu0  ;;  %v1841_v44 = vpop.f32.mrb[60].mxu1 }
 0x17d   :  { %2561 = vst.msk [vmem:[%s6767_s3 + $0xe8] sm:$0xff] %vm2531_vm5, %v2319_v41  ;;  %2682 = vst.msk [vmem:[%s6767_s3 + $0x4b0] sm:$0xff] %vm2531_vm5, %v2440_v42  ;;  %v1237_v45 = vadd.f32 %v4757_v51, %v1236_v43  ;;  %v3368_v46 = vpop.f32.mrb[61].mxu0  ;;  %3526 = vmatmul.mubr.msk.f32.gmra.mrb[166].mxu0 %vm292_vm4, %v123_v39  ;;  %v1842_v47 = vadd.f32 %v4757_v51, %v1841_v44  ;;  %v3731_v48 = vpop.f32.mrb[61].mxu1  ;;  %3889 = vmatmul.mubr.msk.f32.gmra.mrb[166].mxu1 %vm292_vm4, %v244_v40 }
 0x17e   :  { %3528 = vmatprep.mubr.msk.f32.mxu0 %vm4074_vm0, %v4075_v1  ;;  %3891 = vmatprep.mubr.msk.f32.mxu1 %vm4074_vm0, %v4075_v1  ;;  %v251_v48 = vld [vmem:[%s6764_s0 + $0x698] sm:$0xff] }
 0x17f   :  { %v2320_v52 = vmax.f32 %v1237_v45, 0.0  ;;  %v2441_v53 = vmax.f32 %v1842_v47, 0.0  ;;  %v130_v47 = vld [vmem:[%s6764_s0 + $0x2d0] sm:$0xff] }
 0x180   :  { %v1241_v54 = vpop.f32.mrb[62].mxu0  ;;  %v1846_v55 = vpop.f32.mrb[62].mxu1 }
 0x181   :  { %2562 = vst.msk [vmem:[%s6767_s3 + $0xf0] sm:$0xff] %vm2531_vm5, %v2320_v52  ;;  %2683 = vst.msk [vmem:[%s6767_s3 + $0x4b8] sm:$0xff] %vm2531_vm5, %v2441_v53  ;;  %v1242_v56 = vadd.f32 %v4757_v51, %v1241_v54  ;;  %v3371_v57 = vpop.f32.mrb[63].mxu0  ;;  %3529 = vmatmul.mubr.msk.f32.gmra.mrb[168].mxu0 %vm292_vm4, %v124_v49  ;;  %v1847_v58 = vadd.f32 %v4757_v51, %v1846_v55  ;;  %v3734_v59 = vpop.f32.mrb[63].mxu1  ;;  %3892 = vmatmul.mubr.msk.f32.gmra.mrb[168].mxu1 %vm292_vm4, %v245_v50 }
 0x182   :  { %3531 = vmatprep.mubr.msk.f32.mxu0 %vm4074_vm0, %v4075_v1  ;;  %3894 = vmatprep.mubr.msk.f32.mxu1 %vm4074_vm0, %v4075_v1  ;;  %v252_v59 = vld [vmem:[%s6764_s0 + $0x6a0] sm:$0xff] }
 0x183   :  { %v2321_v62 = vmax.f32 %v1242_v56, 0.0  ;;  %v2442_v63 = vmax.f32 %v1847_v58, 0.0  ;;  %v131_v58 = vld [vmem:[%s6764_s0 + $0x2d8] sm:$0xff] }
 0x184   :  { %v1246_v51 = vpop.f32.mrb[64].mxu0  ;;  %v1851_v0 = vpop.f32.mrb[64].mxu1 }
 0x185   :  { %2563 = vst.msk [vmem:[%s6767_s3 + $0xf8] sm:$0xff] %vm2531_vm5, %v2321_v62  ;;  %2684 = vst.msk [vmem:[%s6767_s3 + $0x4c0] sm:$0xff] %vm2531_vm5, %v2442_v63  ;;  %v1247_v3 = vadd.f32 %v5473_v2, %v1246_v51  ;;  %v3374_v4 = vpop.f32.mrb[65].mxu0  ;;  %3532 = vmatmul.mubr.msk.f32.gmra.mrb[170].mxu0 %vm292_vm4, %v125_v60  ;;  %v1852_v5 = vadd.f32 %v5473_v2, %v1851_v0  ;;  %v3737_v6 = vpop.f32.mrb[65].mxu1  ;;  %3895 = vmatmul.mubr.msk.f32.gmra.mrb[170].mxu1 %vm292_vm4, %v246_v61 }
 0x186   :  { %3534 = vmatprep.mubr.msk.f32.mxu0 %vm4074_vm0, %v4075_v1  ;;  %3897 = vmatprep.mubr.msk.f32.mxu1 %vm4074_vm0, %v4075_v1  ;;  %v253_v6 = vld [vmem:[%s6764_s0 + $0x6a8] sm:$0xff] }
 0x187   :  { %v2322_v9 = vmax.f32 %v1247_v3, 0.0  ;;  %v2443_v10 = vmax.f32 %v1852_v5, 0.0  ;;  %v132_v5 = vld [vmem:[%s6764_s0 + $0x2e0] sm:$0xff] }
 0x188   :  { %v1251_v11 = vpop.f32.mrb[66].mxu0  ;;  %v1856_v12 = vpop.f32.mrb[66].mxu1 }
 0x189   :  { %2564 = vst.msk [vmem:[%s6767_s3 + $0x100] sm:$0xff] %vm2531_vm5, %v2322_v9  ;;  %2685 = vst.msk [vmem:[%s6767_s3 + $0x4c8] sm:$0xff] %vm2531_vm5, %v2443_v10  ;;  %v1252_v13 = vadd.f32 %v5473_v2, %v1251_v11  ;;  %v3377_v14 = vpop.f32.mrb[67].mxu0  ;;  %3535 = vmatmul.mubr.msk.f32.gmra.mrb[172].mxu0 %vm292_vm4, %v126_v7  ;;  %v1857_v15 = vadd.f32 %v5473_v2, %v1856_v12  ;;  %v3740_v16 = vpop.f32.mrb[67].mxu1  ;;  %3898 = vmatmul.mubr.msk.f32.gmra.mrb[172].mxu1 %vm292_vm4, %v247_v8 }
 0x18a   :  { %3537 = vmatprep.mubr.msk.f32.mxu0 %vm4074_vm0, %v4075_v1  ;;  %3900 = vmatprep.mubr.msk.f32.mxu1 %vm4074_vm0, %v4075_v1  ;;  %v254_v16 = vld [vmem:[%s6764_s0 + $0x6b0] sm:$0xff] }
 0x18b   :  { %v2323_v19 = vmax.f32 %v1252_v13, 0.0  ;;  %v2444_v20 = vmax.f32 %v1857_v15, 0.0  ;;  %v133_v15 = vld [vmem:[%s6764_s0 + $0x2e8] sm:$0xff] }
 0x18c   :  { %v1256_v21 = vpop.f32.mrb[68].mxu0  ;;  %v1861_v22 = vpop.f32.mrb[68].mxu1 }
 0x18d   :  { %2565 = vst.msk [vmem:[%s6767_s3 + $0x108] sm:$0xff] %vm2531_vm5, %v2323_v19  ;;  %2686 = vst.msk [vmem:[%s6767_s3 + $0x4d0] sm:$0xff] %vm2531_vm5, %v2444_v20  ;;  %v1257_v23 = vadd.f32 %v5473_v2, %v1256_v21  ;;  %v3380_v24 = vpop.f32.mrb[69].mxu0  ;;  %3538 = vmatmul.mubr.msk.f32.gmra.mrb[174].mxu0 %vm292_vm4, %v127_v17  ;;  %v1862_v25 = vadd.f32 %v5473_v2, %v1861_v22  ;;  %v3743_v26 = vpop.f32.mrb[69].mxu1  ;;  %3901 = vmatmul.mubr.msk.f32.gmra.mrb[174].mxu1 %vm292_vm4, %v248_v18 }
 0x18e   :  { %3540 = vmatprep.mubr.msk.f32.mxu0 %vm4074_vm0, %v4075_v1  ;;  %3903 = vmatprep.mubr.msk.f32.mxu1 %vm4074_vm0, %v4075_v1  ;;  %v255_v26 = vld [vmem:[%s6764_s0 + $0x6b8] sm:$0xff] }
 0x18f   :  { %v2324_v29 = vmax.f32 %v1257_v23, 0.0  ;;  %v2445_v30 = vmax.f32 %v1862_v25, 0.0  ;;  %v134_v25 = vld [vmem:[%s6764_s0 + $0x2f0] sm:$0xff] }
 0x190   :  { %v1261_v31 = vpop.f32.mrb[70].mxu0  ;;  %v1866_v32 = vpop.f32.mrb[70].mxu1 }
 0x191   :  { %2566 = vst.msk [vmem:[%s6767_s3 + $0x110] sm:$0xff] %vm2531_vm5, %v2324_v29  ;;  %2687 = vst.msk [vmem:[%s6767_s3 + $0x4d8] sm:$0xff] %vm2531_vm5, %v2445_v30  ;;  %v1262_v33 = vadd.f32 %v5473_v2, %v1261_v31  ;;  %v3383_v34 = vpop.f32.mrb[71].mxu0  ;;  %3541 = vmatmul.mubr.msk.f32.gmra.mrb[176].mxu0 %vm292_vm4, %v128_v27  ;;  %v1867_v35 = vadd.f32 %v5473_v2, %v1866_v32  ;;  %v3746_v36 = vpop.f32.mrb[71].mxu1  ;;  %3904 = vmatmul.mubr.msk.f32.gmra.mrb[176].mxu1 %vm292_vm4, %v249_v28 }
 0x192   :  { %3543 = vmatprep.mubr.msk.f32.mxu0 %vm4074_vm0, %v4075_v1  ;;  %3906 = vmatprep.mubr.msk.f32.mxu1 %vm4074_vm0, %v4075_v1  ;;  %v256_v36 = vld [vmem:[%s6764_s0 + $0x6c0] sm:$0xff] }
 0x193   :  { %v2325_v39 = vmax.f32 %v1262_v33, 0.0  ;;  %v2446_v40 = vmax.f32 %v1867_v35, 0.0  ;;  %v135_v35 = vld [vmem:[%s6764_s0 + $0x2f8] sm:$0xff] }
 0x194   :  { %v1266_v41 = vpop.f32.mrb[72].mxu0  ;;  %v1871_v42 = vpop.f32.mrb[72].mxu1 }
 0x195   :  { %2567 = vst.msk [vmem:[%s6767_s3 + $0x118] sm:$0xff] %vm2531_vm5, %v2325_v39  ;;  %2688 = vst.msk [vmem:[%s6767_s3 + $0x4e0] sm:$0xff] %vm2531_vm5, %v2446_v40  ;;  %v1267_v43 = vadd.f32 %v5473_v2, %v1266_v41  ;;  %v3386_v44 = vpop.f32.mrb[73].mxu0  ;;  %3544 = vmatmul.mubr.msk.f32.gmra.mrb[178].mxu0 %vm292_vm4, %v129_v37  ;;  %v1872_v45 = vadd.f32 %v5473_v2, %v1871_v42  ;;  %v3749_v46 = vpop.f32.mrb[73].mxu1  ;;  %3907 = vmatmul.mubr.msk.f32.gmra.mrb[178].mxu1 %vm292_vm4, %v250_v38 }
 0x196   :  { %3546 = vmatprep.mubr.msk.f32.mxu0 %vm4074_vm0, %v4075_v1  ;;  %3909 = vmatprep.mubr.msk.f32.mxu1 %vm4074_vm0, %v4075_v1  ;;  %v257_v46 = vld [vmem:[%s6764_s0 + $0x6c8] sm:$0xff] }
 0x197   :  { %v2326_v49 = vmax.f32 %v1267_v43, 0.0  ;;  %v2447_v50 = vmax.f32 %v1872_v45, 0.0  ;;  %v136_v45 = vld [vmem:[%s6764_s0 + $0x300] sm:$0xff] }
 0x198   :  { %v1271_v52 = vpop.f32.mrb[74].mxu0  ;;  %v1876_v53 = vpop.f32.mrb[74].mxu1 }
 0x199   :  { %2568 = vst.msk [vmem:[%s6767_s3 + $0x120] sm:$0xff] %vm2531_vm5, %v2326_v49  ;;  %2689 = vst.msk [vmem:[%s6767_s3 + $0x4e8] sm:$0xff] %vm2531_vm5, %v2447_v50  ;;  %v1272_v54 = vadd.f32 %v5473_v2, %v1271_v52  ;;  %v3389_v55 = vpop.f32.mrb[75].mxu0  ;;  %3547 = vmatmul.mubr.msk.f32.gmra.mrb[180].mxu0 %vm292_vm4, %v130_v47  ;;  %v1877_v56 = vadd.f32 %v5473_v2, %v1876_v53  ;;  %v3752_v57 = vpop.f32.mrb[75].mxu1  ;;  %3910 = vmatmul.mubr.msk.f32.gmra.mrb[180].mxu1 %vm292_vm4, %v251_v48 }
 0x19a   :  { %3549 = vmatprep.mubr.msk.f32.mxu0 %vm4074_vm0, %v4075_v1  ;;  %3912 = vmatprep.mubr.msk.f32.mxu1 %vm4074_vm0, %v4075_v1  ;;  %v258_v57 = vld [vmem:[%s6764_s0 + $0x6d0] sm:$0xff] }
 0x19b   :  { %v2327_v60 = vmax.f32 %v1272_v54, 0.0  ;;  %v2448_v61 = vmax.f32 %v1877_v56, 0.0  ;;  %v137_v56 = vld [vmem:[%s6764_s0 + $0x308] sm:$0xff] }
 0x19c   :  { %v1276_v62 = vpop.f32.mrb[76].mxu0  ;;  %v1881_v63 = vpop.f32.mrb[76].mxu1 }
 0x19d   :  { %2569 = vst.msk [vmem:[%s6767_s3 + $0x128] sm:$0xff] %vm2531_vm5, %v2327_v60  ;;  %2690 = vst.msk [vmem:[%s6767_s3 + $0x4f0] sm:$0xff] %vm2531_vm5, %v2448_v61  ;;  %v1277_v51 = vadd.f32 %v5473_v2, %v1276_v62  ;;  %v3392_v0 = vpop.f32.mrb[77].mxu0  ;;  %3550 = vmatmul.mubr.msk.f32.gmra.mrb[182].mxu0 %vm292_vm4, %v131_v58  ;;  %v1882_v3 = vadd.f32 %v5473_v2, %v1881_v63  ;;  %v3755_v4 = vpop.f32.mrb[77].mxu1  ;;  %3913 = vmatmul.mubr.msk.f32.gmra.mrb[182].mxu1 %vm292_vm4, %v252_v59 }
 0x19e   :  { %3552 = vmatprep.mubr.msk.f32.mxu0 %vm4074_vm0, %v4075_v1  ;;  %3915 = vmatprep.mubr.msk.f32.mxu1 %vm4074_vm0, %v4075_v1  ;;  %v259_v4 = vld [vmem:[%s6764_s0 + $0x6d8] sm:$0xff] }
 0x19f   :  { %v2328_v7 = vmax.f32 %v1277_v51, 0.0  ;;  %v2449_v8 = vmax.f32 %v1882_v3, 0.0  ;;  %v138_v3 = vld [vmem:[%s6764_s0 + $0x310] sm:$0xff] }
 0x1a0   :  { %v1281_v9 = vpop.f32.mrb[78].mxu0  ;;  %v1886_v10 = vpop.f32.mrb[78].mxu1 }
 0x1a1   :  { %2570 = vst.msk [vmem:[%s6767_s3 + $0x130] sm:$0xff] %vm2531_vm5, %v2328_v7  ;;  %2691 = vst.msk [vmem:[%s6767_s3 + $0x4f8] sm:$0xff] %vm2531_vm5, %v2449_v8  ;;  %v1282_v11 = vadd.f32 %v5473_v2, %v1281_v9  ;;  %v3395_v12 = vpop.f32.mrb[79].mxu0  ;;  %3553 = vmatmul.mubr.msk.f32.gmra.mrb[184].mxu0 %vm292_vm4, %v132_v5  ;;  %v1887_v13 = vadd.f32 %v5473_v2, %v1886_v10  ;;  %v3758_v14 = vpop.f32.mrb[79].mxu1  ;;  %3916 = vmatmul.mubr.msk.f32.gmra.mrb[184].mxu1 %vm292_vm4, %v253_v6 }
 0x1a2   :  { %3555 = vmatprep.mubr.msk.f32.mxu0 %vm4074_vm0, %v4075_v1  ;;  %3918 = vmatprep.mubr.msk.f32.mxu1 %vm4074_vm0, %v4075_v1  ;;  %v260_v14 = vld [vmem:[%s6764_s0 + $0x6e0] sm:$0xff] }
 0x1a3   :  { %v2329_v17 = vmax.f32 %v1282_v11, 0.0  ;;  %v2450_v18 = vmax.f32 %v1887_v13, 0.0  ;;  %v139_v13 = vld [vmem:[%s6764_s0 + $0x318] sm:$0xff] }
 0x1a4   :  { %v1286_v19 = vpop.f32.mrb[80].mxu0  ;;  %v1891_v20 = vpop.f32.mrb[80].mxu1 }
 0x1a5   :  { %2571 = vst.msk [vmem:[%s6767_s3 + $0x138] sm:$0xff] %vm2531_vm5, %v2329_v17  ;;  %2692 = vst.msk [vmem:[%s6767_s3 + $0x500] sm:$0xff] %vm2531_vm5, %v2450_v18  ;;  %v1287_v21 = vadd.f32 %v5473_v2, %v1286_v19  ;;  %v3398_v22 = vpop.f32.mrb[81].mxu0  ;;  %3556 = vmatmul.mubr.msk.f32.gmra.mrb[186].mxu0 %vm292_vm4, %v133_v15  ;;  %v1892_v23 = vadd.f32 %v5473_v2, %v1891_v20  ;;  %v3761_v24 = vpop.f32.mrb[81].mxu1  ;;  %3919 = vmatmul.mubr.msk.f32.gmra.mrb[186].mxu1 %vm292_vm4, %v254_v16 }
 0x1a6   :  { %3558 = vmatprep.mubr.msk.f32.mxu0 %vm4074_vm0, %v4075_v1  ;;  %3921 = vmatprep.mubr.msk.f32.mxu1 %vm4074_vm0, %v4075_v1  ;;  %v261_v24 = vld [vmem:[%s6764_s0 + $0x6e8] sm:$0xff] }
 0x1a7   :  { %v2330_v27 = vmax.f32 %v1287_v21, 0.0  ;;  %v2451_v28 = vmax.f32 %v1892_v23, 0.0  ;;  %v140_v23 = vld [vmem:[%s6764_s0 + $0x320] sm:$0xff] }
 0x1a8   :  { %v1291_v29 = vpop.f32.mrb[82].mxu0  ;;  %v1896_v30 = vpop.f32.mrb[82].mxu1 }
 0x1a9   :  { %2572 = vst.msk [vmem:[%s6767_s3 + $0x140] sm:$0xff] %vm2531_vm5, %v2330_v27  ;;  %2693 = vst.msk [vmem:[%s6767_s3 + $0x508] sm:$0xff] %vm2531_vm5, %v2451_v28  ;;  %v1292_v31 = vadd.f32 %v5473_v2, %v1291_v29  ;;  %v3401_v32 = vpop.f32.mrb[83].mxu0  ;;  %3559 = vmatmul.mubr.msk.f32.gmra.mrb[188].mxu0 %vm292_vm4, %v134_v25  ;;  %v1897_v33 = vadd.f32 %v5473_v2, %v1896_v30  ;;  %v3764_v34 = vpop.f32.mrb[83].mxu1  ;;  %3922 = vmatmul.mubr.msk.f32.gmra.mrb[188].mxu1 %vm292_vm4, %v255_v26 }
 0x1aa   :  { %3561 = vmatprep.mubr.msk.f32.mxu0 %vm4074_vm0, %v4075_v1  ;;  %3924 = vmatprep.mubr.msk.f32.mxu1 %vm4074_vm0, %v4075_v1  ;;  %v262_v34 = vld [vmem:[%s6764_s0 + $0x6f0] sm:$0xff] }
 0x1ab   :  { %v2331_v37 = vmax.f32 %v1292_v31, 0.0  ;;  %v2452_v38 = vmax.f32 %v1897_v33, 0.0  ;;  %v141_v33 = vld [vmem:[%s6764_s0 + $0x328] sm:$0xff] }
 0x1ac   :  { %v1296_v39 = vpop.f32.mrb[84].mxu0  ;;  %v1901_v40 = vpop.f32.mrb[84].mxu1 }
 0x1ad   :  { %2573 = vst.msk [vmem:[%s6767_s3 + $0x148] sm:$0xff] %vm2531_vm5, %v2331_v37  ;;  %2694 = vst.msk [vmem:[%s6767_s3 + $0x510] sm:$0xff] %vm2531_vm5, %v2452_v38  ;;  %v1297_v41 = vadd.f32 %v5473_v2, %v1296_v39  ;;  %v3404_v42 = vpop.f32.mrb[85].mxu0  ;;  %3562 = vmatmul.mubr.msk.f32.gmra.mrb[190].mxu0 %vm292_vm4, %v135_v35  ;;  %v1902_v43 = vadd.f32 %v5473_v2, %v1901_v40  ;;  %v3767_v44 = vpop.f32.mrb[85].mxu1  ;;  %3925 = vmatmul.mubr.msk.f32.gmra.mrb[190].mxu1 %vm292_vm4, %v256_v36 }
 0x1ae   :  { %3564 = vmatprep.mubr.msk.f32.mxu0 %vm4074_vm0, %v4075_v1  ;;  %3927 = vmatprep.mubr.msk.f32.mxu1 %vm4074_vm0, %v4075_v1  ;;  %v263_v44 = vld [vmem:[%s6764_s0 + $0x6f8] sm:$0xff] }
 0x1af   :  { %v2332_v47 = vmax.f32 %v1297_v41, 0.0  ;;  %v2453_v48 = vmax.f32 %v1902_v43, 0.0  ;;  %v142_v43 = vld [vmem:[%s6764_s0 + $0x330] sm:$0xff] }
 0x1b0   :  { %v1301_v49 = vpop.f32.mrb[86].mxu0  ;;  %v1906_v50 = vpop.f32.mrb[86].mxu1 }
 0x1b1   :  { %2574 = vst.msk [vmem:[%s6767_s3 + $0x150] sm:$0xff] %vm2531_vm5, %v2332_v47  ;;  %2695 = vst.msk [vmem:[%s6767_s3 + $0x518] sm:$0xff] %vm2531_vm5, %v2453_v48  ;;  %v1302_v52 = vadd.f32 %v5473_v2, %v1301_v49  ;;  %v3407_v53 = vpop.f32.mrb[87].mxu0  ;;  %3565 = vmatmul.mubr.msk.f32.gmra.mrb[192].mxu0 %vm292_vm4, %v136_v45  ;;  %v1907_v54 = vadd.f32 %v5473_v2, %v1906_v50  ;;  %v3770_v55 = vpop.f32.mrb[87].mxu1  ;;  %3928 = vmatmul.mubr.msk.f32.gmra.mrb[192].mxu1 %vm292_vm4, %v257_v46 }
 0x1b2   :  { %3567 = vmatprep.mubr.msk.f32.mxu0 %vm4074_vm0, %v4075_v1  ;;  %3930 = vmatprep.mubr.msk.f32.mxu1 %vm4074_vm0, %v4075_v1  ;;  %v264_v55 = vld [vmem:[%s6764_s0 + $0x700] sm:$0xff] }
 0x1b3   :  { %v2333_v58 = vmax.f32 %v1302_v52, 0.0  ;;  %v2454_v59 = vmax.f32 %v1907_v54, 0.0  ;;  %v143_v54 = vld [vmem:[%s6764_s0 + $0x338] sm:$0xff] }
 0x1b4   :  { %v1306_v60 = vpop.f32.mrb[88].mxu0  ;;  %v1911_v61 = vpop.f32.mrb[88].mxu1 }
 0x1b5   :  { %2575 = vst.msk [vmem:[%s6767_s3 + $0x158] sm:$0xff] %vm2531_vm5, %v2333_v58  ;;  %2696 = vst.msk [vmem:[%s6767_s3 + $0x520] sm:$0xff] %vm2531_vm5, %v2454_v59  ;;  %v1307_v62 = vadd.f32 %v5473_v2, %v1306_v60  ;;  %v3410_v63 = vpop.f32.mrb[89].mxu0  ;;  %3568 = vmatmul.mubr.msk.f32.gmra.mrb[194].mxu0 %vm292_vm4, %v137_v56  ;;  %v1912_v51 = vadd.f32 %v5473_v2, %v1911_v61  ;;  %v3773_v0 = vpop.f32.mrb[89].mxu1  ;;  %3931 = vmatmul.mubr.msk.f32.gmra.mrb[194].mxu1 %vm292_vm4, %v258_v57 }
 0x1b6   :  { %3570 = vmatprep.mubr.msk.f32.mxu0 %vm4074_vm0, %v4075_v1  ;;  %3933 = vmatprep.mubr.msk.f32.mxu1 %vm4074_vm0, %v4075_v1  ;;  %v265_v0 = vld [vmem:[%s6764_s0 + $0x708] sm:$0xff] }
 0x1b7   :  { %v2334_v5 = vmax.f32 %v1307_v62, 0.0  ;;  %v2455_v6 = vmax.f32 %v1912_v51, 0.0  ;;  %v144_v51 = vld [vmem:[%s6764_s0 + $0x340] sm:$0xff] }
 0x1b8   :  { %v1311_v7 = vpop.f32.mrb[90].mxu0  ;;  %v1916_v8 = vpop.f32.mrb[90].mxu1 }
 0x1b9   :  { %2576 = vst.msk [vmem:[%s6767_s3 + $0x160] sm:$0xff] %vm2531_vm5, %v2334_v5  ;;  %2697 = vst.msk [vmem:[%s6767_s3 + $0x528] sm:$0xff] %vm2531_vm5, %v2455_v6  ;;  %v1312_v9 = vadd.f32 %v5473_v2, %v1311_v7  ;;  %v3413_v10 = vpop.f32.mrb[91].mxu0  ;;  %3571 = vmatmul.mubr.msk.f32.gmra.mrb[196].mxu0 %vm292_vm4, %v138_v3  ;;  %v1917_v11 = vadd.f32 %v5473_v2, %v1916_v8  ;;  %v3776_v12 = vpop.f32.mrb[91].mxu1  ;;  %3934 = vmatmul.mubr.msk.f32.gmra.mrb[196].mxu1 %vm292_vm4, %v259_v4 }
 0x1ba   :  { %3573 = vmatprep.mubr.msk.f32.mxu0 %vm4074_vm0, %v4075_v1  ;;  %3936 = vmatprep.mubr.msk.f32.mxu1 %vm4074_vm0, %v4075_v1  ;;  %v266_v12 = vld [vmem:[%s6764_s0 + $0x710] sm:$0xff] }
 0x1bb   :  { %v2335_v15 = vmax.f32 %v1312_v9, 0.0  ;;  %v2456_v16 = vmax.f32 %v1917_v11, 0.0  ;;  %v145_v11 = vld [vmem:[%s6764_s0 + $0x348] sm:$0xff] }
 0x1bc   :  { %v1316_v17 = vpop.f32.mrb[92].mxu0  ;;  %v1921_v18 = vpop.f32.mrb[92].mxu1 }
 0x1bd   :  { %2577 = vst.msk [vmem:[%s6767_s3 + $0x168] sm:$0xff] %vm2531_vm5, %v2335_v15  ;;  %2698 = vst.msk [vmem:[%s6767_s3 + $0x530] sm:$0xff] %vm2531_vm5, %v2456_v16  ;;  %v1317_v19 = vadd.f32 %v5473_v2, %v1316_v17  ;;  %v3416_v20 = vpop.f32.mrb[93].mxu0  ;;  %3574 = vmatmul.mubr.msk.f32.gmra.mrb[198].mxu0 %vm292_vm4, %v139_v13  ;;  %v1922_v21 = vadd.f32 %v5473_v2, %v1921_v18  ;;  %v3779_v22 = vpop.f32.mrb[93].mxu1  ;;  %3937 = vmatmul.mubr.msk.f32.gmra.mrb[198].mxu1 %vm292_vm4, %v260_v14 }
 0x1be   :  { %3576 = vmatprep.mubr.msk.f32.mxu0 %vm4074_vm0, %v4075_v1  ;;  %3939 = vmatprep.mubr.msk.f32.mxu1 %vm4074_vm0, %v4075_v1  ;;  %v267_v22 = vld [vmem:[%s6764_s0 + $0x718] sm:$0xff] }
 0x1bf   :  { %v2336_v25 = vmax.f32 %v1317_v19, 0.0  ;;  %v2457_v26 = vmax.f32 %v1922_v21, 0.0  ;;  %v146_v21 = vld [vmem:[%s6764_s0 + $0x350] sm:$0xff] }
 0x1c0   :  { %v1321_v27 = vpop.f32.mrb[94].mxu0  ;;  %v1926_v28 = vpop.f32.mrb[94].mxu1 }
 0x1c1   :  { %2578 = vst.msk [vmem:[%s6767_s3 + $0x170] sm:$0xff] %vm2531_vm5, %v2336_v25  ;;  %2699 = vst.msk [vmem:[%s6767_s3 + $0x538] sm:$0xff] %vm2531_vm5, %v2457_v26  ;;  %v1322_v29 = vadd.f32 %v5473_v2, %v1321_v27  ;;  %v3419_v30 = vpop.f32.mrb[95].mxu0  ;;  %3577 = vmatmul.mubr.msk.f32.gmra.mrb[200].mxu0 %vm292_vm4, %v140_v23  ;;  %v1927_v31 = vadd.f32 %v5473_v2, %v1926_v28  ;;  %v3782_v32 = vpop.f32.mrb[95].mxu1  ;;  %3940 = vmatmul.mubr.msk.f32.gmra.mrb[200].mxu1 %vm292_vm4, %v261_v24 }
 0x1c2   :  { %3579 = vmatprep.mubr.msk.f32.mxu0 %vm4074_vm0, %v4075_v1  ;;  %3942 = vmatprep.mubr.msk.f32.mxu1 %vm4074_vm0, %v4075_v1  ;;  %v268_v32 = vld [vmem:[%s6764_s0 + $0x720] sm:$0xff] }
 0x1c3   :  { %v2337_v35 = vmax.f32 %v1322_v29, 0.0  ;;  %v2458_v36 = vmax.f32 %v1927_v31, 0.0  ;;  %v147_v31 = vld [vmem:[%s6764_s0 + $0x358] sm:$0xff] }
 0x1c4   :  { %v1326_v37 = vpop.f32.mrb[96].mxu0  ;;  %v1931_v38 = vpop.f32.mrb[96].mxu1 }
 0x1c5   :  { %2579 = vst.msk [vmem:[%s6767_s3 + $0x178] sm:$0xff] %vm2531_vm5, %v2337_v35  ;;  %2700 = vst.msk [vmem:[%s6767_s3 + $0x540] sm:$0xff] %vm2531_vm5, %v2458_v36  ;;  %v1327_v39 = vadd.f32 %v5473_v2, %v1326_v37  ;;  %v3422_v40 = vpop.f32.mrb[97].mxu0  ;;  %3580 = vmatmul.mubr.msk.f32.gmra.mrb[202].mxu0 %vm292_vm4, %v141_v33  ;;  %v1932_v41 = vadd.f32 %v5473_v2, %v1931_v38  ;;  %v3785_v42 = vpop.f32.mrb[97].mxu1  ;;  %3943 = vmatmul.mubr.msk.f32.gmra.mrb[202].mxu1 %vm292_vm4, %v262_v34 }
 0x1c6   :  { %3582 = vmatprep.mubr.msk.f32.mxu0 %vm4074_vm0, %v4075_v1  ;;  %3945 = vmatprep.mubr.msk.f32.mxu1 %vm4074_vm0, %v4075_v1  ;;  %v269_v42 = vld [vmem:[%s6764_s0 + $0x728] sm:$0xff] }
 0x1c7   :  { %v2338_v45 = vmax.f32 %v1327_v39, 0.0  ;;  %v2459_v46 = vmax.f32 %v1932_v41, 0.0  ;;  %v148_v41 = vld [vmem:[%s6764_s0 + $0x360] sm:$0xff] }
 0x1c8   :  { %v1331_v47 = vpop.f32.mrb[98].mxu0  ;;  %v1936_v48 = vpop.f32.mrb[98].mxu1 }
 0x1c9   :  { %2580 = vst.msk [vmem:[%s6767_s3 + $0x180] sm:$0xff] %vm2531_vm5, %v2338_v45  ;;  %2701 = vst.msk [vmem:[%s6767_s3 + $0x548] sm:$0xff] %vm2531_vm5, %v2459_v46  ;;  %v1332_v49 = vadd.f32 %v5473_v2, %v1331_v47  ;;  %v3425_v50 = vpop.f32.mrb[99].mxu0  ;;  %3583 = vmatmul.mubr.msk.f32.gmra.mrb[204].mxu0 %vm292_vm4, %v142_v43  ;;  %v1937_v52 = vadd.f32 %v5473_v2, %v1936_v48  ;;  %v3788_v53 = vpop.f32.mrb[99].mxu1  ;;  %3946 = vmatmul.mubr.msk.f32.gmra.mrb[204].mxu1 %vm292_vm4, %v263_v44 }
 0x1ca   :  { %3585 = vmatprep.mubr.msk.f32.mxu0 %vm4074_vm0, %v4075_v1  ;;  %3948 = vmatprep.mubr.msk.f32.mxu1 %vm4074_vm0, %v4075_v1  ;;  %v270_v53 = vld [vmem:[%s6764_s0 + $0x730] sm:$0xff] }
 0x1cb   :  { %v2339_v56 = vmax.f32 %v1332_v49, 0.0  ;;  %v2460_v57 = vmax.f32 %v1937_v52, 0.0  ;;  %v149_v52 = vld [vmem:[%s6764_s0 + $0x368] sm:$0xff] }
 0x1cc   :  { %v1336_v58 = vpop.f32.mrb[100].mxu0  ;;  %v1941_v59 = vpop.f32.mrb[100].mxu1 }
 0x1cd   :  { %2581 = vst.msk [vmem:[%s6767_s3 + $0x188] sm:$0xff] %vm2531_vm5, %v2339_v56  ;;  %2702 = vst.msk [vmem:[%s6767_s3 + $0x550] sm:$0xff] %vm2531_vm5, %v2460_v57  ;;  %v1337_v60 = vadd.f32 %v5473_v2, %v1336_v58  ;;  %v3428_v61 = vpop.f32.mrb[101].mxu0  ;;  %3586 = vmatmul.mubr.msk.f32.gmra.mrb[206].mxu0 %vm292_vm4, %v143_v54  ;;  %v1942_v62 = vadd.f32 %v5473_v2, %v1941_v59  ;;  %v3791_v63 = vpop.f32.mrb[101].mxu1  ;;  %3949 = vmatmul.mubr.msk.f32.gmra.mrb[206].mxu1 %vm292_vm4, %v264_v55 }
 0x1ce   :  { %3588 = vmatprep.mubr.msk.f32.mxu0 %vm4074_vm0, %v4075_v1  ;;  %3951 = vmatprep.mubr.msk.f32.mxu1 %vm4074_vm0, %v4075_v1  ;;  %v271_v63 = vld [vmem:[%s6764_s0 + $0x738] sm:$0xff] }
 0x1cf   :  { %v2340_v3 = vmax.f32 %v1337_v60, 0.0  ;;  %v2461_v4 = vmax.f32 %v1942_v62, 0.0  ;;  %v150_v62 = vld [vmem:[%s6764_s0 + $0x370] sm:$0xff] }
 0x1d0   :  { %v1341_v5 = vpop.f32.mrb[102].mxu0  ;;  %v1946_v6 = vpop.f32.mrb[102].mxu1 }
 0x1d1   :  { %2582 = vst.msk [vmem:[%s6767_s3 + $0x190] sm:$0xff] %vm2531_vm5, %v2340_v3  ;;  %2703 = vst.msk [vmem:[%s6767_s3 + $0x558] sm:$0xff] %vm2531_vm5, %v2461_v4  ;;  %v1342_v7 = vadd.f32 %v5473_v2, %v1341_v5  ;;  %v3431_v8 = vpop.f32.mrb[103].mxu0  ;;  %3589 = vmatmul.mubr.msk.f32.gmra.mrb[208].mxu0 %vm292_vm4, %v144_v51  ;;  %v1947_v9 = vadd.f32 %v5473_v2, %v1946_v6  ;;  %v3794_v10 = vpop.f32.mrb[103].mxu1  ;;  %3952 = vmatmul.mubr.msk.f32.gmra.mrb[208].mxu1 %vm292_vm4, %v265_v0 }
 0x1d2   :  { %3591 = vmatprep.mubr.msk.f32.mxu0 %vm4074_vm0, %v4075_v1  ;;  %3954 = vmatprep.mubr.msk.f32.mxu1 %vm4074_vm0, %v4075_v1  ;;  %v272_v10 = vld [vmem:[%s6764_s0 + $0x740] sm:$0xff] }
 0x1d3   :  { %v2341_v13 = vmax.f32 %v1342_v7, 0.0  ;;  %v2462_v14 = vmax.f32 %v1947_v9, 0.0  ;;  %v151_v9 = vld [vmem:[%s6764_s0 + $0x378] sm:$0xff] }
 0x1d4   :  { %v1346_v15 = vpop.f32.mrb[104].mxu0  ;;  %v1951_v16 = vpop.f32.mrb[104].mxu1 }
 0x1d5   :  { %2583 = vst.msk [vmem:[%s6767_s3 + $0x198] sm:$0xff] %vm2531_vm5, %v2341_v13  ;;  %2704 = vst.msk [vmem:[%s6767_s3 + $0x560] sm:$0xff] %vm2531_vm5, %v2462_v14  ;;  %v1347_v17 = vadd.f32 %v5473_v2, %v1346_v15  ;;  %v3434_v18 = vpop.f32.mrb[105].mxu0  ;;  %3592 = vmatmul.mubr.msk.f32.gmra.mrb[210].mxu0 %vm292_vm4, %v145_v11  ;;  %v1952_v19 = vadd.f32 %v5473_v2, %v1951_v16  ;;  %v3797_v20 = vpop.f32.mrb[105].mxu1  ;;  %3955 = vmatmul.mubr.msk.f32.gmra.mrb[210].mxu1 %vm292_vm4, %v266_v12 }
 0x1d6   :  { %3594 = vmatprep.mubr.msk.f32.mxu0 %vm4074_vm0, %v4075_v1  ;;  %3957 = vmatprep.mubr.msk.f32.mxu1 %vm4074_vm0, %v4075_v1  ;;  %v273_v20 = vld [vmem:[%s6764_s0 + $0x748] sm:$0xff] }
 0x1d7   :  { %v2342_v23 = vmax.f32 %v1347_v17, 0.0  ;;  %v2463_v24 = vmax.f32 %v1952_v19, 0.0  ;;  %v152_v19 = vld [vmem:[%s6764_s0 + $0x380] sm:$0xff] }
 0x1d8   :  { %v1351_v25 = vpop.f32.mrb[106].mxu0  ;;  %v1956_v26 = vpop.f32.mrb[106].mxu1 }
 0x1d9   :  { %2584 = vst.msk [vmem:[%s6767_s3 + $0x1a0] sm:$0xff] %vm2531_vm5, %v2342_v23  ;;  %2705 = vst.msk [vmem:[%s6767_s3 + $0x568] sm:$0xff] %vm2531_vm5, %v2463_v24  ;;  %v1352_v27 = vadd.f32 %v5473_v2, %v1351_v25  ;;  %v3437_v28 = vpop.f32.mrb[107].mxu0  ;;  %3595 = vmatmul.mubr.msk.f32.gmra.mrb[212].mxu0 %vm292_vm4, %v146_v21  ;;  %v1957_v29 = vadd.f32 %v5473_v2, %v1956_v26  ;;  %v3800_v30 = vpop.f32.mrb[107].mxu1  ;;  %3958 = vmatmul.mubr.msk.f32.gmra.mrb[212].mxu1 %vm292_vm4, %v267_v22 }
 0x1da   :  { %3597 = vmatprep.mubr.msk.f32.mxu0 %vm4074_vm0, %v4075_v1  ;;  %3960 = vmatprep.mubr.msk.f32.mxu1 %vm4074_vm0, %v4075_v1  ;;  %v274_v30 = vld [vmem:[%s6764_s0 + $0x750] sm:$0xff] }
 0x1db   :  { %v2343_v33 = vmax.f32 %v1352_v27, 0.0  ;;  %v2464_v34 = vmax.f32 %v1957_v29, 0.0  ;;  %v153_v29 = vld [vmem:[%s6764_s0 + $0x388] sm:$0xff] }
 0x1dc   :  { %v1356_v35 = vpop.f32.mrb[108].mxu0  ;;  %v1961_v36 = vpop.f32.mrb[108].mxu1 }
 0x1dd   :  { %2585 = vst.msk [vmem:[%s6767_s3 + $0x1a8] sm:$0xff] %vm2531_vm5, %v2343_v33  ;;  %2706 = vst.msk [vmem:[%s6767_s3 + $0x570] sm:$0xff] %vm2531_vm5, %v2464_v34  ;;  %v1357_v37 = vadd.f32 %v5473_v2, %v1356_v35  ;;  %v3440_v38 = vpop.f32.mrb[109].mxu0  ;;  %3598 = vmatmul.mubr.msk.f32.gmra.mrb[214].mxu0 %vm292_vm4, %v147_v31  ;;  %v1962_v39 = vadd.f32 %v5473_v2, %v1961_v36  ;;  %v3803_v40 = vpop.f32.mrb[109].mxu1  ;;  %3961 = vmatmul.mubr.msk.f32.gmra.mrb[214].mxu1 %vm292_vm4, %v268_v32 }
 0x1de   :  { %3600 = vmatprep.mubr.msk.f32.mxu0 %vm4074_vm0, %v4075_v1  ;;  %3963 = vmatprep.mubr.msk.f32.mxu1 %vm4074_vm0, %v4075_v1  ;;  %v275_v40 = vld [vmem:[%s6764_s0 + $0x758] sm:$0xff] }
 0x1df   :  { %v2344_v43 = vmax.f32 %v1357_v37, 0.0  ;;  %v2465_v44 = vmax.f32 %v1962_v39, 0.0  ;;  %v154_v39 = vld [vmem:[%s6764_s0 + $0x390] sm:$0xff] }
 0x1e0   :  { %v1361_v45 = vpop.f32.mrb[110].mxu0  ;;  %v1966_v46 = vpop.f32.mrb[110].mxu1 }
 0x1e1   :  { %2586 = vst.msk [vmem:[%s6767_s3 + $0x1b0] sm:$0xff] %vm2531_vm5, %v2344_v43  ;;  %2707 = vst.msk [vmem:[%s6767_s3 + $0x578] sm:$0xff] %vm2531_vm5, %v2465_v44  ;;  %v1362_v47 = vadd.f32 %v5473_v2, %v1361_v45  ;;  %v3443_v48 = vpop.f32.mrb[111].mxu0  ;;  %3601 = vmatmul.mubr.msk.f32.gmra.mrb[216].mxu0 %vm292_vm4, %v148_v41  ;;  %v1967_v49 = vadd.f32 %v5473_v2, %v1966_v46  ;;  %v3806_v50 = vpop.f32.mrb[111].mxu1  ;;  %3964 = vmatmul.mubr.msk.f32.gmra.mrb[216].mxu1 %vm292_vm4, %v269_v42 }
 0x1e2   :  { %3603 = vmatprep.mubr.msk.f32.mxu0 %vm4074_vm0, %v4075_v1  ;;  %3966 = vmatprep.mubr.msk.f32.mxu1 %vm4074_vm0, %v4075_v1  ;;  %v276_v50 = vld [vmem:[%s6764_s0 + $0x760] sm:$0xff] }
 0x1e3   :  { %v2345_v54 = vmax.f32 %v1362_v47, 0.0  ;;  %v2466_v55 = vmax.f32 %v1967_v49, 0.0  ;;  %v155_v49 = vld [vmem:[%s6764_s0 + $0x398] sm:$0xff] }
 0x1e4   :  { %v1366_v56 = vpop.f32.mrb[112].mxu0  ;;  %v1971_v57 = vpop.f32.mrb[112].mxu1 }
 0x1e5   :  { %2587 = vst.msk [vmem:[%s6767_s3 + $0x1b8] sm:$0xff] %vm2531_vm5, %v2345_v54  ;;  %2708 = vst.msk [vmem:[%s6767_s3 + $0x580] sm:$0xff] %vm2531_vm5, %v2466_v55  ;;  %v1367_v58 = vadd.f32 %v5473_v2, %v1366_v56  ;;  %v3446_v59 = vpop.f32.mrb[113].mxu0  ;;  %3604 = vmatmul.mubr.msk.f32.gmra.mrb[218].mxu0 %vm292_vm4, %v149_v52  ;;  %v1972_v60 = vadd.f32 %v5473_v2, %v1971_v57  ;;  %v3809_v61 = vpop.f32.mrb[113].mxu1  ;;  %3967 = vmatmul.mubr.msk.f32.gmra.mrb[218].mxu1 %vm292_vm4, %v270_v53 }
 0x1e6   :  { %3606 = vmatprep.mubr.msk.f32.mxu0 %vm4074_vm0, %v4075_v1  ;;  %3969 = vmatprep.mubr.msk.f32.mxu1 %vm4074_vm0, %v4075_v1  ;;  %v277_v61 = vld [vmem:[%s6764_s0 + $0x768] sm:$0xff] }
 0x1e7   :  { %v2346_v51 = vmax.f32 %v1367_v58, 0.0  ;;  %v2467_v0 = vmax.f32 %v1972_v60, 0.0  ;;  %v156_v60 = vld [vmem:[%s6764_s0 + $0x3a0] sm:$0xff] }
 0x1e8   :  { %v1371_v3 = vpop.f32.mrb[114].mxu0  ;;  %v1976_v4 = vpop.f32.mrb[114].mxu1 }
 0x1e9   :  { %2588 = vst.msk [vmem:[%s6767_s3 + $0x1c0] sm:$0xff] %vm2531_vm5, %v2346_v51  ;;  %2709 = vst.msk [vmem:[%s6767_s3 + $0x588] sm:$0xff] %vm2531_vm5, %v2467_v0  ;;  %v1372_v5 = vadd.f32 %v5473_v2, %v1371_v3  ;;  %v3449_v6 = vpop.f32.mrb[115].mxu0  ;;  %3607 = vmatmul.mubr.msk.f32.gmra.mrb[220].mxu0 %vm292_vm4, %v150_v62  ;;  %v1977_v7 = vadd.f32 %v5473_v2, %v1976_v4  ;;  %v3812_v8 = vpop.f32.mrb[115].mxu1  ;;  %3970 = vmatmul.mubr.msk.f32.gmra.mrb[220].mxu1 %vm292_vm4, %v271_v63 }
 0x1ea   :  { %3609 = vmatprep.mubr.msk.f32.mxu0 %vm4074_vm0, %v4075_v1  ;;  %3972 = vmatprep.mubr.msk.f32.mxu1 %vm4074_vm0, %v4075_v1  ;;  %v278_v8 = vld [vmem:[%s6764_s0 + $0x770] sm:$0xff] }
 0x1eb   :  { %v2347_v11 = vmax.f32 %v1372_v5, 0.0  ;;  %v2468_v12 = vmax.f32 %v1977_v7, 0.0  ;;  %v157_v7 = vld [vmem:[%s6764_s0 + $0x3a8] sm:$0xff] }
 0x1ec   :  { %v1376_v13 = vpop.f32.mrb[116].mxu0  ;;  %v1981_v14 = vpop.f32.mrb[116].mxu1 }
 0x1ed   :  { %2589 = vst.msk [vmem:[%s6767_s3 + $0x1c8] sm:$0xff] %vm2531_vm5, %v2347_v11  ;;  %2710 = vst.msk [vmem:[%s6767_s3 + $0x590] sm:$0xff] %vm2531_vm5, %v2468_v12  ;;  %v1377_v15 = vadd.f32 %v5473_v2, %v1376_v13  ;;  %v3452_v16 = vpop.f32.mrb[117].mxu0  ;;  %3610 = vmatmul.mubr.msk.f32.gmra.mrb[222].mxu0 %vm292_vm4, %v151_v9  ;;  %v1982_v17 = vadd.f32 %v5473_v2, %v1981_v14  ;;  %v3815_v18 = vpop.f32.mrb[117].mxu1  ;;  %3973 = vmatmul.mubr.msk.f32.gmra.mrb[222].mxu1 %vm292_vm4, %v272_v10  ;;  %v6179_v12 = vld [vmem:[#allocation4] ss:$0 sm:$0xff] }
 0x1ee   :  { %3612 = vmatprep.mubr.msk.f32.mxu0 %vm4074_vm0, %v4075_v1  ;;  %3975 = vmatprep.mubr.msk.f32.mxu1 %vm4074_vm0, %v4075_v1  ;;  %v279_v18 = vld [vmem:[%s6764_s0 + $0x778] sm:$0xff] }
 0x1ef   :  { %v2348_v21 = vmax.f32 %v1377_v15, 0.0  ;;  %v2469_v22 = vmax.f32 %v1982_v17, 0.0  ;;  %v158_v17 = vld [vmem:[%s6764_s0 + $0x3b0] sm:$0xff] }
 0x1f0   :  { %v1381_v23 = vpop.f32.mrb[118].mxu0  ;;  %v1986_v24 = vpop.f32.mrb[118].mxu1 }
 0x1f1   :  { %2590 = vst.msk [vmem:[%s6767_s3 + $0x1d0] sm:$0xff] %vm2531_vm5, %v2348_v21  ;;  %2711 = vst.msk [vmem:[%s6767_s3 + $0x598] sm:$0xff] %vm2531_vm5, %v2469_v22  ;;  %v1382_v25 = vadd.f32 %v5473_v2, %v1381_v23  ;;  %v3455_v26 = vpop.f32.mrb[119].mxu0  ;;  %3613 = vmatmul.mubr.msk.f32.gmra.mrb[224].mxu0 %vm292_vm4, %v152_v19  ;;  %v1987_v27 = vadd.f32 %v5473_v2, %v1986_v24  ;;  %v3818_v28 = vpop.f32.mrb[119].mxu1  ;;  %3976 = vmatmul.mubr.msk.f32.gmra.mrb[224].mxu1 %vm292_vm4, %v273_v20 }
 0x1f2   :  { %3615 = vmatprep.mubr.msk.f32.mxu0 %vm4074_vm0, %v4075_v1  ;;  %3978 = vmatprep.mubr.msk.f32.mxu1 %vm4074_vm0, %v4075_v1  ;;  %v280_v28 = vld [vmem:[%s6764_s0 + $0x780] sm:$0x3] }
 0x1f3   :  { %v2349_v31 = vmax.f32 %v1382_v25, 0.0  ;;  %v2470_v32 = vmax.f32 %v1987_v27, 0.0  ;;  %v159_v27 = vld [vmem:[%s6764_s0 + $0x3b8] sm:$0xff] }
 0x1f4   :  { %v1386_v33 = vpop.f32.mrb[120].mxu0  ;;  %v1991_v34 = vpop.f32.mrb[120].mxu1 }
 0x1f5   :  { %2591 = vst.msk [vmem:[%s6767_s3 + $0x1d8] sm:$0xff] %vm2531_vm5, %v2349_v31  ;;  %2712 = vst.msk [vmem:[%s6767_s3 + $0x5a0] sm:$0xff] %vm2531_vm5, %v2470_v32  ;;  %v1387_v35 = vadd.f32 %v5473_v2, %v1386_v33  ;;  %v3458_v36 = vpop.f32.mrb[121].mxu0  ;;  %3616 = vmatmul.mubr.msk.f32.gmra.mrb[226].mxu0 %vm292_vm4, %v153_v29  ;;  %v1992_v37 = vadd.f32 %v5473_v2, %v1991_v34  ;;  %v3821_v38 = vpop.f32.mrb[121].mxu1  ;;  %3979 = vmatmul.mubr.msk.f32.gmra.mrb[226].mxu1 %vm292_vm4, %v274_v30 }
 0x1f6   :  { %3618 = vmatprep.mubr.msk.f32.mxu0 %vm4074_vm0, %v4075_v1  ;;  %3981 = vmatprep.mubr.msk.f32.mxu1 %vm4074_vm0, %v4075_v1 }
 0x1f7   :  { %v2350_v41 = vmax.f32 %v1387_v35, 0.0  ;;  %v2471_v42 = vmax.f32 %v1992_v37, 0.0  ;;  %v160_v37 = vld [vmem:[%s6764_s0 + $0x3c0] sm:$0xff] }
 0x1f8   :  { %v1391_v43 = vpop.f32.mrb[122].mxu0  ;;  %v1996_v44 = vpop.f32.mrb[122].mxu1 }
 0x1f9   :  { %2592 = vst.msk [vmem:[%s6767_s3 + $0x1e0] sm:$0xff] %vm2531_vm5, %v2350_v41  ;;  %2713 = vst.msk [vmem:[%s6767_s3 + $0x5a8] sm:$0xff] %vm2531_vm5, %v2471_v42  ;;  %v1392_v45 = vadd.f32 %v5473_v2, %v1391_v43  ;;  %v3461_v46 = vpop.f32.mrb[123].mxu0  ;;  %3619 = vmatmul.mubr.msk.f32.gmra.mrb[228].mxu0 %vm292_vm4, %v154_v39  ;;  %v1997_v47 = vadd.f32 %v5473_v2, %v1996_v44  ;;  %v3824_v48 = vpop.f32.mrb[123].mxu1  ;;  %3982 = vmatmul.mubr.msk.f32.gmra.mrb[228].mxu1 %vm292_vm4, %v275_v40 }
 0x1fa   :  { %3621 = vmatprep.mubr.msk.f32.mxu0 %vm4074_vm0, %v4075_v1  ;;  %3984 = vmatprep.mubr.msk.f32.mxu1 %vm4074_vm0, %v4075_v1 }
 0x1fb   :  { %v2351_v52 = vmax.f32 %v1392_v45, 0.0  ;;  %v2472_v53 = vmax.f32 %v1997_v47, 0.0 }
 0x1fc   :  { %v1396_v54 = vpop.f32.mrb[124].mxu0  ;;  %v2001_v55 = vpop.f32.mrb[124].mxu1 }
 0x1fd   :  { %2593 = vst.msk [vmem:[%s6767_s3 + $0x1e8] sm:$0xff] %vm2531_vm5, %v2351_v52  ;;  %2714 = vst.msk [vmem:[%s6767_s3 + $0x5b0] sm:$0xff] %vm2531_vm5, %v2472_v53  ;;  %v1397_v56 = vadd.f32 %v5473_v2, %v1396_v54  ;;  %v3464_v57 = vpop.f32.mrb[125].mxu0  ;;  %3622 = vmatmul.mubr.msk.f32.gmra.mrb[230].mxu0 %vm292_vm4, %v155_v49  ;;  %v2002_v58 = vadd.f32 %v5473_v2, %v2001_v55  ;;  %v3827_v59 = vpop.f32.mrb[125].mxu1  ;;  %3985 = vmatmul.mubr.msk.f32.gmra.mrb[230].mxu1 %vm292_vm4, %v276_v50 }
 0x1fe   :  { %3624 = vmatprep.mubr.msk.f32.mxu0 %vm4074_vm0, %v4075_v1  ;;  %3987 = vmatprep.mubr.msk.f32.mxu1 %vm4074_vm0, %v4075_v1 }
 0x1ff   :  { %v2352_v62 = vmax.f32 %v1397_v56, 0.0  ;;  %v2473_v63 = vmax.f32 %v2002_v58, 0.0 }
 0x200   :  { %v1401_v51 = vpop.f32.mrb[126].mxu0  ;;  %v2006_v0 = vpop.f32.mrb[126].mxu1 }
 0x201   :  { %2594 = vst.msk [vmem:[%s6767_s3 + $0x1f0] sm:$0xff] %vm2531_vm5, %v2352_v62  ;;  %2715 = vst.msk [vmem:[%s6767_s3 + $0x5b8] sm:$0xff] %vm2531_vm5, %v2473_v63  ;;  %v1402_v3 = vadd.f32 %v5473_v2, %v1401_v51  ;;  %v3467_v4 = vpop.f32.mrb[127].mxu0  ;;  %3625 = vmatmul.mubr.msk.f32.gmra.mrb[232].mxu0 %vm292_vm4, %v156_v60  ;;  %v2007_v5 = vadd.f32 %v5473_v2, %v2006_v0  ;;  %v3830_v6 = vpop.f32.mrb[127].mxu1  ;;  %3988 = vmatmul.mubr.msk.f32.gmra.mrb[232].mxu1 %vm292_vm4, %v277_v61 }
 0x202   :  { %3627 = vmatprep.mubr.msk.f32.mxu0 %vm4074_vm0, %v4075_v1  ;;  %3990 = vmatprep.mubr.msk.f32.mxu1 %vm4074_vm0, %v4075_v1 }
 0x203   :  { %v2353_v9 = vmax.f32 %v1402_v3, 0.0  ;;  %v2474_v10 = vmax.f32 %v2007_v5, 0.0 }
 0x204   :  { %v1406_v2 = vpop.f32.mrb[128].mxu0  ;;  %v2011_v11 = vpop.f32.mrb[128].mxu1 }
 0x205   :  { %2595 = vst.msk [vmem:[%s6767_s3 + $0x1f8] sm:$0xff] %vm2531_vm5, %v2353_v9  ;;  %2716 = vst.msk [vmem:[%s6767_s3 + $0x5c0] sm:$0xff] %vm2531_vm5, %v2474_v10  ;;  %v1407_v13 = vadd.f32 %v6179_v12, %v1406_v2  ;;  %v3470_v14 = vpop.f32.mrb[129].mxu0  ;;  %3628 = vmatmul.mubr.msk.f32.gmra.mrb[234].mxu0 %vm292_vm4, %v157_v7  ;;  %v2012_v15 = vadd.f32 %v6179_v12, %v2011_v11  ;;  %v3833_v16 = vpop.f32.mrb[129].mxu1  ;;  %3991 = vmatmul.mubr.msk.f32.gmra.mrb[234].mxu1 %vm292_vm4, %v278_v8 }
 0x206   :  { %3630 = vmatprep.mubr.msk.f32.mxu0 %vm4074_vm0, %v4075_v1  ;;  %3993 = vmatprep.mubr.msk.f32.mxu1 %vm4074_vm0, %v4075_v1 }
 0x207   :  { %v2354_v19 = vmax.f32 %v1407_v13, 0.0  ;;  %v2475_v20 = vmax.f32 %v2012_v15, 0.0 }
 0x208   :  { %v1411_v21 = vpop.f32.mrb[130].mxu0  ;;  %v2016_v22 = vpop.f32.mrb[130].mxu1 }
 0x209   :  { %2596 = vst.msk [vmem:[%s6767_s3 + $0x200] sm:$0xff] %vm2531_vm5, %v2354_v19  ;;  %2717 = vst.msk [vmem:[%s6767_s3 + $0x5c8] sm:$0xff] %vm2531_vm5, %v2475_v20  ;;  %v1412_v23 = vadd.f32 %v6179_v12, %v1411_v21  ;;  %v3473_v24 = vpop.f32.mrb[131].mxu0  ;;  %3631 = vmatmul.mubr.msk.f32.gmra.mrb[236].mxu0 %vm292_vm4, %v158_v17  ;;  %v2017_v25 = vadd.f32 %v6179_v12, %v2016_v22  ;;  %v3836_v26 = vpop.f32.mrb[131].mxu1  ;;  %3994 = vmatmul.mubr.msk.f32.gmra.mrb[236].mxu1 %vm292_vm4, %v279_v18 }
 0x20a   :  { %3633 = vmatprep.mubr.msk.f32.mxu0 %vm4074_vm0, %v4075_v1  ;;  %3996 = vmatprep.mubr.msk.f32.mxu1 %vm4074_vm0, %v4075_v1 }
 0x20b   :  { %v2355_v29 = vmax.f32 %v1412_v23, 0.0  ;;  %v2476_v30 = vmax.f32 %v2017_v25, 0.0 }
 0x20c   :  { %v1416_v31 = vpop.f32.mrb[132].mxu0  ;;  %v2021_v32 = vpop.f32.mrb[132].mxu1 }
 0x20d   :  { %2597 = vst.msk [vmem:[%s6767_s3 + $0x208] sm:$0xff] %vm2531_vm5, %v2355_v29  ;;  %2718 = vst.msk [vmem:[%s6767_s3 + $0x5d0] sm:$0xff] %vm2531_vm5, %v2476_v30  ;;  %v1417_v33 = vadd.f32 %v6179_v12, %v1416_v31  ;;  %v3476_v34 = vpop.f32.mrb[133].mxu0  ;;  %3634 = vmatmul.mubr.msk.f32.gmra.mrb[238].mxu0 %vm292_vm4, %v159_v27  ;;  %v2022_v35 = vadd.f32 %v6179_v12, %v2021_v32  ;;  %v3839_v36 = vpop.f32.mrb[133].mxu1  ;;  %3997 = vmatmul.mubr.msk.f32.gmra.mrb[238].mxu1 %vm292_vm4, %v280_v28 }
 0x20e   :  { %3636 = vmatprep.mubr.msk.f32.mxu0 %vm4074_vm0, %v4075_v1 }
 0x20f   :  { %v2356_v38 = vmax.f32 %v1417_v33, 0.0  ;;  %v2477_v39 = vmax.f32 %v2022_v35, 0.0 }
 0x210   :  { %v1421_v40 = vpop.f32.mrb[134].mxu0  ;;  %v2026_v41 = vpop.f32.mrb[134].mxu1 }
 0x211   :  { %2598 = vst.msk [vmem:[%s6767_s3 + $0x210] sm:$0xff] %vm2531_vm5, %v2356_v38  ;;  %2719 = vst.msk [vmem:[%s6767_s3 + $0x5d8] sm:$0xff] %vm2531_vm5, %v2477_v39  ;;  %v1422_v1 = vadd.f32 %v6179_v12, %v1421_v40  ;;  %v3479_v42 = vpop.f32.mrb[135].mxu0  ;;  %3637 = vmatmul.mubr.msk.f32.gmra.mrb[240].mxu0 %vm292_vm4, %v160_v37  ;;  %v2027_v43 = vadd.f32 %v6179_v12, %v2026_v41  ;;  %v3842_v44 = vpop.f32.mrb[135].mxu1 }
 0x213   :  { %v2357_v45 = vmax.f32 %v1422_v1, 0.0  ;;  %v2478_v46 = vmax.f32 %v2027_v43, 0.0 }
 0x214   :  { %v1426_v47 = vpop.f32.mrb[136].mxu0  ;;  %v2031_v48 = vpop.f32.mrb[136].mxu1 }
 0x215   :  { %2599 = vst.msk [vmem:[%s6767_s3 + $0x218] sm:$0xff] %vm2531_vm5, %v2357_v45  ;;  %2720 = vst.msk [vmem:[%s6767_s3 + $0x5e0] sm:$0xff] %vm2531_vm5, %v2478_v46  ;;  %v1427_v49 = vadd.f32 %v6179_v12, %v1426_v47  ;;  %v3482_v50 = vpop.f32.mrb[137].mxu0  ;;  %v2032_v52 = vadd.f32 %v6179_v12, %v2031_v48  ;;  %v3845_v53 = vpop.f32.mrb[137].mxu1 }
 0x217   :  { %v2358_v54 = vmax.f32 %v1427_v49, 0.0  ;;  %v2479_v55 = vmax.f32 %v2032_v52, 0.0 }
 0x218   :  { %v1431_v56 = vpop.f32.mrb[138].mxu0  ;;  %v2036_v57 = vpop.f32.mrb[138].mxu1 }
 0x219   :  { %2600 = vst.msk [vmem:[%s6767_s3 + $0x220] sm:$0xff] %vm2531_vm5, %v2358_v54  ;;  %2721 = vst.msk [vmem:[%s6767_s3 + $0x5e8] sm:$0xff] %vm2531_vm5, %v2479_v55  ;;  %v1432_v58 = vadd.f32 %v6179_v12, %v1431_v56  ;;  %v3485_v59 = vpop.f32.mrb[139].mxu0  ;;  %v2037_v60 = vadd.f32 %v6179_v12, %v2036_v57  ;;  %v3848_v61 = vpop.f32.mrb[139].mxu1 }
 0x21b   :  { %v2359_v62 = vmax.f32 %v1432_v58, 0.0  ;;  %v2480_v63 = vmax.f32 %v2037_v60, 0.0 }
 0x21c   :  { %v1436_v51 = vpop.f32.mrb[140].mxu0  ;;  %v2041_v0 = vpop.f32.mrb[140].mxu1 }
 0x21d   :  { %2601 = vst.msk [vmem:[%s6767_s3 + $0x228] sm:$0xff] %vm2531_vm5, %v2359_v62  ;;  %2722 = vst.msk [vmem:[%s6767_s3 + $0x5f0] sm:$0xff] %vm2531_vm5, %v2480_v63  ;;  %v1437_v3 = vadd.f32 %v6179_v12, %v1436_v51  ;;  %v3488_v4 = vpop.f32.mrb[141].mxu0  ;;  %v2042_v5 = vadd.f32 %v6179_v12, %v2041_v0  ;;  %v3851_v6 = vpop.f32.mrb[141].mxu1 }
 0x21f   :  { %v2360_v7 = vmax.f32 %v1437_v3, 0.0  ;;  %v2481_v8 = vmax.f32 %v2042_v5, 0.0 }
 0x220   :  { %v1441_v9 = vpop.f32.mrb[142].mxu0  ;;  %v2046_v10 = vpop.f32.mrb[142].mxu1 }
 0x221   :  { %2602 = vst.msk [vmem:[%s6767_s3 + $0x230] sm:$0xff] %vm2531_vm5, %v2360_v7  ;;  %2723 = vst.msk [vmem:[%s6767_s3 + $0x5f8] sm:$0xff] %vm2531_vm5, %v2481_v8  ;;  %v1442_v2 = vadd.f32 %v6179_v12, %v1441_v9  ;;  %v3491_v11 = vpop.f32.mrb[143].mxu0  ;;  %v2047_v13 = vadd.f32 %v6179_v12, %v2046_v10  ;;  %v3854_v14 = vpop.f32.mrb[143].mxu1 }
 0x223   :  { %v2361_v15 = vmax.f32 %v1442_v2, 0.0  ;;  %v2482_v16 = vmax.f32 %v2047_v13, 0.0 }
 0x224   :  { %v1446_v17 = vpop.f32.mrb[144].mxu0  ;;  %v2051_v18 = vpop.f32.mrb[144].mxu1 }
 0x225   :  { %2603 = vst.msk [vmem:[%s6767_s3 + $0x238] sm:$0xff] %vm2531_vm5, %v2361_v15  ;;  %2724 = vst.msk [vmem:[%s6767_s3 + $0x600] sm:$0xff] %vm2531_vm5, %v2482_v16  ;;  %v1447_v19 = vadd.f32 %v6179_v12, %v1446_v17  ;;  %v3494_v20 = vpop.f32.mrb[145].mxu0  ;;  %v2052_v21 = vadd.f32 %v6179_v12, %v2051_v18  ;;  %v3857_v22 = vpop.f32.mrb[145].mxu1 }
 0x227   :  { %v2362_v23 = vmax.f32 %v1447_v19, 0.0  ;;  %v2483_v24 = vmax.f32 %v2052_v21, 0.0 }
 0x228   :  { %v1451_v25 = vpop.f32.mrb[146].mxu0  ;;  %v2056_v26 = vpop.f32.mrb[146].mxu1 }
 0x229   :  { %2604 = vst.msk [vmem:[%s6767_s3 + $0x240] sm:$0xff] %vm2531_vm5, %v2362_v23  ;;  %2725 = vst.msk [vmem:[%s6767_s3 + $0x608] sm:$0xff] %vm2531_vm5, %v2483_v24  ;;  %v1452_v27 = vadd.f32 %v6179_v12, %v1451_v25  ;;  %v3497_v28 = vpop.f32.mrb[147].mxu0  ;;  %v2057_v29 = vadd.f32 %v6179_v12, %v2056_v26  ;;  %v3860_v30 = vpop.f32.mrb[147].mxu1 }
 0x22b   :  { %v2363_v31 = vmax.f32 %v1452_v27, 0.0  ;;  %v2484_v32 = vmax.f32 %v2057_v29, 0.0 }
 0x22c   :  { %v1456_v33 = vpop.f32.mrb[148].mxu0  ;;  %v2061_v34 = vpop.f32.mrb[148].mxu1 }
 0x22d   :  { %2605 = vst.msk [vmem:[%s6767_s3 + $0x248] sm:$0xff] %vm2531_vm5, %v2363_v31  ;;  %2726 = vst.msk [vmem:[%s6767_s3 + $0x610] sm:$0xff] %vm2531_vm5, %v2484_v32  ;;  %v1457_v35 = vadd.f32 %v6179_v12, %v1456_v33  ;;  %v3500_v36 = vpop.f32.mrb[149].mxu0  ;;  %v2062_v37 = vadd.f32 %v6179_v12, %v2061_v34  ;;  %v3863_v38 = vpop.f32.mrb[149].mxu1 }
 0x22f   :  { %v2364_v39 = vmax.f32 %v1457_v35, 0.0  ;;  %v2485_v40 = vmax.f32 %v2062_v37, 0.0 }
 0x230   :  { %v1461_v41 = vpop.f32.mrb[150].mxu0  ;;  %v2066_v1 = vpop.f32.mrb[150].mxu1 }
 0x231   :  { %2606 = vst.msk [vmem:[%s6767_s3 + $0x250] sm:$0xff] %vm2531_vm5, %v2364_v39  ;;  %2727 = vst.msk [vmem:[%s6767_s3 + $0x618] sm:$0xff] %vm2531_vm5, %v2485_v40  ;;  %v1462_v42 = vadd.f32 %v6179_v12, %v1461_v41  ;;  %v3503_v43 = vpop.f32.mrb[151].mxu0  ;;  %v2067_v44 = vadd.f32 %v6179_v12, %v2066_v1  ;;  %v3866_v45 = vpop.f32.mrb[151].mxu1 }
 0x233   :  { %v2365_v46 = vmax.f32 %v1462_v42, 0.0  ;;  %v2486_v47 = vmax.f32 %v2067_v44, 0.0 }
 0x234   :  { %v1466_v48 = vpop.f32.mrb[152].mxu0  ;;  %v2071_v49 = vpop.f32.mrb[152].mxu1 }
 0x235   :  { %2607 = vst.msk [vmem:[%s6767_s3 + $0x258] sm:$0xff] %vm2531_vm5, %v2365_v46  ;;  %2728 = vst.msk [vmem:[%s6767_s3 + $0x620] sm:$0xff] %vm2531_vm5, %v2486_v47  ;;  %v1467_v50 = vadd.f32 %v6179_v12, %v1466_v48  ;;  %v3506_v52 = vpop.f32.mrb[153].mxu0  ;;  %v2072_v53 = vadd.f32 %v6179_v12, %v2071_v49  ;;  %v3869_v54 = vpop.f32.mrb[153].mxu1 }
 0x237   :  { %v2366_v55 = vmax.f32 %v1467_v50, 0.0  ;;  %v2487_v56 = vmax.f32 %v2072_v53, 0.0 }
 0x238   :  { %v1471_v57 = vpop.f32.mrb[154].mxu0  ;;  %v2076_v58 = vpop.f32.mrb[154].mxu1 }
 0x239   :  { %2608 = vst.msk [vmem:[%s6767_s3 + $0x260] sm:$0xff] %vm2531_vm5, %v2366_v55  ;;  %2729 = vst.msk [vmem:[%s6767_s3 + $0x628] sm:$0xff] %vm2531_vm5, %v2487_v56  ;;  %v1472_v59 = vadd.f32 %v6179_v12, %v1471_v57  ;;  %v3509_v60 = vpop.f32.mrb[155].mxu0  ;;  %v2077_v61 = vadd.f32 %v6179_v12, %v2076_v58  ;;  %v3872_v62 = vpop.f32.mrb[155].mxu1 }
 0x23b   :  { %v2367_v63 = vmax.f32 %v1472_v59, 0.0  ;;  %v2488_v51 = vmax.f32 %v2077_v61, 0.0 }
 0x23c   :  { %v1476_v0 = vpop.f32.mrb[156].mxu0  ;;  %v2081_v3 = vpop.f32.mrb[156].mxu1 }
 0x23d   :  { %2609 = vst.msk [vmem:[%s6767_s3 + $0x268] sm:$0xff] %vm2531_vm5, %v2367_v63  ;;  %2730 = vst.msk [vmem:[%s6767_s3 + $0x630] sm:$0xff] %vm2531_vm5, %v2488_v51  ;;  %v1477_v4 = vadd.f32 %v6179_v12, %v1476_v0  ;;  %v3512_v5 = vpop.f32.mrb[157].mxu0  ;;  %v2082_v6 = vadd.f32 %v6179_v12, %v2081_v3  ;;  %v3875_v7 = vpop.f32.mrb[157].mxu1 }
 0x23f   :  { %v2368_v8 = vmax.f32 %v1477_v4, 0.0  ;;  %v2489_v9 = vmax.f32 %v2082_v6, 0.0 }
 0x240   :  { %v1481_v10 = vpop.f32.mrb[158].mxu0  ;;  %v2086_v2 = vpop.f32.mrb[158].mxu1 }
 0x241   :  { %2610 = vst.msk [vmem:[%s6767_s3 + $0x270] sm:$0xff] %vm2531_vm5, %v2368_v8  ;;  %2731 = vst.msk [vmem:[%s6767_s3 + $0x638] sm:$0xff] %vm2531_vm5, %v2489_v9  ;;  %v1482_v11 = vadd.f32 %v6179_v12, %v1481_v10  ;;  %v3515_v13 = vpop.f32.mrb[159].mxu0  ;;  %v2087_v14 = vadd.f32 %v6179_v12, %v2086_v2  ;;  %v3878_v15 = vpop.f32.mrb[159].mxu1 }
 0x243   :  { %v2369_v16 = vmax.f32 %v1482_v11, 0.0  ;;  %v2490_v17 = vmax.f32 %v2087_v14, 0.0 }
 0x244   :  { %v1486_v18 = vpop.f32.mrb[160].mxu0  ;;  %v2091_v19 = vpop.f32.mrb[160].mxu1 }
 0x245   :  { %2611 = vst.msk [vmem:[%s6767_s3 + $0x278] sm:$0xff] %vm2531_vm5, %v2369_v16  ;;  %2732 = vst.msk [vmem:[%s6767_s3 + $0x640] sm:$0xff] %vm2531_vm5, %v2490_v17  ;;  %v1487_v20 = vadd.f32 %v6179_v12, %v1486_v18  ;;  %v3518_v21 = vpop.f32.mrb[161].mxu0  ;;  %v2092_v22 = vadd.f32 %v6179_v12, %v2091_v19  ;;  %v3881_v23 = vpop.f32.mrb[161].mxu1 }
 0x247   :  { %v2370_v24 = vmax.f32 %v1487_v20, 0.0  ;;  %v2491_v25 = vmax.f32 %v2092_v22, 0.0 }
 0x248   :  { %v1491_v26 = vpop.f32.mrb[162].mxu0  ;;  %v2096_v27 = vpop.f32.mrb[162].mxu1 }
 0x249   :  { %2612 = vst.msk [vmem:[%s6767_s3 + $0x280] sm:$0xff] %vm2531_vm5, %v2370_v24  ;;  %2733 = vst.msk [vmem:[%s6767_s3 + $0x648] sm:$0xff] %vm2531_vm5, %v2491_v25  ;;  %v1492_v28 = vadd.f32 %v6179_v12, %v1491_v26  ;;  %v3521_v29 = vpop.f32.mrb[163].mxu0  ;;  %v2097_v30 = vadd.f32 %v6179_v12, %v2096_v27  ;;  %v3884_v31 = vpop.f32.mrb[163].mxu1 }
 0x24b   :  { %v2371_v32 = vmax.f32 %v1492_v28, 0.0  ;;  %v2492_v33 = vmax.f32 %v2097_v30, 0.0 }
 0x24c   :  { %v1496_v34 = vpop.f32.mrb[164].mxu0  ;;  %v2101_v35 = vpop.f32.mrb[164].mxu1 }
 0x24d   :  { %2613 = vst.msk [vmem:[%s6767_s3 + $0x288] sm:$0xff] %vm2531_vm5, %v2371_v32  ;;  %2734 = vst.msk [vmem:[%s6767_s3 + $0x650] sm:$0xff] %vm2531_vm5, %v2492_v33  ;;  %v1497_v36 = vadd.f32 %v6179_v12, %v1496_v34  ;;  %v3524_v37 = vpop.f32.mrb[165].mxu0  ;;  %v2102_v38 = vadd.f32 %v6179_v12, %v2101_v35  ;;  %v3887_v39 = vpop.f32.mrb[165].mxu1 }
 0x24f   :  { %v2372_v40 = vmax.f32 %v1497_v36, 0.0  ;;  %v2493_v41 = vmax.f32 %v2102_v38, 0.0 }
 0x250   :  { %v1501_v1 = vpop.f32.mrb[166].mxu0  ;;  %v2106_v42 = vpop.f32.mrb[166].mxu1 }
 0x251   :  { %2614 = vst.msk [vmem:[%s6767_s3 + $0x290] sm:$0xff] %vm2531_vm5, %v2372_v40  ;;  %2735 = vst.msk [vmem:[%s6767_s3 + $0x658] sm:$0xff] %vm2531_vm5, %v2493_v41  ;;  %v1502_v43 = vadd.f32 %v6179_v12, %v1501_v1  ;;  %v3527_v44 = vpop.f32.mrb[167].mxu0  ;;  %v2107_v45 = vadd.f32 %v6179_v12, %v2106_v42  ;;  %v3890_v46 = vpop.f32.mrb[167].mxu1 }
 0x253   :  { %v2373_v47 = vmax.f32 %v1502_v43, 0.0  ;;  %v2494_v48 = vmax.f32 %v2107_v45, 0.0 }
 0x254   :  { %v1506_v49 = vpop.f32.mrb[168].mxu0  ;;  %v2111_v50 = vpop.f32.mrb[168].mxu1 }
 0x255   :  { %2615 = vst.msk [vmem:[%s6767_s3 + $0x298] sm:$0xff] %vm2531_vm5, %v2373_v47  ;;  %2736 = vst.msk [vmem:[%s6767_s3 + $0x660] sm:$0xff] %vm2531_vm5, %v2494_v48  ;;  %v1507_v52 = vadd.f32 %v6179_v12, %v1506_v49  ;;  %v3530_v53 = vpop.f32.mrb[169].mxu0  ;;  %v2112_v54 = vadd.f32 %v6179_v12, %v2111_v50  ;;  %v3893_v55 = vpop.f32.mrb[169].mxu1 }
 0x257   :  { %v2374_v56 = vmax.f32 %v1507_v52, 0.0  ;;  %v2495_v57 = vmax.f32 %v2112_v54, 0.0 }
 0x258   :  { %v1511_v58 = vpop.f32.mrb[170].mxu0  ;;  %v2116_v59 = vpop.f32.mrb[170].mxu1 }
 0x259   :  { %2616 = vst.msk [vmem:[%s6767_s3 + $0x2a0] sm:$0xff] %vm2531_vm5, %v2374_v56  ;;  %2737 = vst.msk [vmem:[%s6767_s3 + $0x668] sm:$0xff] %vm2531_vm5, %v2495_v57  ;;  %v1512_v60 = vadd.f32 %v6179_v12, %v1511_v58  ;;  %v3533_v61 = vpop.f32.mrb[171].mxu0  ;;  %v2117_v62 = vadd.f32 %v6179_v12, %v2116_v59  ;;  %v3896_v63 = vpop.f32.mrb[171].mxu1 }
 0x25b   :  { %v2375_v51 = vmax.f32 %v1512_v60, 0.0  ;;  %v2496_v0 = vmax.f32 %v2117_v62, 0.0 }
 0x25c   :  { %v1516_v3 = vpop.f32.mrb[172].mxu0  ;;  %v2121_v4 = vpop.f32.mrb[172].mxu1 }
 0x25d   :  { %2617 = vst.msk [vmem:[%s6767_s3 + $0x2a8] sm:$0xff] %vm2531_vm5, %v2375_v51  ;;  %2738 = vst.msk [vmem:[%s6767_s3 + $0x670] sm:$0xff] %vm2531_vm5, %v2496_v0  ;;  %v1517_v5 = vadd.f32 %v6179_v12, %v1516_v3  ;;  %v3536_v6 = vpop.f32.mrb[173].mxu0  ;;  %v2122_v7 = vadd.f32 %v6179_v12, %v2121_v4  ;;  %v3899_v8 = vpop.f32.mrb[173].mxu1 }
 0x25f   :  { %v2376_v9 = vmax.f32 %v1517_v5, 0.0  ;;  %v2497_v10 = vmax.f32 %v2122_v7, 0.0 }
 0x260   :  { %v1521_v2 = vpop.f32.mrb[174].mxu0  ;;  %v2126_v11 = vpop.f32.mrb[174].mxu1 }
 0x261   :  { %2618 = vst.msk [vmem:[%s6767_s3 + $0x2b0] sm:$0xff] %vm2531_vm5, %v2376_v9  ;;  %2739 = vst.msk [vmem:[%s6767_s3 + $0x678] sm:$0xff] %vm2531_vm5, %v2497_v10  ;;  %v1522_v13 = vadd.f32 %v6179_v12, %v1521_v2  ;;  %v3539_v14 = vpop.f32.mrb[175].mxu0  ;;  %v2127_v15 = vadd.f32 %v6179_v12, %v2126_v11  ;;  %v3902_v16 = vpop.f32.mrb[175].mxu1 }
 0x263   :  { %v2377_v17 = vmax.f32 %v1522_v13, 0.0  ;;  %v2498_v18 = vmax.f32 %v2127_v15, 0.0 }
 0x264   :  { %v1526_v19 = vpop.f32.mrb[176].mxu0  ;;  %v2131_v20 = vpop.f32.mrb[176].mxu1 }
 0x265   :  { %2619 = vst.msk [vmem:[%s6767_s3 + $0x2b8] sm:$0xff] %vm2531_vm5, %v2377_v17  ;;  %2740 = vst.msk [vmem:[%s6767_s3 + $0x680] sm:$0xff] %vm2531_vm5, %v2498_v18  ;;  %v1527_v21 = vadd.f32 %v6179_v12, %v1526_v19  ;;  %v3542_v22 = vpop.f32.mrb[177].mxu0  ;;  %v2132_v23 = vadd.f32 %v6179_v12, %v2131_v20  ;;  %v3905_v24 = vpop.f32.mrb[177].mxu1 }
 0x267   :  { %v2378_v25 = vmax.f32 %v1527_v21, 0.0  ;;  %v2499_v26 = vmax.f32 %v2132_v23, 0.0 }
 0x268   :  { %v1531_v27 = vpop.f32.mrb[178].mxu0  ;;  %v2136_v28 = vpop.f32.mrb[178].mxu1 }
 0x269   :  { %2620 = vst.msk [vmem:[%s6767_s3 + $0x2c0] sm:$0xff] %vm2531_vm5, %v2378_v25  ;;  %2741 = vst.msk [vmem:[%s6767_s3 + $0x688] sm:$0xff] %vm2531_vm5, %v2499_v26  ;;  %v1532_v29 = vadd.f32 %v6179_v12, %v1531_v27  ;;  %v3545_v30 = vpop.f32.mrb[179].mxu0  ;;  %v2137_v31 = vadd.f32 %v6179_v12, %v2136_v28  ;;  %v3908_v32 = vpop.f32.mrb[179].mxu1 }
 0x26b   :  { %v2379_v33 = vmax.f32 %v1532_v29, 0.0  ;;  %v2500_v34 = vmax.f32 %v2137_v31, 0.0 }
 0x26c   :  { %v1536_v35 = vpop.f32.mrb[180].mxu0  ;;  %v2141_v36 = vpop.f32.mrb[180].mxu1 }
 0x26d   :  { %2621 = vst.msk [vmem:[%s6767_s3 + $0x2c8] sm:$0xff] %vm2531_vm5, %v2379_v33  ;;  %2742 = vst.msk [vmem:[%s6767_s3 + $0x690] sm:$0xff] %vm2531_vm5, %v2500_v34  ;;  %v1537_v37 = vadd.f32 %v6179_v12, %v1536_v35  ;;  %v3548_v38 = vpop.f32.mrb[181].mxu0  ;;  %v2142_v39 = vadd.f32 %v6179_v12, %v2141_v36  ;;  %v3911_v40 = vpop.f32.mrb[181].mxu1 }
 0x26f   :  { %v2380_v41 = vmax.f32 %v1537_v37, 0.0  ;;  %v2501_v1 = vmax.f32 %v2142_v39, 0.0 }
 0x270   :  { %v1541_v42 = vpop.f32.mrb[182].mxu0  ;;  %v2146_v43 = vpop.f32.mrb[182].mxu1 }
 0x271   :  { %2622 = vst.msk [vmem:[%s6767_s3 + $0x2d0] sm:$0xff] %vm2531_vm5, %v2380_v41  ;;  %2743 = vst.msk [vmem:[%s6767_s3 + $0x698] sm:$0xff] %vm2531_vm5, %v2501_v1  ;;  %v1542_v44 = vadd.f32 %v6179_v12, %v1541_v42  ;;  %v3551_v45 = vpop.f32.mrb[183].mxu0  ;;  %v2147_v46 = vadd.f32 %v6179_v12, %v2146_v43  ;;  %v3914_v47 = vpop.f32.mrb[183].mxu1 }
 0x273   :  { %v2381_v48 = vmax.f32 %v1542_v44, 0.0  ;;  %v2502_v49 = vmax.f32 %v2147_v46, 0.0 }
 0x274   :  { %v1546_v50 = vpop.f32.mrb[184].mxu0  ;;  %v2151_v52 = vpop.f32.mrb[184].mxu1 }
 0x275   :  { %2623 = vst.msk [vmem:[%s6767_s3 + $0x2d8] sm:$0xff] %vm2531_vm5, %v2381_v48  ;;  %2744 = vst.msk [vmem:[%s6767_s3 + $0x6a0] sm:$0xff] %vm2531_vm5, %v2502_v49  ;;  %v1547_v53 = vadd.f32 %v6179_v12, %v1546_v50  ;;  %v3554_v54 = vpop.f32.mrb[185].mxu0  ;;  %v2152_v55 = vadd.f32 %v6179_v12, %v2151_v52  ;;  %v3917_v56 = vpop.f32.mrb[185].mxu1 }
 0x277   :  { %v2382_v57 = vmax.f32 %v1547_v53, 0.0  ;;  %v2503_v58 = vmax.f32 %v2152_v55, 0.0 }
 0x278   :  { %v1551_v59 = vpop.f32.mrb[186].mxu0  ;;  %v2156_v60 = vpop.f32.mrb[186].mxu1 }
 0x279   :  { %2624 = vst.msk [vmem:[%s6767_s3 + $0x2e0] sm:$0xff] %vm2531_vm5, %v2382_v57  ;;  %2745 = vst.msk [vmem:[%s6767_s3 + $0x6a8] sm:$0xff] %vm2531_vm5, %v2503_v58  ;;  %v1552_v61 = vadd.f32 %v6179_v12, %v1551_v59  ;;  %v3557_v62 = vpop.f32.mrb[187].mxu0  ;;  %v2157_v63 = vadd.f32 %v6179_v12, %v2156_v60  ;;  %v3920_v51 = vpop.f32.mrb[187].mxu1 }
 0x27b   :  { %v2383_v0 = vmax.f32 %v1552_v61, 0.0  ;;  %v2504_v3 = vmax.f32 %v2157_v63, 0.0 }
 0x27c   :  { %v1556_v4 = vpop.f32.mrb[188].mxu0  ;;  %v2161_v5 = vpop.f32.mrb[188].mxu1 }
 0x27d   :  { %2625 = vst.msk [vmem:[%s6767_s3 + $0x2e8] sm:$0xff] %vm2531_vm5, %v2383_v0  ;;  %2746 = vst.msk [vmem:[%s6767_s3 + $0x6b0] sm:$0xff] %vm2531_vm5, %v2504_v3  ;;  %v1557_v6 = vadd.f32 %v6179_v12, %v1556_v4  ;;  %v3560_v7 = vpop.f32.mrb[189].mxu0  ;;  %v2162_v8 = vadd.f32 %v6179_v12, %v2161_v5  ;;  %v3923_v9 = vpop.f32.mrb[189].mxu1 }
 0x27f   :  { %v2384_v10 = vmax.f32 %v1557_v6, 0.0  ;;  %v2505_v2 = vmax.f32 %v2162_v8, 0.0 }
 0x280   :  { %v1561_v11 = vpop.f32.mrb[190].mxu0  ;;  %v2166_v13 = vpop.f32.mrb[190].mxu1 }
 0x281   :  { %2626 = vst.msk [vmem:[%s6767_s3 + $0x2f0] sm:$0xff] %vm2531_vm5, %v2384_v10  ;;  %2747 = vst.msk [vmem:[%s6767_s3 + $0x6b8] sm:$0xff] %vm2531_vm5, %v2505_v2  ;;  %v1562_v14 = vadd.f32 %v6179_v12, %v1561_v11  ;;  %v3563_v15 = vpop.f32.mrb[191].mxu0  ;;  %v2167_v16 = vadd.f32 %v6179_v12, %v2166_v13  ;;  %v3926_v17 = vpop.f32.mrb[191].mxu1 }
 0x283   :  { %v2385_v18 = vmax.f32 %v1562_v14, 0.0  ;;  %v2506_v19 = vmax.f32 %v2167_v16, 0.0 }
 0x284   :  { %v1566_v20 = vpop.f32.mrb[192].mxu0  ;;  %v2171_v21 = vpop.f32.mrb[192].mxu1 }
 0x285   :  { %2627 = vst.msk [vmem:[%s6767_s3 + $0x2f8] sm:$0xff] %vm2531_vm5, %v2385_v18  ;;  %2748 = vst.msk [vmem:[%s6767_s3 + $0x6c0] sm:$0xff] %vm2531_vm5, %v2506_v19  ;;  %v1567_v22 = vadd.f32 %v6179_v12, %v1566_v20  ;;  %v3566_v23 = vpop.f32.mrb[193].mxu0  ;;  %v2172_v24 = vadd.f32 %v6179_v12, %v2171_v21  ;;  %v3929_v25 = vpop.f32.mrb[193].mxu1 }
 0x287   :  { %v2386_v26 = vmax.f32 %v1567_v22, 0.0  ;;  %v2507_v27 = vmax.f32 %v2172_v24, 0.0 }
 0x288   :  { %v1571_v28 = vpop.f32.mrb[194].mxu0  ;;  %v2176_v29 = vpop.f32.mrb[194].mxu1 }
 0x289   :  { %2628 = vst.msk [vmem:[%s6767_s3 + $0x300] sm:$0xff] %vm2531_vm5, %v2386_v26  ;;  %2749 = vst.msk [vmem:[%s6767_s3 + $0x6c8] sm:$0xff] %vm2531_vm5, %v2507_v27  ;;  %v1572_v30 = vadd.f32 %v6179_v12, %v1571_v28  ;;  %v3569_v31 = vpop.f32.mrb[195].mxu0  ;;  %v2177_v32 = vadd.f32 %v6179_v12, %v2176_v29  ;;  %v3932_v33 = vpop.f32.mrb[195].mxu1 }
 0x28b   :  { %v2387_v34 = vmax.f32 %v1572_v30, 0.0  ;;  %v2508_v35 = vmax.f32 %v2177_v32, 0.0 }
 0x28c   :  { %v1576_v36 = vpop.f32.mrb[196].mxu0  ;;  %v2181_v37 = vpop.f32.mrb[196].mxu1 }
 0x28d   :  { %2629 = vst.msk [vmem:[%s6767_s3 + $0x308] sm:$0xff] %vm2531_vm5, %v2387_v34  ;;  %2750 = vst.msk [vmem:[%s6767_s3 + $0x6d0] sm:$0xff] %vm2531_vm5, %v2508_v35  ;;  %v1577_v38 = vadd.f32 %v6179_v12, %v1576_v36  ;;  %v3572_v39 = vpop.f32.mrb[197].mxu0  ;;  %v2182_v40 = vadd.f32 %v6179_v12, %v2181_v37  ;;  %v3935_v41 = vpop.f32.mrb[197].mxu1 }
 0x28f   :  { %v2388_v1 = vmax.f32 %v1577_v38, 0.0  ;;  %v2509_v42 = vmax.f32 %v2182_v40, 0.0 }
 0x290   :  { %v1581_v43 = vpop.f32.mrb[198].mxu0  ;;  %v2186_v44 = vpop.f32.mrb[198].mxu1 }
 0x291   :  { %2630 = vst.msk [vmem:[%s6767_s3 + $0x310] sm:$0xff] %vm2531_vm5, %v2388_v1  ;;  %2751 = vst.msk [vmem:[%s6767_s3 + $0x6d8] sm:$0xff] %vm2531_vm5, %v2509_v42  ;;  %v1582_v45 = vadd.f32 %v6179_v12, %v1581_v43  ;;  %v3575_v46 = vpop.f32.mrb[199].mxu0  ;;  %v2187_v47 = vadd.f32 %v6179_v12, %v2186_v44  ;;  %v3938_v48 = vpop.f32.mrb[199].mxu1 }
 0x293   :  { %v2389_v49 = vmax.f32 %v1582_v45, 0.0  ;;  %v2510_v50 = vmax.f32 %v2187_v47, 0.0 }
 0x294   :  { %v1586_v52 = vpop.f32.mrb[200].mxu0  ;;  %v2191_v53 = vpop.f32.mrb[200].mxu1 }
 0x295   :  { %2631 = vst.msk [vmem:[%s6767_s3 + $0x318] sm:$0xff] %vm2531_vm5, %v2389_v49  ;;  %2752 = vst.msk [vmem:[%s6767_s3 + $0x6e0] sm:$0xff] %vm2531_vm5, %v2510_v50  ;;  %v1587_v54 = vadd.f32 %v6179_v12, %v1586_v52  ;;  %v3578_v55 = vpop.f32.mrb[201].mxu0  ;;  %v2192_v56 = vadd.f32 %v6179_v12, %v2191_v53  ;;  %v3941_v57 = vpop.f32.mrb[201].mxu1 }
 0x297   :  { %v2390_v58 = vmax.f32 %v1587_v54, 0.0  ;;  %v2511_v59 = vmax.f32 %v2192_v56, 0.0 }
 0x298   :  { %v1591_v60 = vpop.f32.mrb[202].mxu0  ;;  %v2196_v61 = vpop.f32.mrb[202].mxu1 }
 0x299   :  { %2632 = vst.msk [vmem:[%s6767_s3 + $0x320] sm:$0xff] %vm2531_vm5, %v2390_v58  ;;  %2753 = vst.msk [vmem:[%s6767_s3 + $0x6e8] sm:$0xff] %vm2531_vm5, %v2511_v59  ;;  %v1592_v62 = vadd.f32 %v6179_v12, %v1591_v60  ;;  %v3581_v63 = vpop.f32.mrb[203].mxu0  ;;  %v2197_v51 = vadd.f32 %v6179_v12, %v2196_v61  ;;  %v3944_v0 = vpop.f32.mrb[203].mxu1 }
 0x29b   :  { %v2391_v3 = vmax.f32 %v1592_v62, 0.0  ;;  %v2512_v4 = vmax.f32 %v2197_v51, 0.0 }
 0x29c   :  { %v1596_v5 = vpop.f32.mrb[204].mxu0  ;;  %v2201_v6 = vpop.f32.mrb[204].mxu1 }
 0x29d   :  { %2633 = vst.msk [vmem:[%s6767_s3 + $0x328] sm:$0xff] %vm2531_vm5, %v2391_v3  ;;  %2754 = vst.msk [vmem:[%s6767_s3 + $0x6f0] sm:$0xff] %vm2531_vm5, %v2512_v4  ;;  %v1597_v7 = vadd.f32 %v6179_v12, %v1596_v5  ;;  %v3584_v8 = vpop.f32.mrb[205].mxu0  ;;  %v2202_v9 = vadd.f32 %v6179_v12, %v2201_v6  ;;  %v3947_v10 = vpop.f32.mrb[205].mxu1 }
 0x29f   :  { %v2392_v2 = vmax.f32 %v1597_v7, 0.0  ;;  %v2513_v11 = vmax.f32 %v2202_v9, 0.0 }
 0x2a0   :  { %v1601_v13 = vpop.f32.mrb[206].mxu0  ;;  %v2206_v14 = vpop.f32.mrb[206].mxu1 }
 0x2a1   :  { %2634 = vst.msk [vmem:[%s6767_s3 + $0x330] sm:$0xff] %vm2531_vm5, %v2392_v2  ;;  %2755 = vst.msk [vmem:[%s6767_s3 + $0x6f8] sm:$0xff] %vm2531_vm5, %v2513_v11  ;;  %v1602_v15 = vadd.f32 %v6179_v12, %v1601_v13  ;;  %v3587_v16 = vpop.f32.mrb[207].mxu0  ;;  %v2207_v17 = vadd.f32 %v6179_v12, %v2206_v14  ;;  %v3950_v18 = vpop.f32.mrb[207].mxu1 }
 0x2a3   :  { %v2393_v19 = vmax.f32 %v1602_v15, 0.0  ;;  %v2514_v20 = vmax.f32 %v2207_v17, 0.0 }
 0x2a4   :  { %v1606_v21 = vpop.f32.mrb[208].mxu0  ;;  %v2211_v22 = vpop.f32.mrb[208].mxu1 }
 0x2a5   :  { %2635 = vst.msk [vmem:[%s6767_s3 + $0x338] sm:$0xff] %vm2531_vm5, %v2393_v19  ;;  %2756 = vst.msk [vmem:[%s6767_s3 + $0x700] sm:$0xff] %vm2531_vm5, %v2514_v20  ;;  %v1607_v23 = vadd.f32 %v6179_v12, %v1606_v21  ;;  %v3590_v24 = vpop.f32.mrb[209].mxu0  ;;  %v2212_v25 = vadd.f32 %v6179_v12, %v2211_v22  ;;  %v3953_v26 = vpop.f32.mrb[209].mxu1 }
 0x2a7   :  { %v2394_v27 = vmax.f32 %v1607_v23, 0.0  ;;  %v2515_v28 = vmax.f32 %v2212_v25, 0.0 }
 0x2a8   :  { %v1611_v29 = vpop.f32.mrb[210].mxu0  ;;  %v2216_v30 = vpop.f32.mrb[210].mxu1 }
 0x2a9   :  { %2636 = vst.msk [vmem:[%s6767_s3 + $0x340] sm:$0xff] %vm2531_vm5, %v2394_v27  ;;  %2757 = vst.msk [vmem:[%s6767_s3 + $0x708] sm:$0xff] %vm2531_vm5, %v2515_v28  ;;  %v1612_v31 = vadd.f32 %v6179_v12, %v1611_v29  ;;  %v3593_v32 = vpop.f32.mrb[211].mxu0  ;;  %v2217_v33 = vadd.f32 %v6179_v12, %v2216_v30  ;;  %v3956_v34 = vpop.f32.mrb[211].mxu1 }
 0x2ab   :  { %v2395_v35 = vmax.f32 %v1612_v31, 0.0  ;;  %v2516_v36 = vmax.f32 %v2217_v33, 0.0 }
 0x2ac   :  { %v1616_v37 = vpop.f32.mrb[212].mxu0  ;;  %v2221_v38 = vpop.f32.mrb[212].mxu1 }
 0x2ad   :  { %2637 = vst.msk [vmem:[%s6767_s3 + $0x348] sm:$0xff] %vm2531_vm5, %v2395_v35  ;;  %2758 = vst.msk [vmem:[%s6767_s3 + $0x710] sm:$0xff] %vm2531_vm5, %v2516_v36  ;;  %v1617_v39 = vadd.f32 %v6179_v12, %v1616_v37  ;;  %v3596_v40 = vpop.f32.mrb[213].mxu0  ;;  %v2222_v41 = vadd.f32 %v6179_v12, %v2221_v38  ;;  %v3959_v1 = vpop.f32.mrb[213].mxu1 }
 0x2ae   :  { %v4020_v40 = vld [vmem:[#allocation4] ss:$0 sm:$0xff] }
 0x2af   :  { %v2396_v42 = vmax.f32 %v1617_v39, 0.0  ;;  %v2517_v43 = vmax.f32 %v2222_v41, 0.0 }
 0x2b0   :  { %v1621_v44 = vpop.f32.mrb[214].mxu0  ;;  %v2226_v45 = vpop.f32.mrb[214].mxu1 }
 0x2b1   :  { %2638 = vst.msk [vmem:[%s6767_s3 + $0x350] sm:$0xff] %vm2531_vm5, %v2396_v42  ;;  %2759 = vst.msk [vmem:[%s6767_s3 + $0x718] sm:$0xff] %vm2531_vm5, %v2517_v43  ;;  %v1622_v46 = vadd.f32 %v6179_v12, %v1621_v44  ;;  %v3599_v47 = vpop.f32.mrb[215].mxu0  ;;  %v2227_v48 = vadd.f32 %v6179_v12, %v2226_v45  ;;  %v3962_v49 = vpop.f32.mrb[215].mxu1 }
 0x2b3   :  { %v2397_v50 = vmax.f32 %v1622_v46, 0.0  ;;  %v2518_v52 = vmax.f32 %v2227_v48, 0.0 }
 0x2b4   :  { %v1626_v53 = vpop.f32.mrb[216].mxu0  ;;  %v2231_v54 = vpop.f32.mrb[216].mxu1 }
 0x2b5   :  { %2639 = vst.msk [vmem:[%s6767_s3 + $0x358] sm:$0xff] %vm2531_vm5, %v2397_v50  ;;  %2760 = vst.msk [vmem:[%s6767_s3 + $0x720] sm:$0xff] %vm2531_vm5, %v2518_v52  ;;  %v1627_v55 = vadd.f32 %v6179_v12, %v1626_v53  ;;  %v3602_v56 = vpop.f32.mrb[217].mxu0  ;;  %v2232_v57 = vadd.f32 %v6179_v12, %v2231_v54  ;;  %v3965_v58 = vpop.f32.mrb[217].mxu1 }
 0x2b7   :  { %v2398_v59 = vmax.f32 %v1627_v55, 0.0  ;;  %v2519_v60 = vmax.f32 %v2232_v57, 0.0 }
 0x2b8   :  { %v1631_v61 = vpop.f32.mrb[218].mxu0  ;;  %v2236_v62 = vpop.f32.mrb[218].mxu1 }
 0x2b9   :  { %2640 = vst.msk [vmem:[%s6767_s3 + $0x360] sm:$0xff] %vm2531_vm5, %v2398_v59  ;;  %2761 = vst.msk [vmem:[%s6767_s3 + $0x728] sm:$0xff] %vm2531_vm5, %v2519_v60  ;;  %v1632_v63 = vadd.f32 %v6179_v12, %v1631_v61  ;;  %v3605_v51 = vpop.f32.mrb[219].mxu0  ;;  %v2237_v0 = vadd.f32 %v6179_v12, %v2236_v62  ;;  %v3968_v3 = vpop.f32.mrb[219].mxu1 }
 0x2bb   :  { %v2399_v4 = vmax.f32 %v1632_v63, 0.0  ;;  %v2520_v5 = vmax.f32 %v2237_v0, 0.0 }
 0x2bc   :  { %v1636_v6 = vpop.f32.mrb[220].mxu0  ;;  %v2241_v7 = vpop.f32.mrb[220].mxu1 }
 0x2bd   :  { %2641 = vst.msk [vmem:[%s6767_s3 + $0x368] sm:$0xff] %vm2531_vm5, %v2399_v4  ;;  %2762 = vst.msk [vmem:[%s6767_s3 + $0x730] sm:$0xff] %vm2531_vm5, %v2520_v5  ;;  %v1637_v8 = vadd.f32 %v6179_v12, %v1636_v6  ;;  %v3608_v9 = vpop.f32.mrb[221].mxu0  ;;  %v2242_v10 = vadd.f32 %v6179_v12, %v2241_v7  ;;  %v3971_v2 = vpop.f32.mrb[221].mxu1 }
 0x2bf   :  { %v2400_v11 = vmax.f32 %v1637_v8, 0.0  ;;  %v2521_v13 = vmax.f32 %v2242_v10, 0.0 }
 0x2c0   :  { %v1641_v14 = vpop.f32.mrb[222].mxu0  ;;  %v2246_v15 = vpop.f32.mrb[222].mxu1 }
 0x2c1   :  { %2642 = vst.msk [vmem:[%s6767_s3 + $0x370] sm:$0xff] %vm2531_vm5, %v2400_v11  ;;  %2763 = vst.msk [vmem:[%s6767_s3 + $0x738] sm:$0xff] %vm2531_vm5, %v2521_v13  ;;  %v1642_v16 = vadd.f32 %v6179_v12, %v1641_v14  ;;  %v3611_v17 = vpop.f32.mrb[223].mxu0  ;;  %v2247_v18 = vadd.f32 %v6179_v12, %v2246_v15  ;;  %v3974_v19 = vpop.f32.mrb[223].mxu1 }
 0x2c3   :  { %v2401_v20 = vmax.f32 %v1642_v16, 0.0  ;;  %v2522_v21 = vmax.f32 %v2247_v18, 0.0 }
 0x2c4   :  { %v1646_v22 = vpop.f32.mrb[224].mxu0  ;;  %v2251_v23 = vpop.f32.mrb[224].mxu1 }
 0x2c5   :  { %2643 = vst.msk [vmem:[%s6767_s3 + $0x378] sm:$0xff] %vm2531_vm5, %v2401_v20  ;;  %2764 = vst.msk [vmem:[%s6767_s3 + $0x740] sm:$0xff] %vm2531_vm5, %v2522_v21  ;;  %v1647_v24 = vadd.f32 %v6179_v12, %v1646_v22  ;;  %v3614_v25 = vpop.f32.mrb[225].mxu0  ;;  %v2252_v26 = vadd.f32 %v6179_v12, %v2251_v23  ;;  %v3977_v27 = vpop.f32.mrb[225].mxu1 }
 0x2c7   :  { %v2402_v28 = vmax.f32 %v1647_v24, 0.0  ;;  %v2523_v29 = vmax.f32 %v2252_v26, 0.0 }
 0x2c8   :  { %v1651_v30 = vpop.f32.mrb[226].mxu0  ;;  %v2256_v31 = vpop.f32.mrb[226].mxu1 }
 0x2c9   :  { %2644 = vst.msk [vmem:[%s6767_s3 + $0x380] sm:$0xff] %vm2531_vm5, %v2402_v28  ;;  %2765 = vst.msk [vmem:[%s6767_s3 + $0x748] sm:$0xff] %vm2531_vm5, %v2523_v29  ;;  %v1652_v32 = vadd.f32 %v6179_v12, %v1651_v30  ;;  %v3617_v33 = vpop.f32.mrb[227].mxu0  ;;  %v2257_v34 = vadd.f32 %v6179_v12, %v2256_v31  ;;  %v3980_v35 = vpop.f32.mrb[227].mxu1 }
 0x2cb   :  { %v2403_v36 = vmax.f32 %v1652_v32, 0.0  ;;  %v2524_v37 = vmax.f32 %v2257_v34, 0.0 }
 0x2cc   :  { %v1656_v38 = vpop.f32.mrb[228].mxu0  ;;  %v2261_v39 = vpop.f32.mrb[228].mxu1 }
 0x2cd   :  { %2645 = vst.msk [vmem:[%s6767_s3 + $0x388] sm:$0xff] %vm2531_vm5, %v2403_v36  ;;  %2766 = vst.msk [vmem:[%s6767_s3 + $0x750] sm:$0xff] %vm2531_vm5, %v2524_v37  ;;  %v1657_v41 = vadd.f32 %v4020_v40, %v1656_v38  ;;  %v3620_v1 = vpop.f32.mrb[229].mxu0  ;;  %v2262_v42 = vadd.f32 %v4020_v40, %v2261_v39  ;;  %v3983_v12 = vpop.f32.mrb[229].mxu1 }
 0x2cf   :  { %v2404_v43 = vmax.f32 %v1657_v41, 0.0  ;;  %v2525_v44 = vmax.f32 %v2262_v42, 0.0 }
 0x2d0   :  { %v1661_v45 = vpop.f32.mrb[230].mxu0  ;;  %v2266_v46 = vpop.f32.mrb[230].mxu1 }
 0x2d1   :  { %2646 = vst.msk [vmem:[%s6767_s3 + $0x390] sm:$0xff] %vm2531_vm5, %v2404_v43  ;;  %2767 = vst.msk [vmem:[%s6767_s3 + $0x758] sm:$0xff] %vm2531_vm5, %v2525_v44  ;;  %v1662_v47 = vadd.f32 %v4020_v40, %v1661_v45  ;;  %v3623_v48 = vpop.f32.mrb[231].mxu0  ;;  %v2267_v49 = vadd.f32 %v4020_v40, %v2266_v46  ;;  %v3986_v50 = vpop.f32.mrb[231].mxu1 }
 0x2d3   :  { %v2405_v52 = vmax.f32 %v1662_v47, 0.0  ;;  %v2526_v53 = vmax.f32 %v2267_v49, 0.0 }
 0x2d4   :  { %v1666_v54 = vpop.f32.mrb[232].mxu0  ;;  %v2271_v55 = vpop.f32.mrb[232].mxu1 }
 0x2d5   :  { %2647 = vst.msk [vmem:[%s6767_s3 + $0x398] sm:$0xff] %vm2531_vm5, %v2405_v52  ;;  %2768 = vst.msk [vmem:[%s6767_s3 + $0x760] sm:$0xff] %vm2531_vm5, %v2526_v53  ;;  %v1667_v56 = vadd.f32 %v4020_v40, %v1666_v54  ;;  %v3626_v57 = vpop.f32.mrb[233].mxu0  ;;  %v2272_v58 = vadd.f32 %v4020_v40, %v2271_v55  ;;  %v3989_v59 = vpop.f32.mrb[233].mxu1 }
 0x2d7   :  { %v2406_v60 = vmax.f32 %v1667_v56, 0.0  ;;  %v2527_v61 = vmax.f32 %v2272_v58, 0.0 }
 0x2d8   :  { %v1671_v62 = vpop.f32.mrb[234].mxu0  ;;  %v2276_v63 = vpop.f32.mrb[234].mxu1 }
 0x2d9   :  { %2648 = vst.msk [vmem:[%s6767_s3 + $0x3a0] sm:$0xff] %vm2531_vm5, %v2406_v60  ;;  %2769 = vst.msk [vmem:[%s6767_s3 + $0x768] sm:$0xff] %vm2531_vm5, %v2527_v61  ;;  %v1672_v51 = vadd.f32 %v4020_v40, %v1671_v62  ;;  %v3629_v0 = vpop.f32.mrb[235].mxu0  ;;  %v2277_v3 = vadd.f32 %v4020_v40, %v2276_v63  ;;  %v3992_v4 = vpop.f32.mrb[235].mxu1 }
 0x2db   :  { %v2407_v5 = vmax.f32 %v1672_v51, 0.0  ;;  %v2528_v6 = vmax.f32 %v2277_v3, 0.0 }
 0x2dc   :  { %v1676_v7 = vpop.f32.mrb[236].mxu0  ;;  %v2281_v8 = vpop.f32.mrb[236].mxu1 }
 0x2dd   :  { %2649 = vst.msk [vmem:[%s6767_s3 + $0x3a8] sm:$0xff] %vm2531_vm5, %v2407_v5  ;;  %2770 = vst.msk [vmem:[%s6767_s3 + $0x770] sm:$0xff] %vm2531_vm5, %v2528_v6  ;;  %v1677_v9 = vadd.f32 %v4020_v40, %v1676_v7  ;;  %v3632_v10 = vpop.f32.mrb[237].mxu0  ;;  %v2282_v2 = vadd.f32 %v4020_v40, %v2281_v8  ;;  %v3995_v11 = vpop.f32.mrb[237].mxu1 }
 0x2df   :  { %v2408_v13 = vmax.f32 %v1677_v9, 0.0  ;;  %v2529_v14 = vmax.f32 %v2282_v2, 0.0 }
 0x2e0   :  { %v1681_v15 = vpop.f32.mrb[238].mxu0  ;;  %v2286_v16 = vpop.f32.mrb[238].mxu1 }
 0x2e1   :  { %2650 = vst.msk [vmem:[%s6767_s3 + $0x3b0] sm:$0xff] %vm2531_vm5, %v2408_v13  ;;  %2771 = vst.msk [vmem:[%s6767_s3 + $0x778] sm:$0xff] %vm2531_vm5, %v2529_v14  ;;  %v1682_v17 = vadd.f32 %v4020_v40, %v1681_v15  ;;  %v3635_v18 = vpop.f32.mrb[239].mxu0  ;;  %v2287_v19 = vadd.f32 %v4020_v40, %v2286_v16  ;;  %v3998_v20 = vpop.f32.mrb[239].mxu1 }
 0x2e3   :  { %v2409_v21 = vmax.f32 %v1682_v17, 0.0  ;;  %v2530_v22 = vmax.f32 %v2287_v19, 0.0 }
 0x2e4   :  { %v1686_v23 = vpop.f32.mrb[240].mxu0 }
 0x2e5   :  { %2651 = vst.msk [vmem:[%s6767_s3 + $0x3b8] sm:$0xff] %vm2531_vm5, %v2409_v21  ;;  %v1687_v24 = vadd.f32 %v4020_v40, %v1686_v23  ;;  %v3638_v25 = vpop.f32.mrb[241].mxu0 }
 0x2e6   :  { %2773 = vst.msk [vmem:[%s6767_s3 + $0x780] sm:$0x3] %vm2772_vm6, %v2530_v22 }
 0x2e7   :  { %v2410_v26 = vmax.f32 %v1687_v24, 0.0 }
 0x2e9   :  { %2652 = vst.msk [vmem:[%s6767_s3 + $0x3c0] sm:$0xff] %vm2531_vm5, %v2410_v26 }
 0x2ea   :  { %2778 = vsyncpa [#allocation3], 1 }
 0x2eb   :  { %2779 = vsyncpa [#allocation5], 1 }

// kernel: deeponet_forward.6
= control target key start
LH: loop header
LB: loop body
LE: loop exit
PB: predicated region body
PF: predicated region fallthrough
CT: control target
= control target key end

     0   :  { %v4471_v0 = vmov 0.0|0.0   ;;  %vm4472_vm0 = vmmov 0   ;;  %vm858_vm1 = vcmask 523264   ;;  %s7608_s1 = inlined_call_operand.vmem [shape: f32[1600,128], index: 1, kind: input, shape index: {}]   ;;  %s7609_s0 = inlined_call_operand.vmem [shape: f32[392,1600], index: 0, kind: input, shape index: {}]   ;;  %s7610_s2 = inlined_call_operand.vmem [shape: f32[1,128], index: 2, kind: input, shape index: {}]   ;;  %s7611_s3 = inlined_call_operand.vmem [shape: f32[392,128], index: 3, kind: output, shape index: {}]  }
   0x1   :  { %3548 = vmatprep.subr.bf16.mxu1 %v4471_v0  ;;  %3692 = vmatprep.subr.bf16.mxu0 %v4471_v0  ;;  %v651_v1 = vld [vmem:[%s7608_s1] sm:$0xff]  ;;  %v652_v2 = vld [vmem:[%s7608_s1 + $0x8] sm:$0xff]  ;;  %v653_v6 = vld [vmem:[%s7608_s1 + $0x10] sm:$0xff] }
   0x2   :  { %v747_v3 = vld [vmem:[%s7608_s1 + $0x300] sm:$0xff]  ;;  %v3549_v4 = vpack.c.bf16 %v652_v2, %v651_v1  ;;  %v748_v5 = vld [vmem:[%s7608_s1 + $0x308] sm:$0xff]  ;;  %v654_v7 = vld [vmem:[%s7608_s1 + $0x18] sm:$0xff] }
   0x3   :  { %v4514_v8 = vpack.c.bf16 %v748_v5, %v747_v3  ;;  %v749_v9 = vld [vmem:[%s7608_s1 + $0x310] sm:$0xff]  ;;  %v750_v10 = vld [vmem:[%s7608_s1 + $0x318] sm:$0xff]  ;;  %v3552_v11 = vpack.c.bf16 %v654_v7, %v653_v6  ;;  %v655_v13 = vld [vmem:[%s7608_s1 + $0x20] sm:$0xff] }
   0x4   :  { %3550 = vmatpush1.bf16.msra.mxu1 %v3549_v4  ;;  %v4524_v12 = vpack.c.bf16 %v750_v10, %v749_v9  ;;  %v656_v14 = vld [vmem:[%s7608_s1 + $0x28] sm:$0xff]  ;;  %v751_v15 = vld [vmem:[%s7608_s1 + $0x320] sm:$0xff]  ;;  %v657_v19 = vld [vmem:[%s7608_s1 + $0x30] sm:$0xff] }
   0x5   :  { %3694 = vmatpush1.bf16.msra.mxu0 %v4514_v8  ;;  %3551 = vmatprep.subr.bf16.mxu1 %v4471_v0  ;;  %v752_v16 = vld [vmem:[%s7608_s1 + $0x328] sm:$0xff]  ;;  %v3555_v17 = vpack.c.bf16 %v656_v14, %v655_v13  ;;  %v658_v20 = vld [vmem:[%s7608_s1 + $0x38] sm:$0xff]  ;;  %v753_v21 = vld [vmem:[%s7608_s1 + $0x330] sm:$0xff] }
   0x6   :  { %3695 = vmatprep.subr.bf16.mxu0 %v4471_v0  ;;  %v4541_v18 = vpack.c.bf16 %v752_v16, %v751_v15  ;;  %v754_v22 = vld [vmem:[%s7608_s1 + $0x338] sm:$0xff]  ;;  %v3558_v23 = vpack.c.bf16 %v658_v20, %v657_v19  ;;  %v659_v25 = vld [vmem:[%s7608_s1 + $0x40] sm:$0xff]  ;;  %v660_v26 = vld [vmem:[%s7608_s1 + $0x48] sm:$0xff] }
   0x7   :  { %v4558_v24 = vpack.c.bf16 %v754_v22, %v753_v21  ;;  %v755_v27 = vld [vmem:[%s7608_s1 + $0x340] sm:$0xff]  ;;  %v756_v28 = vld [vmem:[%s7608_s1 + $0x348] sm:$0xff]  ;;  %v3561_v29 = vpack.c.bf16 %v660_v26, %v659_v25  ;;  %v661_v31 = vld [vmem:[%s7608_s1 + $0x50] sm:$0xff] }
   0x8   :  { %3553 = vmatpush1.bf16.msra.mxu1 %v3552_v11  ;;  %v4575_v30 = vpack.c.bf16 %v756_v28, %v755_v27  ;;  %v662_v32 = vld [vmem:[%s7608_s1 + $0x58] sm:$0xff]  ;;  %v757_v33 = vld [vmem:[%s7608_s1 + $0x350] sm:$0xff]  ;;  %v663_v37 = vld [vmem:[%s7608_s1 + $0x60] sm:$0xff] }
   0x9   :  { %3697 = vmatpush1.bf16.msra.mxu0 %v4524_v12  ;;  %3554 = vmatprep.subr.bf16.mxu1 %v4471_v0  ;;  %v758_v34 = vld [vmem:[%s7608_s1 + $0x358] sm:$0xff]  ;;  %v3564_v35 = vpack.c.bf16 %v662_v32, %v661_v31  ;;  %v664_v38 = vld [vmem:[%s7608_s1 + $0x68] sm:$0xff]  ;;  %v759_v39 = vld [vmem:[%s7608_s1 + $0x360] sm:$0xff] }
   0xa   :  { %3698 = vmatprep.subr.bf16.mxu0 %v4471_v0  ;;  %v4592_v36 = vpack.c.bf16 %v758_v34, %v757_v33  ;;  %v760_v40 = vld [vmem:[%s7608_s1 + $0x368] sm:$0xff]  ;;  %v21_v42 = vld [vmem:[%s7609_s0 + $0x38] sm:$0xff]  ;;  %v3567_v43 = vpack.c.bf16 %v664_v38, %v663_v37  ;;  %v665_v45 = vld [vmem:[%s7608_s1 + $0x70] sm:$0xff] }
   0xb   :  { %v15_v41 = vld [vmem:[%s7609_s0 + $0x8] sm:$0xff]  ;;  %2000 = vmatprep.mubr.f32.mxu0 %v21_v42  ;;  %v4615_v44 = vpack.c.bf16 %v760_v40, %v759_v39  ;;  %v666_v46 = vld [vmem:[%s7608_s1 + $0x78] sm:$0xff]  ;;  %v761_v47 = vld [vmem:[%s7608_s1 + $0x370] sm:$0xff] }
   0xc   :  { %3556 = vmatpush1.bf16.msra.mxu1 %v3555_v17  ;;  %1070 = vmatprep.mubr.f32.mxu1 %v15_v41  ;;  %v762_v48 = vld [vmem:[%s7608_s1 + $0x378] sm:$0xff]  ;;  %v3570_v49 = vpack.c.bf16 %v666_v46, %v665_v45  ;;  %v667_v51 = vld [vmem:[%s7608_s1 + $0x80] sm:$0xff]  ;;  %v668_v52 = vld [vmem:[%s7608_s1 + $0x88] sm:$0xff] }
   0xd   :  { %3700 = vmatpush1.bf16.msra.mxu0 %v4541_v18  ;;  %3557 = vmatprep.subr.bf16.mxu1 %v4471_v0  ;;  %v4632_v50 = vpack.c.bf16 %v762_v48, %v761_v47  ;;  %v763_v53 = vld [vmem:[%s7608_s1 + $0x380] sm:$0xff]  ;;  %v764_v54 = vld [vmem:[%s7608_s1 + $0x388] sm:$0xff]  ;;  %v3573_v55 = vpack.c.bf16 %v668_v52, %v667_v51  ;;  %v669_v57 = vld [vmem:[%s7608_s1 + $0x90] sm:$0xff] }
   0xe   :  { %3701 = vmatprep.subr.bf16.mxu0 %v4471_v0  ;;  %v4649_v56 = vpack.c.bf16 %v764_v54, %v763_v53  ;;  %v670_v58 = vld [vmem:[%s7608_s1 + $0x98] sm:$0xff]  ;;  %v765_v59 = vld [vmem:[%s7608_s1 + $0x390] sm:$0xff]  ;;  %v671_v63 = vld [vmem:[%s7608_s1 + $0xa0] sm:$0xff] }
   0xf   :  { %v766_v60 = vld [vmem:[%s7608_s1 + $0x398] sm:$0xff]  ;;  %v3576_v61 = vpack.c.bf16 %v670_v58, %v669_v57  ;;  %v672_v1 = vld [vmem:[%s7608_s1 + $0xa8] sm:$0xff]  ;;  %v767_v2 = vld [vmem:[%s7608_s1 + $0x3a0] sm:$0xff] }
  0x10   :  { %3559 = vmatpush1.bf16.msra.mxu1 %v3558_v23  ;;  %v4666_v62 = vpack.c.bf16 %v766_v60, %v765_v59  ;;  %v768_v3 = vld [vmem:[%s7608_s1 + $0x3a8] sm:$0xff]  ;;  %v3579_v4 = vpack.c.bf16 %v672_v1, %v671_v63  ;;  %v673_v6 = vld [vmem:[%s7608_s1 + $0xb0] sm:$0xff]  ;;  %v674_v7 = vld [vmem:[%s7608_s1 + $0xb8] sm:$0xff] }
  0x11   :  { %3703 = vmatpush1.bf16.msra.mxu0 %v4558_v24  ;;  %3560 = vmatprep.subr.bf16.mxu1 %v4471_v0  ;;  %v4683_v5 = vpack.c.bf16 %v768_v3, %v767_v2  ;;  %v769_v9 = vld [vmem:[%s7608_s1 + $0x3b0] sm:$0xff]  ;;  %v770_v10 = vld [vmem:[%s7608_s1 + $0x3b8] sm:$0xff]  ;;  %v3582_v11 = vpack.c.bf16 %v674_v7, %v673_v6  ;;  %v675_v14 = vld [vmem:[%s7608_s1 + $0xc0] sm:$0xff] }
  0x12   :  { %3704 = vmatprep.subr.bf16.mxu0 %v4471_v0  ;;  %v4700_v13 = vpack.c.bf16 %v770_v10, %v769_v9  ;;  %v676_v15 = vld [vmem:[%s7608_s1 + $0xc8] sm:$0xff]  ;;  %v771_v16 = vld [vmem:[%s7608_s1 + $0x3c0] sm:$0xff]  ;;  %v677_v21 = vld [vmem:[%s7608_s1 + $0xd0] sm:$0xff] }
  0x13   :  { %v772_v17 = vld [vmem:[%s7608_s1 + $0x3c8] sm:$0xff]  ;;  %v3585_v19 = vpack.c.bf16 %v676_v15, %v675_v14  ;;  %v678_v22 = vld [vmem:[%s7608_s1 + $0xd8] sm:$0xff]  ;;  %v773_v23 = vld [vmem:[%s7608_s1 + $0x3d0] sm:$0xff] }
  0x14   :  { %3562 = vmatpush1.bf16.msra.mxu1 %v3561_v29  ;;  %v4717_v20 = vpack.c.bf16 %v772_v17, %v771_v16  ;;  %v774_v25 = vld [vmem:[%s7608_s1 + $0x3d8] sm:$0xff]  ;;  %v3588_v26 = vpack.c.bf16 %v678_v22, %v677_v21  ;;  %v679_v28 = vld [vmem:[%s7608_s1 + $0xe0] sm:$0xff]  ;;  %v680_v29 = vld [vmem:[%s7608_s1 + $0xe8] sm:$0xff] }
  0x15   :  { %3706 = vmatpush1.bf16.msra.mxu0 %v4575_v30  ;;  %3563 = vmatprep.subr.bf16.mxu1 %v4471_v0  ;;  %v4734_v27 = vpack.c.bf16 %v774_v25, %v773_v23  ;;  %v775_v31 = vld [vmem:[%s7608_s1 + $0x3e0] sm:$0xff]  ;;  %v776_v32 = vld [vmem:[%s7608_s1 + $0x3e8] sm:$0xff]  ;;  %v3591_v33 = vpack.c.bf16 %v680_v29, %v679_v28  ;;  %v682_v37 = vld [vmem:[%s7608_s1 + $0xf8] sm:$0xff] }
  0x16   :  { %3707 = vmatprep.subr.bf16.mxu0 %v4471_v0  ;;  %v4751_v34 = vpack.c.bf16 %v776_v32, %v775_v31  ;;  %v777_v38 = vld [vmem:[%s7608_s1 + $0x3f0] sm:$0xff]  ;;  %v778_v39 = vld [vmem:[%s7608_s1 + $0x3f8] sm:$0xff]  ;;  %v779_v42 = vld [vmem:[%s7608_s1 + $0x400] sm:$0xff] }
  0x17   :  { %v4768_v41 = vpack.c.bf16 %v778_v39, %v777_v38  ;;  %v683_v45 = vld [vmem:[%s7608_s1 + $0x100] sm:$0xff]  ;;  %v684_v46 = vld [vmem:[%s7608_s1 + $0x108] sm:$0xff]  ;;  %v20_v48 = vld [vmem:[%s7609_s0 + $0x30] sm:$0xff] }
  0x18   :  { %3565 = vmatpush1.bf16.msra.mxu1 %v3564_v35  ;;  %v681_v35 = vld [vmem:[%s7608_s1 + $0xf0] sm:$0xff]  ;;  %v14_v47 = vld [vmem:[%s7609_s0] sm:$0xff]  ;;  %v3597_v52 = vpack.c.bf16 %v684_v46, %v683_v45  ;;  %v782_v54 = vld [vmem:[%s7608_s1 + $0x418] sm:$0xff] }
  0x19   :  { %3709 = vmatpush1.bf16.msra.mxu0 %v4592_v36  ;;  %3566 = vmatprep.subr.bf16.mxu1 %v4471_v0  ;;  %v3594_v40 = vpack.c.bf16 %v682_v37, %v681_v35  ;;  %v28_v51 = vld [vmem:[%s7609_s0 + $0x70] sm:$0xff]  ;;  %v686_v58 = vld [vmem:[%s7608_s1 + $0x118] sm:$0xff]  ;;  %v27_v59 = vld [vmem:[%s7609_s0 + $0x68] sm:$0xff] }
  0x1a   :  { %3710 = vmatprep.subr.bf16.mxu0 %v4471_v0  ;;  %v781_v53 = vld [vmem:[%s7608_s1 + $0x410] sm:$0xff]  ;;  %v33_v60 = vld [vmem:[%s7609_s0 + $0x98] sm:$0xff]  ;;  %v47_v1 = vld [vmem:[%s7609_s0 + $0x108] sm:$0xff] }
  0x1b   :  { %v685_v57 = vld [vmem:[%s7608_s1 + $0x110] sm:$0xff]  ;;  %v3744_v63 = vpack.c.bf16 %v782_v54, %v781_v53  ;;  %v783_v2 = vld [vmem:[%s7608_s1 + $0x420] sm:$0xff]  ;;  %v784_v3 = vld [vmem:[%s7608_s1 + $0x428] sm:$0xff] }
  0x1c   :  { %3568 = vmatpush1.bf16.msra.mxu1 %v3567_v43  ;;  %v780_v43 = vld [vmem:[%s7608_s1 + $0x408] sm:$0xff]  ;;  %v687_v6 = vld [vmem:[%s7608_s1 + $0x120] sm:$0xff]  ;;  %v40_v9 = vld [vmem:[%s7609_s0 + $0xd0] sm:$0xff]  ;;  %v3747_v14 = vpack.c.bf16 %v784_v3, %v783_v2 }
  0x1d   :  { %3712 = vmatpush1.bf16.msra.mxu0 %v4615_v44  ;;  %3569 = vmatprep.subr.bf16.mxu1 %v4471_v0  ;;  %v688_v7 = vld [vmem:[%s7608_s1 + $0x128] sm:$0xff]  ;;  %v46_v10 = vld [vmem:[%s7609_s0 + $0x100] sm:$0xff]  ;;  %v60_v15 = vld [vmem:[%s7609_s0 + $0x170] sm:$0xff] }
  0x1e   :  { %3713 = vmatprep.subr.bf16.mxu0 %v4471_v0  ;;  %v785_v16 = vld [vmem:[%s7608_s1 + $0x430] sm:$0xff]  ;;  %v786_v17 = vld [vmem:[%s7608_s1 + $0x438] sm:$0xff]  ;;  %v59_v25 = vld [vmem:[%s7609_s0 + $0x168] sm:$0xff] }
  0x1f   :  { %v689_v21 = vld [vmem:[%s7608_s1 + $0x130] sm:$0xff]  ;;  %v690_v22 = vld [vmem:[%s7608_s1 + $0x138] sm:$0xff]  ;;  %v3750_v28 = vpack.c.bf16 %v786_v17, %v785_v16  ;;  %v787_v31 = vld [vmem:[%s7608_s1 + $0x440] sm:$0xff] }
  0x20   :  { %3571 = vmatpush1.bf16.msra.mxu1 %v3570_v49  ;;  %v3741_v49 = vpack.c.bf16 %v780_v43, %v779_v42  ;;  %v53_v23 = vld [vmem:[%s7609_s0 + $0x138] sm:$0xff]  ;;  %v788_v32 = vld [vmem:[%s7608_s1 + $0x448] sm:$0xff]  ;;  %v691_v35 = vld [vmem:[%s7608_s1 + $0x140] sm:$0xff] }
  0x21   :  { %3715 = vmatpush1.bf16.msra.mxu0 %v4632_v50  ;;  %3572 = vmatprep.subr.bf16.mxu1 %v4471_v0  ;;  %v73_v29 = vld [vmem:[%s7609_s0 + $0x1d8] sm:$0xff]  ;;  %v692_v37 = vld [vmem:[%s7608_s1 + $0x148] sm:$0xff]  ;;  %v66_v38 = vld [vmem:[%s7609_s0 + $0x1a0] sm:$0xff]  ;;  %v3753_v42 = vpack.c.bf16 %v788_v32, %v787_v31 }
  0x22   :  { %3716 = vmatprep.subr.bf16.mxu0 %v4471_v0  ;;  %v72_v39 = vld [vmem:[%s7609_s0 + $0x1d0] sm:$0xff]  ;;  %v86_v43 = vld [vmem:[%s7609_s0 + $0x240] sm:$0xff]  ;;  %v790_v46 = vld [vmem:[%s7608_s1 + $0x458] sm:$0xff] }
  0x23   :  { %v789_v45 = vld [vmem:[%s7608_s1 + $0x450] sm:$0xff]  ;;  %v93_v53 = vld [vmem:[%s7609_s0 + $0x278] sm:$0xff]  ;;  %v106_v2 = vld [vmem:[%s7609_s0 + $0x2e0] sm:$0xff] }
  0x24   :  { %3574 = vmatpush1.bf16.msra.mxu1 %v3573_v55  ;;  %v34_v55 = vld [vmem:[%s7609_s0 + $0xa0] sm:$0xff]  ;;  %v3756_v54 = vpack.c.bf16 %v790_v46, %v789_v45  ;;  %v119_v16 = vld [vmem:[%s7609_s0 + $0x348] sm:$0xff]  ;;  %v132_v31 = vld [vmem:[%s7609_s0 + $0x3b0] sm:$0xff] }
  0x25   :  { %3718 = vmatpush1.bf16.msra.mxu0 %v4649_v56  ;;  %3575 = vmatprep.subr.bf16.mxu1 %v4471_v0  ;;  %v145_v45 = vld [vmem:[%s7609_s0 + $0x418] sm:$0xff] }
  0x26   :  { %3719 = vmatprep.subr.bf16.mxu0 %v4471_v0 }
  0x28   :  { %3577 = vmatpush1.bf16.msra.mxu1 %v3576_v61  ;;  %v41_v61 = vld [vmem:[%s7609_s0 + $0xd8] sm:$0xff] }
  0x29   :  { %3721 = vmatpush1.bf16.msra.mxu0 %v4666_v62  ;;  %3578 = vmatprep.subr.bf16.mxu1 %v4471_v0 }
  0x2a   :  { %3722 = vmatprep.subr.bf16.mxu0 %v4471_v0 }
  0x2c   :  { %3580 = vmatpush1.bf16.msra.mxu1 %v3579_v4  ;;  %v3600_v4 = vpack.c.bf16 %v686_v58, %v685_v57  ;;  %v791_v57 = vld [vmem:[%s7608_s1 + $0x460] sm:$0xff]  ;;  %v792_v58 = vld [vmem:[%s7608_s1 + $0x468] sm:$0xff] }
  0x2d   :  { %3724 = vmatpush1.bf16.msra.mxu0 %v4683_v5  ;;  %3581 = vmatprep.subr.bf16.mxu1 %v4471_v0  ;;  %v3759_v3 = vpack.c.bf16 %v792_v58, %v791_v57  ;;  %v158_v57 = vld [vmem:[%s7609_s0 + $0x480] sm:$0xff] }
  0x2e   :  { %3725 = vmatprep.subr.bf16.mxu0 %v4471_v0 }
  0x30   :  { %3583 = vmatpush1.bf16.msra.mxu1 %v3582_v11  ;;  %v54_v11 = vld [vmem:[%s7609_s0 + $0x140] sm:$0xff] }
  0x31   :  { %3727 = vmatpush1.bf16.msra.mxu0 %v4700_v13  ;;  %3584 = vmatprep.subr.bf16.mxu1 %v4471_v0 }
  0x32   :  { %3728 = vmatprep.subr.bf16.mxu0 %v4471_v0 }
  0x34   :  { %3586 = vmatpush1.bf16.msra.mxu1 %v3585_v19  ;;  %v3603_v19 = vpack.c.bf16 %v688_v7, %v687_v6  ;;  %v793_v6 = vld [vmem:[%s7608_s1 + $0x470] sm:$0xff]  ;;  %v794_v7 = vld [vmem:[%s7608_s1 + $0x478] sm:$0xff] }
  0x35   :  { %3730 = vmatpush1.bf16.msra.mxu0 %v4717_v20  ;;  %3587 = vmatprep.subr.bf16.mxu1 %v4471_v0  ;;  %v3762_v17 = vpack.c.bf16 %v794_v7, %v793_v6  ;;  %v171_v6 = vld [vmem:[%s7609_s0 + $0x4e8] sm:$0xff] }
  0x36   :  { %3731 = vmatprep.subr.bf16.mxu0 %v4471_v0 }
  0x38   :  { %3589 = vmatpush1.bf16.msra.mxu1 %v3588_v26  ;;  %v67_v26 = vld [vmem:[%s7609_s0 + $0x1a8] sm:$0xff] }
  0x39   :  { %3733 = vmatpush1.bf16.msra.mxu0 %v4734_v27  ;;  %3590 = vmatprep.subr.bf16.mxu1 %v4471_v0 }
  0x3a   :  { %3734 = vmatprep.subr.bf16.mxu0 %v4471_v0 }
  0x3c   :  { %3592 = vmatpush1.bf16.msra.mxu1 %v3591_v33  ;;  %v3606_v33 = vpack.c.bf16 %v690_v22, %v689_v21  ;;  %v795_v21 = vld [vmem:[%s7608_s1 + $0x480] sm:$0xff]  ;;  %v796_v22 = vld [vmem:[%s7608_s1 + $0x488] sm:$0xff] }
  0x3d   :  { %3736 = vmatpush1.bf16.msra.mxu0 %v4751_v34  ;;  %3593 = vmatprep.subr.bf16.mxu1 %v4471_v0  ;;  %v3765_v32 = vpack.c.bf16 %v796_v22, %v795_v21  ;;  %v184_v21 = vld [vmem:[%s7609_s0 + $0x550] sm:$0xff] }
  0x3e   :  { %3737 = vmatprep.subr.bf16.mxu0 %v4471_v0 }
  0x40   :  { %3595 = vmatpush1.bf16.msra.mxu1 %v3594_v40  ;;  %v80_v40 = vld [vmem:[%s7609_s0 + $0x210] sm:$0xff] }
  0x41   :  { %3739 = vmatpush1.bf16.msra.mxu0 %v4768_v41  ;;  %3596 = vmatprep.subr.bf16.mxu1 %v4471_v0 }
  0x42   :  { %3740 = vmatprep.subr.bf16.mxu0 %v4471_v0 }
  0x43   :  { %1071 = vmatmul.mubr.f32.vlgmr.msra.gmra.mrb[0].mxu1 %v14_v47  ;;  %v3609_v47 = vpack.c.bf16 %v692_v37, %v691_v35  ;;  %v797_v35 = vld [vmem:[%s7608_s1 + $0x490] sm:$0xff]  ;;  %v798_v37 = vld [vmem:[%s7608_s1 + $0x498] sm:$0xff] }
  0x44   :  { %2001 = vmatmul.mubr.f32.vlgmr.msra.gmra.mrb[0].mxu0 %v20_v48  ;;  %1075 = vmatprep.mubr.f32.mxu1 %v28_v51  ;;  %v693_v48 = vld [vmem:[%s7608_s1 + $0x150] sm:$0xff]  ;;  %v79_v51 = vld [vmem:[%s7609_s0 + $0x208] sm:$0xff]  ;;  %v3768_v46 = vpack.c.bf16 %v798_v37, %v797_v35  ;;  %v197_v35 = vld [vmem:[%s7609_s0 + $0x5b8] sm:$0xff] }
  0x45   :  { %3742 = vmatpush1.bf16.msra.mxu0 %v3741_v49  ;;  %3598 = vmatpush1.bf16.msra.mxu1 %v3597_v52  ;;  %v694_v49 = vld [vmem:[%s7608_s1 + $0x158] sm:$0xff] }
  0x46   :  { %2005 = vmatprep.mubr.f32.mxu0 %v34_v55  ;;  %3743 = vmatprep.subr.bf16.mxu0 %v4471_v0  ;;  %v85_v52 = vld [vmem:[%s7609_s0 + $0x238] sm:$0xff]  ;;  %v99_v55 = vld [vmem:[%s7609_s0 + $0x2a8] sm:$0xff] }
  0x47   :  { %1076 = vmatmul.mubr.f32.gmra.mrb[2].mxu1 %v27_v59  ;;  %3599 = vmatprep.subr.bf16.mxu1 %v4471_v0  ;;  %v3612_v59 = vpack.c.bf16 %v694_v49, %v693_v48  ;;  %v799_v48 = vld [vmem:[%s7608_s1 + $0x4a0] sm:$0xff]  ;;  %v800_v49 = vld [vmem:[%s7608_s1 + $0x4a8] sm:$0xff] }
  0x48   :  { %2006 = vmatmul.mubr.f32.gmra.mrb[2].mxu0 %v33_v60  ;;  %1080 = vmatprep.mubr.f32.mxu1 %v41_v61  ;;  %v695_v60 = vld [vmem:[%s7608_s1 + $0x160] sm:$0xff]  ;;  %v696_v61 = vld [vmem:[%s7608_s1 + $0x168] sm:$0xff]  ;;  %v3771_v58 = vpack.c.bf16 %v800_v49, %v799_v48 }
  0x49   :  { %2010 = vmatprep.mubr.f32.mxu0 %v47_v1  ;;  %3745 = vmatpush1.bf16.msra.mxu0 %v3744_v63  ;;  %v92_v63 = vld [vmem:[%s7609_s0 + $0x270] sm:$0xff]  ;;  %v98_v1 = vld [vmem:[%s7609_s0 + $0x2a0] sm:$0xff] }
  0x4a   :  { %3746 = vmatprep.subr.bf16.mxu0 %v4471_v0  ;;  %3601 = vmatpush1.bf16.msra.mxu1 %v3600_v4  ;;  %v112_v4 = vld [vmem:[%s7609_s0 + $0x310] sm:$0xff]  ;;  %v210_v48 = vld [vmem:[%s7609_s0 + $0x620] sm:$0xff] }
  0x4b   :  { %1081 = vmatmul.mubr.f32.gmra.mrb[4].mxu1 %v40_v9  ;;  %3602 = vmatprep.subr.bf16.mxu1 %v4471_v0  ;;  %v3615_v9 = vpack.c.bf16 %v696_v61, %v695_v60  ;;  %v801_v60 = vld [vmem:[%s7608_s1 + $0x4b0] sm:$0xff]  ;;  %v802_v61 = vld [vmem:[%s7608_s1 + $0x4b8] sm:$0xff] }
  0x4c   :  { %2011 = vmatmul.mubr.f32.gmra.mrb[4].mxu0 %v46_v10  ;;  %1085 = vmatprep.mubr.f32.mxu1 %v54_v11  ;;  %v697_v10 = vld [vmem:[%s7608_s1 + $0x170] sm:$0xff]  ;;  %v698_v11 = vld [vmem:[%s7608_s1 + $0x178] sm:$0xff]  ;;  %v3774_v7 = vpack.c.bf16 %v802_v61, %v801_v60  ;;  %v223_v60 = vld [vmem:[%s7609_s0 + $0x688] sm:$0xff] }
  0x4d   :  { %2015 = vmatprep.mubr.f32.mxu0 %v60_v15  ;;  %3748 = vmatpush1.bf16.msra.mxu0 %v3747_v14  ;;  %v105_v14 = vld [vmem:[%s7609_s0 + $0x2d8] sm:$0xff]  ;;  %v111_v15 = vld [vmem:[%s7609_s0 + $0x308] sm:$0xff] }
  0x4e   :  { %3749 = vmatprep.subr.bf16.mxu0 %v4471_v0  ;;  %3604 = vmatpush1.bf16.msra.mxu1 %v3603_v19  ;;  %v125_v19 = vld [vmem:[%s7609_s0 + $0x378] sm:$0xff] }
  0x4f   :  { %1086 = vmatmul.mubr.f32.gmra.mrb[6].mxu1 %v53_v23  ;;  %3605 = vmatprep.subr.bf16.mxu1 %v4471_v0  ;;  %v3618_v23 = vpack.c.bf16 %v698_v11, %v697_v10  ;;  %v803_v10 = vld [vmem:[%s7608_s1 + $0x4c0] sm:$0xff]  ;;  %v804_v11 = vld [vmem:[%s7608_s1 + $0x4c8] sm:$0xff] }
  0x50   :  { %2016 = vmatmul.mubr.f32.gmra.mrb[6].mxu0 %v59_v25  ;;  %1090 = vmatprep.mubr.f32.mxu1 %v67_v26  ;;  %v699_v25 = vld [vmem:[%s7608_s1 + $0x180] sm:$0xff]  ;;  %v700_v26 = vld [vmem:[%s7608_s1 + $0x188] sm:$0xff]  ;;  %v3777_v22 = vpack.c.bf16 %v804_v11, %v803_v10  ;;  %v249_v10 = vld [vmem:[%s7609_s0 + $0x758] sm:$0xff] }
  0x51   :  { %2020 = vmatprep.mubr.f32.mxu0 %v73_v29  ;;  %3751 = vmatpush1.bf16.msra.mxu0 %v3750_v28  ;;  %v118_v28 = vld [vmem:[%s7609_s0 + $0x340] sm:$0xff]  ;;  %v124_v29 = vld [vmem:[%s7609_s0 + $0x370] sm:$0xff]  ;;  %v255_v11 = vld [vmem:[%s7609_s0 + $0x788] sm:$0xff] }
  0x52   :  { %3752 = vmatprep.subr.bf16.mxu0 %v4471_v0  ;;  %3607 = vmatpush1.bf16.msra.mxu1 %v3606_v33  ;;  %v138_v33 = vld [vmem:[%s7609_s0 + $0x3e0] sm:$0xff] }
  0x53   :  { %1091 = vmatmul.mubr.f32.gmra.mrb[8].mxu1 %v66_v38  ;;  %3608 = vmatprep.subr.bf16.mxu1 %v4471_v0  ;;  %v3621_v38 = vpack.c.bf16 %v700_v26, %v699_v25  ;;  %v805_v25 = vld [vmem:[%s7608_s1 + $0x4d0] sm:$0xff]  ;;  %v806_v26 = vld [vmem:[%s7608_s1 + $0x4d8] sm:$0xff] }
  0x54   :  { %2021 = vmatmul.mubr.f32.gmra.mrb[8].mxu0 %v72_v39  ;;  %1095 = vmatprep.mubr.f32.mxu1 %v80_v40  ;;  %v701_v39 = vld [vmem:[%s7608_s1 + $0x190] sm:$0xff]  ;;  %v702_v40 = vld [vmem:[%s7608_s1 + $0x198] sm:$0xff]  ;;  %v3780_v37 = vpack.c.bf16 %v806_v26, %v805_v25  ;;  %v274_v25 = vld [vmem:[%s7609_s0 + $0x820] sm:$0xff] }
  0x55   :  { %2025 = vmatprep.mubr.f32.mxu0 %v86_v43  ;;  %3754 = vmatpush1.bf16.msra.mxu0 %v3753_v42  ;;  %v131_v42 = vld [vmem:[%s7609_s0 + $0x3a8] sm:$0xff]  ;;  %v137_v43 = vld [vmem:[%s7609_s0 + $0x3d8] sm:$0xff]  ;;  %v280_v26 = vld [vmem:[%s7609_s0 + $0x850] sm:$0xff] }
  0x56   :  { %3755 = vmatprep.subr.bf16.mxu0 %v4471_v0  ;;  %3610 = vmatpush1.bf16.msra.mxu1 %v3609_v47  ;;  %v151_v47 = vld [vmem:[%s7609_s0 + $0x448] sm:$0xff] }
  0x57   :  { %1096 = vmatmul.mubr.f32.gmra.mrb[10].mxu1 %v79_v51  ;;  %3611 = vmatprep.subr.bf16.mxu1 %v4471_v0  ;;  %v3624_v51 = vpack.c.bf16 %v702_v40, %v701_v39  ;;  %v807_v39 = vld [vmem:[%s7608_s1 + $0x4e0] sm:$0xff]  ;;  %v808_v40 = vld [vmem:[%s7608_s1 + $0x4e8] sm:$0xff] }
  0x58   :  { %2026 = vmatmul.mubr.f32.gmra.mrb[10].mxu0 %v85_v52  ;;  %1100 = vmatprep.mubr.f32.mxu1 %v93_v53  ;;  %v703_v52 = vld [vmem:[%s7608_s1 + $0x1a0] sm:$0xff]  ;;  %v704_v53 = vld [vmem:[%s7608_s1 + $0x1a8] sm:$0xff]  ;;  %v3783_v49 = vpack.c.bf16 %v808_v40, %v807_v39  ;;  %v320_v40 = vld [vmem:[%s7609_s0 + $0x990] sm:$0xff] }
  0x59   :  { %2030 = vmatprep.mubr.f32.mxu0 %v99_v55  ;;  %3757 = vmatpush1.bf16.msra.mxu0 %v3756_v54  ;;  %v144_v54 = vld [vmem:[%s7609_s0 + $0x410] sm:$0xff]  ;;  %v150_v55 = vld [vmem:[%s7609_s0 + $0x440] sm:$0xff] }
  0x5a   :  { %3758 = vmatprep.subr.bf16.mxu0 %v4471_v0  ;;  %3613 = vmatpush1.bf16.msra.mxu1 %v3612_v59  ;;  %v164_v59 = vld [vmem:[%s7609_s0 + $0x4b0] sm:$0xff]  ;;  %v314_v39 = vld [vmem:[%s7609_s0 + $0x960] sm:$0xff] }
  0x5b   :  { %1101 = vmatmul.mubr.f32.gmra.mrb[12].mxu1 %v92_v63  ;;  %3614 = vmatprep.subr.bf16.mxu1 %v4471_v0  ;;  %v3627_v63 = vpack.c.bf16 %v704_v53, %v703_v52  ;;  %v809_v52 = vld [vmem:[%s7608_s1 + $0x4f0] sm:$0xff]  ;;  %v810_v53 = vld [vmem:[%s7608_s1 + $0x4f8] sm:$0xff] }
  0x5c   :  { %2031 = vmatmul.mubr.f32.gmra.mrb[12].mxu0 %v98_v1  ;;  %1105 = vmatprep.mubr.f32.mxu1 %v106_v2  ;;  %v705_v1 = vld [vmem:[%s7608_s1 + $0x1b0] sm:$0xff]  ;;  %v706_v2 = vld [vmem:[%s7608_s1 + $0x1b8] sm:$0xff]  ;;  %v3786_v61 = vpack.c.bf16 %v810_v53, %v809_v52  ;;  %v811_v52 = vld [vmem:[%s7608_s1 + $0x500] sm:$0xff] }
  0x5d   :  { %2035 = vmatprep.mubr.f32.mxu0 %v112_v4  ;;  %3760 = vmatpush1.bf16.msra.mxu0 %v3759_v3  ;;  %v157_v3 = vld [vmem:[%s7609_s0 + $0x478] sm:$0xff]  ;;  %v163_v4 = vld [vmem:[%s7609_s0 + $0x4a8] sm:$0xff] }
  0x5e   :  { %3761 = vmatprep.subr.bf16.mxu0 %v4471_v0  ;;  %3616 = vmatpush1.bf16.msra.mxu1 %v3615_v9  ;;  %v177_v9 = vld [vmem:[%s7609_s0 + $0x518] sm:$0xff]  ;;  %v812_v53 = vld [vmem:[%s7608_s1 + $0x508] sm:$0xff] }
  0x5f   :  { %1106 = vmatmul.mubr.f32.gmra.mrb[14].mxu1 %v105_v14  ;;  %3617 = vmatprep.subr.bf16.mxu1 %v4471_v0  ;;  %v3630_v14 = vpack.c.bf16 %v706_v2, %v705_v1  ;;  %v222_v2 = vld [vmem:[%s7609_s0 + $0x680] sm:$0xff] }
  0x60   :  { %2036 = vmatmul.mubr.f32.gmra.mrb[14].mxu0 %v111_v15  ;;  %1110 = vmatprep.mubr.f32.mxu1 %v119_v16  ;;  %v707_v15 = vld [vmem:[%s7608_s1 + $0x1c0] sm:$0xff]  ;;  %v708_v16 = vld [vmem:[%s7608_s1 + $0x1c8] sm:$0xff] }
  0x61   :  { %2040 = vmatprep.mubr.f32.mxu0 %v125_v19  ;;  %3763 = vmatpush1.bf16.msra.mxu0 %v3762_v17  ;;  %v170_v17 = vld [vmem:[%s7609_s0 + $0x4e0] sm:$0xff]  ;;  %v176_v19 = vld [vmem:[%s7609_s0 + $0x510] sm:$0xff] }
  0x62   :  { %3764 = vmatprep.subr.bf16.mxu0 %v4471_v0  ;;  %3619 = vmatpush1.bf16.msra.mxu1 %v3618_v23  ;;  %v190_v23 = vld [vmem:[%s7609_s0 + $0x580] sm:$0xff] }
  0x63   :  { %1111 = vmatmul.mubr.f32.gmra.mrb[16].mxu1 %v118_v28  ;;  %3620 = vmatprep.subr.bf16.mxu1 %v4471_v0  ;;  %v3633_v28 = vpack.c.bf16 %v708_v16, %v707_v15  ;;  %v254_v15 = vld [vmem:[%s7609_s0 + $0x780] sm:$0xff] }
  0x64   :  { %2041 = vmatmul.mubr.f32.gmra.mrb[16].mxu0 %v124_v29  ;;  %1115 = vmatprep.mubr.f32.mxu1 %v132_v31  ;;  %v709_v29 = vld [vmem:[%s7608_s1 + $0x1d0] sm:$0xff]  ;;  %v710_v31 = vld [vmem:[%s7608_s1 + $0x1d8] sm:$0xff]  ;;  %v262_v16 = vld [vmem:[%s7609_s0 + $0x7c0] sm:$0xff] }
  0x65   :  { %2045 = vmatprep.mubr.f32.mxu0 %v138_v33  ;;  %3766 = vmatpush1.bf16.msra.mxu0 %v3765_v32  ;;  %v183_v32 = vld [vmem:[%s7609_s0 + $0x548] sm:$0xff]  ;;  %v189_v33 = vld [vmem:[%s7609_s0 + $0x578] sm:$0xff] }
  0x66   :  { %3767 = vmatprep.subr.bf16.mxu0 %v4471_v0  ;;  %3622 = vmatpush1.bf16.msra.mxu1 %v3621_v38  ;;  %v203_v38 = vld [vmem:[%s7609_s0 + $0x5e8] sm:$0xff] }
  0x67   :  { %1116 = vmatmul.mubr.f32.gmra.mrb[18].mxu1 %v131_v42  ;;  %3623 = vmatprep.subr.bf16.mxu1 %v4471_v0  ;;  %v3636_v42 = vpack.c.bf16 %v710_v31, %v709_v29  ;;  %v294_v29 = vld [vmem:[%s7609_s0 + $0x8c0] sm:$0xff]  ;;  %v287_v31 = vld [vmem:[%s7609_s0 + $0x888] sm:$0xff] }
  0x68   :  { %2046 = vmatmul.mubr.f32.gmra.mrb[18].mxu0 %v137_v43  ;;  %1120 = vmatprep.mubr.f32.mxu1 %v145_v45  ;;  %v711_v43 = vld [vmem:[%s7608_s1 + $0x1e0] sm:$0xff]  ;;  %v712_v45 = vld [vmem:[%s7608_s1 + $0x1e8] sm:$0xff] }
  0x69   :  { %2050 = vmatprep.mubr.f32.mxu0 %v151_v47  ;;  %3769 = vmatpush1.bf16.msra.mxu0 %v3768_v46  ;;  %v196_v46 = vld [vmem:[%s7609_s0 + $0x5b0] sm:$0xff]  ;;  %v202_v47 = vld [vmem:[%s7609_s0 + $0x5e0] sm:$0xff] }
  0x6a   :  { %3770 = vmatprep.subr.bf16.mxu0 %v4471_v0  ;;  %3625 = vmatpush1.bf16.msra.mxu1 %v3624_v51  ;;  %v216_v51 = vld [vmem:[%s7609_s0 + $0x650] sm:$0xff] }
  0x6b   :  { %1121 = vmatmul.mubr.f32.gmra.mrb[20].mxu1 %v144_v54  ;;  %3626 = vmatprep.subr.bf16.mxu1 %v4471_v0  ;;  %v3639_v54 = vpack.c.bf16 %v712_v45, %v711_v43  ;;  %v319_v43 = vld [vmem:[%s7609_s0 + $0x988] sm:$0xff] }
  0x6c   :  { %2051 = vmatmul.mubr.f32.gmra.mrb[20].mxu0 %v150_v55  ;;  %1125 = vmatprep.mubr.f32.mxu1 %v158_v57  ;;  %v209_v55 = vld [vmem:[%s7609_s0 + $0x618] sm:$0xff]  ;;  %v713_v57 = vld [vmem:[%s7608_s1 + $0x1f0] sm:$0xff]  ;;  %v327_v45 = vld [vmem:[%s7609_s0 + $0x9c8] sm:$0xff] }
  0x6d   :  { %2055 = vmatprep.mubr.f32.mxu0 %v164_v59  ;;  %3772 = vmatpush1.bf16.msra.mxu0 %v3771_v58  ;;  %v714_v58 = vld [vmem:[%s7608_s1 + $0x1f8] sm:$0xff]  ;;  %v215_v59 = vld [vmem:[%s7609_s0 + $0x648] sm:$0xff] }
  0x6e   :  { %3773 = vmatprep.subr.bf16.mxu0 %v4471_v0  ;;  %3628 = vmatpush1.bf16.msra.mxu1 %v3627_v63  ;;  %v229_v63 = vld [vmem:[%s7609_s0 + $0x6b8] sm:$0xff]  ;;  %v3642_v1 = vpack.c.bf16 %v714_v58, %v713_v57  ;;  %v3789_v57 = vpack.c.bf16 %v812_v53, %v811_v52  ;;  %v114_v53 = vld [vmem:[%s7609_s0 + $0x320] sm:$0xff] }
  0x6f   :  { %1126 = vmatmul.mubr.f32.gmra.mrb[22].mxu1 %v157_v3  ;;  %3629 = vmatprep.subr.bf16.mxu1 %v4471_v0  ;;  %v228_v3 = vld [vmem:[%s7609_s0 + $0x6b0] sm:$0xff]  ;;  %v353_v58 = vld [vmem:[%s7609_s0 + $0xa98] sm:$0xff] }
  0x70   :  { %2056 = vmatmul.mubr.f32.gmra.mrb[22].mxu0 %v163_v4  ;;  %1130 = vmatprep.mubr.f32.mxu1 %v171_v6  ;;  %v236_v4 = vld [vmem:[%s7609_s0 + $0x6f0] sm:$0xff]  ;;  %v242_v6 = vld [vmem:[%s7609_s0 + $0x720] sm:$0xff] }
  0x71   :  { %2060 = vmatprep.mubr.f32.mxu0 %v177_v9  ;;  %3775 = vmatpush1.bf16.msra.mxu0 %v3774_v7  ;;  %v235_v7 = vld [vmem:[%s7609_s0 + $0x6e8] sm:$0xff]  ;;  %v241_v9 = vld [vmem:[%s7609_s0 + $0x718] sm:$0xff] }
  0x72   :  { %3776 = vmatprep.subr.bf16.mxu0 %v4471_v0  ;;  %3631 = vmatpush1.bf16.msra.mxu1 %v3630_v14  ;;  %v248_v14 = vld [vmem:[%s7609_s0 + $0x750] sm:$0xff] }
  0x73   :  { %1131 = vmatmul.mubr.f32.gmra.mrb[24].mxu1 %v170_v17  ;;  %3632 = vmatprep.subr.bf16.mxu1 %v4471_v0  ;;  %v268_v17 = vld [vmem:[%s7609_s0 + $0x7f0] sm:$0xff] }
  0x74   :  { %2061 = vmatmul.mubr.f32.gmra.mrb[24].mxu0 %v176_v19  ;;  %1135 = vmatprep.mubr.f32.mxu1 %v184_v21  ;;  %v261_v19 = vld [vmem:[%s7609_s0 + $0x7b8] sm:$0xff]  ;;  %v267_v21 = vld [vmem:[%s7609_s0 + $0x7e8] sm:$0xff] }
  0x75   :  { %2065 = vmatprep.mubr.f32.mxu0 %v190_v23  ;;  %3778 = vmatpush1.bf16.msra.mxu0 %v3777_v22  ;;  %v275_v22 = vld [vmem:[%s7609_s0 + $0x828] sm:$0xff]  ;;  %v281_v23 = vld [vmem:[%s7609_s0 + $0x858] sm:$0xff] }
  0x76   :  { %3779 = vmatprep.subr.bf16.mxu0 %v4471_v0  ;;  %3634 = vmatpush1.bf16.msra.mxu1 %v3633_v28  ;;  %v288_v28 = vld [vmem:[%s7609_s0 + $0x890] sm:$0xff] }
  0x77   :  { %1136 = vmatmul.mubr.f32.gmra.mrb[26].mxu1 %v183_v32  ;;  %3635 = vmatprep.subr.bf16.mxu1 %v4471_v0  ;;  %v293_v32 = vld [vmem:[%s7609_s0 + $0x8b8] sm:$0xff] }
  0x78   :  { %2066 = vmatmul.mubr.f32.gmra.mrb[26].mxu0 %v189_v33  ;;  %1140 = vmatprep.mubr.f32.mxu1 %v197_v35  ;;  %v301_v33 = vld [vmem:[%s7609_s0 + $0x8f8] sm:$0xff]  ;;  %v307_v35 = vld [vmem:[%s7609_s0 + $0x928] sm:$0xff] }
  0x79   :  { %2070 = vmatprep.mubr.f32.mxu0 %v203_v38  ;;  %3781 = vmatpush1.bf16.msra.mxu0 %v3780_v37  ;;  %v300_v37 = vld [vmem:[%s7609_s0 + $0x8f0] sm:$0xff]  ;;  %v306_v38 = vld [vmem:[%s7609_s0 + $0x920] sm:$0xff] }
  0x7a   :  { %3782 = vmatprep.subr.bf16.mxu0 %v4471_v0  ;;  %3637 = vmatpush1.bf16.msra.mxu1 %v3636_v42  ;;  %v313_v42 = vld [vmem:[%s7609_s0 + $0x958] sm:$0xff] }
  0x7b   :  { %1141 = vmatmul.mubr.f32.gmra.mrb[28].mxu1 %v196_v46  ;;  %3638 = vmatprep.subr.bf16.mxu1 %v4471_v0  ;;  %v333_v46 = vld [vmem:[%s7609_s0 + $0x9f8] sm:$0xff] }
  0x7c   :  { %2071 = vmatmul.mubr.f32.gmra.mrb[28].mxu0 %v202_v47  ;;  %1145 = vmatprep.mubr.f32.mxu1 %v210_v48  ;;  %v326_v47 = vld [vmem:[%s7609_s0 + $0x9c0] sm:$0xff]  ;;  %v332_v48 = vld [vmem:[%s7609_s0 + $0x9f0] sm:$0xff] }
  0x7d   :  { %2075 = vmatprep.mubr.f32.mxu0 %v216_v51  ;;  %3784 = vmatpush1.bf16.msra.mxu0 %v3783_v49  ;;  %v340_v49 = vld [vmem:[%s7609_s0 + $0xa30] sm:$0xff]  ;;  %v23_v51 = vld [vmem:[%s7609_s0 + $0x48] sm:$0xff] }
  0x7e   :  { %3785 = vmatprep.subr.bf16.mxu0 %v4471_v0  ;;  %3640 = vmatpush1.bf16.msra.mxu1 %v3639_v54  ;;  %v339_v54 = vld [vmem:[%s7609_s0 + $0xa28] sm:$0xff] }
  0x7f   :  { %1146 = vmatmul.mubr.f32.gmra.mrb[30].mxu1 %v209_v55  ;;  %3641 = vmatprep.subr.bf16.mxu1 %v4471_v0  ;;  %v22_v55 = vld [vmem:[%s7609_s0 + $0x40] sm:$0xff] }
  0x80   :  { %2076 = vmatmul.mubr.f32.gmra.mrb[30].mxu0 %v215_v59  ;;  %1150 = vmatprep.mubr.f32.mxu1 %v223_v60  ;;  %v36_v59 = vld [vmem:[%s7609_s0 + $0xb0] sm:$0xff] }
  0x81   :  { %2080 = vmatprep.mubr.f32.mxu0 %v229_v63  ;;  %3787 = vmatpush1.bf16.msra.mxu0 %v3786_v61  ;;  %v813_v60 = vld [vmem:[%s7608_s1 + $0x510] sm:$0xff]  ;;  %v814_v61 = vld [vmem:[%s7608_s1 + $0x518] sm:$0xff] }
  0x82   :  { %3788 = vmatprep.subr.bf16.mxu0 %v4471_v0  ;;  %3643 = vmatpush1.bf16.msra.mxu1 %v3642_v1  ;;  %v352_v63 = vld [vmem:[%s7609_s0 + $0xa90] sm:$0xff]  ;;  %v35_v1 = vld [vmem:[%s7609_s0 + $0xa8] sm:$0xff] }
  0x83   :  { %1151 = vmatmul.mubr.f32.gmra.mrb[32].mxu1 %v222_v2  ;;  %3644 = vmatprep.subr.bf16.mxu1 %v4471_v0  ;;  %v366_v2 = vld [vmem:[%s7609_s0 + $0xb00] sm:$0xff] }
  0x84   :  { %2081 = vmatmul.mubr.f32.gmra.mrb[32].mxu0 %v228_v3  ;;  %1155 = vmatprep.mubr.f32.mxu1 %v236_v4  ;;  %v3792_v3 = vpack.c.bf16 %v814_v61, %v813_v60  ;;  %v49_v4 = vld [vmem:[%s7609_s0 + $0x118] sm:$0xff]  ;;  %v127_v61 = vld [vmem:[%s7609_s0 + $0x388] sm:$0xff] }
  0x85   :  { %2085 = vmatprep.mubr.f32.mxu0 %v242_v6  ;;  %v815_v6 = vld [vmem:[%s7608_s1 + $0x520] sm:$0xff] }
  0x87   :  { %1156 = vmatmul.mubr.f32.gmra.mrb[34].mxu1 %v235_v7  ;;  %v816_v7 = vld [vmem:[%s7608_s1 + $0x528] sm:$0xff] }
  0x88   :  { %2086 = vmatmul.mubr.f32.gmra.mrb[34].mxu0 %v241_v9  ;;  %1160 = vmatprep.mubr.f32.mxu1 %v249_v10  ;;  %v365_v9 = vld [vmem:[%s7609_s0 + $0xaf8] sm:$0xff]  ;;  %v48_v10 = vld [vmem:[%s7609_s0 + $0x110] sm:$0xff] }
  0x89   :  { %2090 = vmatprep.mubr.f32.mxu0 %v255_v11  ;;  %v379_v11 = vld [vmem:[%s7609_s0 + $0xb68] sm:$0xff] }
  0x8b   :  { %1161 = vmatmul.mubr.f32.gmra.mrb[36].mxu1 %v248_v14  ;;  %v3795_v14 = vpack.c.bf16 %v816_v7, %v815_v6  ;;  %v140_v7 = vld [vmem:[%s7609_s0 + $0x3f0] sm:$0xff] }
  0x8c   :  { %2091 = vmatmul.mubr.f32.gmra.mrb[36].mxu0 %v254_v15  ;;  %1165 = vmatprep.mubr.f32.mxu1 %v262_v16  ;;  %v62_v15 = vld [vmem:[%s7609_s0 + $0x180] sm:$0xff]  ;;  %v817_v16 = vld [vmem:[%s7608_s1 + $0x530] sm:$0xff] }
  0x8d   :  { %2095 = vmatprep.mubr.f32.mxu0 %v268_v17  ;;  %v818_v17 = vld [vmem:[%s7608_s1 + $0x538] sm:$0xff] }
  0x8f   :  { %1166 = vmatmul.mubr.f32.gmra.mrb[38].mxu1 %v261_v19  ;;  %v378_v19 = vld [vmem:[%s7609_s0 + $0xb60] sm:$0xff] }
  0x90   :  { %2096 = vmatmul.mubr.f32.gmra.mrb[38].mxu0 %v267_v21  ;;  %1170 = vmatprep.mubr.f32.mxu1 %v275_v22  ;;  %v61_v21 = vld [vmem:[%s7609_s0 + $0x178] sm:$0xff]  ;;  %v392_v22 = vld [vmem:[%s7609_s0 + $0xbd0] sm:$0xff] }
  0x91   :  { %2100 = vmatprep.mubr.f32.mxu0 %v281_v23  ;;  %v3798_v23 = vpack.c.bf16 %v818_v17, %v817_v16  ;;  %v153_v17 = vld [vmem:[%s7609_s0 + $0x458] sm:$0xff] }
  0x93   :  { %1171 = vmatmul.mubr.f32.gmra.mrb[40].mxu1 %v274_v25  ;;  %v75_v25 = vld [vmem:[%s7609_s0 + $0x1e8] sm:$0xff] }
  0x94   :  { %2101 = vmatmul.mubr.f32.gmra.mrb[40].mxu0 %v280_v26  ;;  %1175 = vmatprep.mubr.f32.mxu1 %v288_v28  ;;  %v819_v26 = vld [vmem:[%s7608_s1 + $0x540] sm:$0xff]  ;;  %v820_v28 = vld [vmem:[%s7608_s1 + $0x548] sm:$0xff] }
  0x95   :  { %2105 = vmatprep.mubr.f32.mxu0 %v294_v29  ;;  %v391_v29 = vld [vmem:[%s7609_s0 + $0xbc8] sm:$0xff] }
  0x97   :  { %1176 = vmatmul.mubr.f32.gmra.mrb[42].mxu1 %v287_v31  ;;  %v74_v31 = vld [vmem:[%s7609_s0 + $0x1e0] sm:$0xff] }
  0x98   :  { %2106 = vmatmul.mubr.f32.gmra.mrb[42].mxu0 %v293_v32  ;;  %1180 = vmatprep.mubr.f32.mxu1 %v301_v33  ;;  %v405_v32 = vld [vmem:[%s7609_s0 + $0xc38] sm:$0xff]  ;;  %v3801_v33 = vpack.c.bf16 %v820_v28, %v819_v26  ;;  %v166_v28 = vld [vmem:[%s7609_s0 + $0x4c0] sm:$0xff] }
  0x99   :  { %2110 = vmatprep.mubr.f32.mxu0 %v307_v35  ;;  %v88_v35 = vld [vmem:[%s7609_s0 + $0x250] sm:$0xff] }
  0x9b   :  { %1181 = vmatmul.mubr.f32.gmra.mrb[44].mxu1 %v300_v37  ;;  %v821_v37 = vld [vmem:[%s7608_s1 + $0x550] sm:$0xff] }
  0x9c   :  { %2111 = vmatmul.mubr.f32.gmra.mrb[44].mxu0 %v306_v38  ;;  %1185 = vmatprep.mubr.f32.mxu1 %v314_v39  ;;  %v822_v38 = vld [vmem:[%s7608_s1 + $0x558] sm:$0xff]  ;;  %v404_v39 = vld [vmem:[%s7609_s0 + $0xc30] sm:$0xff] }
  0x9d   :  { %2115 = vmatprep.mubr.f32.mxu0 %v320_v40  ;;  %v87_v40 = vld [vmem:[%s7609_s0 + $0x248] sm:$0xff] }
  0x9f   :  { %1186 = vmatmul.mubr.f32.gmra.mrb[46].mxu1 %v313_v42  ;;  %v418_v42 = vld [vmem:[%s7609_s0 + $0xca0] sm:$0xff] }
  0xa0   :  { %2116 = vmatmul.mubr.f32.gmra.mrb[46].mxu0 %v319_v43  ;;  %1190 = vmatprep.mubr.f32.mxu1 %v327_v45  ;;  %v3804_v43 = vpack.c.bf16 %v822_v38, %v821_v37  ;;  %v101_v45 = vld [vmem:[%s7609_s0 + $0x2b8] sm:$0xff]  ;;  %v179_v38 = vld [vmem:[%s7609_s0 + $0x528] sm:$0xff] }
  0xa1   :  { %2120 = vmatprep.mubr.f32.mxu0 %v333_v46  ;;  %v823_v46 = vld [vmem:[%s7608_s1 + $0x560] sm:$0xff] }
  0xa3   :  { %1191 = vmatmul.mubr.f32.gmra.mrb[48].mxu1 %v326_v47  ;;  %v824_v47 = vld [vmem:[%s7608_s1 + $0x568] sm:$0xff] }
  0xa4   :  { %2121 = vmatmul.mubr.f32.gmra.mrb[48].mxu0 %v332_v48  ;;  %1195 = vmatprep.mubr.f32.mxu1 %v340_v49  ;;  %v417_v48 = vld [vmem:[%s7609_s0 + $0xc98] sm:$0xff]  ;;  %v100_v49 = vld [vmem:[%s7609_s0 + $0x2b0] sm:$0xff]  ;;  %v3807_v52 = vpack.c.bf16 %v824_v47, %v823_v46 }
  0xa5   :  { %2310 = vmatprep.mubr.f32.mxu0 %v23_v51  ;;  %v431_v51 = vld [vmem:[%s7609_s0 + $0xd08] sm:$0xff]  ;;  %v192_v47 = vld [vmem:[%s7609_s0 + $0x590] sm:$0xff] }
  0xa7   :  { %1196 = vmatmul.mubr.f32.gmra.mrb[50].mxu1 %v339_v54  ;;  %v825_v54 = vld [vmem:[%s7608_s1 + $0x570] sm:$0xff] }
  0xa8   :  { %2311 = vmatmul.mubr.f32.vlgmr.msra.gmra.mrb[0].mxu0 %v22_v55  ;;  %1200 = vmatprep.mubr.f32.mxu1 %v353_v58  ;;  %v826_v55 = vld [vmem:[%s7608_s1 + $0x578] sm:$0xff] }
  0xa9   :  { %3790 = vmatpush1.bf16.msra.mxu0 %v3789_v57  ;;  %2315 = vmatprep.mubr.f32.mxu0 %v36_v59  ;;  %v430_v57 = vld [vmem:[%s7609_s0 + $0xd00] sm:$0xff]  ;;  %v113_v58 = vld [vmem:[%s7609_s0 + $0x318] sm:$0xff]  ;;  %v444_v59 = vld [vmem:[%s7609_s0 + $0xd70] sm:$0xff]  ;;  %v3810_v60 = vpack.c.bf16 %v826_v55, %v825_v54 }
  0xaa   :  { %3791 = vmatprep.subr.bf16.mxu0 %v4471_v0  ;;  %v205_v55 = vld [vmem:[%s7609_s0 + $0x5f8] sm:$0xff] }
  0xab   :  { %1201 = vmatmul.mubr.f32.gmra.mrb[52].mxu1 %v352_v63  ;;  %v827_v63 = vld [vmem:[%s7608_s1 + $0x580] sm:$0xff] }
  0xac   :  { %2316 = vmatmul.mubr.f32.gmra.mrb[2].mxu0 %v35_v1  ;;  %1205 = vmatprep.mubr.f32.mxu1 %v366_v2  ;;  %v828_v1 = vld [vmem:[%s7608_s1 + $0x588] sm:$0xff] }
  0xad   :  { %2320 = vmatprep.mubr.f32.mxu0 %v49_v4  ;;  %3793 = vmatpush1.bf16.msra.mxu0 %v3792_v3  ;;  %v443_v2 = vld [vmem:[%s7609_s0 + $0xd68] sm:$0xff]  ;;  %v126_v3 = vld [vmem:[%s7609_s0 + $0x380] sm:$0xff]  ;;  %v457_v4 = vld [vmem:[%s7609_s0 + $0xdd8] sm:$0xff]  ;;  %v3813_v6 = vpack.c.bf16 %v828_v1, %v827_v63 }
  0xae   :  { %3794 = vmatprep.subr.bf16.mxu0 %v4471_v0  ;;  %v218_v1 = vld [vmem:[%s7609_s0 + $0x660] sm:$0xff] }
  0xaf   :  { %1206 = vmatmul.mubr.f32.gmra.mrb[54].mxu1 %v365_v9  ;;  %v829_v9 = vld [vmem:[%s7608_s1 + $0x590] sm:$0xff] }
  0xb0   :  { %2321 = vmatmul.mubr.f32.gmra.mrb[4].mxu0 %v48_v10  ;;  %1210 = vmatprep.mubr.f32.mxu1 %v379_v11  ;;  %v830_v10 = vld [vmem:[%s7608_s1 + $0x598] sm:$0xff]  ;;  %v456_v11 = vld [vmem:[%s7609_s0 + $0xdd0] sm:$0xff] }
  0xb1   :  { %2325 = vmatprep.mubr.f32.mxu0 %v62_v15  ;;  %3796 = vmatpush1.bf16.msra.mxu0 %v3795_v14  ;;  %v139_v14 = vld [vmem:[%s7609_s0 + $0x3e8] sm:$0xff]  ;;  %v470_v15 = vld [vmem:[%s7609_s0 + $0xe40] sm:$0xff]  ;;  %v3816_v16 = vpack.c.bf16 %v830_v10, %v829_v9 }
  0xb2   :  { %3797 = vmatprep.subr.bf16.mxu0 %v4471_v0  ;;  %v231_v9 = vld [vmem:[%s7609_s0 + $0x6c8] sm:$0xff] }
  0xb3   :  { %1211 = vmatmul.mubr.f32.gmra.mrb[56].mxu1 %v378_v19  ;;  %v831_v19 = vld [vmem:[%s7608_s1 + $0x5a0] sm:$0xff] }
  0xb4   :  { %2326 = vmatmul.mubr.f32.gmra.mrb[6].mxu0 %v61_v21  ;;  %1215 = vmatprep.mubr.f32.mxu1 %v392_v22  ;;  %v832_v21 = vld [vmem:[%s7608_s1 + $0x5a8] sm:$0xff]  ;;  %v469_v22 = vld [vmem:[%s7609_s0 + $0xe38] sm:$0xff] }
  0xb5   :  { %2330 = vmatprep.mubr.f32.mxu0 %v75_v25  ;;  %3799 = vmatpush1.bf16.msra.mxu0 %v3798_v23  ;;  %v152_v23 = vld [vmem:[%s7609_s0 + $0x450] sm:$0xff]  ;;  %v483_v25 = vld [vmem:[%s7609_s0 + $0xea8] sm:$0xff]  ;;  %v3819_v26 = vpack.c.bf16 %v832_v21, %v831_v19  ;;  %v574_v21 = vld [vmem:[%s7609_s0 + $0x1180] sm:$0xff] }
  0xb6   :  { %3800 = vmatprep.subr.bf16.mxu0 %v4471_v0  ;;  %v243_v19 = vld [vmem:[%s7609_s0 + $0x728] sm:$0xff] }
  0xb7   :  { %1216 = vmatmul.mubr.f32.gmra.mrb[58].mxu1 %v391_v29  ;;  %v833_v29 = vld [vmem:[%s7608_s1 + $0x5b0] sm:$0xff] }
  0xb8   :  { %2331 = vmatmul.mubr.f32.gmra.mrb[8].mxu0 %v74_v31  ;;  %1220 = vmatprep.mubr.f32.mxu1 %v405_v32  ;;  %v834_v31 = vld [vmem:[%s7608_s1 + $0x5b8] sm:$0xff]  ;;  %v482_v32 = vld [vmem:[%s7609_s0 + $0xea0] sm:$0xff] }
  0xb9   :  { %2335 = vmatprep.mubr.f32.mxu0 %v88_v35  ;;  %3802 = vmatpush1.bf16.msra.mxu0 %v3801_v33  ;;  %v165_v33 = vld [vmem:[%s7609_s0 + $0x4b8] sm:$0xff]  ;;  %v496_v35 = vld [vmem:[%s7609_s0 + $0xf10] sm:$0xff]  ;;  %v3822_v37 = vpack.c.bf16 %v834_v31, %v833_v29  ;;  %v586_v29 = vld [vmem:[%s7609_s0 + $0x11e0] sm:$0xff] }
  0xba   :  { %3803 = vmatprep.subr.bf16.mxu0 %v4471_v0  ;;  %v269_v31 = vld [vmem:[%s7609_s0 + $0x7f8] sm:$0xff] }
  0xbb   :  { %1221 = vmatmul.mubr.f32.gmra.mrb[60].mxu1 %v404_v39  ;;  %v835_v39 = vld [vmem:[%s7608_s1 + $0x5c0] sm:$0xff] }
  0xbc   :  { %2336 = vmatmul.mubr.f32.gmra.mrb[10].mxu0 %v87_v40  ;;  %1225 = vmatprep.mubr.f32.mxu1 %v418_v42  ;;  %v836_v40 = vld [vmem:[%s7608_s1 + $0x5c8] sm:$0xff] }
  0xbd   :  { %2340 = vmatprep.mubr.f32.mxu0 %v101_v45  ;;  %3805 = vmatpush1.bf16.msra.mxu0 %v3804_v43  ;;  %v495_v42 = vld [vmem:[%s7609_s0 + $0xf08] sm:$0xff]  ;;  %v178_v43 = vld [vmem:[%s7609_s0 + $0x520] sm:$0xff]  ;;  %v509_v45 = vld [vmem:[%s7609_s0 + $0xf78] sm:$0xff]  ;;  %v3825_v46 = vpack.c.bf16 %v836_v40, %v835_v39 }
  0xbe   :  { %3806 = vmatprep.subr.bf16.mxu0 %v4471_v0  ;;  %v296_v39 = vld [vmem:[%s7609_s0 + $0x8d0] sm:$0xff] }
  0xbf   :  { %1226 = vmatmul.mubr.f32.gmra.mrb[62].mxu1 %v417_v48  ;;  %v837_v48 = vld [vmem:[%s7608_s1 + $0x5d0] sm:$0xff] }
  0xc0   :  { %2341 = vmatmul.mubr.f32.gmra.mrb[12].mxu0 %v100_v49  ;;  %1230 = vmatprep.mubr.f32.mxu1 %v431_v51  ;;  %v838_v49 = vld [vmem:[%s7608_s1 + $0x5d8] sm:$0xff]  ;;  %v508_v51 = vld [vmem:[%s7609_s0 + $0xf70] sm:$0xff] }
  0xc1   :  { %2345 = vmatprep.mubr.f32.mxu0 %v114_v53  ;;  %3808 = vmatpush1.bf16.msra.mxu0 %v3807_v52  ;;  %v191_v52 = vld [vmem:[%s7609_s0 + $0x588] sm:$0xff]  ;;  %v522_v53 = vld [vmem:[%s7609_s0 + $0xfe0] sm:$0xff]  ;;  %v3828_v54 = vpack.c.bf16 %v838_v49, %v837_v48  ;;  %v612_v40 = vld [vmem:[%s7609_s0 + $0x12b0] sm:$0xff] }
  0xc2   :  { %3809 = vmatprep.subr.bf16.mxu0 %v4471_v0  ;;  %v639_v48 = vld [vmem:[%s7609_s0 + $0x1388] sm:$0xff]  ;;  %v322_v49 = vld [vmem:[%s7609_s0 + $0x9a0] sm:$0xff] }
  0xc3   :  { %1231 = vmatmul.mubr.f32.gmra.mrb[64].mxu1 %v430_v57  ;;  %v839_v57 = vld [vmem:[%s7608_s1 + $0x5e0] sm:$0xff] }
  0xc4   :  { %2346 = vmatmul.mubr.f32.gmra.mrb[14].mxu0 %v113_v58  ;;  %1235 = vmatprep.mubr.f32.mxu1 %v444_v59  ;;  %v840_v58 = vld [vmem:[%s7608_s1 + $0x5e8] sm:$0xff]  ;;  %v521_v59 = vld [vmem:[%s7609_s0 + $0xfd8] sm:$0xff] }
  0xc5   :  { %2350 = vmatprep.mubr.f32.mxu0 %v127_v61  ;;  %3811 = vmatpush1.bf16.msra.mxu0 %v3810_v60  ;;  %v204_v60 = vld [vmem:[%s7609_s0 + $0x5f0] sm:$0xff]  ;;  %v535_v61 = vld [vmem:[%s7609_s0 + $0x1048] sm:$0xff]  ;;  %v3831_v63 = vpack.c.bf16 %v840_v58, %v839_v57 }
  0xc6   :  { %3812 = vmatprep.subr.bf16.mxu0 %v4471_v0  ;;  %v716_v57 = vld [vmem:[%s7608_s1 + $0x208] sm:$0xff]  ;;  %v16_v58 = vld [vmem:[%s7609_s0 + $0x10] sm:$0xff] }
  0xc7   :  { %1236 = vmatmul.mubr.f32.gmra.mrb[66].mxu1 %v443_v2  ;;  %v534_v2 = vld [vmem:[%s7609_s0 + $0x1040] sm:$0xff] }
  0xc8   :  { %2351 = vmatmul.mubr.f32.gmra.mrb[16].mxu0 %v126_v3  ;;  %1240 = vmatprep.mubr.f32.mxu1 %v457_v4  ;;  %v841_v3 = vld [vmem:[%s7608_s1 + $0x5f0] sm:$0xff]  ;;  %v217_v4 = vld [vmem:[%s7609_s0 + $0x658] sm:$0xff] }
  0xc9   :  { %2355 = vmatprep.mubr.f32.mxu0 %v140_v7  ;;  %3814 = vmatpush1.bf16.msra.mxu0 %v3813_v6  ;;  %v548_v6 = vld [vmem:[%s7609_s0 + $0x10b0] sm:$0xff]  ;;  %v842_v7 = vld [vmem:[%s7608_s1 + $0x5f8] sm:$0xff] }
  0xca   :  { %3815 = vmatprep.subr.bf16.mxu0 %v4471_v0  ;;  %v3834_v10 = vpack.c.bf16 %v842_v7, %v841_v3  ;;  %v29_v3 = vld [vmem:[%s7609_s0 + $0x78] sm:$0xff] }
  0xcb   :  { %1241 = vmatmul.mubr.f32.gmra.mrb[68].mxu1 %v456_v11  ;;  %v547_v11 = vld [vmem:[%s7609_s0 + $0x10a8] sm:$0xff] }
  0xcc   :  { %2356 = vmatmul.mubr.f32.gmra.mrb[18].mxu0 %v139_v14  ;;  %1245 = vmatprep.mubr.f32.mxu1 %v470_v15  ;;  %v230_v14 = vld [vmem:[%s7609_s0 + $0x6c0] sm:$0xff]  ;;  %v561_v15 = vld [vmem:[%s7609_s0 + $0x1118] sm:$0xff] }
  0xcd   :  { %2360 = vmatprep.mubr.f32.mxu0 %v153_v17  ;;  %3817 = vmatpush1.bf16.msra.mxu0 %v3816_v16  ;;  %v244_v16 = vld [vmem:[%s7609_s0 + $0x730] sm:$0xff] }
  0xce   :  { %3818 = vmatprep.subr.bf16.mxu0 %v4471_v0  ;;  %v560_v17 = vld [vmem:[%s7609_s0 + $0x1110] sm:$0xff] }
  0xcf   :  { %1246 = vmatmul.mubr.f32.gmra.mrb[70].mxu1 %v469_v22  ;;  %v257_v22 = vld [vmem:[%s7609_s0 + $0x798] sm:$0xff] }
  0xd0   :  { %2361 = vmatmul.mubr.f32.gmra.mrb[20].mxu0 %v152_v23  ;;  %1250 = vmatprep.mubr.f32.mxu1 %v483_v25  ;;  %v573_v23 = vld [vmem:[%s7609_s0 + $0x1178] sm:$0xff]  ;;  %v256_v25 = vld [vmem:[%s7609_s0 + $0x790] sm:$0xff] }
  0xd1   :  { %2365 = vmatprep.mubr.f32.mxu0 %v166_v28  ;;  %3820 = vmatpush1.bf16.msra.mxu0 %v3819_v26  ;;  %v587_v26 = vld [vmem:[%s7609_s0 + $0x11e8] sm:$0xff]  ;;  %v270_v28 = vld [vmem:[%s7609_s0 + $0x800] sm:$0xff] }
  0xd2   :  { %3821 = vmatprep.subr.bf16.mxu0 %v4471_v0 }
  0xd3   :  { %1251 = vmatmul.mubr.f32.gmra.mrb[72].mxu1 %v482_v32  ;;  %v600_v32 = vld [vmem:[%s7609_s0 + $0x1250] sm:$0xff] }
  0xd4   :  { %2366 = vmatmul.mubr.f32.gmra.mrb[22].mxu0 %v165_v33  ;;  %1255 = vmatprep.mubr.f32.mxu1 %v496_v35  ;;  %v283_v33 = vld [vmem:[%s7609_s0 + $0x868] sm:$0xff] }
  0xd5   :  { %2370 = vmatprep.mubr.f32.mxu0 %v179_v38  ;;  %3823 = vmatpush1.bf16.msra.mxu0 %v3822_v37  ;;  %v599_v35 = vld [vmem:[%s7609_s0 + $0x1248] sm:$0xff]  ;;  %v282_v37 = vld [vmem:[%s7609_s0 + $0x860] sm:$0xff]  ;;  %v613_v38 = vld [vmem:[%s7609_s0 + $0x12b8] sm:$0xff] }
  0xd6   :  { %3824 = vmatprep.subr.bf16.mxu0 %v4471_v0 }
  0xd7   :  { %1256 = vmatmul.mubr.f32.gmra.mrb[74].mxu1 %v495_v42  ;;  %v295_v42 = vld [vmem:[%s7609_s0 + $0x8c8] sm:$0xff] }
  0xd8   :  { %2371 = vmatmul.mubr.f32.gmra.mrb[24].mxu0 %v178_v43  ;;  %1260 = vmatprep.mubr.f32.mxu1 %v509_v45  ;;  %v626_v43 = vld [vmem:[%s7609_s0 + $0x1320] sm:$0xff]  ;;  %v309_v45 = vld [vmem:[%s7609_s0 + $0x938] sm:$0xff] }
  0xd9   :  { %2375 = vmatprep.mubr.f32.mxu0 %v192_v47  ;;  %3826 = vmatpush1.bf16.msra.mxu0 %v3825_v46  ;;  %v625_v46 = vld [vmem:[%s7609_s0 + $0x1318] sm:$0xff]  ;;  %v308_v47 = vld [vmem:[%s7609_s0 + $0x930] sm:$0xff] }
  0xda   :  { %3827 = vmatprep.subr.bf16.mxu0 %v4471_v0 }
  0xdb   :  { %1261 = vmatmul.mubr.f32.gmra.mrb[76].mxu1 %v508_v51  ;;  %v638_v51 = vld [vmem:[%s7609_s0 + $0x1380] sm:$0xff] }
  0xdc   :  { %2376 = vmatmul.mubr.f32.gmra.mrb[26].mxu0 %v191_v52  ;;  %1265 = vmatprep.mubr.f32.mxu1 %v522_v53  ;;  %v321_v52 = vld [vmem:[%s7609_s0 + $0x998] sm:$0xff] }
  0xdd   :  { %2380 = vmatprep.mubr.f32.mxu0 %v205_v55  ;;  %3829 = vmatpush1.bf16.msra.mxu0 %v3828_v54  ;;  %v17_v53 = vld [vmem:[%s7609_s0 + $0x18] sm:$0xff]  ;;  %v335_v54 = vld [vmem:[%s7609_s0 + $0xa08] sm:$0xff]  ;;  %v715_v55 = vld [vmem:[%s7608_s1 + $0x200] sm:$0xff] }
  0xde   :  { %3830 = vmatprep.subr.bf16.mxu0 %v4471_v0 }
  0xdf   :  { %1266 = vmatmul.mubr.f32.gmra.mrb[78].mxu1 %v521_v59  ;;  %v334_v59 = vld [vmem:[%s7609_s0 + $0xa00] sm:$0xff] }
  0xe0   :  { %2381 = vmatmul.mubr.f32.gmra.mrb[28].mxu0 %v204_v60  ;;  %1270 = vmatprep.mubr.f32.mxu1 %v535_v61  ;;  %v30_v60 = vld [vmem:[%s7609_s0 + $0x80] sm:$0xff]  ;;  %v3645_v61 = vpack.c.bf16 %v716_v57, %v715_v55 }
  0xe1   :  { %2385 = vmatprep.mubr.f32.mxu0 %v218_v1  ;;  %3832 = vmatpush1.bf16.msra.mxu0 %v3831_v63  ;;  %v348_v63 = vld [vmem:[%s7609_s0 + $0xa70] sm:$0xff]  ;;  %v426_v57 = vld [vmem:[%s7609_s0 + $0xce0] sm:$0xff] }
  0xe2   :  { %3833 = vmatprep.subr.bf16.mxu0 %v4471_v0  ;;  %v717_v1 = vld [vmem:[%s7608_s1 + $0x210] sm:$0xff] }
  0xe3   :  { %1271 = vmatmul.mubr.f32.gmra.mrb[80].mxu1 %v534_v2  ;;  %v718_v2 = vld [vmem:[%s7608_s1 + $0x218] sm:$0xff] }
  0xe4   :  { %2386 = vmatmul.mubr.f32.gmra.mrb[30].mxu0 %v217_v4  ;;  %1275 = vmatprep.mubr.f32.mxu1 %v548_v6  ;;  %v347_v4 = vld [vmem:[%s7609_s0 + $0xa68] sm:$0xff]  ;;  %v3648_v7 = vpack.c.bf16 %v718_v2, %v717_v1 }
  0xe5   :  { %2390 = vmatprep.mubr.f32.mxu0 %v231_v9  ;;  %3835 = vmatpush1.bf16.msra.mxu0 %v3834_v10  ;;  %v43_v6 = vld [vmem:[%s7609_s0 + $0xe8] sm:$0xff]  ;;  %v361_v9 = vld [vmem:[%s7609_s0 + $0xad8] sm:$0xff]  ;;  %v719_v10 = vld [vmem:[%s7608_s1 + $0x220] sm:$0xff] }
  0xe6   :  { %3836 = vmatprep.subr.bf16.mxu0 %v4471_v0  ;;  %v439_v2 = vld [vmem:[%s7609_s0 + $0xd48] sm:$0xff] }
  0xe7   :  { %1276 = vmatmul.mubr.f32.gmra.mrb[82].mxu1 %v547_v11  ;;  %v720_v11 = vld [vmem:[%s7608_s1 + $0x228] sm:$0xff] }
  0xe8   :  { %2391 = vmatmul.mubr.f32.gmra.mrb[32].mxu0 %v230_v14  ;;  %1280 = vmatprep.mubr.f32.mxu1 %v561_v15  ;;  %v42_v14 = vld [vmem:[%s7609_s0 + $0xe0] sm:$0xff]  ;;  %v360_v15 = vld [vmem:[%s7609_s0 + $0xad0] sm:$0xff] }
  0xe9   :  { %2395 = vmatprep.mubr.f32.mxu0 %v244_v16  ;;  %v56_v16 = vld [vmem:[%s7609_s0 + $0x150] sm:$0xff] }
  0xeb   :  { %1281 = vmatmul.mubr.f32.gmra.mrb[84].mxu1 %v560_v17  ;;  %v3651_v17 = vpack.c.bf16 %v720_v11, %v719_v10  ;;  %v452_v11 = vld [vmem:[%s7609_s0 + $0xdb0] sm:$0xff] }
  0xec   :  { %2396 = vmatmul.mubr.f32.gmra.mrb[34].mxu0 %v243_v19  ;;  %1285 = vmatprep.mubr.f32.mxu1 %v574_v21  ;;  %v374_v19 = vld [vmem:[%s7609_s0 + $0xb40] sm:$0xff]  ;;  %v721_v21 = vld [vmem:[%s7608_s1 + $0x230] sm:$0xff] }
  0xed   :  { %2400 = vmatprep.mubr.f32.mxu0 %v257_v22  ;;  %v722_v22 = vld [vmem:[%s7608_s1 + $0x238] sm:$0xff] }
  0xef   :  { %1286 = vmatmul.mubr.f32.gmra.mrb[86].mxu1 %v573_v23  ;;  %v55_v23 = vld [vmem:[%s7609_s0 + $0x148] sm:$0xff] }
  0xf0   :  { %2401 = vmatmul.mubr.f32.gmra.mrb[36].mxu0 %v256_v25  ;;  %1290 = vmatprep.mubr.f32.mxu1 %v587_v26  ;;  %v373_v25 = vld [vmem:[%s7609_s0 + $0xb38] sm:$0xff] }
  0xf1   :  { %2405 = vmatprep.mubr.f32.mxu0 %v270_v28  ;;  %v69_v26 = vld [vmem:[%s7609_s0 + $0x1b8] sm:$0xff]  ;;  %v3654_v28 = vpack.c.bf16 %v722_v22, %v721_v21 }
  0xf2   :  { %v465_v22 = vld [vmem:[%s7609_s0 + $0xe18] sm:$0xff] }
  0xf3   :  { %1291 = vmatmul.mubr.f32.gmra.mrb[88].mxu1 %v586_v29  ;;  %v387_v29 = vld [vmem:[%s7609_s0 + $0xba8] sm:$0xff] }
  0xf4   :  { %2406 = vmatmul.mubr.f32.gmra.mrb[38].mxu0 %v269_v31  ;;  %1295 = vmatprep.mubr.f32.mxu1 %v600_v32  ;;  %v723_v31 = vld [vmem:[%s7608_s1 + $0x240] sm:$0xff]  ;;  %v724_v32 = vld [vmem:[%s7608_s1 + $0x248] sm:$0xff] }
  0xf5   :  { %2410 = vmatprep.mubr.f32.mxu0 %v283_v33  ;;  %v68_v33 = vld [vmem:[%s7609_s0 + $0x1b0] sm:$0xff] }
  0xf7   :  { %1296 = vmatmul.mubr.f32.gmra.mrb[90].mxu1 %v599_v35  ;;  %v386_v35 = vld [vmem:[%s7609_s0 + $0xba0] sm:$0xff] }
  0xf8   :  { %2411 = vmatmul.mubr.f32.gmra.mrb[40].mxu0 %v282_v37  ;;  %1300 = vmatprep.mubr.f32.mxu1 %v613_v38  ;;  %v82_v37 = vld [vmem:[%s7609_s0 + $0x220] sm:$0xff]  ;;  %v3657_v38 = vpack.c.bf16 %v724_v32, %v723_v31 }
  0xf9   :  { %2415 = vmatprep.mubr.f32.mxu0 %v296_v39  ;;  %v400_v39 = vld [vmem:[%s7609_s0 + $0xc10] sm:$0xff]  ;;  %v478_v32 = vld [vmem:[%s7609_s0 + $0xe80] sm:$0xff] }
  0xfb   :  { %1301 = vmatmul.mubr.f32.gmra.mrb[92].mxu1 %v612_v40  ;;  %v725_v40 = vld [vmem:[%s7608_s1 + $0x250] sm:$0xff] }
  0xfc   :  { %2416 = vmatmul.mubr.f32.gmra.mrb[42].mxu0 %v295_v42  ;;  %1305 = vmatprep.mubr.f32.mxu1 %v626_v43  ;;  %v726_v42 = vld [vmem:[%s7608_s1 + $0x258] sm:$0xff] }
  0xfd   :  { %2420 = vmatprep.mubr.f32.mxu0 %v309_v45  ;;  %v81_v43 = vld [vmem:[%s7609_s0 + $0x218] sm:$0xff]  ;;  %v399_v45 = vld [vmem:[%s7609_s0 + $0xc08] sm:$0xff] }
  0xff   :  { %1306 = vmatmul.mubr.f32.gmra.mrb[94].mxu1 %v625_v46  ;;  %v95_v46 = vld [vmem:[%s7609_s0 + $0x288] sm:$0xff] }
 0x100   :  { %2421 = vmatmul.mubr.f32.gmra.mrb[44].mxu0 %v308_v47  ;;  %1310 = vmatprep.mubr.f32.mxu1 %v639_v48  ;;  %v3660_v47 = vpack.c.bf16 %v726_v42, %v725_v40  ;;  %v413_v48 = vld [vmem:[%s7609_s0 + $0xc78] sm:$0xff]  ;;  %v491_v42 = vld [vmem:[%s7609_s0 + $0xee8] sm:$0xff] }
 0x101   :  { %2425 = vmatprep.mubr.f32.mxu0 %v322_v49  ;;  %v727_v49 = vld [vmem:[%s7608_s1 + $0x260] sm:$0xff] }
 0x103   :  { %1311 = vmatmul.mubr.f32.gmra.mrb[96].mxu1 %v638_v51  ;;  %v728_v51 = vld [vmem:[%s7608_s1 + $0x268] sm:$0xff] }
 0x104   :  { %2426 = vmatmul.mubr.f32.gmra.mrb[46].mxu0 %v321_v52  ;;  %1380 = vmatprep.mubr.f32.mxu1 %v17_v53  ;;  %v94_v52 = vld [vmem:[%s7609_s0 + $0x280] sm:$0xff]  ;;  %v412_v53 = vld [vmem:[%s7609_s0 + $0xc70] sm:$0xff]  ;;  %v3663_v55 = vpack.c.bf16 %v728_v51, %v727_v49 }
 0x105   :  { %2430 = vmatprep.mubr.f32.mxu0 %v335_v54  ;;  %v108_v54 = vld [vmem:[%s7609_s0 + $0x2f0] sm:$0xff] }
 0x106   :  { %v504_v51 = vld [vmem:[%s7609_s0 + $0xf50] sm:$0xff] }
 0x107   :  { %1381 = vmatmul.mubr.f32.vlgmr.msra.gmra.mrb[0].mxu1 %v16_v58  ;;  %v729_v58 = vld [vmem:[%s7608_s1 + $0x270] sm:$0xff] }
 0x108   :  { %2431 = vmatmul.mubr.f32.gmra.mrb[48].mxu0 %v334_v59  ;;  %1385 = vmatprep.mubr.f32.mxu1 %v30_v60  ;;  %v730_v59 = vld [vmem:[%s7608_s1 + $0x278] sm:$0xff]  ;;  %v107_v60 = vld [vmem:[%s7609_s0 + $0x2e8] sm:$0xff] }
 0x109   :  { %3646 = vmatpush1.bf16.msra.mxu1 %v3645_v61  ;;  %2435 = vmatprep.mubr.f32.mxu0 %v348_v63  ;;  %v425_v61 = vld [vmem:[%s7609_s0 + $0xcd8] sm:$0xff]  ;;  %v3666_v1 = vpack.c.bf16 %v730_v59, %v729_v58 }
 0x10a   :  { %3647 = vmatprep.subr.bf16.mxu1 %v4471_v0  ;;  %v121_v63 = vld [vmem:[%s7609_s0 + $0x358] sm:$0xff] }
 0x10b   :  { %1386 = vmatmul.mubr.f32.gmra.mrb[2].mxu1 %v29_v3  ;;  %v731_v3 = vld [vmem:[%s7608_s1 + $0x280] sm:$0xff]  ;;  %v517_v59 = vld [vmem:[%s7609_s0 + $0xfb8] sm:$0xff] }
 0x10c   :  { %2436 = vmatmul.mubr.f32.gmra.mrb[50].mxu0 %v347_v4  ;;  %1390 = vmatprep.mubr.f32.mxu1 %v43_v6  ;;  %v732_v4 = vld [vmem:[%s7608_s1 + $0x288] sm:$0xff]  ;;  %v120_v6 = vld [vmem:[%s7609_s0 + $0x350] sm:$0xff] }
 0x10d   :  { %2440 = vmatprep.mubr.f32.mxu0 %v361_v9  ;;  %3649 = vmatpush1.bf16.msra.mxu1 %v3648_v7  ;;  %v438_v7 = vld [vmem:[%s7609_s0 + $0xd40] sm:$0xff]  ;;  %v3669_v10 = vpack.c.bf16 %v732_v4, %v731_v3 }
 0x10e   :  { %3650 = vmatprep.subr.bf16.mxu1 %v4471_v0  ;;  %v134_v9 = vld [vmem:[%s7609_s0 + $0x3c0] sm:$0xff] }
 0x10f   :  { %1391 = vmatmul.mubr.f32.gmra.mrb[4].mxu1 %v42_v14  ;;  %v733_v14 = vld [vmem:[%s7608_s1 + $0x290] sm:$0xff]  ;;  %v530_v4 = vld [vmem:[%s7609_s0 + $0x1020] sm:$0xff] }
 0x110   :  { %2441 = vmatmul.mubr.f32.gmra.mrb[52].mxu0 %v360_v15  ;;  %1395 = vmatprep.mubr.f32.mxu1 %v56_v16  ;;  %v734_v15 = vld [vmem:[%s7608_s1 + $0x298] sm:$0xff] }
 0x111   :  { %2445 = vmatprep.mubr.f32.mxu0 %v374_v19  ;;  %3652 = vmatpush1.bf16.msra.mxu1 %v3651_v17  ;;  %v133_v16 = vld [vmem:[%s7609_s0 + $0x3b8] sm:$0xff]  ;;  %v451_v17 = vld [vmem:[%s7609_s0 + $0xda8] sm:$0xff]  ;;  %v3672_v21 = vpack.c.bf16 %v734_v15, %v733_v14 }
 0x112   :  { %3653 = vmatprep.subr.bf16.mxu1 %v4471_v0  ;;  %v147_v19 = vld [vmem:[%s7609_s0 + $0x428] sm:$0xff] }
 0x113   :  { %1396 = vmatmul.mubr.f32.gmra.mrb[6].mxu1 %v55_v23  ;;  %v735_v23 = vld [vmem:[%s7608_s1 + $0x2a0] sm:$0xff]  ;;  %v543_v15 = vld [vmem:[%s7609_s0 + $0x1088] sm:$0xff] }
 0x114   :  { %2446 = vmatmul.mubr.f32.gmra.mrb[54].mxu0 %v373_v25  ;;  %1400 = vmatprep.mubr.f32.mxu1 %v69_v26  ;;  %v736_v25 = vld [vmem:[%s7608_s1 + $0x2a8] sm:$0xff]  ;;  %v146_v26 = vld [vmem:[%s7609_s0 + $0x420] sm:$0xff] }
 0x115   :  { %2450 = vmatprep.mubr.f32.mxu0 %v387_v29  ;;  %3655 = vmatpush1.bf16.msra.mxu1 %v3654_v28  ;;  %v464_v28 = vld [vmem:[%s7609_s0 + $0xe10] sm:$0xff]  ;;  %v3675_v31 = vpack.c.bf16 %v736_v25, %v735_v23  ;;  %v555_v23 = vld [vmem:[%s7609_s0 + $0x10e8] sm:$0xff] }
 0x116   :  { %3656 = vmatprep.subr.bf16.mxu1 %v4471_v0  ;;  %v160_v29 = vld [vmem:[%s7609_s0 + $0x490] sm:$0xff]  ;;  %v251_v25 = vld [vmem:[%s7609_s0 + $0x768] sm:$0xff] }
 0x117   :  { %1401 = vmatmul.mubr.f32.gmra.mrb[8].mxu1 %v68_v33  ;;  %v737_v33 = vld [vmem:[%s7608_s1 + $0x2b0] sm:$0xff] }
 0x118   :  { %2451 = vmatmul.mubr.f32.gmra.mrb[56].mxu0 %v386_v35  ;;  %1405 = vmatprep.mubr.f32.mxu1 %v82_v37  ;;  %v738_v35 = vld [vmem:[%s7608_s1 + $0x2b8] sm:$0xff]  ;;  %v159_v37 = vld [vmem:[%s7609_s0 + $0x488] sm:$0xff] }
 0x119   :  { %2455 = vmatprep.mubr.f32.mxu0 %v400_v39  ;;  %3658 = vmatpush1.bf16.msra.mxu1 %v3657_v38  ;;  %v477_v38 = vld [vmem:[%s7609_s0 + $0xe78] sm:$0xff]  ;;  %v3678_v40 = vpack.c.bf16 %v738_v35, %v737_v33  ;;  %v263_v33 = vld [vmem:[%s7609_s0 + $0x7c8] sm:$0xff] }
 0x11a   :  { %3659 = vmatprep.subr.bf16.mxu1 %v4471_v0  ;;  %v173_v39 = vld [vmem:[%s7609_s0 + $0x4f8] sm:$0xff] }
 0x11b   :  { %1406 = vmatmul.mubr.f32.gmra.mrb[10].mxu1 %v81_v43  ;;  %v739_v43 = vld [vmem:[%s7608_s1 + $0x2c0] sm:$0xff]  ;;  %v581_v35 = vld [vmem:[%s7609_s0 + $0x11b8] sm:$0xff] }
 0x11c   :  { %2456 = vmatmul.mubr.f32.gmra.mrb[58].mxu0 %v399_v45  ;;  %1410 = vmatprep.mubr.f32.mxu1 %v95_v46  ;;  %v740_v45 = vld [vmem:[%s7608_s1 + $0x2c8] sm:$0xff]  ;;  %v172_v46 = vld [vmem:[%s7609_s0 + $0x4f0] sm:$0xff] }
 0x11d   :  { %2460 = vmatprep.mubr.f32.mxu0 %v413_v48  ;;  %3661 = vmatpush1.bf16.msra.mxu1 %v3660_v47  ;;  %v490_v47 = vld [vmem:[%s7609_s0 + $0xee0] sm:$0xff]  ;;  %v3681_v49 = vpack.c.bf16 %v740_v45, %v739_v43  ;;  %v608_v43 = vld [vmem:[%s7609_s0 + $0x1290] sm:$0xff]  ;;  %v289_v45 = vld [vmem:[%s7609_s0 + $0x898] sm:$0xff] }
 0x11e   :  { %3662 = vmatprep.subr.bf16.mxu1 %v4471_v0  ;;  %v186_v48 = vld [vmem:[%s7609_s0 + $0x560] sm:$0xff] }
 0x11f   :  { %1411 = vmatmul.mubr.f32.gmra.mrb[12].mxu1 %v94_v52  ;;  %v741_v52 = vld [vmem:[%s7608_s1 + $0x2d0] sm:$0xff] }
 0x120   :  { %2461 = vmatmul.mubr.f32.gmra.mrb[60].mxu0 %v412_v53  ;;  %1415 = vmatprep.mubr.f32.mxu1 %v108_v54  ;;  %v742_v53 = vld [vmem:[%s7608_s1 + $0x2d8] sm:$0xff] }
 0x121   :  { %2465 = vmatprep.mubr.f32.mxu0 %v426_v57  ;;  %3664 = vmatpush1.bf16.msra.mxu1 %v3663_v55  ;;  %v185_v54 = vld [vmem:[%s7609_s0 + $0x558] sm:$0xff]  ;;  %v503_v55 = vld [vmem:[%s7609_s0 + $0xf48] sm:$0xff]  ;;  %v3684_v58 = vpack.c.bf16 %v742_v53, %v741_v52  ;;  %v316_v52 = vld [vmem:[%s7609_s0 + $0x970] sm:$0xff] }
 0x122   :  { %3665 = vmatprep.subr.bf16.mxu1 %v4471_v0  ;;  %v199_v57 = vld [vmem:[%s7609_s0 + $0x5c8] sm:$0xff]  ;;  %v634_v53 = vld [vmem:[%s7609_s0 + $0x1360] sm:$0xff] }
 0x123   :  { %1416 = vmatmul.mubr.f32.gmra.mrb[14].mxu1 %v107_v60  ;;  %v743_v60 = vld [vmem:[%s7608_s1 + $0x2e0] sm:$0xff] }
 0x124   :  { %2466 = vmatmul.mubr.f32.gmra.mrb[62].mxu0 %v425_v61  ;;  %1420 = vmatprep.mubr.f32.mxu1 %v121_v63  ;;  %v744_v61 = vld [vmem:[%s7608_s1 + $0x2e8] sm:$0xff]  ;;  %v198_v63 = vld [vmem:[%s7609_s0 + $0x5c0] sm:$0xff] }
 0x125   :  { %2470 = vmatprep.mubr.f32.mxu0 %v439_v2  ;;  %3667 = vmatpush1.bf16.msra.mxu1 %v3666_v1  ;;  %v516_v1 = vld [vmem:[%s7609_s0 + $0xfb0] sm:$0xff]  ;;  %v3687_v3 = vpack.c.bf16 %v744_v61, %v743_v60  ;;  %v646_v60 = vld [vmem:[%s7609_s0 + $0x13c0] sm:$0xff] }
 0x126   :  { %3668 = vmatprep.subr.bf16.mxu1 %v4471_v0  ;;  %v212_v2 = vld [vmem:[%s7609_s0 + $0x630] sm:$0xff]  ;;  %v342_v61 = vld [vmem:[%s7609_s0 + $0xa40] sm:$0xff] }
 0x127   :  { %1421 = vmatmul.mubr.f32.gmra.mrb[16].mxu1 %v120_v6  ;;  %v211_v6 = vld [vmem:[%s7609_s0 + $0x628] sm:$0xff] }
 0x128   :  { %2471 = vmatmul.mubr.f32.gmra.mrb[64].mxu0 %v438_v7  ;;  %1425 = vmatprep.mubr.f32.mxu1 %v134_v9  ;;  %v745_v7 = vld [vmem:[%s7608_s1 + $0x2f0] sm:$0xff]  ;;  %v746_v9 = vld [vmem:[%s7608_s1 + $0x2f8] sm:$0xff] }
 0x129   :  { %2475 = vmatprep.mubr.f32.mxu0 %v452_v11  ;;  %3670 = vmatpush1.bf16.msra.mxu1 %v3669_v10  ;;  %v529_v10 = vld [vmem:[%s7609_s0 + $0x1018] sm:$0xff]  ;;  %v3690_v14 = vpack.c.bf16 %v746_v9, %v745_v7  ;;  %v355_v7 = vld [vmem:[%s7609_s0 + $0xaa8] sm:$0xff]  ;;  %v38_v9 = vld [vmem:[%s7609_s0 + $0xc0] sm:$0xff] }
 0x12a   :  { %3671 = vmatprep.subr.bf16.mxu1 %v4471_v0  ;;  %v225_v11 = vld [vmem:[%s7609_s0 + $0x698] sm:$0xff] }
 0x12b   :  { %1426 = vmatmul.mubr.f32.gmra.mrb[18].mxu1 %v133_v16  ;;  %v224_v16 = vld [vmem:[%s7609_s0 + $0x690] sm:$0xff] }
 0x12c   :  { %2476 = vmatmul.mubr.f32.gmra.mrb[66].mxu0 %v451_v17  ;;  %1430 = vmatprep.mubr.f32.mxu1 %v147_v19  ;;  %v542_v17 = vld [vmem:[%s7609_s0 + $0x1080] sm:$0xff] }
 0x12d   :  { %2480 = vmatprep.mubr.f32.mxu0 %v465_v22  ;;  %3673 = vmatpush1.bf16.msra.mxu1 %v3672_v21  ;;  %v238_v19 = vld [vmem:[%s7609_s0 + $0x700] sm:$0xff]  ;;  %v556_v21 = vld [vmem:[%s7609_s0 + $0x10f0] sm:$0xff]  ;;  %v237_v22 = vld [vmem:[%s7609_s0 + $0x6f8] sm:$0xff] }
 0x12e   :  { %3674 = vmatprep.subr.bf16.mxu1 %v4471_v0 }
 0x12f   :  { %1431 = vmatmul.mubr.f32.gmra.mrb[20].mxu1 %v146_v26  ;;  %v569_v26 = vld [vmem:[%s7609_s0 + $0x1158] sm:$0xff] }
 0x130   :  { %2481 = vmatmul.mubr.f32.gmra.mrb[68].mxu0 %v464_v28  ;;  %1435 = vmatprep.mubr.f32.mxu1 %v160_v29  ;;  %v250_v28 = vld [vmem:[%s7609_s0 + $0x760] sm:$0xff]  ;;  %v568_v29 = vld [vmem:[%s7609_s0 + $0x1150] sm:$0xff] }
 0x131   :  { %2485 = vmatprep.mubr.f32.mxu0 %v478_v32  ;;  %3676 = vmatpush1.bf16.msra.mxu1 %v3675_v31  ;;  %v264_v31 = vld [vmem:[%s7609_s0 + $0x7d0] sm:$0xff]  ;;  %v582_v32 = vld [vmem:[%s7609_s0 + $0x11c0] sm:$0xff] }
 0x132   :  { %3677 = vmatprep.subr.bf16.mxu1 %v4471_v0 }
 0x133   :  { %1436 = vmatmul.mubr.f32.gmra.mrb[22].mxu1 %v159_v37  ;;  %v277_v37 = vld [vmem:[%s7609_s0 + $0x838] sm:$0xff] }
 0x134   :  { %2486 = vmatmul.mubr.f32.gmra.mrb[70].mxu0 %v477_v38  ;;  %1440 = vmatprep.mubr.f32.mxu1 %v173_v39  ;;  %v595_v38 = vld [vmem:[%s7609_s0 + $0x1228] sm:$0xff]  ;;  %v276_v39 = vld [vmem:[%s7609_s0 + $0x830] sm:$0xff] }
 0x135   :  { %2490 = vmatprep.mubr.f32.mxu0 %v491_v42  ;;  %3679 = vmatpush1.bf16.msra.mxu1 %v3678_v40  ;;  %v594_v40 = vld [vmem:[%s7609_s0 + $0x1220] sm:$0xff] }
 0x136   :  { %3680 = vmatprep.subr.bf16.mxu1 %v4471_v0  ;;  %v290_v42 = vld [vmem:[%s7609_s0 + $0x8a0] sm:$0xff] }
 0x137   :  { %1441 = vmatmul.mubr.f32.gmra.mrb[24].mxu1 %v172_v46  ;;  %v607_v46 = vld [vmem:[%s7609_s0 + $0x1288] sm:$0xff] }
 0x138   :  { %2491 = vmatmul.mubr.f32.gmra.mrb[72].mxu0 %v490_v47  ;;  %1445 = vmatprep.mubr.f32.mxu1 %v186_v48  ;;  %v303_v47 = vld [vmem:[%s7609_s0 + $0x908] sm:$0xff]  ;;  %v621_v48 = vld [vmem:[%s7609_s0 + $0x12f8] sm:$0xff] }
 0x139   :  { %2495 = vmatprep.mubr.f32.mxu0 %v504_v51  ;;  %3682 = vmatpush1.bf16.msra.mxu1 %v3681_v49  ;;  %v302_v49 = vld [vmem:[%s7609_s0 + $0x900] sm:$0xff]  ;;  %v620_v51 = vld [vmem:[%s7609_s0 + $0x12f0] sm:$0xff] }
 0x13a   :  { %3683 = vmatprep.subr.bf16.mxu1 %v4471_v0 }
 0x13b   :  { %1446 = vmatmul.mubr.f32.gmra.mrb[26].mxu1 %v185_v54  ;;  %v315_v54 = vld [vmem:[%s7609_s0 + $0x968] sm:$0xff] }
 0x13c   :  { %2496 = vmatmul.mubr.f32.gmra.mrb[74].mxu0 %v503_v55  ;;  %1450 = vmatprep.mubr.f32.mxu1 %v199_v57  ;;  %v633_v55 = vld [vmem:[%s7609_s0 + $0x1358] sm:$0xff] }
 0x13d   :  { %2500 = vmatprep.mubr.f32.mxu0 %v517_v59  ;;  %3685 = vmatpush1.bf16.msra.mxu1 %v3684_v58  ;;  %v329_v57 = vld [vmem:[%s7609_s0 + $0x9d8] sm:$0xff]  ;;  %v647_v58 = vld [vmem:[%s7609_s0 + $0x13c8] sm:$0xff]  ;;  %v328_v59 = vld [vmem:[%s7609_s0 + $0x9d0] sm:$0xff] }
 0x13e   :  { %3686 = vmatprep.subr.bf16.mxu1 %v4471_v0 }
 0x13f   :  { %1451 = vmatmul.mubr.f32.gmra.mrb[28].mxu1 %v198_v63  ;;  %v25_v63 = vld [vmem:[%s7609_s0 + $0x58] sm:$0xff] }
 0x140   :  { %2501 = vmatmul.mubr.f32.gmra.mrb[76].mxu0 %v516_v1  ;;  %1455 = vmatprep.mubr.f32.mxu1 %v212_v2  ;;  %v843_v1 = vld [vmem:[%s7608_s1 + $0x600] sm:$0xff]  ;;  %v844_v2 = vld [vmem:[%s7608_s1 + $0x608] sm:$0xff] }
 0x141   :  { %2505 = vmatprep.mubr.f32.mxu0 %v530_v4  ;;  %3688 = vmatpush1.bf16.msra.mxu1 %v3687_v3  ;;  %v341_v3 = vld [vmem:[%s7609_s0 + $0xa38] sm:$0xff]  ;;  %v24_v4 = vld [vmem:[%s7609_s0 + $0x50] sm:$0xff] }
 0x142   :  { %3689 = vmatprep.subr.bf16.mxu1 %v4471_v0 }
 0x143   :  { %1456 = vmatmul.mubr.f32.gmra.mrb[30].mxu1 %v211_v6  ;;  %v3837_v6 = vpack.c.bf16 %v844_v2, %v843_v1  ;;  %v142_v1 = vld [vmem:[%s7609_s0 + $0x400] sm:$0xff] }
 0x144   :  { %2506 = vmatmul.mubr.f32.gmra.mrb[78].mxu0 %v529_v10  ;;  %1460 = vmatprep.mubr.f32.mxu1 %v225_v11  ;;  %v845_v10 = vld [vmem:[%s7608_s1 + $0x610] sm:$0xff]  ;;  %v846_v11 = vld [vmem:[%s7608_s1 + $0x618] sm:$0xff]  ;;  %v458_v2 = vld [vmem:[%s7609_s0 + $0xde0] sm:$0xff] }
 0x145   :  { %2510 = vmatprep.mubr.f32.mxu0 %v543_v15  ;;  %3691 = vmatpush1.bf16.msra.mxu1 %v3690_v14  ;;  %v354_v14 = vld [vmem:[%s7609_s0 + $0xaa0] sm:$0xff]  ;;  %v37_v15 = vld [vmem:[%s7609_s0 + $0xb8] sm:$0xff] }
 0x146   :  { %3848 = vmatprep.subr.bf16.mxu1 %v4471_v0 }
 0x147   :  { %1461 = vmatmul.mubr.f32.gmra.mrb[32].mxu1 %v224_v16  ;;  %v368_v16 = vld [vmem:[%s7609_s0 + $0xb10] sm:$0xff] }
 0x148   :  { %2511 = vmatmul.mubr.f32.gmra.mrb[80].mxu0 %v542_v17  ;;  %1465 = vmatprep.mubr.f32.mxu1 %v238_v19  ;;  %v3840_v17 = vpack.c.bf16 %v846_v11, %v845_v10  ;;  %v51_v19 = vld [vmem:[%s7609_s0 + $0x128] sm:$0xff]  ;;  %v485_v10 = vld [vmem:[%s7609_s0 + $0xeb8] sm:$0xff]  ;;  %v168_v11 = vld [vmem:[%s7609_s0 + $0x4d0] sm:$0xff] }
 0x149   :  { %2515 = vmatprep.mubr.f32.mxu0 %v556_v21  ;;  %v847_v21 = vld [vmem:[%s7608_s1 + $0x620] sm:$0xff] }
 0x14b   :  { %1466 = vmatmul.mubr.f32.gmra.mrb[34].mxu1 %v237_v22  ;;  %v848_v22 = vld [vmem:[%s7608_s1 + $0x628] sm:$0xff] }
 0x14c   :  { %2516 = vmatmul.mubr.f32.gmra.mrb[82].mxu0 %v555_v23  ;;  %1470 = vmatprep.mubr.f32.mxu1 %v251_v25  ;;  %v367_v23 = vld [vmem:[%s7609_s0 + $0xb08] sm:$0xff]  ;;  %v50_v25 = vld [vmem:[%s7609_s0 + $0x120] sm:$0xff] }
 0x14d   :  { %2520 = vmatprep.mubr.f32.mxu0 %v569_v26  ;;  %v381_v26 = vld [vmem:[%s7609_s0 + $0xb78] sm:$0xff] }
 0x14f   :  { %1471 = vmatmul.mubr.f32.gmra.mrb[36].mxu1 %v250_v28  ;;  %v3843_v28 = vpack.c.bf16 %v848_v22, %v847_v21  ;;  %v180_v21 = vld [vmem:[%s7609_s0 + $0x530] sm:$0xff]  ;;  %v511_v22 = vld [vmem:[%s7609_s0 + $0xf88] sm:$0xff] }
 0x150   :  { %2521 = vmatmul.mubr.f32.gmra.mrb[84].mxu0 %v568_v29  ;;  %1475 = vmatprep.mubr.f32.mxu1 %v264_v31  ;;  %v64_v29 = vld [vmem:[%s7609_s0 + $0x190] sm:$0xff] }
 0x151   :  { %2525 = vmatprep.mubr.f32.mxu0 %v582_v32  ;;  %v380_v31 = vld [vmem:[%s7609_s0 + $0xb70] sm:$0xff]  ;;  %v63_v32 = vld [vmem:[%s7609_s0 + $0x188] sm:$0xff] }
 0x153   :  { %1476 = vmatmul.mubr.f32.gmra.mrb[38].mxu1 %v263_v33  ;;  %v394_v33 = vld [vmem:[%s7609_s0 + $0xbe0] sm:$0xff] }
 0x154   :  { %2526 = vmatmul.mubr.f32.gmra.mrb[86].mxu0 %v581_v35  ;;  %1480 = vmatprep.mubr.f32.mxu1 %v277_v37  ;;  %v77_v35 = vld [vmem:[%s7609_s0 + $0x1f8] sm:$0xff] }
 0x155   :  { %2530 = vmatprep.mubr.f32.mxu0 %v595_v38  ;;  %v393_v37 = vld [vmem:[%s7609_s0 + $0xbd8] sm:$0xff]  ;;  %v76_v38 = vld [vmem:[%s7609_s0 + $0x1f0] sm:$0xff] }
 0x157   :  { %1481 = vmatmul.mubr.f32.gmra.mrb[40].mxu1 %v276_v39  ;;  %v407_v39 = vld [vmem:[%s7609_s0 + $0xc48] sm:$0xff] }
 0x158   :  { %2531 = vmatmul.mubr.f32.gmra.mrb[88].mxu0 %v594_v40  ;;  %1485 = vmatprep.mubr.f32.mxu1 %v290_v42  ;;  %v90_v40 = vld [vmem:[%s7609_s0 + $0x260] sm:$0xff] }
 0x159   :  { %2535 = vmatprep.mubr.f32.mxu0 %v608_v43  ;;  %v406_v42 = vld [vmem:[%s7609_s0 + $0xc40] sm:$0xff]  ;;  %v89_v43 = vld [vmem:[%s7609_s0 + $0x258] sm:$0xff] }
 0x15b   :  { %1486 = vmatmul.mubr.f32.gmra.mrb[42].mxu1 %v289_v45  ;;  %v420_v45 = vld [vmem:[%s7609_s0 + $0xcb0] sm:$0xff] }
 0x15c   :  { %2536 = vmatmul.mubr.f32.gmra.mrb[90].mxu0 %v607_v46  ;;  %1490 = vmatprep.mubr.f32.mxu1 %v303_v47  ;;  %v103_v46 = vld [vmem:[%s7609_s0 + $0x2c8] sm:$0xff] }
 0x15d   :  { %2540 = vmatprep.mubr.f32.mxu0 %v621_v48  ;;  %v419_v47 = vld [vmem:[%s7609_s0 + $0xca8] sm:$0xff]  ;;  %v849_v48 = vld [vmem:[%s7608_s1 + $0x630] sm:$0xff] }
 0x15f   :  { %1491 = vmatmul.mubr.f32.gmra.mrb[44].mxu1 %v302_v49  ;;  %v850_v49 = vld [vmem:[%s7608_s1 + $0x638] sm:$0xff] }
 0x160   :  { %2541 = vmatmul.mubr.f32.gmra.mrb[92].mxu0 %v620_v51  ;;  %1495 = vmatprep.mubr.f32.mxu1 %v316_v52  ;;  %v102_v51 = vld [vmem:[%s7609_s0 + $0x2c0] sm:$0xff]  ;;  %v433_v52 = vld [vmem:[%s7609_s0 + $0xd18] sm:$0xff] }
 0x161   :  { %2545 = vmatprep.mubr.f32.mxu0 %v634_v53  ;;  %v3846_v53 = vpack.c.bf16 %v850_v49, %v849_v48  ;;  %v245_v48 = vld [vmem:[%s7609_s0 + $0x738] sm:$0xff]  ;;  %v576_v49 = vld [vmem:[%s7609_s0 + $0x1190] sm:$0xff] }
 0x163   :  { %1496 = vmatmul.mubr.f32.gmra.mrb[46].mxu1 %v315_v54  ;;  %v116_v54 = vld [vmem:[%s7609_s0 + $0x330] sm:$0xff] }
 0x164   :  { %2546 = vmatmul.mubr.f32.gmra.mrb[94].mxu0 %v633_v55  ;;  %1500 = vmatprep.mubr.f32.mxu1 %v329_v57  ;;  %v432_v55 = vld [vmem:[%s7609_s0 + $0xd10] sm:$0xff]  ;;  %v115_v57 = vld [vmem:[%s7609_s0 + $0x328] sm:$0xff] }
 0x165   :  { %2550 = vmatprep.mubr.f32.mxu0 %v647_v58  ;;  %v446_v58 = vld [vmem:[%s7609_s0 + $0xd80] sm:$0xff] }
 0x167   :  { %1501 = vmatmul.mubr.f32.gmra.mrb[48].mxu1 %v328_v59  ;;  %v129_v59 = vld [vmem:[%s7609_s0 + $0x398] sm:$0xff] }
 0x168   :  { %2551 = vmatmul.mubr.f32.gmra.mrb[96].mxu0 %v646_v60  ;;  %1505 = vmatprep.mubr.f32.mxu1 %v342_v61  ;;  %v445_v60 = vld [vmem:[%s7609_s0 + $0xd78] sm:$0xff]  ;;  %v128_v61 = vld [vmem:[%s7609_s0 + $0x390] sm:$0xff] }
 0x169   :  { %2620 = vmatprep.mubr.f32.mxu0 %v25_v63  ;;  %v459_v63 = vld [vmem:[%s7609_s0 + $0xde8] sm:$0xff] }
 0x16b   :  { %1506 = vmatmul.mubr.f32.gmra.mrb[50].mxu1 %v341_v3  ;;  %v141_v3 = vld [vmem:[%s7609_s0 + $0x3f8] sm:$0xff] }
 0x16c   :  { %2621 = vmatmul.mubr.f32.vlgmr.msra.gmra.mrb[0].mxu0 %v24_v4  ;;  %1510 = vmatprep.mubr.f32.mxu1 %v355_v7  ;;  %v472_v4 = vld [vmem:[%s7609_s0 + $0xe50] sm:$0xff]  ;;  %v471_v7 = vld [vmem:[%s7609_s0 + $0xe48] sm:$0xff] }
 0x16d   :  { %3838 = vmatpush3.bf16.msra.mxu0 %v3837_v6  ;;  %2625 = vmatprep.mubr.f32.mxu0 %v38_v9  ;;  %v155_v6 = vld [vmem:[%s7609_s0 + $0x468] sm:$0xff]  ;;  %v154_v9 = vld [vmem:[%s7609_s0 + $0x460] sm:$0xff] }
 0x16e   :  { %3839 = vmatprep.subr.bf16.mxu0 %v4471_v0 }
 0x16f   :  { %1511 = vmatmul.mubr.f32.gmra.mrb[52].mxu1 %v354_v14  ;;  %v484_v14 = vld [vmem:[%s7609_s0 + $0xeb0] sm:$0xff] }
 0x170   :  { %2626 = vmatmul.mubr.f32.gmra.mrb[2].mxu0 %v37_v15  ;;  %1515 = vmatprep.mubr.f32.mxu1 %v368_v16  ;;  %v167_v15 = vld [vmem:[%s7609_s0 + $0x4c8] sm:$0xff]  ;;  %v498_v16 = vld [vmem:[%s7609_s0 + $0xf20] sm:$0xff] }
 0x171   :  { %2630 = vmatprep.mubr.f32.mxu0 %v51_v19  ;;  %3841 = vmatpush3.bf16.msra.mxu0 %v3840_v17  ;;  %v181_v17 = vld [vmem:[%s7609_s0 + $0x538] sm:$0xff] }
 0x172   :  { %3842 = vmatprep.subr.bf16.mxu0 %v4471_v0  ;;  %v497_v19 = vld [vmem:[%s7609_s0 + $0xf18] sm:$0xff] }
 0x173   :  { %1516 = vmatmul.mubr.f32.gmra.mrb[54].mxu1 %v367_v23  ;;  %v194_v23 = vld [vmem:[%s7609_s0 + $0x5a0] sm:$0xff] }
 0x174   :  { %2631 = vmatmul.mubr.f32.gmra.mrb[4].mxu0 %v50_v25  ;;  %1520 = vmatprep.mubr.f32.mxu1 %v381_v26  ;;  %v510_v25 = vld [vmem:[%s7609_s0 + $0xf80] sm:$0xff]  ;;  %v193_v26 = vld [vmem:[%s7609_s0 + $0x598] sm:$0xff] }
 0x175   :  { %2635 = vmatprep.mubr.f32.mxu0 %v64_v29  ;;  %3844 = vmatpush3.bf16.msra.mxu0 %v3843_v28  ;;  %v524_v28 = vld [vmem:[%s7609_s0 + $0xff0] sm:$0xff]  ;;  %v207_v29 = vld [vmem:[%s7609_s0 + $0x608] sm:$0xff] }
 0x176   :  { %3845 = vmatprep.subr.bf16.mxu0 %v4471_v0 }
 0x177   :  { %1521 = vmatmul.mubr.f32.gmra.mrb[56].mxu1 %v380_v31  ;;  %v523_v31 = vld [vmem:[%s7609_s0 + $0xfe8] sm:$0xff] }
 0x178   :  { %2636 = vmatmul.mubr.f32.gmra.mrb[6].mxu0 %v63_v32  ;;  %1525 = vmatprep.mubr.f32.mxu1 %v394_v33  ;;  %v206_v32 = vld [vmem:[%s7609_s0 + $0x600] sm:$0xff]  ;;  %v537_v33 = vld [vmem:[%s7609_s0 + $0x1058] sm:$0xff] }
 0x179   :  { %2640 = vmatprep.mubr.f32.mxu0 %v77_v35  ;;  %3847 = vmatpush3.bf16.msra.mxu0 %v3846_v53  ;;  %v220_v35 = vld [vmem:[%s7609_s0 + $0x670] sm:$0xff]  ;;  %v258_v53 = vld [vmem:[%s7609_s0 + $0x7a0] sm:$0xff] }
 0x17b   :  { %1526 = vmatmul.mubr.f32.gmra.mrb[58].mxu1 %v393_v37  ;;  %v536_v37 = vld [vmem:[%s7609_s0 + $0x1050] sm:$0xff] }
 0x17c   :  { %2641 = vmatmul.mubr.f32.gmra.mrb[8].mxu0 %v76_v38  ;;  %1530 = vmatprep.mubr.f32.mxu1 %v407_v39  ;;  %v219_v38 = vld [vmem:[%s7609_s0 + $0x668] sm:$0xff]  ;;  %v550_v39 = vld [vmem:[%s7609_s0 + $0x10c0] sm:$0xff] }
 0x17d   :  { %2645 = vmatprep.mubr.f32.mxu0 %v90_v40  ;;  %v233_v40 = vld [vmem:[%s7609_s0 + $0x6d8] sm:$0xff] }
 0x17f   :  { %1531 = vmatmul.mubr.f32.gmra.mrb[60].mxu1 %v406_v42  ;;  %v549_v42 = vld [vmem:[%s7609_s0 + $0x10b8] sm:$0xff] }
 0x180   :  { %2646 = vmatmul.mubr.f32.gmra.mrb[10].mxu0 %v89_v43  ;;  %1535 = vmatprep.mubr.f32.mxu1 %v420_v45  ;;  %v232_v43 = vld [vmem:[%s7609_s0 + $0x6d0] sm:$0xff]  ;;  %v563_v45 = vld [vmem:[%s7609_s0 + $0x1128] sm:$0xff] }
 0x181   :  { %2650 = vmatprep.mubr.f32.mxu0 %v103_v46  ;;  %v246_v46 = vld [vmem:[%s7609_s0 + $0x740] sm:$0xff] }
 0x183   :  { %1536 = vmatmul.mubr.f32.gmra.mrb[62].mxu1 %v419_v47  ;;  %v562_v47 = vld [vmem:[%s7609_s0 + $0x1120] sm:$0xff] }
 0x184   :  { %2651 = vmatmul.mubr.f32.gmra.mrb[12].mxu0 %v102_v51  ;;  %1540 = vmatprep.mubr.f32.mxu1 %v433_v52  ;;  %v259_v51 = vld [vmem:[%s7609_s0 + $0x7a8] sm:$0xff] }
 0x185   :  { %2655 = vmatprep.mubr.f32.mxu0 %v116_v54  ;;  %v575_v52 = vld [vmem:[%s7609_s0 + $0x1188] sm:$0xff]  ;;  %v589_v54 = vld [vmem:[%s7609_s0 + $0x11f8] sm:$0xff] }
 0x187   :  { %1541 = vmatmul.mubr.f32.gmra.mrb[64].mxu1 %v432_v55  ;;  %v272_v55 = vld [vmem:[%s7609_s0 + $0x810] sm:$0xff] }
 0x188   :  { %2656 = vmatmul.mubr.f32.gmra.mrb[14].mxu0 %v115_v57  ;;  %1545 = vmatprep.mubr.f32.mxu1 %v446_v58  ;;  %v588_v57 = vld [vmem:[%s7609_s0 + $0x11f0] sm:$0xff]  ;;  %v271_v58 = vld [vmem:[%s7609_s0 + $0x808] sm:$0xff] }
 0x189   :  { %2660 = vmatprep.mubr.f32.mxu0 %v129_v59  ;;  %v602_v59 = vld [vmem:[%s7609_s0 + $0x1260] sm:$0xff] }
 0x18b   :  { %1546 = vmatmul.mubr.f32.gmra.mrb[66].mxu1 %v445_v60  ;;  %v285_v60 = vld [vmem:[%s7609_s0 + $0x878] sm:$0xff] }
 0x18c   :  { %2661 = vmatmul.mubr.f32.gmra.mrb[16].mxu0 %v128_v61  ;;  %1550 = vmatprep.mubr.f32.mxu1 %v459_v63  ;;  %v601_v61 = vld [vmem:[%s7609_s0 + $0x1258] sm:$0xff]  ;;  %v284_v63 = vld [vmem:[%s7609_s0 + $0x870] sm:$0xff] }
 0x18d   :  { %2665 = vmatprep.mubr.f32.mxu0 %v142_v1  ;;  %v615_v1 = vld [vmem:[%s7609_s0 + $0x12c8] sm:$0xff] }
 0x18f   :  { %1551 = vmatmul.mubr.f32.gmra.mrb[68].mxu1 %v458_v2  ;;  %v298_v2 = vld [vmem:[%s7609_s0 + $0x8e0] sm:$0xff] }
 0x190   :  { %2666 = vmatmul.mubr.f32.gmra.mrb[18].mxu0 %v141_v3  ;;  %1555 = vmatprep.mubr.f32.mxu1 %v472_v4  ;;  %v614_v3 = vld [vmem:[%s7609_s0 + $0x12c0] sm:$0xff]  ;;  %v297_v4 = vld [vmem:[%s7609_s0 + $0x8d8] sm:$0xff] }
 0x191   :  { %2670 = vmatprep.mubr.f32.mxu0 %v155_v6  ;;  %v628_v6 = vld [vmem:[%s7609_s0 + $0x1330] sm:$0xff] }
 0x193   :  { %1556 = vmatmul.mubr.f32.gmra.mrb[70].mxu1 %v471_v7  ;;  %v311_v7 = vld [vmem:[%s7609_s0 + $0x948] sm:$0xff] }
 0x194   :  { %2671 = vmatmul.mubr.f32.gmra.mrb[20].mxu0 %v154_v9  ;;  %1560 = vmatprep.mubr.f32.mxu1 %v485_v10  ;;  %v627_v9 = vld [vmem:[%s7609_s0 + $0x1328] sm:$0xff]  ;;  %v310_v10 = vld [vmem:[%s7609_s0 + $0x940] sm:$0xff] }
 0x195   :  { %2675 = vmatprep.mubr.f32.mxu0 %v168_v11  ;;  %v641_v11 = vld [vmem:[%s7609_s0 + $0x1398] sm:$0xff] }
 0x197   :  { %1561 = vmatmul.mubr.f32.gmra.mrb[72].mxu1 %v484_v14  ;;  %v324_v14 = vld [vmem:[%s7609_s0 + $0x9b0] sm:$0xff] }
 0x198   :  { %2676 = vmatmul.mubr.f32.gmra.mrb[22].mxu0 %v167_v15  ;;  %1565 = vmatprep.mubr.f32.mxu1 %v498_v16  ;;  %v640_v15 = vld [vmem:[%s7609_s0 + $0x1390] sm:$0xff]  ;;  %v323_v16 = vld [vmem:[%s7609_s0 + $0x9a8] sm:$0xff] }
 0x199   :  { %2680 = vmatprep.mubr.f32.mxu0 %v181_v17  ;;  %v19_v17 = vld [vmem:[%s7609_s0 + $0x28] sm:$0xff] }
 0x19b   :  { %1566 = vmatmul.mubr.f32.gmra.mrb[74].mxu1 %v497_v19  ;;  %v337_v19 = vld [vmem:[%s7609_s0 + $0xa18] sm:$0xff] }
 0x19c   :  { %2681 = vmatmul.mubr.f32.gmra.mrb[24].mxu0 %v180_v21  ;;  %1570 = vmatprep.mubr.f32.mxu1 %v511_v22  ;;  %v18_v21 = vld [vmem:[%s7609_s0 + $0x20] sm:$0xff]  ;;  %v336_v22 = vld [vmem:[%s7609_s0 + $0xa10] sm:$0xff] }
 0x19d   :  { %2685 = vmatprep.mubr.f32.mxu0 %v194_v23  ;;  %v32_v23 = vld [vmem:[%s7609_s0 + $0x90] sm:$0xff] }
 0x19f   :  { %1571 = vmatmul.mubr.f32.gmra.mrb[76].mxu1 %v510_v25  ;;  %v350_v25 = vld [vmem:[%s7609_s0 + $0xa80] sm:$0xff] }
 0x1a0   :  { %2686 = vmatmul.mubr.f32.gmra.mrb[26].mxu0 %v193_v26  ;;  %1575 = vmatprep.mubr.f32.mxu1 %v524_v28  ;;  %v31_v26 = vld [vmem:[%s7609_s0 + $0x88] sm:$0xff]  ;;  %v349_v28 = vld [vmem:[%s7609_s0 + $0xa78] sm:$0xff] }
 0x1a1   :  { %2690 = vmatprep.mubr.f32.mxu0 %v207_v29  ;;  %v45_v29 = vld [vmem:[%s7609_s0 + $0xf8] sm:$0xff] }
 0x1a3   :  { %1576 = vmatmul.mubr.f32.gmra.mrb[78].mxu1 %v523_v31  ;;  %v363_v31 = vld [vmem:[%s7609_s0 + $0xae8] sm:$0xff] }
 0x1a4   :  { %2691 = vmatmul.mubr.f32.gmra.mrb[28].mxu0 %v206_v32  ;;  %1580 = vmatprep.mubr.f32.mxu1 %v537_v33  ;;  %v362_v32 = vld [vmem:[%s7609_s0 + $0xae0] sm:$0xff] }
 0x1a5   :  { %2695 = vmatprep.mubr.f32.mxu0 %v220_v35  ;;  %v58_v33 = vld [vmem:[%s7609_s0 + $0x160] sm:$0xff]  ;;  %v376_v35 = vld [vmem:[%s7609_s0 + $0xb50] sm:$0xff] }
 0x1a7   :  { %1581 = vmatmul.mubr.f32.gmra.mrb[80].mxu1 %v536_v37  ;;  %v57_v37 = vld [vmem:[%s7609_s0 + $0x158] sm:$0xff] }
 0x1a8   :  { %2696 = vmatmul.mubr.f32.gmra.mrb[30].mxu0 %v219_v38  ;;  %1585 = vmatprep.mubr.f32.mxu1 %v550_v39  ;;  %v375_v38 = vld [vmem:[%s7609_s0 + $0xb48] sm:$0xff]  ;;  %v389_v39 = vld [vmem:[%s7609_s0 + $0xbb8] sm:$0xff] }
 0x1a9   :  { %2700 = vmatprep.mubr.f32.mxu0 %v233_v40  ;;  %v70_v40 = vld [vmem:[%s7609_s0 + $0x1c0] sm:$0xff] }
 0x1ab   :  { %1586 = vmatmul.mubr.f32.gmra.mrb[82].mxu1 %v549_v42  ;;  %v388_v42 = vld [vmem:[%s7609_s0 + $0xbb0] sm:$0xff] }
 0x1ac   :  { %2701 = vmatmul.mubr.f32.gmra.mrb[32].mxu0 %v232_v43  ;;  %1590 = vmatprep.mubr.f32.mxu1 %v563_v45  ;;  %v402_v43 = vld [vmem:[%s7609_s0 + $0xc20] sm:$0xff]  ;;  %v83_v45 = vld [vmem:[%s7609_s0 + $0x228] sm:$0xff] }
 0x1ad   :  { %2705 = vmatprep.mubr.f32.mxu0 %v246_v46  ;;  %v401_v46 = vld [vmem:[%s7609_s0 + $0xc18] sm:$0xff] }
 0x1af   :  { %1591 = vmatmul.mubr.f32.gmra.mrb[84].mxu1 %v562_v47  ;;  %v415_v47 = vld [vmem:[%s7609_s0 + $0xc88] sm:$0xff] }
 0x1b0   :  { %2706 = vmatmul.mubr.f32.gmra.mrb[34].mxu0 %v245_v48  ;;  %1595 = vmatprep.mubr.f32.mxu1 %v576_v49  ;;  %v96_v48 = vld [vmem:[%s7609_s0 + $0x290] sm:$0xff]  ;;  %v414_v49 = vld [vmem:[%s7609_s0 + $0xc80] sm:$0xff] }
 0x1b1   :  { %2710 = vmatprep.mubr.f32.mxu0 %v259_v51  ;;  %v428_v51 = vld [vmem:[%s7609_s0 + $0xcf0] sm:$0xff] }
 0x1b3   :  { %1596 = vmatmul.mubr.f32.gmra.mrb[86].mxu1 %v575_v52  ;;  %v109_v52 = vld [vmem:[%s7609_s0 + $0x2f8] sm:$0xff] }
 0x1b4   :  { %2711 = vmatmul.mubr.f32.gmra.mrb[36].mxu0 %v258_v53  ;;  %1600 = vmatprep.mubr.f32.mxu1 %v589_v54  ;;  %v427_v53 = vld [vmem:[%s7609_s0 + $0xce8] sm:$0xff]  ;;  %v441_v54 = vld [vmem:[%s7609_s0 + $0xd58] sm:$0xff] }
 0x1b5   :  { %2715 = vmatprep.mubr.f32.mxu0 %v272_v55  ;;  %v122_v55 = vld [vmem:[%s7609_s0 + $0x360] sm:$0xff] }
 0x1b7   :  { %1601 = vmatmul.mubr.f32.gmra.mrb[88].mxu1 %v588_v57  ;;  %v440_v57 = vld [vmem:[%s7609_s0 + $0xd50] sm:$0xff] }
 0x1b8   :  { %2716 = vmatmul.mubr.f32.gmra.mrb[38].mxu0 %v271_v58  ;;  %1605 = vmatprep.mubr.f32.mxu1 %v602_v59  ;;  %v454_v58 = vld [vmem:[%s7609_s0 + $0xdc0] sm:$0xff]  ;;  %v135_v59 = vld [vmem:[%s7609_s0 + $0x3c8] sm:$0xff] }
 0x1b9   :  { %2720 = vmatprep.mubr.f32.mxu0 %v285_v60  ;;  %v453_v60 = vld [vmem:[%s7609_s0 + $0xdb8] sm:$0xff] }
 0x1bb   :  { %1606 = vmatmul.mubr.f32.gmra.mrb[90].mxu1 %v601_v61  ;;  %v467_v61 = vld [vmem:[%s7609_s0 + $0xe28] sm:$0xff] }
 0x1bc   :  { %2721 = vmatmul.mubr.f32.gmra.mrb[40].mxu0 %v284_v63  ;;  %1610 = vmatprep.mubr.f32.mxu1 %v615_v1  ;;  %v148_v63 = vld [vmem:[%s7609_s0 + $0x430] sm:$0xff]  ;;  %v466_v1 = vld [vmem:[%s7609_s0 + $0xe20] sm:$0xff] }
 0x1bd   :  { %2725 = vmatprep.mubr.f32.mxu0 %v298_v2  ;;  %v480_v2 = vld [vmem:[%s7609_s0 + $0xe90] sm:$0xff] }
 0x1bf   :  { %1611 = vmatmul.mubr.f32.gmra.mrb[92].mxu1 %v614_v3  ;;  %v161_v3 = vld [vmem:[%s7609_s0 + $0x498] sm:$0xff] }
 0x1c0   :  { %2726 = vmatmul.mubr.f32.gmra.mrb[42].mxu0 %v297_v4  ;;  %1615 = vmatprep.mubr.f32.mxu1 %v628_v6  ;;  %v479_v4 = vld [vmem:[%s7609_s0 + $0xe88] sm:$0xff]  ;;  %v493_v6 = vld [vmem:[%s7609_s0 + $0xef8] sm:$0xff] }
 0x1c1   :  { %2730 = vmatprep.mubr.f32.mxu0 %v311_v7  ;;  %v174_v7 = vld [vmem:[%s7609_s0 + $0x500] sm:$0xff] }
 0x1c3   :  { %1616 = vmatmul.mubr.f32.gmra.mrb[94].mxu1 %v627_v9  ;;  %v492_v9 = vld [vmem:[%s7609_s0 + $0xef0] sm:$0xff] }
 0x1c4   :  { %2731 = vmatmul.mubr.f32.gmra.mrb[44].mxu0 %v310_v10  ;;  %1620 = vmatprep.mubr.f32.mxu1 %v641_v11  ;;  %v506_v10 = vld [vmem:[%s7609_s0 + $0xf60] sm:$0xff]  ;;  %v187_v11 = vld [vmem:[%s7609_s0 + $0x568] sm:$0xff] }
 0x1c5   :  { %2735 = vmatprep.mubr.f32.mxu0 %v324_v14  ;;  %v505_v14 = vld [vmem:[%s7609_s0 + $0xf58] sm:$0xff] }
 0x1c7   :  { %1621 = vmatmul.mubr.f32.gmra.mrb[96].mxu1 %v640_v15  ;;  %v519_v15 = vld [vmem:[%s7609_s0 + $0xfc8] sm:$0xff] }
 0x1c8   :  { %2736 = vmatmul.mubr.f32.gmra.mrb[46].mxu0 %v323_v16  ;;  %1690 = vmatprep.mubr.f32.mxu1 %v19_v17  ;;  %v200_v16 = vld [vmem:[%s7609_s0 + $0x5d0] sm:$0xff]  ;;  %v518_v17 = vld [vmem:[%s7609_s0 + $0xfc0] sm:$0xff] }
 0x1c9   :  { %2740 = vmatprep.mubr.f32.mxu0 %v337_v19  ;;  %v532_v19 = vld [vmem:[%s7609_s0 + $0x1030] sm:$0xff] }
 0x1cb   :  { %1691 = vmatmul.mubr.f32.vlgmr.msra.gmra.mrb[0].mxu1 %v18_v21  ;;  %v213_v21 = vld [vmem:[%s7609_s0 + $0x638] sm:$0xff] }
 0x1cc   :  { %2741 = vmatmul.mubr.f32.gmra.mrb[48].mxu0 %v336_v22  ;;  %1695 = vmatprep.mubr.f32.mxu1 %v32_v23  ;;  %v531_v22 = vld [vmem:[%s7609_s0 + $0x1028] sm:$0xff]  ;;  %v545_v23 = vld [vmem:[%s7609_s0 + $0x1098] sm:$0xff] }
 0x1cd   :  { %3864 = vmatpush1.bf16.msra.mxu1 %v4514_v8  ;;  %2745 = vmatprep.mubr.f32.mxu0 %v350_v25  ;;  %v44_v8 = vld [vmem:[%s7609_s0 + $0xf0] sm:$0xff]  ;;  %v226_v25 = vld [vmem:[%s7609_s0 + $0x6a0] sm:$0xff] }
 0x1ce   :  { %3849 = vmatprep.subr.bf16.mxu1 %v4471_v0 }
 0x1cf   :  { %1696 = vmatmul.mubr.f32.gmra.mrb[2].mxu1 %v31_v26  ;;  %v544_v26 = vld [vmem:[%s7609_s0 + $0x1090] sm:$0xff] }
 0x1d0   :  { %2746 = vmatmul.mubr.f32.gmra.mrb[50].mxu0 %v349_v28  ;;  %1700 = vmatprep.mubr.f32.mxu1 %v45_v29  ;;  %v239_v28 = vld [vmem:[%s7609_s0 + $0x708] sm:$0xff]  ;;  %v557_v29 = vld [vmem:[%s7609_s0 + $0x10f8] sm:$0xff] }
 0x1d1   :  { %2750 = vmatprep.mubr.f32.mxu0 %v363_v31  ;;  %3865 = vmatpush1.bf16.msra.mxu1 %v4524_v12  ;;  %v71_v12 = vld [vmem:[%s7609_s0 + $0x1c8] sm:$0xff] }
 0x1d2   :  { %3850 = vmatprep.subr.bf16.mxu1 %v4471_v0  ;;  %v571_v31 = vld [vmem:[%s7609_s0 + $0x1168] sm:$0xff] }
 0x1d3   :  { %1701 = vmatmul.mubr.f32.gmra.mrb[4].mxu1 %v44_v8  ;;  %v252_v8 = vld [vmem:[%s7609_s0 + $0x770] sm:$0xff] }
 0x1d4   :  { %2751 = vmatmul.mubr.f32.gmra.mrb[52].mxu0 %v362_v32  ;;  %1705 = vmatprep.mubr.f32.mxu1 %v58_v33  ;;  %v570_v32 = vld [vmem:[%s7609_s0 + $0x1160] sm:$0xff] }
 0x1d5   :  { %2755 = vmatprep.mubr.f32.mxu0 %v376_v35  ;;  %3866 = vmatpush1.bf16.msra.mxu1 %v4541_v18  ;;  %v84_v18 = vld [vmem:[%s7609_s0 + $0x230] sm:$0xff]  ;;  %v266_v33 = vld [vmem:[%s7609_s0 + $0x7e0] sm:$0xff] }
 0x1d6   :  { %3851 = vmatprep.subr.bf16.mxu1 %v4471_v0  ;;  %v584_v35 = vld [vmem:[%s7609_s0 + $0x11d0] sm:$0xff] }
 0x1d7   :  { %1706 = vmatmul.mubr.f32.gmra.mrb[6].mxu1 %v57_v37  ;;  %v265_v37 = vld [vmem:[%s7609_s0 + $0x7d8] sm:$0xff] }
 0x1d8   :  { %2756 = vmatmul.mubr.f32.gmra.mrb[54].mxu0 %v375_v38  ;;  %1710 = vmatprep.mubr.f32.mxu1 %v71_v12  ;;  %v583_v38 = vld [vmem:[%s7609_s0 + $0x11c8] sm:$0xff] }
 0x1d9   :  { %2760 = vmatprep.mubr.f32.mxu0 %v389_v39  ;;  %3867 = vmatpush1.bf16.msra.mxu1 %v4558_v24  ;;  %v97_v24 = vld [vmem:[%s7609_s0 + $0x298] sm:$0xff]  ;;  %v279_v12 = vld [vmem:[%s7609_s0 + $0x848] sm:$0xff] }
 0x1da   :  { %3852 = vmatprep.subr.bf16.mxu1 %v4471_v0  ;;  %v597_v39 = vld [vmem:[%s7609_s0 + $0x1238] sm:$0xff] }
 0x1db   :  { %1711 = vmatmul.mubr.f32.gmra.mrb[8].mxu1 %v70_v40  ;;  %v278_v40 = vld [vmem:[%s7609_s0 + $0x840] sm:$0xff] }
 0x1dc   :  { %2761 = vmatmul.mubr.f32.gmra.mrb[56].mxu0 %v388_v42  ;;  %1715 = vmatprep.mubr.f32.mxu1 %v84_v18  ;;  %v596_v42 = vld [vmem:[%s7609_s0 + $0x1230] sm:$0xff] }
 0x1dd   :  { %2765 = vmatprep.mubr.f32.mxu0 %v402_v43  ;;  %3868 = vmatpush1.bf16.msra.mxu1 %v4575_v30  ;;  %v110_v30 = vld [vmem:[%s7609_s0 + $0x300] sm:$0xff]  ;;  %v292_v18 = vld [vmem:[%s7609_s0 + $0x8b0] sm:$0xff] }
 0x1de   :  { %3853 = vmatprep.subr.bf16.mxu1 %v4471_v0  ;;  %v610_v43 = vld [vmem:[%s7609_s0 + $0x12a0] sm:$0xff] }
 0x1df   :  { %1716 = vmatmul.mubr.f32.gmra.mrb[10].mxu1 %v83_v45  ;;  %v291_v45 = vld [vmem:[%s7609_s0 + $0x8a8] sm:$0xff] }
 0x1e0   :  { %2766 = vmatmul.mubr.f32.gmra.mrb[58].mxu0 %v401_v46  ;;  %1720 = vmatprep.mubr.f32.mxu1 %v97_v24  ;;  %v609_v46 = vld [vmem:[%s7609_s0 + $0x1298] sm:$0xff] }
 0x1e1   :  { %2770 = vmatprep.mubr.f32.mxu0 %v415_v47  ;;  %3869 = vmatpush1.bf16.msra.mxu1 %v4592_v36  ;;  %v123_v36 = vld [vmem:[%s7609_s0 + $0x368] sm:$0xff]  ;;  %v305_v24 = vld [vmem:[%s7609_s0 + $0x918] sm:$0xff] }
 0x1e2   :  { %3854 = vmatprep.subr.bf16.mxu1 %v4471_v0  ;;  %v623_v47 = vld [vmem:[%s7609_s0 + $0x1308] sm:$0xff] }
 0x1e3   :  { %1721 = vmatmul.mubr.f32.gmra.mrb[12].mxu1 %v96_v48  ;;  %v304_v48 = vld [vmem:[%s7609_s0 + $0x910] sm:$0xff] }
 0x1e4   :  { %2771 = vmatmul.mubr.f32.gmra.mrb[60].mxu0 %v414_v49  ;;  %1725 = vmatprep.mubr.f32.mxu1 %v110_v30  ;;  %v622_v49 = vld [vmem:[%s7609_s0 + $0x1300] sm:$0xff] }
 0x1e5   :  { %2775 = vmatprep.mubr.f32.mxu0 %v428_v51  ;;  %3870 = vmatpush1.bf16.msra.mxu1 %v4615_v44  ;;  %v136_v44 = vld [vmem:[%s7609_s0 + $0x3d0] sm:$0xff]  ;;  %v318_v30 = vld [vmem:[%s7609_s0 + $0x980] sm:$0xff] }
 0x1e6   :  { %3855 = vmatprep.subr.bf16.mxu1 %v4471_v0  ;;  %v636_v51 = vld [vmem:[%s7609_s0 + $0x1370] sm:$0xff] }
 0x1e7   :  { %1726 = vmatmul.mubr.f32.gmra.mrb[14].mxu1 %v109_v52  ;;  %v317_v52 = vld [vmem:[%s7609_s0 + $0x978] sm:$0xff] }
 0x1e8   :  { %2776 = vmatmul.mubr.f32.gmra.mrb[62].mxu0 %v427_v53  ;;  %1730 = vmatprep.mubr.f32.mxu1 %v123_v36  ;;  %v635_v53 = vld [vmem:[%s7609_s0 + $0x1368] sm:$0xff] }
 0x1e9   :  { %2780 = vmatprep.mubr.f32.mxu0 %v441_v54  ;;  %3871 = vmatpush1.bf16.msra.mxu1 %v4632_v50  ;;  %v149_v50 = vld [vmem:[%s7609_s0 + $0x438] sm:$0xff]  ;;  %v331_v36 = vld [vmem:[%s7609_s0 + $0x9e8] sm:$0xff] }
 0x1ea   :  { %3856 = vmatprep.subr.bf16.mxu1 %v4471_v0  ;;  %v649_v54 = vld [vmem:[%s7609_s0 + $0x13d8] sm:$0xff] }
 0x1eb   :  { %1731 = vmatmul.mubr.f32.gmra.mrb[16].mxu1 %v122_v55  ;;  %v330_v55 = vld [vmem:[%s7609_s0 + $0x9e0] sm:$0xff] }
 0x1ec   :  { %2781 = vmatmul.mubr.f32.gmra.mrb[64].mxu0 %v440_v57  ;;  %1735 = vmatprep.mubr.f32.mxu1 %v136_v44  ;;  %v648_v57 = vld [vmem:[%s7609_s0 + $0x13d0] sm:$0xff] }
 0x1ed   :  { %2785 = vmatprep.mubr.f32.mxu0 %v454_v58  ;;  %3872 = vmatpush1.bf16.msra.mxu1 %v4649_v56  ;;  %v162_v56 = vld [vmem:[%s7609_s0 + $0x4a0] sm:$0xff]  ;;  %v344_v44 = vld [vmem:[%s7609_s0 + $0xa50] sm:$0xff]  ;;  %v343_v58 = vld [vmem:[%s7609_s0 + $0xa48] sm:$0xff] }
 0x1ee   :  { %3857 = vmatprep.subr.bf16.mxu1 %v4471_v0 }
 0x1ef   :  { %1736 = vmatmul.mubr.f32.gmra.mrb[18].mxu1 %v135_v59  ;;  %v4473_v59 = vmov 0.0  }
 0x1f0   :  { %2786 = vmatmul.mubr.f32.gmra.mrb[66].mxu0 %v453_v60  ;;  %1740 = vmatprep.mubr.f32.mxu1 %v149_v50  ;;  %v26_v60 = vld [vmem:[%s7609_s0 + $0x60] sm:$0xff]  ;;  %v357_v50 = vld [vmem:[%s7609_s0 + $0xab8] sm:$0xff] }
 0x1f1   :  { %2790 = vmatprep.mubr.f32.mxu0 %v467_v61  ;;  %3873 = vmatpush1.bf16.msra.mxu1 %v4666_v62  ;;  %v175_v62 = vld [vmem:[%s7609_s0 + $0x508] sm:$0xff]  ;;  %v356_v61 = vld [vmem:[%s7609_s0 + $0xab0] sm:$0xff] }
 0x1f2   :  { %3858 = vmatprep.subr.bf16.mxu1 %v4471_v0 }
 0x1f3   :  { %1741 = vmatmul.mubr.f32.gmra.mrb[20].mxu1 %v148_v63  ;;  %v39_v63 = vld [vmem:[%s7609_s0 + $0xc8] sm:$0xff] }
 0x1f4   :  { %2791 = vmatmul.mubr.f32.gmra.mrb[68].mxu0 %v466_v1  ;;  %1745 = vmatprep.mubr.f32.mxu1 %v162_v56  ;;  %v370_v1 = vld [vmem:[%s7609_s0 + $0xb20] sm:$0xff]  ;;  %v369_v56 = vld [vmem:[%s7609_s0 + $0xb18] sm:$0xff] }
 0x1f5   :  { %2795 = vmatprep.mubr.f32.mxu0 %v480_v2  ;;  %3874 = vmatpush1.bf16.msra.mxu1 %v4683_v5  ;;  %v188_v5 = vld [vmem:[%s7609_s0 + $0x570] sm:$0xff] }
 0x1f6   :  { %3859 = vmatprep.subr.bf16.mxu1 %v4471_v0  ;;  %v52_v2 = vld [vmem:[%s7609_s0 + $0x130] sm:$0xff] }
 0x1f7   :  { %1746 = vmatmul.mubr.f32.gmra.mrb[22].mxu1 %v161_v3  ;;  %v383_v3 = vld [vmem:[%s7609_s0 + $0xb88] sm:$0xff] }
 0x1f8   :  { %2796 = vmatmul.mubr.f32.gmra.mrb[70].mxu0 %v479_v4  ;;  %1750 = vmatprep.mubr.f32.mxu1 %v175_v62  ;;  %v382_v4 = vld [vmem:[%s7609_s0 + $0xb80] sm:$0xff]  ;;  %v65_v62 = vld [vmem:[%s7609_s0 + $0x198] sm:$0xff] }
 0x1f9   :  { %2800 = vmatprep.mubr.f32.mxu0 %v493_v6  ;;  %3875 = vmatpush1.bf16.msra.mxu1 %v4700_v13  ;;  %v201_v13 = vld [vmem:[%s7609_s0 + $0x5d8] sm:$0xff]  ;;  %v396_v6 = vld [vmem:[%s7609_s0 + $0xbf0] sm:$0xff] }
 0x1fa   :  { %3860 = vmatprep.subr.bf16.mxu1 %v4471_v0 }
 0x1fb   :  { %1751 = vmatmul.mubr.f32.gmra.mrb[24].mxu1 %v174_v7  ;;  %v395_v7 = vld [vmem:[%s7609_s0 + $0xbe8] sm:$0xff] }
 0x1fc   :  { %2801 = vmatmul.mubr.f32.gmra.mrb[72].mxu0 %v492_v9  ;;  %1755 = vmatprep.mubr.f32.mxu1 %v188_v5  ;;  %v78_v9 = vld [vmem:[%s7609_s0 + $0x200] sm:$0xff]  ;;  %v409_v5 = vld [vmem:[%s7609_s0 + $0xc58] sm:$0xff] }
 0x1fd   :  { %2805 = vmatprep.mubr.f32.mxu0 %v506_v10  ;;  %3876 = vmatpush1.bf16.msra.mxu1 %v4717_v20  ;;  %v214_v20 = vld [vmem:[%s7609_s0 + $0x640] sm:$0xff]  ;;  %v408_v10 = vld [vmem:[%s7609_s0 + $0xc50] sm:$0xff] }
 0x1fe   :  { %3861 = vmatprep.subr.bf16.mxu1 %v4471_v0 }
 0x1ff   :  { %1756 = vmatmul.mubr.f32.gmra.mrb[26].mxu1 %v187_v11  ;;  %v91_v11 = vld [vmem:[%s7609_s0 + $0x268] sm:$0xff] }
 0x200   :  { %2806 = vmatmul.mubr.f32.gmra.mrb[74].mxu0 %v505_v14  ;;  %1760 = vmatprep.mubr.f32.mxu1 %v201_v13  ;;  %v422_v14 = vld [vmem:[%s7609_s0 + $0xcc0] sm:$0xff]  ;;  %v421_v13 = vld [vmem:[%s7609_s0 + $0xcb8] sm:$0xff] }
 0x201   :  { %2810 = vmatprep.mubr.f32.mxu0 %v519_v15  ;;  %3877 = vmatpush1.bf16.msra.mxu1 %v4734_v27  ;;  %v227_v27 = vld [vmem:[%s7609_s0 + $0x6a8] sm:$0xff]  ;;  %v104_v15 = vld [vmem:[%s7609_s0 + $0x2d0] sm:$0xff] }
 0x202   :  { %3862 = vmatprep.subr.bf16.mxu1 %v4471_v0 }
 0x203   :  { %1761 = vmatmul.mubr.f32.gmra.mrb[28].mxu1 %v200_v16  ;;  %v435_v16 = vld [vmem:[%s7609_s0 + $0xd28] sm:$0xff] }
 0x204   :  { %2811 = vmatmul.mubr.f32.gmra.mrb[76].mxu0 %v518_v17  ;;  %1765 = vmatprep.mubr.f32.mxu1 %v214_v20  ;;  %v434_v17 = vld [vmem:[%s7609_s0 + $0xd20] sm:$0xff]  ;;  %v117_v20 = vld [vmem:[%s7609_s0 + $0x338] sm:$0xff] }
 0x205   :  { %2815 = vmatprep.mubr.f32.mxu0 %v532_v19  ;;  %3878 = vmatpush1.bf16.msra.mxu1 %v4751_v34  ;;  %v240_v34 = vld [vmem:[%s7609_s0 + $0x710] sm:$0xff] }
 0x206   :  { %3863 = vmatprep.subr.bf16.mxu1 %v4471_v0  ;;  %v558_v0 = vld [vmem:[%s7609_s0 + $0x1100] sm:$0xff]  ;;  %v448_v19 = vld [vmem:[%s7609_s0 + $0xd90] sm:$0xff] }
 0x207   :  { %1766 = vmatmul.mubr.f32.gmra.mrb[30].mxu1 %v213_v21  ;;  %v447_v21 = vld [vmem:[%s7609_s0 + $0xd88] sm:$0xff] }
 0x208   :  { %2816 = vmatmul.mubr.f32.gmra.mrb[78].mxu0 %v531_v22  ;;  %1770 = vmatprep.mubr.f32.mxu1 %v227_v27  ;;  %v130_v22 = vld [vmem:[%s7609_s0 + $0x3a0] sm:$0xff]  ;;  %v461_v27 = vld [vmem:[%s7609_s0 + $0xdf8] sm:$0xff] }
 0x209   :  { %2820 = vmatprep.mubr.f32.mxu0 %v545_v23  ;;  %3879 = vmatpush1.bf16.msra.mxu1 %v4768_v41  ;;  %v253_v41 = vld [vmem:[%s7609_s0 + $0x778] sm:$0xff]  ;;  %v460_v23 = vld [vmem:[%s7609_s0 + $0xdf0] sm:$0xff] }
 0x20b   :  { %1771 = vmatmul.mubr.f32.gmra.mrb[32].mxu1 %v226_v25  ;;  %v143_v25 = vld [vmem:[%s7609_s0 + $0x408] sm:$0xff] }
 0x20c   :  { %2821 = vmatmul.mubr.f32.gmra.mrb[80].mxu0 %v544_v26  ;;  %1775 = vmatprep.mubr.f32.mxu1 %v240_v34  ;;  %v474_v26 = vld [vmem:[%s7609_s0 + $0xe60] sm:$0xff]  ;;  %v473_v34 = vld [vmem:[%s7609_s0 + $0xe58] sm:$0xff] }
 0x20d   :  { %2825 = vmatprep.mubr.f32.mxu0 %v558_v0  ;;  %v156_v0 = vld [vmem:[%s7609_s0 + $0x470] sm:$0xff] }
 0x20f   :  { %1776 = vmatmul.mubr.f32.gmra.mrb[34].mxu1 %v239_v28  ;;  %v487_v28 = vld [vmem:[%s7609_s0 + $0xec8] sm:$0xff] }
 0x210   :  { %2826 = vmatmul.mubr.f32.gmra.mrb[82].mxu0 %v557_v29  ;;  %1780 = vmatprep.mubr.f32.mxu1 %v253_v41  ;;  %v486_v29 = vld [vmem:[%s7609_s0 + $0xec0] sm:$0xff]  ;;  %v169_v41 = vld [vmem:[%s7609_s0 + $0x4d8] sm:$0xff] }
 0x211   :  { %2830 = vmatprep.mubr.f32.mxu0 %v571_v31  ;;  %v500_v31 = vld [vmem:[%s7609_s0 + $0xf30] sm:$0xff] }
 0x213   :  { %1781 = vmatmul.mubr.f32.gmra.mrb[36].mxu1 %v252_v8  ;;  %v499_v8 = vld [vmem:[%s7609_s0 + $0xf28] sm:$0xff] }
 0x214   :  { %2831 = vmatmul.mubr.f32.gmra.mrb[84].mxu0 %v570_v32  ;;  %1785 = vmatprep.mubr.f32.mxu1 %v266_v33  ;;  %v182_v32 = vld [vmem:[%s7609_s0 + $0x540] sm:$0xff]  ;;  %v513_v33 = vld [vmem:[%s7609_s0 + $0xf98] sm:$0xff] }
 0x215   :  { %2835 = vmatprep.mubr.f32.mxu0 %v584_v35  ;;  %v512_v35 = vld [vmem:[%s7609_s0 + $0xf90] sm:$0xff] }
 0x217   :  { %1786 = vmatmul.mubr.f32.gmra.mrb[38].mxu1 %v265_v37  ;;  %v195_v37 = vld [vmem:[%s7609_s0 + $0x5a8] sm:$0xff] }
 0x218   :  { %2836 = vmatmul.mubr.f32.gmra.mrb[86].mxu0 %v583_v38  ;;  %1790 = vmatprep.mubr.f32.mxu1 %v279_v12  ;;  %v526_v38 = vld [vmem:[%s7609_s0 + $0x1000] sm:$0xff]  ;;  %v525_v12 = vld [vmem:[%s7609_s0 + $0xff8] sm:$0xff] }
 0x219   :  { %2840 = vmatprep.mubr.f32.mxu0 %v597_v39  ;;  %v208_v39 = vld [vmem:[%s7609_s0 + $0x610] sm:$0xff] }
 0x21b   :  { %1791 = vmatmul.mubr.f32.gmra.mrb[40].mxu1 %v278_v40  ;;  %v539_v40 = vld [vmem:[%s7609_s0 + $0x1068] sm:$0xff] }
 0x21c   :  { %2841 = vmatmul.mubr.f32.gmra.mrb[88].mxu0 %v596_v42  ;;  %1795 = vmatprep.mubr.f32.mxu1 %v292_v18  ;;  %v538_v42 = vld [vmem:[%s7609_s0 + $0x1060] sm:$0xff]  ;;  %v221_v18 = vld [vmem:[%s7609_s0 + $0x678] sm:$0xff] }
 0x21d   :  { %2845 = vmatprep.mubr.f32.mxu0 %v610_v43  ;;  %v552_v43 = vld [vmem:[%s7609_s0 + $0x10d0] sm:$0xff] }
 0x21f   :  { %1796 = vmatmul.mubr.f32.gmra.mrb[42].mxu1 %v291_v45  ;;  %v551_v45 = vld [vmem:[%s7609_s0 + $0x10c8] sm:$0xff] }
 0x220   :  { %2846 = vmatmul.mubr.f32.gmra.mrb[90].mxu0 %v609_v46  ;;  %1800 = vmatprep.mubr.f32.mxu1 %v305_v24  ;;  %v234_v46 = vld [vmem:[%s7609_s0 + $0x6e0] sm:$0xff]  ;;  %v565_v24 = vld [vmem:[%s7609_s0 + $0x1138] sm:$0xff] }
 0x221   :  { %2850 = vmatprep.mubr.f32.mxu0 %v623_v47  ;;  %v564_v47 = vld [vmem:[%s7609_s0 + $0x1130] sm:$0xff] }
 0x223   :  { %1801 = vmatmul.mubr.f32.gmra.mrb[44].mxu1 %v304_v48  ;;  %v247_v48 = vld [vmem:[%s7609_s0 + $0x748] sm:$0xff] }
 0x224   :  { %2851 = vmatmul.mubr.f32.gmra.mrb[92].mxu0 %v622_v49  ;;  %1805 = vmatprep.mubr.f32.mxu1 %v318_v30  ;;  %v578_v49 = vld [vmem:[%s7609_s0 + $0x11a0] sm:$0xff]  ;;  %v577_v30 = vld [vmem:[%s7609_s0 + $0x1198] sm:$0xff] }
 0x225   :  { %2855 = vmatprep.mubr.f32.mxu0 %v636_v51  ;;  %v260_v51 = vld [vmem:[%s7609_s0 + $0x7b0] sm:$0xff] }
 0x227   :  { %1806 = vmatmul.mubr.f32.gmra.mrb[46].mxu1 %v317_v52  ;;  %v591_v52 = vld [vmem:[%s7609_s0 + $0x1208] sm:$0xff] }
 0x228   :  { %2856 = vmatmul.mubr.f32.gmra.mrb[94].mxu0 %v635_v53  ;;  %1810 = vmatprep.mubr.f32.mxu1 %v331_v36  ;;  %v590_v53 = vld [vmem:[%s7609_s0 + $0x1200] sm:$0xff]  ;;  %v273_v36 = vld [vmem:[%s7609_s0 + $0x818] sm:$0xff] }
 0x229   :  { %2860 = vmatprep.mubr.f32.mxu0 %v649_v54  ;;  %v604_v54 = vld [vmem:[%s7609_s0 + $0x1270] sm:$0xff] }
 0x22b   :  { %1811 = vmatmul.mubr.f32.gmra.mrb[48].mxu1 %v330_v55  ;;  %v603_v55 = vld [vmem:[%s7609_s0 + $0x1268] sm:$0xff] }
 0x22c   :  { %2861 = vmatmul.mubr.f32.gmra.mrb[96].mxu0 %v648_v57  ;;  %1815 = vmatprep.mubr.f32.mxu1 %v344_v44  ;;  %v286_v57 = vld [vmem:[%s7609_s0 + $0x880] sm:$0xff]  ;;  %v617_v44 = vld [vmem:[%s7609_s0 + $0x12d8] sm:$0xff] }
 0x22d   :  { %3401 = vmatprep.mubr.msk.f32.mxu0 %vm4472_vm0, %v4473_v59 }
 0x22f   :  { %1816 = vmatmul.mubr.f32.gmra.mrb[50].mxu1 %v343_v58  ;;  %v616_v58 = vld [vmem:[%s7609_s0 + $0x12d0] sm:$0xff] }
 0x230   :  { %3402 = vmatmul.mubr.msk.f32.vlgmr.msra.gmra.mrb[0].mxu0 %vm858_vm1, %v26_v60  ;;  %1820 = vmatprep.mubr.f32.mxu1 %v357_v50  ;;  %v299_v60 = vld [vmem:[%s7609_s0 + $0x8e8] sm:$0xff]  ;;  %v630_v50 = vld [vmem:[%s7609_s0 + $0x1340] sm:$0xff] }
 0x231   :  { %3404 = vmatprep.mubr.msk.f32.mxu0 %vm4472_vm0, %v4473_v59 }
 0x233   :  { %1821 = vmatmul.mubr.f32.gmra.mrb[52].mxu1 %v356_v61  ;;  %v629_v61 = vld [vmem:[%s7609_s0 + $0x1338] sm:$0xff] }
 0x234   :  { %3405 = vmatmul.mubr.msk.f32.gmra.mrb[2].mxu0 %vm858_vm1, %v39_v63  ;;  %1825 = vmatprep.mubr.f32.mxu1 %v370_v1  ;;  %v312_v63 = vld [vmem:[%s7609_s0 + $0x950] sm:$0xff]  ;;  %v643_v1 = vld [vmem:[%s7609_s0 + $0x13a8] sm:$0xff] }
 0x235   :  { %3407 = vmatprep.mubr.msk.f32.mxu0 %vm4472_vm0, %v4473_v59 }
 0x237   :  { %1826 = vmatmul.mubr.f32.gmra.mrb[54].mxu1 %v369_v56  ;;  %v642_v56 = vld [vmem:[%s7609_s0 + $0x13a0] sm:$0xff] }
 0x238   :  { %3408 = vmatmul.mubr.msk.f32.gmra.mrb[4].mxu0 %vm858_vm1, %v52_v2  ;;  %1830 = vmatprep.mubr.f32.mxu1 %v383_v3  ;;  %v325_v2 = vld [vmem:[%s7609_s0 + $0x9b8] sm:$0xff]  ;;  %v346_v3 = vld [vmem:[%s7609_s0 + $0xa60] sm:$0xff] }
 0x239   :  { %3410 = vmatprep.mubr.msk.f32.mxu0 %vm4472_vm0, %v4473_v59 }
 0x23b   :  { %1831 = vmatmul.mubr.f32.gmra.mrb[56].mxu1 %v382_v4  ;;  %v345_v4 = vld [vmem:[%s7609_s0 + $0xa58] sm:$0xff] }
 0x23c   :  { %3411 = vmatmul.mubr.msk.f32.gmra.mrb[6].mxu0 %vm858_vm1, %v65_v62  ;;  %1835 = vmatprep.mubr.f32.mxu1 %v396_v6  ;;  %v338_v62 = vld [vmem:[%s7609_s0 + $0xa20] sm:$0xff]  ;;  %v359_v6 = vld [vmem:[%s7609_s0 + $0xac8] sm:$0xff] }
 0x23d   :  { %3413 = vmatprep.mubr.msk.f32.mxu0 %vm4472_vm0, %v4473_v59 }
 0x23f   :  { %1836 = vmatmul.mubr.f32.gmra.mrb[58].mxu1 %v395_v7  ;;  %v358_v7 = vld [vmem:[%s7609_s0 + $0xac0] sm:$0xff] }
 0x240   :  { %3414 = vmatmul.mubr.msk.f32.gmra.mrb[8].mxu0 %vm858_vm1, %v78_v9  ;;  %1840 = vmatprep.mubr.f32.mxu1 %v409_v5  ;;  %v351_v9 = vld [vmem:[%s7609_s0 + $0xa88] sm:$0xff]  ;;  %v372_v5 = vld [vmem:[%s7609_s0 + $0xb30] sm:$0xff] }
 0x241   :  { %3416 = vmatprep.mubr.msk.f32.mxu0 %vm4472_vm0, %v4473_v59 }
 0x243   :  { %1841 = vmatmul.mubr.f32.gmra.mrb[60].mxu1 %v408_v10  ;;  %v371_v10 = vld [vmem:[%s7609_s0 + $0xb28] sm:$0xff] }
 0x244   :  { %3417 = vmatmul.mubr.msk.f32.gmra.mrb[10].mxu0 %vm858_vm1, %v91_v11  ;;  %1845 = vmatprep.mubr.f32.mxu1 %v422_v14  ;;  %v364_v11 = vld [vmem:[%s7609_s0 + $0xaf0] sm:$0xff]  ;;  %v385_v14 = vld [vmem:[%s7609_s0 + $0xb98] sm:$0xff] }
 0x245   :  { %3419 = vmatprep.mubr.msk.f32.mxu0 %vm4472_vm0, %v4473_v59 }
 0x247   :  { %1846 = vmatmul.mubr.f32.gmra.mrb[62].mxu1 %v421_v13  ;;  %v384_v13 = vld [vmem:[%s7609_s0 + $0xb90] sm:$0xff] }
 0x248   :  { %3420 = vmatmul.mubr.msk.f32.gmra.mrb[12].mxu0 %vm858_vm1, %v104_v15  ;;  %1850 = vmatprep.mubr.f32.mxu1 %v435_v16  ;;  %v377_v15 = vld [vmem:[%s7609_s0 + $0xb58] sm:$0xff]  ;;  %v398_v16 = vld [vmem:[%s7609_s0 + $0xc00] sm:$0xff] }
 0x249   :  { %3422 = vmatprep.mubr.msk.f32.mxu0 %vm4472_vm0, %v4473_v59 }
 0x24b   :  { %1851 = vmatmul.mubr.f32.gmra.mrb[64].mxu1 %v434_v17  ;;  %v397_v17 = vld [vmem:[%s7609_s0 + $0xbf8] sm:$0xff] }
 0x24c   :  { %3423 = vmatmul.mubr.msk.f32.gmra.mrb[14].mxu0 %vm858_vm1, %v117_v20  ;;  %1855 = vmatprep.mubr.f32.mxu1 %v448_v19  ;;  %v390_v20 = vld [vmem:[%s7609_s0 + $0xbc0] sm:$0xff]  ;;  %v411_v19 = vld [vmem:[%s7609_s0 + $0xc68] sm:$0xff] }
 0x24d   :  { %3425 = vmatprep.mubr.msk.f32.mxu0 %vm4472_vm0, %v4473_v59 }
 0x24f   :  { %1856 = vmatmul.mubr.f32.gmra.mrb[66].mxu1 %v447_v21 }
 0x250   :  { %3426 = vmatmul.mubr.msk.f32.gmra.mrb[16].mxu0 %vm858_vm1, %v130_v22  ;;  %1860 = vmatprep.mubr.f32.mxu1 %v461_v27  ;;  %v410_v27 = vld [vmem:[%s7609_s0 + $0xc60] sm:$0xff] }
 0x251   :  { %3428 = vmatprep.mubr.msk.f32.mxu0 %vm4472_vm0, %v4473_v59 }
 0x253   :  { %1861 = vmatmul.mubr.f32.gmra.mrb[68].mxu1 %v460_v23  ;;  %v403_v23 = vld [vmem:[%s7609_s0 + $0xc28] sm:$0xff] }
 0x254   :  { %3429 = vmatmul.mubr.msk.f32.gmra.mrb[18].mxu0 %vm858_vm1, %v143_v25  ;;  %1865 = vmatprep.mubr.f32.mxu1 %v474_v26  ;;  %v424_v25 = vld [vmem:[%s7609_s0 + $0xcd0] sm:$0xff] }
 0x255   :  { %3431 = vmatprep.mubr.msk.f32.mxu0 %vm4472_vm0, %v4473_v59 }
 0x257   :  { %1866 = vmatmul.mubr.f32.gmra.mrb[70].mxu1 %v473_v34 }
 0x258   :  { %3432 = vmatmul.mubr.msk.f32.gmra.mrb[20].mxu0 %vm858_vm1, %v156_v0  ;;  %1870 = vmatprep.mubr.f32.mxu1 %v487_v28  ;;  %v423_v0 = vld [vmem:[%s7609_s0 + $0xcc8] sm:$0xff]  ;;  %v416_v28 = vld [vmem:[%s7609_s0 + $0xc90] sm:$0xff] }
 0x259   :  { %3434 = vmatprep.mubr.msk.f32.mxu0 %vm4472_vm0, %v4473_v59 }
 0x25b   :  { %1871 = vmatmul.mubr.f32.gmra.mrb[72].mxu1 %v486_v29  ;;  %v437_v29 = vld [vmem:[%s7609_s0 + $0xd38] sm:$0xff] }
 0x25c   :  { %3435 = vmatmul.mubr.msk.f32.gmra.mrb[22].mxu0 %vm858_vm1, %v169_v41  ;;  %1875 = vmatprep.mubr.f32.mxu1 %v500_v31 }
 0x25d   :  { %3437 = vmatprep.mubr.msk.f32.mxu0 %vm4472_vm0, %v4473_v59 }
 0x25f   :  { %1876 = vmatmul.mubr.f32.gmra.mrb[74].mxu1 %v499_v8  ;;  %v436_v8 = vld [vmem:[%s7609_s0 + $0xd30] sm:$0xff] }
 0x260   :  { %3438 = vmatmul.mubr.msk.f32.gmra.mrb[24].mxu0 %vm858_vm1, %v182_v32  ;;  %1880 = vmatprep.mubr.f32.mxu1 %v513_v33  ;;  %v429_v32 = vld [vmem:[%s7609_s0 + $0xcf8] sm:$0xff]  ;;  %v450_v33 = vld [vmem:[%s7609_s0 + $0xda0] sm:$0xff] }
 0x261   :  { %3440 = vmatprep.mubr.msk.f32.mxu0 %vm4472_vm0, %v4473_v59 }
 0x263   :  { %1881 = vmatmul.mubr.f32.gmra.mrb[76].mxu1 %v512_v35 }
 0x264   :  { %3441 = vmatmul.mubr.msk.f32.gmra.mrb[26].mxu0 %vm858_vm1, %v195_v37  ;;  %1885 = vmatprep.mubr.f32.mxu1 %v526_v38  ;;  %v449_v38 = vld [vmem:[%s7609_s0 + $0xd98] sm:$0xff] }
 0x265   :  { %3443 = vmatprep.mubr.msk.f32.mxu0 %vm4472_vm0, %v4473_v59 }
 0x267   :  { %1886 = vmatmul.mubr.f32.gmra.mrb[78].mxu1 %v525_v12  ;;  %v442_v12 = vld [vmem:[%s7609_s0 + $0xd60] sm:$0xff] }
 0x268   :  { %3444 = vmatmul.mubr.msk.f32.gmra.mrb[28].mxu0 %vm858_vm1, %v208_v39  ;;  %1890 = vmatprep.mubr.f32.mxu1 %v539_v40  ;;  %v463_v39 = vld [vmem:[%s7609_s0 + $0xe08] sm:$0xff] }
 0x269   :  { %3446 = vmatprep.mubr.msk.f32.mxu0 %vm4472_vm0, %v4473_v59 }
 0x26b   :  { %1891 = vmatmul.mubr.f32.gmra.mrb[80].mxu1 %v538_v42 }
 0x26c   :  { %3447 = vmatmul.mubr.msk.f32.gmra.mrb[30].mxu0 %vm858_vm1, %v221_v18  ;;  %1895 = vmatprep.mubr.f32.mxu1 %v552_v43  ;;  %v462_v18 = vld [vmem:[%s7609_s0 + $0xe00] sm:$0xff]  ;;  %v455_v43 = vld [vmem:[%s7609_s0 + $0xdc8] sm:$0xff] }
 0x26d   :  { %3449 = vmatprep.mubr.msk.f32.mxu0 %vm4472_vm0, %v4473_v59 }
 0x26f   :  { %1896 = vmatmul.mubr.f32.gmra.mrb[82].mxu1 %v551_v45  ;;  %v476_v45 = vld [vmem:[%s7609_s0 + $0xe70] sm:$0xff] }
 0x270   :  { %3450 = vmatmul.mubr.msk.f32.gmra.mrb[32].mxu0 %vm858_vm1, %v234_v46  ;;  %1900 = vmatprep.mubr.f32.mxu1 %v565_v24 }
 0x271   :  { %3452 = vmatprep.mubr.msk.f32.mxu0 %vm4472_vm0, %v4473_v59 }
 0x273   :  { %1901 = vmatmul.mubr.f32.gmra.mrb[84].mxu1 %v564_v47  ;;  %v475_v47 = vld [vmem:[%s7609_s0 + $0xe68] sm:$0xff] }
 0x274   :  { %3453 = vmatmul.mubr.msk.f32.gmra.mrb[34].mxu0 %vm858_vm1, %v247_v48  ;;  %1905 = vmatprep.mubr.f32.mxu1 %v578_v49  ;;  %v468_v48 = vld [vmem:[%s7609_s0 + $0xe30] sm:$0xff]  ;;  %v489_v49 = vld [vmem:[%s7609_s0 + $0xed8] sm:$0xff] }
 0x275   :  { %3455 = vmatprep.mubr.msk.f32.mxu0 %vm4472_vm0, %v4473_v59 }
 0x277   :  { %1906 = vmatmul.mubr.f32.gmra.mrb[86].mxu1 %v577_v30 }
 0x278   :  { %3456 = vmatmul.mubr.msk.f32.gmra.mrb[36].mxu0 %vm858_vm1, %v260_v51  ;;  %1910 = vmatprep.mubr.f32.mxu1 %v591_v52  ;;  %v488_v52 = vld [vmem:[%s7609_s0 + $0xed0] sm:$0xff] }
 0x279   :  { %3458 = vmatprep.mubr.msk.f32.mxu0 %vm4472_vm0, %v4473_v59 }
 0x27b   :  { %1911 = vmatmul.mubr.f32.gmra.mrb[88].mxu1 %v590_v53  ;;  %v481_v53 = vld [vmem:[%s7609_s0 + $0xe98] sm:$0xff] }
 0x27c   :  { %3459 = vmatmul.mubr.msk.f32.gmra.mrb[38].mxu0 %vm858_vm1, %v273_v36  ;;  %1915 = vmatprep.mubr.f32.mxu1 %v604_v54  ;;  %v502_v36 = vld [vmem:[%s7609_s0 + $0xf40] sm:$0xff] }
 0x27d   :  { %3461 = vmatprep.mubr.msk.f32.mxu0 %vm4472_vm0, %v4473_v59 }
 0x27f   :  { %1916 = vmatmul.mubr.f32.gmra.mrb[90].mxu1 %v603_v55 }
 0x280   :  { %3462 = vmatmul.mubr.msk.f32.gmra.mrb[40].mxu0 %vm858_vm1, %v286_v57  ;;  %1920 = vmatprep.mubr.f32.mxu1 %v617_v44  ;;  %v501_v57 = vld [vmem:[%s7609_s0 + $0xf38] sm:$0xff]  ;;  %v494_v44 = vld [vmem:[%s7609_s0 + $0xf00] sm:$0xff] }
 0x281   :  { %3464 = vmatprep.mubr.msk.f32.mxu0 %vm4472_vm0, %v4473_v59 }
 0x283   :  { %1921 = vmatmul.mubr.f32.gmra.mrb[92].mxu1 %v616_v58  ;;  %v515_v58 = vld [vmem:[%s7609_s0 + $0xfa8] sm:$0xff] }
 0x284   :  { %3465 = vmatmul.mubr.msk.f32.gmra.mrb[42].mxu0 %vm858_vm1, %v299_v60  ;;  %1925 = vmatprep.mubr.f32.mxu1 %v630_v50 }
 0x285   :  { %3467 = vmatprep.mubr.msk.f32.mxu0 %vm4472_vm0, %v4473_v59 }
 0x287   :  { %1926 = vmatmul.mubr.f32.gmra.mrb[94].mxu1 %v629_v61  ;;  %v514_v61 = vld [vmem:[%s7609_s0 + $0xfa0] sm:$0xff] }
 0x288   :  { %3468 = vmatmul.mubr.msk.f32.gmra.mrb[44].mxu0 %vm858_vm1, %v312_v63  ;;  %1930 = vmatprep.mubr.f32.mxu1 %v643_v1  ;;  %v507_v63 = vld [vmem:[%s7609_s0 + $0xf68] sm:$0xff]  ;;  %v528_v1 = vld [vmem:[%s7609_s0 + $0x1010] sm:$0xff] }
 0x289   :  { %3470 = vmatprep.mubr.msk.f32.mxu0 %vm4472_vm0, %v4473_v59 }
 0x28b   :  { %1931 = vmatmul.mubr.f32.gmra.mrb[96].mxu1 %v642_v56 }
 0x28c   :  { %3471 = vmatmul.mubr.msk.f32.gmra.mrb[46].mxu0 %vm858_vm1, %v325_v2  ;;  %2125 = vmatprep.mubr.f32.mxu1 %v346_v3  ;;  %v527_v3 = vld [vmem:[%s7609_s0 + $0x1008] sm:$0xff] }
 0x28d   :  { %3473 = vmatprep.mubr.msk.f32.mxu0 %vm4472_vm0, %v4473_v59 }
 0x28f   :  { %2126 = vmatmul.mubr.f32.vlgmr.msra.gmra.mrb[50].mxu1 %v345_v4  ;;  %v520_v4 = vld [vmem:[%s7609_s0 + $0xfd0] sm:$0xff] }
 0x290   :  { %3474 = vmatmul.mubr.msk.f32.gmra.mrb[48].mxu0 %vm858_vm1, %v338_v62  ;;  %2130 = vmatprep.mubr.f32.mxu1 %v359_v6  ;;  %v541_v62 = vld [vmem:[%s7609_s0 + $0x1078] sm:$0xff] }
 0x291   :  { %3476 = vmatprep.mubr.msk.f32.mxu0 %vm4472_vm0, %v4473_v59 }
 0x293   :  { %2131 = vmatmul.mubr.f32.gmra.mrb[52].mxu1 %v358_v7 }
 0x294   :  { %3477 = vmatmul.mubr.msk.f32.gmra.mrb[50].mxu0 %vm858_vm1, %v351_v9  ;;  %2135 = vmatprep.mubr.f32.mxu1 %v372_v5  ;;  %v540_v9 = vld [vmem:[%s7609_s0 + $0x1070] sm:$0xff]  ;;  %v533_v5 = vld [vmem:[%s7609_s0 + $0x1038] sm:$0xff] }
 0x295   :  { %3479 = vmatprep.mubr.msk.f32.mxu0 %vm4472_vm0, %v4473_v59 }
 0x297   :  { %2136 = vmatmul.mubr.f32.gmra.mrb[54].mxu1 %v371_v10  ;;  %v554_v10 = vld [vmem:[%s7609_s0 + $0x10e0] sm:$0xff] }
 0x298   :  { %3480 = vmatmul.mubr.msk.f32.gmra.mrb[52].mxu0 %vm858_vm1, %v364_v11  ;;  %2140 = vmatprep.mubr.f32.mxu1 %v385_v14 }
 0x299   :  { %3482 = vmatprep.mubr.msk.f32.mxu0 %vm4472_vm0, %v4473_v59 }
 0x29b   :  { %2141 = vmatmul.mubr.f32.gmra.mrb[56].mxu1 %v384_v13  ;;  %v553_v13 = vld [vmem:[%s7609_s0 + $0x10d8] sm:$0xff] }
 0x29c   :  { %3483 = vmatmul.mubr.msk.f32.gmra.mrb[54].mxu0 %vm858_vm1, %v377_v15  ;;  %2145 = vmatprep.mubr.f32.mxu1 %v398_v16  ;;  %v546_v15 = vld [vmem:[%s7609_s0 + $0x10a0] sm:$0xff]  ;;  %v567_v16 = vld [vmem:[%s7609_s0 + $0x1148] sm:$0xff] }
 0x29d   :  { %3485 = vmatprep.mubr.msk.f32.mxu0 %vm4472_vm0, %v4473_v59 }
 0x29e   :  { %v7100_v21 = vpop.f32.mrb[0].mxu1 }
 0x29f   :  { %v1694_v22 = vpop.f32.mrb[1].mxu1  ;;  %2146 = vmatmul.mubr.f32.gmra.mrb[58].mxu1 %v397_v17 }
 0x2a0   :  { %3486 = vmatmul.mubr.msk.f32.gmra.mrb[56].mxu0 %vm858_vm1, %v390_v20  ;;  %2150 = vmatprep.mubr.f32.mxu1 %v411_v19  ;;  %v566_v19 = vld [vmem:[%s7609_s0 + $0x1140] sm:$0xff]  ;;  %v559_v22 = vld [vmem:[%s7609_s0 + $0x1108] sm:$0xff] }
 0x2a1   :  { %3488 = vmatprep.mubr.msk.f32.mxu0 %vm4472_vm0, %v4473_v59 }
 0x2a2   :  { %v7114_v26 = vpop.f32.mrb[2].mxu1 }
 0x2a3   :  { %v1699_v34 = vpop.f32.mrb[3].mxu1  ;;  %2151 = vmatmul.mubr.f32.gmra.mrb[60].mxu1 %v410_v27  ;;  %v580_v27 = vld [vmem:[%s7609_s0 + $0x11b0] sm:$0xff] }
 0x2a4   :  { %3489 = vmatmul.mubr.msk.f32.gmra.mrb[58].mxu0 %vm858_vm1, %v403_v23  ;;  %2155 = vmatprep.mubr.f32.mxu1 %v424_v25  ;;  %v579_v34 = vld [vmem:[%s7609_s0 + $0x11a8] sm:$0xff] }
 0x2a5   :  { %3491 = vmatprep.mubr.msk.f32.mxu0 %vm4472_vm0, %v4473_v59 }
 0x2a6   :  { %v7128_v41 = vpop.f32.mrb[4].mxu1 }
 0x2a7   :  { %v1704_v31 = vpop.f32.mrb[5].mxu1  ;;  %2156 = vmatmul.mubr.f32.gmra.mrb[62].mxu1 %v423_v0  ;;  %v572_v0 = vld [vmem:[%s7609_s0 + $0x1170] sm:$0xff] }
 0x2a8   :  { %3492 = vmatmul.mubr.msk.f32.gmra.mrb[60].mxu0 %vm858_vm1, %v416_v28  ;;  %2160 = vmatprep.mubr.f32.mxu1 %v437_v29  ;;  %v593_v28 = vld [vmem:[%s7609_s0 + $0x1218] sm:$0xff] }
 0x2a9   :  { %3494 = vmatprep.mubr.msk.f32.mxu0 %vm4472_vm0, %v4473_v59 }
 0x2aa   :  { %v7142_v35 = vpop.f32.mrb[6].mxu1 }
 0x2ab   :  { %v1709_v37 = vpop.f32.mrb[7].mxu1  ;;  %2161 = vmatmul.mubr.f32.gmra.mrb[64].mxu1 %v436_v8  ;;  %v592_v8 = vld [vmem:[%s7609_s0 + $0x1210] sm:$0xff] }
 0x2ac   :  { %3495 = vmatmul.mubr.msk.f32.gmra.mrb[62].mxu0 %vm858_vm1, %v429_v32  ;;  %2165 = vmatprep.mubr.f32.mxu1 %v450_v33  ;;  %v585_v32 = vld [vmem:[%s7609_s0 + $0x11d8] sm:$0xff]  ;;  %v606_v33 = vld [vmem:[%s7609_s0 + $0x1280] sm:$0xff] }
 0x2ad   :  { %3497 = vmatprep.mubr.msk.f32.mxu0 %vm4472_vm0, %v4473_v59 }
 0x2ae   :  { %v7156_v40 = vpop.f32.mrb[8].mxu1 }
 0x2af   :  { %v1714_v42 = vpop.f32.mrb[9].mxu1  ;;  %2166 = vmatmul.mubr.f32.gmra.mrb[66].mxu1 %v449_v38 }
 0x2b0   :  { %3498 = vmatmul.mubr.msk.f32.gmra.mrb[64].mxu0 %vm858_vm1, %v442_v12  ;;  %2170 = vmatprep.mubr.f32.mxu1 %v463_v39  ;;  %v605_v12 = vld [vmem:[%s7609_s0 + $0x1278] sm:$0xff]  ;;  %v598_v39 = vld [vmem:[%s7609_s0 + $0x1240] sm:$0xff]  ;;  %v619_v42 = vld [vmem:[%s7609_s0 + $0x12e8] sm:$0xff] }
 0x2b1   :  { %3500 = vmatprep.mubr.msk.f32.mxu0 %vm4472_vm0, %v4473_v59 }
 0x2b2   :  { %v7170_v46 = vpop.f32.mrb[10].mxu1 }
 0x2b3   :  { %v1719_v24 = vpop.f32.mrb[11].mxu1  ;;  %2171 = vmatmul.mubr.f32.gmra.mrb[68].mxu1 %v462_v18 }
 0x2b4   :  { %3501 = vmatmul.mubr.msk.f32.gmra.mrb[66].mxu0 %vm858_vm1, %v455_v43  ;;  %2175 = vmatprep.mubr.f32.mxu1 %v476_v45  ;;  %v618_v45 = vld [vmem:[%s7609_s0 + $0x12e0] sm:$0xff]  ;;  %v611_v24 = vld [vmem:[%s7609_s0 + $0x12a8] sm:$0xff] }
 0x2b5   :  { %3503 = vmatprep.mubr.msk.f32.mxu0 %vm4472_vm0, %v4473_v59 }
 0x2b6   :  { %v7184_v30 = vpop.f32.mrb[12].mxu1 }
 0x2b7   :  { %v1724_v51 = vpop.f32.mrb[13].mxu1  ;;  %2176 = vmatmul.mubr.f32.gmra.mrb[70].mxu1 %v475_v47  ;;  %v632_v47 = vld [vmem:[%s7609_s0 + $0x1350] sm:$0xff] }
 0x2b8   :  { %3504 = vmatmul.mubr.msk.f32.gmra.mrb[68].mxu0 %vm858_vm1, %v468_v48  ;;  %2180 = vmatprep.mubr.f32.mxu1 %v489_v49  ;;  %v631_v51 = vld [vmem:[%s7609_s0 + $0x1348] sm:$0xff] }
 0x2b9   :  { %3506 = vmatprep.mubr.msk.f32.mxu0 %vm4472_vm0, %v4473_v59 }
 0x2ba   :  { %v7198_v54 = vpop.f32.mrb[14].mxu1 }
 0x2bb   :  { %v1729_v55 = vpop.f32.mrb[15].mxu1  ;;  %2181 = vmatmul.mubr.f32.gmra.mrb[72].mxu1 %v488_v52  ;;  %v624_v52 = vld [vmem:[%s7609_s0 + $0x1310] sm:$0xff] }
 0x2bc   :  { %3507 = vmatmul.mubr.msk.f32.gmra.mrb[70].mxu0 %vm858_vm1, %v481_v53  ;;  %2185 = vmatprep.mubr.f32.mxu1 %v502_v36  ;;  %v645_v53 = vld [vmem:[%s7609_s0 + $0x13b8] sm:$0xff] }
 0x2bd   :  { %3509 = vmatprep.mubr.msk.f32.mxu0 %vm4472_vm0, %v4473_v59 }
 0x2be   :  { %v7212_v60 = vpop.f32.mrb[16].mxu1 }
 0x2bf   :  { %v1734_v50 = vpop.f32.mrb[17].mxu1  ;;  %2186 = vmatmul.mubr.f32.gmra.mrb[74].mxu1 %v501_v57  ;;  %v644_v57 = vld [vmem:[%s7609_s0 + $0x13b0] sm:$0xff] }
 0x2c0   :  { %3510 = vmatmul.mubr.msk.f32.gmra.mrb[72].mxu0 %vm858_vm1, %v494_v44  ;;  %2190 = vmatprep.mubr.f32.mxu1 %v515_v58  ;;  %v637_v44 = vld [vmem:[%s7609_s0 + $0x1378] sm:$0xff] }
 0x2c1   :  { %3512 = vmatprep.mubr.msk.f32.mxu0 %vm4472_vm0, %v4473_v59 }
 0x2c2   :  { %v7226_v56 = vpop.f32.mrb[18].mxu1 }
 0x2c3   :  { %v1739_v2 = vpop.f32.mrb[19].mxu1  ;;  %2191 = vmatmul.mubr.f32.gmra.mrb[76].mxu1 %v514_v61  ;;  %v650_v61 = vld [vmem:[%s7609_s0 + $0x13e0] sm:$0xff] }
 0x2c4   :  { %3513 = vmatmul.mubr.msk.f32.gmra.mrb[74].mxu0 %vm858_vm1, %v507_v63  ;;  %2195 = vmatprep.mubr.f32.mxu1 %v528_v1 }
 0x2c5   :  { %3515 = vmatprep.mubr.msk.f32.mxu0 %vm4472_vm0, %v4473_v59 }
 0x2c6   :  { %v7240_v6 = vpop.f32.mrb[20].mxu1 }
 0x2c7   :  { %v1744_v7 = vpop.f32.mrb[21].mxu1  ;;  %2196 = vmatmul.mubr.f32.gmra.mrb[78].mxu1 %v527_v3 }
 0x2c8   :  { %3516 = vmatmul.mubr.msk.f32.gmra.mrb[76].mxu0 %vm858_vm1, %v520_v4  ;;  %2200 = vmatprep.mubr.f32.mxu1 %v541_v62 }
 0x2c9   :  { %3518 = vmatprep.mubr.msk.f32.mxu0 %vm4472_vm0, %v4473_v59 }
 0x2ca   :  { %v7254_v11 = vpop.f32.mrb[22].mxu1 }
 0x2cb   :  { %v1749_v14 = vpop.f32.mrb[23].mxu1  ;;  %2201 = vmatmul.mubr.f32.gmra.mrb[80].mxu1 %v540_v9 }
 0x2cc   :  { %3519 = vmatmul.mubr.msk.f32.gmra.mrb[78].mxu0 %vm858_vm1, %v533_v5  ;;  %2205 = vmatprep.mubr.f32.mxu1 %v554_v10 }
 0x2cd   :  { %3521 = vmatprep.mubr.msk.f32.mxu0 %vm4472_vm0, %v4473_v59 }
 0x2ce   :  { %v7268_v17 = vpop.f32.mrb[24].mxu1 }
 0x2cf   :  { %v1754_v20 = vpop.f32.mrb[25].mxu1  ;;  %2206 = vmatmul.mubr.f32.gmra.mrb[82].mxu1 %v553_v13 }
 0x2d0   :  { %3522 = vmatmul.mubr.msk.f32.gmra.mrb[80].mxu0 %vm858_vm1, %v546_v15  ;;  %2210 = vmatprep.mubr.f32.mxu1 %v567_v16 }
 0x2d1   :  { %3524 = vmatprep.mubr.msk.f32.mxu0 %vm4472_vm0, %v4473_v59 }
 0x2d2   :  { %v7282_v23 = vpop.f32.mrb[26].mxu1 }
 0x2d3   :  { %v1759_v25 = vpop.f32.mrb[27].mxu1  ;;  %2211 = vmatmul.mubr.f32.gmra.mrb[84].mxu1 %v566_v19 }
 0x2d4   :  { %3525 = vmatmul.mubr.msk.f32.gmra.mrb[82].mxu0 %vm858_vm1, %v559_v22  ;;  %2215 = vmatprep.mubr.f32.mxu1 %v580_v27 }
 0x2d5   :  { %3527 = vmatprep.mubr.msk.f32.mxu0 %vm4472_vm0, %v4473_v59 }
 0x2d6   :  { %v7296_v29 = vpop.f32.mrb[28].mxu1 }
 0x2d7   :  { %v1764_v31 = vpop.f32.mrb[29].mxu1  ;;  %2216 = vmatmul.mubr.f32.gmra.mrb[86].mxu1 %v579_v34 }
 0x2d8   :  { %3528 = vmatmul.mubr.msk.f32.gmra.mrb[84].mxu0 %vm858_vm1, %v572_v0  ;;  %2220 = vmatprep.mubr.f32.mxu1 %v593_v28 }
 0x2d9   :  { %3530 = vmatprep.mubr.msk.f32.mxu0 %vm4472_vm0, %v4473_v59 }
 0x2da   :  { %v7310_v37 = vpop.f32.mrb[30].mxu1 }
 0x2db   :  { %v1769_v38 = vpop.f32.mrb[31].mxu1  ;;  %2221 = vmatmul.mubr.f32.gmra.mrb[88].mxu1 %v592_v8 }
 0x2dc   :  { %3531 = vmatmul.mubr.msk.f32.gmra.mrb[86].mxu0 %vm858_vm1, %v585_v32  ;;  %2225 = vmatprep.mubr.f32.mxu1 %v606_v33 }
 0x2dd   :  { %3533 = vmatprep.mubr.msk.f32.mxu0 %vm4472_vm0, %v4473_v59 }
 0x2de   :  { %v7324_v18 = vpop.f32.mrb[32].mxu1 }
 0x2df   :  { %v1774_v43 = vpop.f32.mrb[33].mxu1  ;;  %2226 = vmatmul.mubr.f32.gmra.mrb[90].mxu1 %v605_v12 }
 0x2e0   :  { %3534 = vmatmul.mubr.msk.f32.gmra.mrb[88].mxu0 %vm858_vm1, %v598_v39  ;;  %2230 = vmatprep.mubr.f32.mxu1 %v619_v42 }
 0x2e1   :  { %3536 = vmatprep.mubr.msk.f32.mxu0 %vm4472_vm0, %v4473_v59 }
 0x2e2   :  { %v7338_v48 = vpop.f32.mrb[34].mxu1 }
 0x2e3   :  { %v1779_v49 = vpop.f32.mrb[35].mxu1  ;;  %2231 = vmatmul.mubr.f32.gmra.mrb[92].mxu1 %v618_v45 }
 0x2e4   :  { %3537 = vmatmul.mubr.msk.f32.gmra.mrb[90].mxu0 %vm858_vm1, %v611_v24  ;;  %2235 = vmatprep.mubr.f32.mxu1 %v632_v47 }
 0x2e5   :  { %3539 = vmatprep.mubr.msk.f32.mxu0 %vm4472_vm0, %v4473_v59 }
 0x2e6   :  { %v7352_v36 = vpop.f32.mrb[36].mxu1 }
 0x2e7   :  { %v1784_v55 = vpop.f32.mrb[37].mxu1  ;;  %2236 = vmatmul.mubr.f32.gmra.mrb[94].mxu1 %v631_v51 }
 0x2e8   :  { %3540 = vmatmul.mubr.msk.f32.gmra.mrb[92].mxu0 %vm858_vm1, %v624_v52  ;;  %2240 = vmatprep.mubr.f32.mxu1 %v645_v53 }
 0x2e9   :  { %3542 = vmatprep.mubr.msk.f32.mxu0 %vm4472_vm0, %v4473_v59 }
 0x2ea   :  { %v7363_v58 = vpop.f32.mrb[38].mxu1 }
 0x2eb   :  { %v1789_v50 = vpop.f32.mrb[39].mxu1  ;;  %2241 = vmatmul.mubr.f32.gmra.mrb[96].mxu1 %v644_v57 }
 0x2ec   :  { %3543 = vmatmul.mubr.msk.f32.gmra.mrb[94].mxu0 %vm858_vm1, %v637_v44 }
 0x2ed   :  { %3545 = vmatprep.mubr.msk.f32.mxu0 %vm4472_vm0, %v4473_v59  ;;  %v7385_v59 = vld [vmem:[%s7610_s2] ss:$0 sm:$0xff] }
 0x2ee   :  { %v7371_v63 = vpop.f32.mrb[40].mxu1  ;;  %v3880_v14 = vadd.f32 %v7385_v59, %v7100_v21  ;;  %v3882_v20 = vadd.f32 %v7385_v59, %v7114_v26  ;;  %v3884_v34 = vadd.f32 %v7385_v59, %v7128_v41  ;;  %v3886_v26 = vadd.f32 %v7385_v59, %v7142_v35 }
 0x2ef   :  { %v1794_v1 = vpop.f32.mrb[41].mxu1  ;;  %v3888_v41 = vadd.f32 %v7385_v59, %v7156_v40  ;;  %v3890_v35 = vadd.f32 %v7385_v59, %v7170_v46  ;;  %v3892_v40 = vadd.f32 %v7385_v59, %v7184_v30  ;;  %v3894_v46 = vadd.f32 %v7385_v59, %v7198_v54 }
 0x2f0   :  { %3546 = vmatmul.mubr.msk.f32.gmra.mrb[96].mxu0 %vm858_vm1, %v650_v61  ;;  %v3896_v30 = vadd.f32 %v7385_v59, %v7212_v60  ;;  %v3898_v54 = vadd.f32 %v7385_v59, %v7226_v56  ;;  %v3900_v60 = vadd.f32 %v7385_v59, %v7240_v6  ;;  %v3902_v56 = vadd.f32 %v7385_v59, %v7254_v11 }
 0x2f1   :  { %v3904_v6 = vadd.f32 %v7385_v59, %v7268_v17  ;;  %v3906_v11 = vadd.f32 %v7385_v59, %v7282_v23  ;;  %v3908_v17 = vadd.f32 %v7385_v59, %v7296_v29  ;;  %v3910_v23 = vadd.f32 %v7385_v59, %v7310_v37 }
 0x2f2   :  { %v7374_v2 = vpop.f32.mrb[42].mxu1  ;;  %v3912_v29 = vadd.f32 %v7385_v59, %v7324_v18  ;;  %v3914_v37 = vadd.f32 %v7385_v59, %v7338_v48  ;;  %v3916_v18 = vadd.f32 %v7385_v59, %v7352_v36  ;;  %v3918_v48 = vadd.f32 %v7385_v59, %v7363_v58 }
 0x2f3   :  { %v1799_v3 = vpop.f32.mrb[43].mxu1  ;;  %v3920_v36 = vadd.f32 %v7385_v59, %v7371_v63  ;;  %v3922_v58 = vadd.f32 %v7385_v59, %v7374_v2 }
 0x2f6   :  { %v7376_v4 = vpop.f32.mrb[44].mxu1 }
 0x2f7   :  { %v1804_v62 = vpop.f32.mrb[45].mxu1  ;;  %v3924_v63 = vadd.f32 %v7385_v59, %v7376_v4 }
 0x2fa   :  { %v7378_v7 = vpop.f32.mrb[46].mxu1 }
 0x2fb   :  { %v1809_v9 = vpop.f32.mrb[47].mxu1  ;;  %v3926_v2 = vadd.f32 %v7385_v59, %v7378_v7 }
 0x2fe   :  { %v7380_v5 = vpop.f32.mrb[48].mxu1 }
 0x2ff   :  { %v1814_v10 = vpop.f32.mrb[49].mxu1  ;;  %v3928_v4 = vadd.f32 %v7385_v59, %v7380_v5 }
 0x303   :  { %v2932_v13 = vpop.f32.mrb[0].mxu0 }
 0x304   :  { %v3881_v15 = vadd.f32 %v3880_v14, %v2932_v13  ;;  %v3403_v16 = vpop.f32.mrb[1].mxu0 }
 0x306   :  { %v3176_v19 = vmax.f32 %v3881_v15, 0.0 }
 0x307   :  { %v2937_v22 = vpop.f32.mrb[2].mxu0 }
 0x308   :  { %3225 = vst [vmem:[%s7611_s3] sm:$0xff] %v3176_v19  ;;  %v3883_v27 = vadd.f32 %v3882_v20, %v2937_v22  ;;  %v3406_v25 = vpop.f32.mrb[3].mxu0 }
 0x30a   :  { %v3177_v0 = vmax.f32 %v3883_v27, 0.0 }
 0x30b   :  { %v2942_v28 = vpop.f32.mrb[4].mxu0 }
 0x30c   :  { %3226 = vst [vmem:[%s7611_s3 + $0x8] sm:$0xff] %v3177_v0  ;;  %v3885_v21 = vadd.f32 %v3884_v34, %v2942_v28  ;;  %v3409_v31 = vpop.f32.mrb[5].mxu0 }
 0x30e   :  { %v3178_v8 = vmax.f32 %v3885_v21, 0.0 }
 0x30f   :  { %v2947_v32 = vpop.f32.mrb[6].mxu0 }
 0x310   :  { %3227 = vst [vmem:[%s7611_s3 + $0x10] sm:$0xff] %v3178_v8  ;;  %v3887_v33 = vadd.f32 %v3886_v26, %v2947_v32  ;;  %v3412_v38 = vpop.f32.mrb[7].mxu0 }
 0x312   :  { %v3179_v12 = vmax.f32 %v3887_v33, 0.0 }
 0x313   :  { %v2952_v39 = vpop.f32.mrb[8].mxu0 }
 0x314   :  { %3228 = vst [vmem:[%s7611_s3 + $0x18] sm:$0xff] %v3179_v12  ;;  %v3889_v42 = vadd.f32 %v3888_v41, %v2952_v39  ;;  %v3415_v43 = vpop.f32.mrb[9].mxu0 }
 0x316   :  { %v3180_v45 = vmax.f32 %v3889_v42, 0.0 }
 0x317   :  { %v2957_v24 = vpop.f32.mrb[10].mxu0 }
 0x318   :  { %3229 = vst [vmem:[%s7611_s3 + $0x20] sm:$0xff] %v3180_v45  ;;  %v3891_v47 = vadd.f32 %v3890_v35, %v2957_v24  ;;  %v3418_v49 = vpop.f32.mrb[11].mxu0 }
 0x31a   :  { %v3181_v51 = vmax.f32 %v3891_v47, 0.0 }
 0x31b   :  { %v2962_v52 = vpop.f32.mrb[12].mxu0 }
 0x31c   :  { %3230 = vst [vmem:[%s7611_s3 + $0x28] sm:$0xff] %v3181_v51  ;;  %v3893_v53 = vadd.f32 %v3892_v40, %v2962_v52  ;;  %v3421_v55 = vpop.f32.mrb[13].mxu0 }
 0x31e   :  { %v3182_v57 = vmax.f32 %v3893_v53, 0.0 }
 0x31f   :  { %v2967_v44 = vpop.f32.mrb[14].mxu0 }
 0x320   :  { %3231 = vst [vmem:[%s7611_s3 + $0x30] sm:$0xff] %v3182_v57  ;;  %v3895_v50 = vadd.f32 %v3894_v46, %v2967_v44  ;;  %v3424_v61 = vpop.f32.mrb[15].mxu0 }
 0x322   :  { %v3183_v1 = vmax.f32 %v3895_v50, 0.0 }
 0x323   :  { %v2972_v3 = vpop.f32.mrb[16].mxu0 }
 0x324   :  { %3232 = vst [vmem:[%s7611_s3 + $0x38] sm:$0xff] %v3183_v1  ;;  %v3897_v62 = vadd.f32 %v3896_v30, %v2972_v3  ;;  %v3427_v9 = vpop.f32.mrb[17].mxu0 }
 0x326   :  { %v3184_v10 = vmax.f32 %v3897_v62, 0.0 }
 0x327   :  { %v2977_v14 = vpop.f32.mrb[18].mxu0 }
 0x328   :  { %3233 = vst [vmem:[%s7611_s3 + $0x40] sm:$0xff] %v3184_v10  ;;  %v3899_v13 = vadd.f32 %v3898_v54, %v2977_v14  ;;  %v3430_v15 = vpop.f32.mrb[19].mxu0 }
 0x32a   :  { %v3185_v16 = vmax.f32 %v3899_v13, 0.0 }
 0x32b   :  { %v2982_v20 = vpop.f32.mrb[20].mxu0 }
 0x32c   :  { %3234 = vst [vmem:[%s7611_s3 + $0x48] sm:$0xff] %v3185_v16  ;;  %v3901_v19 = vadd.f32 %v3900_v60, %v2982_v20  ;;  %v3433_v22 = vpop.f32.mrb[21].mxu0 }
 0x32e   :  { %v3186_v27 = vmax.f32 %v3901_v19, 0.0 }
 0x32f   :  { %v2987_v25 = vpop.f32.mrb[22].mxu0 }
 0x330   :  { %3235 = vst [vmem:[%s7611_s3 + $0x50] sm:$0xff] %v3186_v27  ;;  %v3903_v34 = vadd.f32 %v3902_v56, %v2987_v25  ;;  %v3436_v0 = vpop.f32.mrb[23].mxu0 }
 0x332   :  { %v3187_v28 = vmax.f32 %v3903_v34, 0.0 }
 0x333   :  { %v2992_v21 = vpop.f32.mrb[24].mxu0 }
 0x334   :  { %3236 = vst [vmem:[%s7611_s3 + $0x58] sm:$0xff] %v3187_v28  ;;  %v3905_v31 = vadd.f32 %v3904_v6, %v2992_v21  ;;  %v3439_v26 = vpop.f32.mrb[25].mxu0 }
 0x336   :  { %v3188_v8 = vmax.f32 %v3905_v31, 0.0 }
 0x337   :  { %v2997_v32 = vpop.f32.mrb[26].mxu0 }
 0x338   :  { %3237 = vst [vmem:[%s7611_s3 + $0x60] sm:$0xff] %v3188_v8  ;;  %v3907_v33 = vadd.f32 %v3906_v11, %v2997_v32  ;;  %v3442_v38 = vpop.f32.mrb[27].mxu0 }
 0x33a   :  { %v3189_v41 = vmax.f32 %v3907_v33, 0.0 }
 0x33b   :  { %v3002_v12 = vpop.f32.mrb[28].mxu0 }
 0x33c   :  { %3238 = vst [vmem:[%s7611_s3 + $0x68] sm:$0xff] %v3189_v41  ;;  %v3909_v39 = vadd.f32 %v3908_v17, %v3002_v12  ;;  %v3445_v42 = vpop.f32.mrb[29].mxu0 }
 0x33e   :  { %v3190_v43 = vmax.f32 %v3909_v39, 0.0 }
 0x33f   :  { %v3007_v35 = vpop.f32.mrb[30].mxu0 }
 0x340   :  { %3239 = vst [vmem:[%s7611_s3 + $0x70] sm:$0xff] %v3190_v43  ;;  %v3911_v45 = vadd.f32 %v3910_v23, %v3007_v35  ;;  %v3448_v24 = vpop.f32.mrb[31].mxu0 }
 0x342   :  { %v3191_v47 = vmax.f32 %v3911_v45, 0.0 }
 0x343   :  { %v3012_v49 = vpop.f32.mrb[32].mxu0 }
 0x344   :  { %3240 = vst [vmem:[%s7611_s3 + $0x78] sm:$0xff] %v3191_v47  ;;  %v3913_v40 = vadd.f32 %v3912_v29, %v3012_v49  ;;  %v3451_v51 = vpop.f32.mrb[33].mxu0 }
 0x346   :  { %v3192_v52 = vmax.f32 %v3913_v40, 0.0 }
 0x347   :  { %v3017_v53 = vpop.f32.mrb[34].mxu0 }
 0x348   :  { %3241 = vst [vmem:[%s7611_s3 + $0x80] sm:$0xff] %v3192_v52  ;;  %v3915_v55 = vadd.f32 %v3914_v37, %v3017_v53  ;;  %v3454_v46 = vpop.f32.mrb[35].mxu0 }
 0x34a   :  { %v3193_v57 = vmax.f32 %v3915_v55, 0.0 }
 0x34b   :  { %v3022_v44 = vpop.f32.mrb[36].mxu0 }
 0x34c   :  { %3242 = vst [vmem:[%s7611_s3 + $0x88] sm:$0xff] %v3193_v57  ;;  %v3917_v50 = vadd.f32 %v3916_v18, %v3022_v44  ;;  %v3457_v61 = vpop.f32.mrb[37].mxu0 }
 0x34e   :  { %v3194_v30 = vmax.f32 %v3917_v50, 0.0 }
 0x34f   :  { %v3027_v1 = vpop.f32.mrb[38].mxu0 }
 0x350   :  { %3243 = vst [vmem:[%s7611_s3 + $0x90] sm:$0xff] %v3194_v30  ;;  %v3919_v3 = vadd.f32 %v3918_v48, %v3027_v1  ;;  %v3460_v62 = vpop.f32.mrb[39].mxu0 }
 0x352   :  { %v3195_v9 = vmax.f32 %v3919_v3, 0.0 }
 0x353   :  { %v3032_v54 = vpop.f32.mrb[40].mxu0 }
 0x354   :  { %3244 = vst [vmem:[%s7611_s3 + $0x98] sm:$0xff] %v3195_v9  ;;  %v3921_v10 = vadd.f32 %v3920_v36, %v3032_v54  ;;  %v3463_v14 = vpop.f32.mrb[41].mxu0 }
 0x356   :  { %v3196_v13 = vmax.f32 %v3921_v10, 0.0 }
 0x357   :  { %v3037_v15 = vpop.f32.mrb[42].mxu0 }
 0x358   :  { %3245 = vst [vmem:[%s7611_s3 + $0xa0] sm:$0xff] %v3196_v13  ;;  %v3923_v60 = vadd.f32 %v3922_v58, %v3037_v15  ;;  %v3466_v16 = vpop.f32.mrb[43].mxu0 }
 0x35a   :  { %v3197_v20 = vmax.f32 %v3923_v60, 0.0 }
 0x35b   :  { %v3042_v19 = vpop.f32.mrb[44].mxu0 }
 0x35c   :  { %3246 = vst [vmem:[%s7611_s3 + $0xa8] sm:$0xff] %v3197_v20  ;;  %v3925_v22 = vadd.f32 %v3924_v63, %v3042_v19  ;;  %v3469_v56 = vpop.f32.mrb[45].mxu0 }
 0x35e   :  { %v3198_v27 = vmax.f32 %v3925_v22, 0.0 }
 0x35f   :  { %v3047_v25 = vpop.f32.mrb[46].mxu0 }
 0x360   :  { %3247 = vst [vmem:[%s7611_s3 + $0xb0] sm:$0xff] %v3198_v27  ;;  %v3927_v34 = vadd.f32 %v3926_v2, %v3047_v25  ;;  %v3472_v0 = vpop.f32.mrb[47].mxu0 }
 0x362   :  { %v3199_v6 = vmax.f32 %v3927_v34, 0.0  ;;  %v2127_v28 = vpop.f32.mrb[50].mxu1 }
 0x363   :  { %v3052_v21 = vpop.f32.mrb[48].mxu0  ;;  %v2129_v31 = vpop.f32.mrb[51].mxu1  ;;  %v3930_v11 = vadd.f32 %v7385_v59, %v2127_v28 }
 0x364   :  { %3248 = vst [vmem:[%s7611_s3 + $0xb8] sm:$0xff] %v3199_v6  ;;  %v3929_v7 = vadd.f32 %v3928_v4, %v3052_v21  ;;  %v3475_v26 = vpop.f32.mrb[49].mxu0 }
 0x366   :  { %v3200_v8 = vmax.f32 %v3929_v7, 0.0  ;;  %v2132_v32 = vpop.f32.mrb[52].mxu1 }
 0x367   :  { %v3057_v33 = vpop.f32.mrb[50].mxu0  ;;  %v2134_v38 = vpop.f32.mrb[53].mxu1  ;;  %v3932_v41 = vadd.f32 %v7385_v59, %v2132_v32 }
 0x368   :  { %3249 = vst [vmem:[%s7611_s3 + $0xc0] sm:$0xff] %v3200_v8  ;;  %v3931_v5 = vadd.f32 %v3930_v11, %v3057_v33  ;;  %v3478_v17 = vpop.f32.mrb[51].mxu0 }
 0x36a   :  { %v3201_v12 = vmax.f32 %v3931_v5, 0.0  ;;  %v2137_v39 = vpop.f32.mrb[54].mxu1 }
 0x36b   :  { %v3062_v42 = vpop.f32.mrb[52].mxu0  ;;  %v2139_v23 = vpop.f32.mrb[55].mxu1  ;;  %v3934_v45 = vadd.f32 %v7385_v59, %v2137_v39 }
 0x36c   :  { %3250 = vst [vmem:[%s7611_s3 + $0xc8] sm:$0xff] %v3201_v12  ;;  %v3933_v43 = vadd.f32 %v3932_v41, %v3062_v42  ;;  %v3481_v35 = vpop.f32.mrb[53].mxu0 }
 0x36e   :  { %v3202_v24 = vmax.f32 %v3933_v43, 0.0  ;;  %v2142_v29 = vpop.f32.mrb[56].mxu1 }
 0x36f   :  { %v3067_v47 = vpop.f32.mrb[54].mxu0  ;;  %v2144_v49 = vpop.f32.mrb[57].mxu1  ;;  %v3936_v37 = vadd.f32 %v7385_v59, %v2142_v29 }
 0x370   :  { %3251 = vst [vmem:[%s7611_s3 + $0xd0] sm:$0xff] %v3202_v24  ;;  %v3935_v40 = vadd.f32 %v3934_v45, %v3067_v47  ;;  %v3484_v51 = vpop.f32.mrb[55].mxu0 }
 0x372   :  { %v3203_v52 = vmax.f32 %v3935_v40, 0.0  ;;  %v2147_v53 = vpop.f32.mrb[58].mxu1 }
 0x373   :  { %v3072_v55 = vpop.f32.mrb[56].mxu0  ;;  %v2149_v46 = vpop.f32.mrb[59].mxu1  ;;  %v3938_v44 = vadd.f32 %v7385_v59, %v2147_v53 }
 0x374   :  { %3252 = vst [vmem:[%s7611_s3 + $0xd8] sm:$0xff] %v3203_v52  ;;  %v3937_v18 = vadd.f32 %v3936_v37, %v3072_v55  ;;  %v3487_v57 = vpop.f32.mrb[57].mxu0 }
 0x376   :  { %v3204_v50 = vmax.f32 %v3937_v18, 0.0  ;;  %v2152_v61 = vpop.f32.mrb[60].mxu1 }
 0x377   :  { %v3077_v48 = vpop.f32.mrb[58].mxu0  ;;  %v2154_v30 = vpop.f32.mrb[61].mxu1  ;;  %v3940_v62 = vadd.f32 %v7385_v59, %v2152_v61 }
 0x378   :  { %3253 = vst [vmem:[%s7611_s3 + $0xe0] sm:$0xff] %v3204_v50  ;;  %v3939_v1 = vadd.f32 %v3938_v44, %v3077_v48  ;;  %v3490_v3 = vpop.f32.mrb[59].mxu0 }
 0x37a   :  { %v3205_v36 = vmax.f32 %v3939_v1, 0.0  ;;  %v2157_v9 = vpop.f32.mrb[62].mxu1 }
 0x37b   :  { %v3082_v54 = vpop.f32.mrb[60].mxu0  ;;  %v2159_v10 = vpop.f32.mrb[63].mxu1  ;;  %v3942_v13 = vadd.f32 %v7385_v59, %v2157_v9 }
 0x37c   :  { %3254 = vst [vmem:[%s7611_s3 + $0xe8] sm:$0xff] %v3205_v36  ;;  %v3941_v14 = vadd.f32 %v3940_v62, %v3082_v54  ;;  %v3493_v58 = vpop.f32.mrb[61].mxu0 }
 0x37e   :  { %v3206_v15 = vmax.f32 %v3941_v14, 0.0  ;;  %v2162_v60 = vpop.f32.mrb[64].mxu1 }
 0x37f   :  { %v3087_v16 = vpop.f32.mrb[62].mxu0  ;;  %v2164_v63 = vpop.f32.mrb[65].mxu1  ;;  %v3944_v22 = vadd.f32 %v7385_v59, %v2162_v60 }
 0x380   :  { %3255 = vst [vmem:[%s7611_s3 + $0xf0] sm:$0xff] %v3206_v15  ;;  %v3943_v20 = vadd.f32 %v3942_v13, %v3087_v16  ;;  %v3496_v19 = vpop.f32.mrb[63].mxu0 }
 0x382   :  { %v3207_v56 = vmax.f32 %v3943_v20, 0.0  ;;  %v2167_v2 = vpop.f32.mrb[66].mxu1 }
 0x383   :  { %v3092_v27 = vpop.f32.mrb[64].mxu0  ;;  %v2169_v25 = vpop.f32.mrb[67].mxu1  ;;  %v3946_v4 = vadd.f32 %v7385_v59, %v2167_v2 }
 0x384   :  { %3256 = vst [vmem:[%s7611_s3 + $0xf8] sm:$0xff] %v3207_v56  ;;  %v3945_v34 = vadd.f32 %v3944_v22, %v3092_v27  ;;  %v3499_v0 = vpop.f32.mrb[65].mxu0 }
 0x386   :  { %v3208_v6 = vmax.f32 %v3945_v34, 0.0  ;;  %v2172_v28 = vpop.f32.mrb[68].mxu1 }
 0x387   :  { %v3097_v21 = vpop.f32.mrb[66].mxu0  ;;  %v2174_v31 = vpop.f32.mrb[69].mxu1  ;;  %v3948_v11 = vadd.f32 %v7385_v59, %v2172_v28 }
 0x388   :  { %3257 = vst [vmem:[%s7611_s3 + $0x100] sm:$0xff] %v3208_v6  ;;  %v3947_v7 = vadd.f32 %v3946_v4, %v3097_v21  ;;  %v3502_v26 = vpop.f32.mrb[67].mxu0 }
 0x38a   :  { %v3209_v8 = vmax.f32 %v3947_v7, 0.0  ;;  %v2177_v32 = vpop.f32.mrb[70].mxu1 }
 0x38b   :  { %v3102_v33 = vpop.f32.mrb[68].mxu0  ;;  %v2179_v38 = vpop.f32.mrb[71].mxu1  ;;  %v3950_v41 = vadd.f32 %v7385_v59, %v2177_v32 }
 0x38c   :  { %3258 = vst [vmem:[%s7611_s3 + $0x108] sm:$0xff] %v3209_v8  ;;  %v3949_v5 = vadd.f32 %v3948_v11, %v3102_v33  ;;  %v3505_v17 = vpop.f32.mrb[69].mxu0 }
 0x38e   :  { %v3210_v12 = vmax.f32 %v3949_v5, 0.0  ;;  %v2182_v39 = vpop.f32.mrb[72].mxu1 }
 0x38f   :  { %v3107_v42 = vpop.f32.mrb[70].mxu0  ;;  %v2184_v23 = vpop.f32.mrb[73].mxu1  ;;  %v3952_v45 = vadd.f32 %v7385_v59, %v2182_v39 }
 0x390   :  { %3259 = vst [vmem:[%s7611_s3 + $0x110] sm:$0xff] %v3210_v12  ;;  %v3951_v43 = vadd.f32 %v3950_v41, %v3107_v42  ;;  %v3508_v35 = vpop.f32.mrb[71].mxu0 }
 0x392   :  { %v3211_v24 = vmax.f32 %v3951_v43, 0.0  ;;  %v2187_v29 = vpop.f32.mrb[74].mxu1 }
 0x393   :  { %v3112_v47 = vpop.f32.mrb[72].mxu0  ;;  %v2189_v49 = vpop.f32.mrb[75].mxu1  ;;  %v3954_v37 = vadd.f32 %v7385_v59, %v2187_v29 }
 0x394   :  { %3260 = vst [vmem:[%s7611_s3 + $0x118] sm:$0xff] %v3211_v24  ;;  %v3953_v40 = vadd.f32 %v3952_v45, %v3112_v47  ;;  %v3511_v51 = vpop.f32.mrb[73].mxu0 }
 0x396   :  { %v3212_v52 = vmax.f32 %v3953_v40, 0.0  ;;  %v2192_v53 = vpop.f32.mrb[76].mxu1 }
 0x397   :  { %v3117_v55 = vpop.f32.mrb[74].mxu0  ;;  %v2194_v46 = vpop.f32.mrb[77].mxu1  ;;  %v3956_v44 = vadd.f32 %v7385_v59, %v2192_v53 }
 0x398   :  { %3261 = vst [vmem:[%s7611_s3 + $0x120] sm:$0xff] %v3212_v52  ;;  %v3955_v18 = vadd.f32 %v3954_v37, %v3117_v55  ;;  %v3514_v57 = vpop.f32.mrb[75].mxu0 }
 0x39a   :  { %v3213_v50 = vmax.f32 %v3955_v18, 0.0  ;;  %v2197_v61 = vpop.f32.mrb[78].mxu1 }
 0x39b   :  { %v3122_v48 = vpop.f32.mrb[76].mxu0  ;;  %v2199_v30 = vpop.f32.mrb[79].mxu1  ;;  %v3958_v62 = vadd.f32 %v7385_v59, %v2197_v61 }
 0x39c   :  { %3262 = vst [vmem:[%s7611_s3 + $0x128] sm:$0xff] %v3213_v50  ;;  %v3957_v1 = vadd.f32 %v3956_v44, %v3122_v48  ;;  %v3517_v3 = vpop.f32.mrb[77].mxu0 }
 0x39e   :  { %v3214_v36 = vmax.f32 %v3957_v1, 0.0  ;;  %v2202_v9 = vpop.f32.mrb[80].mxu1 }
 0x39f   :  { %v3127_v54 = vpop.f32.mrb[78].mxu0  ;;  %v2204_v10 = vpop.f32.mrb[81].mxu1  ;;  %v3960_v13 = vadd.f32 %v7385_v59, %v2202_v9 }
 0x3a0   :  { %3263 = vst [vmem:[%s7611_s3 + $0x130] sm:$0xff] %v3214_v36  ;;  %v3959_v14 = vadd.f32 %v3958_v62, %v3127_v54  ;;  %v3520_v58 = vpop.f32.mrb[79].mxu0 }
 0x3a2   :  { %v3215_v15 = vmax.f32 %v3959_v14, 0.0  ;;  %v2207_v60 = vpop.f32.mrb[82].mxu1 }
 0x3a3   :  { %v3132_v16 = vpop.f32.mrb[80].mxu0  ;;  %v2209_v63 = vpop.f32.mrb[83].mxu1  ;;  %v3962_v22 = vadd.f32 %v7385_v59, %v2207_v60 }
 0x3a4   :  { %3264 = vst [vmem:[%s7611_s3 + $0x138] sm:$0xff] %v3215_v15  ;;  %v3961_v20 = vadd.f32 %v3960_v13, %v3132_v16  ;;  %v3523_v19 = vpop.f32.mrb[81].mxu0 }
 0x3a6   :  { %v3216_v56 = vmax.f32 %v3961_v20, 0.0  ;;  %v2212_v2 = vpop.f32.mrb[84].mxu1 }
 0x3a7   :  { %v3137_v27 = vpop.f32.mrb[82].mxu0  ;;  %v2214_v25 = vpop.f32.mrb[85].mxu1  ;;  %v3964_v4 = vadd.f32 %v7385_v59, %v2212_v2 }
 0x3a8   :  { %3265 = vst [vmem:[%s7611_s3 + $0x140] sm:$0xff] %v3216_v56  ;;  %v3963_v34 = vadd.f32 %v3962_v22, %v3137_v27  ;;  %v3526_v0 = vpop.f32.mrb[83].mxu0 }
 0x3aa   :  { %v3217_v6 = vmax.f32 %v3963_v34, 0.0  ;;  %v2217_v28 = vpop.f32.mrb[86].mxu1 }
 0x3ab   :  { %v3142_v21 = vpop.f32.mrb[84].mxu0  ;;  %v2219_v31 = vpop.f32.mrb[87].mxu1  ;;  %v3966_v11 = vadd.f32 %v7385_v59, %v2217_v28 }
 0x3ac   :  { %3266 = vst [vmem:[%s7611_s3 + $0x148] sm:$0xff] %v3217_v6  ;;  %v3965_v7 = vadd.f32 %v3964_v4, %v3142_v21  ;;  %v3529_v26 = vpop.f32.mrb[85].mxu0 }
 0x3ae   :  { %v3218_v8 = vmax.f32 %v3965_v7, 0.0  ;;  %v2222_v32 = vpop.f32.mrb[88].mxu1 }
 0x3af   :  { %v3147_v33 = vpop.f32.mrb[86].mxu0  ;;  %v2224_v38 = vpop.f32.mrb[89].mxu1  ;;  %v3968_v41 = vadd.f32 %v7385_v59, %v2222_v32 }
 0x3b0   :  { %3267 = vst [vmem:[%s7611_s3 + $0x150] sm:$0xff] %v3218_v8  ;;  %v3967_v5 = vadd.f32 %v3966_v11, %v3147_v33  ;;  %v3532_v17 = vpop.f32.mrb[87].mxu0 }
 0x3b2   :  { %v3219_v12 = vmax.f32 %v3967_v5, 0.0  ;;  %v2227_v39 = vpop.f32.mrb[90].mxu1 }
 0x3b3   :  { %v3152_v42 = vpop.f32.mrb[88].mxu0  ;;  %v2229_v23 = vpop.f32.mrb[91].mxu1  ;;  %v3970_v45 = vadd.f32 %v7385_v59, %v2227_v39 }
 0x3b4   :  { %3268 = vst [vmem:[%s7611_s3 + $0x158] sm:$0xff] %v3219_v12  ;;  %v3969_v43 = vadd.f32 %v3968_v41, %v3152_v42  ;;  %v3535_v35 = vpop.f32.mrb[89].mxu0 }
 0x3b6   :  { %v3220_v24 = vmax.f32 %v3969_v43, 0.0  ;;  %v2232_v29 = vpop.f32.mrb[92].mxu1 }
 0x3b7   :  { %v3157_v47 = vpop.f32.mrb[90].mxu0  ;;  %v2234_v49 = vpop.f32.mrb[93].mxu1  ;;  %v3972_v37 = vadd.f32 %v7385_v59, %v2232_v29 }
 0x3b8   :  { %3269 = vst [vmem:[%s7611_s3 + $0x160] sm:$0xff] %v3220_v24  ;;  %v3971_v40 = vadd.f32 %v3970_v45, %v3157_v47  ;;  %v3538_v51 = vpop.f32.mrb[91].mxu0 }
 0x3ba   :  { %v3221_v52 = vmax.f32 %v3971_v40, 0.0  ;;  %v2237_v53 = vpop.f32.mrb[94].mxu1 }
 0x3bb   :  { %v3162_v55 = vpop.f32.mrb[92].mxu0  ;;  %v2239_v46 = vpop.f32.mrb[95].mxu1  ;;  %v3974_v44 = vadd.f32 %v7385_v59, %v2237_v53 }
 0x3bc   :  { %3270 = vst [vmem:[%s7611_s3 + $0x168] sm:$0xff] %v3221_v52  ;;  %v3973_v18 = vadd.f32 %v3972_v37, %v3162_v55  ;;  %v3541_v57 = vpop.f32.mrb[93].mxu0 }
 0x3be   :  { %v3222_v50 = vmax.f32 %v3973_v18, 0.0  ;;  %v2242_v61 = vpop.f32.mrb[96].mxu1 }
 0x3bf   :  { %v3167_v48 = vpop.f32.mrb[94].mxu0  ;;  %v2244_v30 = vpop.f32.mrb[97].mxu1  ;;  %v3976_v62 = vadd.f32 %v7385_v59, %v2242_v61 }
 0x3c0   :  { %3271 = vst [vmem:[%s7611_s3 + $0x170] sm:$0xff] %v3222_v50  ;;  %v3975_v1 = vadd.f32 %v3974_v44, %v3167_v48  ;;  %v3544_v3 = vpop.f32.mrb[95].mxu0 }
 0x3c2   :  { %v3223_v36 = vmax.f32 %v3975_v1, 0.0 }
 0x3c3   :  { %v3172_v9 = vpop.f32.mrb[96].mxu0 }
 0x3c4   :  { %3272 = vst [vmem:[%s7611_s3 + $0x178] sm:$0xff] %v3223_v36  ;;  %v3977_v54 = vadd.f32 %v3976_v62, %v3172_v9  ;;  %v3547_v10 = vpop.f32.mrb[97].mxu0 }
 0x3c6   :  { %v3224_v14 = vmax.f32 %v3977_v54, 0.0 }
 0x3c8   :  { %3273 = vst [vmem:[%s7611_s3 + $0x180] sm:$0xff] %v3224_v14 }

// kernel: deeponet_forward.7
= control target key start
LH: loop header
LB: loop body
LE: loop exit
PB: predicated region body
PF: predicated region fallthrough
CT: control target
= control target key end

     0   :  { %s6031_s20 = smov 0   ;;  %s7338_s0 = inlined_call_operand.vmem [shape: f32[2,25088], index: 0, kind: input, shape index: {}]   ;;  %s7339_s1 = inlined_call_operand.vmem [shape: f32[25088,128], index: 1, kind: input, shape index: {}]   ;;  %s7340_s2 = inlined_call_operand.vmem [shape: f32[1,128], index: 2, kind: input, shape index: {}]   ;;  %s7341_s3 = inlined_call_operand.vmem [shape: f32[128,256], index: 3, kind: input, shape index: {}]   ;;  %s7342_s4 = inlined_call_operand.vmem [shape: f32[1,256], index: 4, kind: input, shape index: {}]   ;;  %s7343_s5 = inlined_call_operand.vmem [shape: f32[16,8], index: 5, kind: input, shape index: {}]   ;;  %s7344_s6 = inlined_call_operand.vmem [shape: f32[8,128], index: 6, kind: input, shape index: {}]   ;;  %s7345_s7 = inlined_call_operand.vmem [shape: f32[1,128], index: 7, kind: input, shape index: {}]   ;;  %s7346_s8 = inlined_call_operand.vmem [shape: f32[128,128], index: 8, kind: input, shape index: {}]   ;;  %s7347_s9 = inlined_call_operand.vmem [shape: f32[1,128], index: 9, kind: input, shape index: {}]   ;;  %s7348_s10 = inlined_call_operand.vmem [shape: f32[128,128], index: 10, kind: input, shape index: {}]   ;;  %s7349_s11 = inlined_call_operand.vmem [shape: f32[1,128], index: 11, kind: input, shape index: {}]   ;;  %s7350_s12 = inlined_call_operand.vmem [shape: f32[128,256], index: 12, kind: input, shape index: {}]   ;;  %s7351_s13 = inlined_call_operand.vmem [shape: f32[1,256], index: 13, kind: input, shape index: {}]   ;;  %s7352_s14 = inlined_call_operand.<no memory space> [shape: f32[1,1], index: 14, kind: input, shape index: {}]   ;;  %s7353_s15 = inlined_call_operand.vmem [shape: f32[16,1], index: 15, kind: output, shape index: {}]  }
   0x1   :  { %v20_v0 = vstv %s7352_s14 }
   0x2   :  { %21 = vst [vmem:[#allocation3] sm:$0x1] %v20_v0 }
   0x3 LB: > { %s6037_s21 = sadd.s32 4294967295, %s5940_s20   ;;  %p3966_p0 = scmp.ge.s32.totalorder %s5940_s20, 1  ;;  %s5940_s20 = sphi %s6031_s20, %s27_s20  }
   0x4   : > { %p446_p1 = scmp.lt.s32.totalorder %s5940_s20, 5 }
   0x6   : > { %p447_p2 = pnand %p3966_p0, %p446_p1 }
   0x7   : > { %s494_s14 = smul.u32 (!%p447_p2), 49, %s6037_s21  ;;  %p3969_p5 = scmp.ne.s32.totalorder (!%p447_p2), %s6037_s21, 0 }
   0x8   : > { %450 = sbr.rel (%p447_p2) target bundleno = 1698 (0x6a2), region = 80 }
   0x9   : > { %s500_s22 = smul.u32 (!%p447_p2), 784, %s6037_s21  ;;  %p495_p3 = scmp.lt.s32.totalorder (!%p447_p2), %s494_s14, 195 }
   0xb   : > { %p501_p4 = scmp.lt.s32.totalorder (!%p447_p2), %s500_s22, 3135 }
   0xf   : > { %s7355_s14 = smov (!%p495_p3, %s494_s14), 195  ;;  %s7357_s22 = smov (!%p501_p4, %s500_s22), 3135 }
  0x10   : > { %s3967_s23 = sshll.u32 %s7355_s14, 1  ;;  %s3968_s27 = sshll.u32 %s7357_s22, 3  ;;  %v5942_v1 = vmov (!%p3969_p5), 0.0  }
  0x11   : > { %s6046_s26 = scalar_lea.vmem %s7338_s0, %s3967_s23  ;;  %s6051_s30 = scalar_lea.vmem %s7339_s1, %s3968_s27  ;;  %510 = vst [vmem:[#allocation2] sm:$0x3] (!%p3969_p5), %v5942_v1 }
  0x12   : > { %509 = sbr.rel (%p3969_p5) target bundleno = 25 (0x19), region = 84 }
  0x19 PF: > { %v541_v2 = vld [vmem:[%s6051_s30 + $0x80] sm:$0xff]  ;;  %v542_v3 = vld [vmem:[%s6051_s30 + $0x88] sm:$0xff]  ;;  %v543_v13 = vld [vmem:[%s6051_s30 + $0x90] sm:$0xff]  ;;  %v5943_v49 = vmov 1983009808   ;;  %v1326_v51 = vlaneseq  ;;  %vm5945_vm0 = vmmov 0  }
  0x1a   : > { %v573_v4 = vld [vmem:[%s6051_s30 + $0x180] sm:$0xff]  ;;  %v4988_v5 = vpack.c.bf16 %v542_v3, %v541_v2  ;;  %v574_v6 = vld [vmem:[%s6051_s30 + $0x188] sm:$0xff]  ;;  %v544_v15 = vld [vmem:[%s6051_s30 + $0x98] sm:$0xff]  ;;  %v1324_v50 = vunpack.c.l.s4 %v5943_v49  ;;  %p3971_p6 = scmp.ne.s32.totalorder %s6037_s21, 3 }
  0x1b   : > { %v525_v7 = vld [vmem:[%s6051_s30] sm:$0xff]  ;;  %v526_v8 = vld [vmem:[%s6051_s30 + $0x8] sm:$0xff]  ;;  %v5020_v9 = vpack.c.bf16 %v574_v6, %v573_v4  ;;  %v575_v16 = vld [vmem:[%s6051_s30 + $0x190] sm:$0xff]  ;;  %v4992_v18 = vpack.c.bf16 %v544_v15, %v543_v13  ;;  %v6096_v2 = vshrl.u32 %v1326_v51, 7  ;;  %vm3473_vm1 = vcmask (!%p3971_p6), 64512  }
  0x1c   : > { %v4990_v10 = vpack.c.bf16 %v526_v8, %v525_v7  ;;  %v557_v11 = vld [vmem:[%s6051_s30 + $0x100] sm:$0xff]  ;;  %v558_v12 = vld [vmem:[%s6051_s30 + $0x108] sm:$0xff]  ;;  %4989 = vmatprep.subr.bf16.mxu0 %v4988_v5  ;;  %v576_v17 = vld [vmem:[%s6051_s30 + $0x198] sm:$0xff]  ;;  %v1325_v1 = vunpack.c.0.s8 %v1324_v50  ;;  %vm3899_vm2 = vcmask (!%p3971_p6), 7168  }
  0x1d   : > { %v5022_v14 = vpack.c.bf16 %v558_v12, %v557_v11  ;;  %5021 = vmatprep.subr.bf16.mxu1 %v5020_v9  ;;  %v5024_v19 = vpack.c.bf16 %v576_v17, %v575_v16  ;;  %v527_v20 = vld [vmem:[%s6051_s30 + $0x10] sm:$0xff]  ;;  %v528_v21 = vld [vmem:[%s6051_s30 + $0x18] sm:$0xff]  ;;  %v545_v25 = vld [vmem:[%s6051_s30 + $0xa0] sm:$0xff] }
  0x1e   : > { %4991 = vmatpush3.bf16.msra.mxu0 %v4990_v10  ;;  %v559_v22 = vld [vmem:[%s6051_s30 + $0x110] sm:$0xff]  ;;  %v4994_v23 = vpack.c.bf16 %v528_v21, %v527_v20  ;;  %v560_v24 = vld [vmem:[%s6051_s30 + $0x118] sm:$0xff]  ;;  %v546_v26 = vld [vmem:[%s6051_s30 + $0xa8] sm:$0xff]  ;;  %v6107_v15 = vsub.s32 %v1325_v1, %v6096_v2 }
  0x1f   : > { %5023 = vmatpush3.bf16.msra.mxu1 %v5022_v14  ;;  %4993 = vmatprep.subr.bf16.mxu0 %v4992_v18  ;;  %v5026_v27 = vpack.c.bf16 %v560_v24, %v559_v22  ;;  %v4996_v28 = vpack.c.bf16 %v546_v26, %v545_v25  ;;  %v577_v29 = vld [vmem:[%s6051_s30 + $0x1a0] sm:$0xff]  ;;  %v578_v30 = vld [vmem:[%s6051_s30 + $0x1a8] sm:$0xff]  ;;  %v547_v37 = vld [vmem:[%s6051_s30 + $0xb0] sm:$0xff] }
  0x20   : > { %5025 = vmatprep.subr.bf16.mxu1 %v5024_v19  ;;  %v529_v31 = vld [vmem:[%s6051_s30 + $0x20] sm:$0xff]  ;;  %v5028_v32 = vpack.c.bf16 %v578_v30, %v577_v29  ;;  %v530_v33 = vld [vmem:[%s6051_s30 + $0x28] sm:$0xff]  ;;  %v548_v38 = vld [vmem:[%s6051_s30 + $0xb8] sm:$0xff] }
  0x21   : > { %v561_v34 = vld [vmem:[%s6051_s30 + $0x120] sm:$0xff]  ;;  %v562_v35 = vld [vmem:[%s6051_s30 + $0x128] sm:$0xff]  ;;  %v4998_v36 = vpack.c.bf16 %v530_v33, %v529_v31  ;;  %v579_v39 = vld [vmem:[%s6051_s30 + $0x1b0] sm:$0xff]  ;;  %v5000_v41 = vpack.c.bf16 %v548_v38, %v547_v37 }
  0x22   : > { %4995 = vmatpush3.bf16.msra.mxu0 %v4994_v23  ;;  %v5030_v40 = vpack.c.bf16 %v562_v35, %v561_v34  ;;  %v580_v42 = vld [vmem:[%s6051_s30 + $0x1b8] sm:$0xff]  ;;  %v531_v43 = vld [vmem:[%s6051_s30 + $0x30] sm:$0xff]  ;;  %v549_v48 = vld [vmem:[%s6051_s30 + $0xc0] sm:$0xff] }
  0x23   : > { %5027 = vmatpush3.bf16.msra.mxu1 %v5026_v27  ;;  %4997 = vmatprep.subr.bf16.mxu0 %v4996_v28  ;;  %v532_v44 = vld [vmem:[%s6051_s30 + $0x38] sm:$0xff]  ;;  %v5032_v45 = vpack.c.bf16 %v580_v42, %v579_v39  ;;  %v563_v46 = vld [vmem:[%s6051_s30 + $0x130] sm:$0xff]  ;;  %v550_v52 = vld [vmem:[%s6051_s30 + $0xc8] sm:$0xff] }
  0x24   : > { %5029 = vmatprep.subr.bf16.mxu1 %v5028_v32  ;;  %v564_v47 = vld [vmem:[%s6051_s30 + $0x138] sm:$0xff]  ;;  %v581_v53 = vld [vmem:[%s6051_s30 + $0x1c0] sm:$0xff]  ;;  %v582_v54 = vld [vmem:[%s6051_s30 + $0x1c8] sm:$0xff]  ;;  %v5002_v55 = vpack.c.bf16 %v532_v44, %v531_v43  ;;  %v5004_v57 = vpack.c.bf16 %v550_v52, %v549_v48 }
  0x25   : > { %v5034_v56 = vpack.c.bf16 %v564_v47, %v563_v46  ;;  %v533_v58 = vld [vmem:[%s6051_s30 + $0x40] sm:$0xff]  ;;  %v534_v59 = vld [vmem:[%s6051_s30 + $0x48] sm:$0xff]  ;;  %v5036_v61 = vpack.c.bf16 %v582_v54, %v581_v53  ;;  %v551_v63 = vld [vmem:[%s6051_s30 + $0xd0] sm:$0xff] }
  0x26   : > { %4999 = vmatpush3.bf16.msra.mxu0 %v4998_v36  ;;  %v565_v60 = vld [vmem:[%s6051_s30 + $0x140] sm:$0xff]  ;;  %v566_v62 = vld [vmem:[%s6051_s30 + $0x148] sm:$0xff]  ;;  %v552_v0 = vld [vmem:[%s6051_s30 + $0xd8] sm:$0xff]  ;;  %v5006_v5 = vpack.c.bf16 %v534_v59, %v533_v58 }
  0x27   : > { %5031 = vmatpush3.bf16.msra.mxu1 %v5030_v40  ;;  %5001 = vmatprep.subr.bf16.mxu0 %v5000_v41  ;;  %v583_v3 = vld [vmem:[%s6051_s30 + $0x1d0] sm:$0xff]  ;;  %v584_v4 = vld [vmem:[%s6051_s30 + $0x1d8] sm:$0xff]  ;;  %v5038_v6 = vpack.c.bf16 %v566_v62, %v565_v60  ;;  %v5008_v7 = vpack.c.bf16 %v552_v0, %v551_v63  ;;  %v553_v13 = vld [vmem:[%s6051_s30 + $0xe0] sm:$0xff] }
  0x28   : > { %5033 = vmatprep.subr.bf16.mxu1 %v5032_v45  ;;  %v535_v8 = vld [vmem:[%s6051_s30 + $0x50] sm:$0xff]  ;;  %v536_v9 = vld [vmem:[%s6051_s30 + $0x58] sm:$0xff]  ;;  %v5040_v11 = vpack.c.bf16 %v584_v4, %v583_v3  ;;  %v554_v14 = vld [vmem:[%s6051_s30 + $0xe8] sm:$0xff] }
  0x29   : > { %v567_v10 = vld [vmem:[%s6051_s30 + $0x150] sm:$0xff]  ;;  %v568_v12 = vld [vmem:[%s6051_s30 + $0x158] sm:$0xff]  ;;  %v585_v16 = vld [vmem:[%s6051_s30 + $0x1e0] sm:$0xff]  ;;  %v5010_v18 = vpack.c.bf16 %v536_v9, %v535_v8  ;;  %v5012_v21 = vpack.c.bf16 %v554_v14, %v553_v13 }
  0x2a   : > { %5003 = vmatpush3.bf16.msra.mxu0 %v5002_v55  ;;  %v586_v17 = vld [vmem:[%s6051_s30 + $0x1e8] sm:$0xff]  ;;  %v537_v19 = vld [vmem:[%s6051_s30 + $0x60] sm:$0xff]  ;;  %v5042_v20 = vpack.c.bf16 %v568_v12, %v567_v10  ;;  %v555_v27 = vld [vmem:[%s6051_s30 + $0xf0] sm:$0xff] }
  0x2b   : > { %5035 = vmatpush3.bf16.msra.mxu1 %v5034_v56  ;;  %5005 = vmatprep.subr.bf16.mxu0 %v5004_v57  ;;  %v538_v22 = vld [vmem:[%s6051_s30 + $0x68] sm:$0xff]  ;;  %v569_v23 = vld [vmem:[%s6051_s30 + $0x160] sm:$0xff]  ;;  %v5044_v25 = vpack.c.bf16 %v586_v17, %v585_v16  ;;  %v556_v28 = vld [vmem:[%s6051_s30 + $0xf8] sm:$0xff] }
  0x2c   : > { %5037 = vmatprep.subr.bf16.mxu1 %v5036_v61  ;;  %v512_v24 = vld [vmem:[%s6046_s26] sm:$0xff]  ;;  %v570_v26 = vld [vmem:[%s6051_s30 + $0x168] sm:$0xff]  ;;  %v587_v31 = vld [vmem:[%s6051_s30 + $0x1f0] sm:$0xff]  ;;  %v5014_v33 = vpack.c.bf16 %v538_v22, %v537_v19  ;;  %v5016_v37 = vpack.c.bf16 %v556_v28, %v555_v27 }
  0x2d   : > { %v1329_v29 = vrot.slane %v512_v24, %v6107_v15  ;;  %v1322_v30 = vcombine.high %v512_v24, %v512_v24  ;;  %v588_v32 = vld [vmem:[%s6051_s30 + $0x1f8] sm:$0xff]  ;;  %v5046_v36 = vpack.c.bf16 %v570_v26, %v569_v23  ;;  %v539_v38 = vld [vmem:[%s6051_s30 + $0x70] sm:$0xff]  ;;  %v605_v44 = vld [vmem:[%s6051_s30 + $0x280] sm:$0xff] }
  0x2e   : > { %5007 = vmatpush3.bf16.msra.mxu0 %v5006_v5  ;;  %v540_v39 = vld [vmem:[%s6051_s30 + $0x78] sm:$0xff]  ;;  %v571_v40 = vld [vmem:[%s6051_s30 + $0x170] sm:$0xff]  ;;  %v5048_v41 = vpack.c.bf16 %v588_v32, %v587_v31  ;;  %v606_v45 = vld [vmem:[%s6051_s30 + $0x288] sm:$0xff] }
  0x2f   : > { %5039 = vmatpush3.bf16.msra.mxu1 %v5038_v6  ;;  %5009 = vmatprep.subr.bf16.mxu0 %v5008_v7  ;;  %v1337_v34 = vcombine.high %v1329_v29, %v1329_v29  ;;  %v1336_v35 = vrot.slane %v1322_v30, %v6107_v15  ;;  %v572_v42 = vld [vmem:[%s6051_s30 + $0x178] sm:$0xff]  ;;  %v637_v46 = vld [vmem:[%s6051_s30 + $0x380] sm:$0xff]  ;;  %v638_v47 = vld [vmem:[%s6051_s30 + $0x388] sm:$0xff]  ;;  %v5018_v48 = vpack.c.bf16 %v540_v39, %v539_v38 }
  0x30   : > { %5041 = vmatprep.subr.bf16.mxu1 %v5040_v11  ;;  %v5050_v49 = vpack.c.bf16 %v572_v42, %v571_v40  ;;  %v5052_v50 = vpack.c.bf16 %v606_v45, %v605_v44  ;;  %v589_v51 = vld [vmem:[%s6051_s30 + $0x200] sm:$0xff]  ;;  %v590_v52 = vld [vmem:[%s6051_s30 + $0x208] sm:$0xff]  ;;  %v5084_v54 = vpack.c.bf16 %v638_v47, %v637_v46  ;;  %v607_v56 = vld [vmem:[%s6051_s30 + $0x290] sm:$0xff] }
  0x31   : > { %1646 = vmatprep.mubr.f32.mxu0 %v1337_v34  ;;  %v1338_v43 = vcombine.high %v1336_v35, %v1336_v35  ;;  %v621_v53 = vld [vmem:[%s6051_s30 + $0x300] sm:$0xff]  ;;  %v622_v55 = vld [vmem:[%s6051_s30 + $0x308] sm:$0xff]  ;;  %v608_v57 = vld [vmem:[%s6051_s30 + $0x298] sm:$0xff]  ;;  %v5054_v60 = vpack.c.bf16 %v590_v52, %v589_v51 }
  0x32   : > { %5011 = vmatpush3.bf16.msra.mxu0 %v5010_v18  ;;  %v639_v58 = vld [vmem:[%s6051_s30 + $0x390] sm:$0xff]  ;;  %v640_v59 = vld [vmem:[%s6051_s30 + $0x398] sm:$0xff]  ;;  %v5086_v61 = vpack.c.bf16 %v622_v55, %v621_v53  ;;  %v5056_v62 = vpack.c.bf16 %v608_v57, %v607_v56  ;;  %v609_v5 = vld [vmem:[%s6051_s30 + $0x2a0] sm:$0xff] }
  0x33   : > { %5043 = vmatpush3.bf16.msra.mxu1 %v5042_v20  ;;  %5013 = vmatprep.subr.bf16.mxu0 %v5012_v21  ;;  %v591_v63 = vld [vmem:[%s6051_s30 + $0x210] sm:$0xff]  ;;  %v592_v0 = vld [vmem:[%s6051_s30 + $0x218] sm:$0xff]  ;;  %v5088_v3 = vpack.c.bf16 %v640_v59, %v639_v58  ;;  %v610_v6 = vld [vmem:[%s6051_s30 + $0x2a8] sm:$0xff] }
  0x34   : > { %5045 = vmatprep.subr.bf16.mxu1 %v5044_v25  ;;  %1716 = vmatprep.mubr.f32.mxu1 %v1338_v43  ;;  %v623_v1 = vld [vmem:[%s6051_s30 + $0x310] sm:$0xff]  ;;  %v624_v4 = vld [vmem:[%s6051_s30 + $0x318] sm:$0xff]  ;;  %v641_v7 = vld [vmem:[%s6051_s30 + $0x3a0] sm:$0xff]  ;;  %v5058_v9 = vpack.c.bf16 %v592_v0, %v591_v63  ;;  %v5060_v11 = vpack.c.bf16 %v610_v6, %v609_v5 }
  0x35   : > { %v642_v8 = vld [vmem:[%s6051_s30 + $0x3a8] sm:$0xff]  ;;  %v5090_v10 = vpack.c.bf16 %v624_v4, %v623_v1  ;;  %v593_v12 = vld [vmem:[%s6051_s30 + $0x220] sm:$0xff]  ;;  %v611_v18 = vld [vmem:[%s6051_s30 + $0x2b0] sm:$0xff] }
  0x36   : > { %5015 = vmatpush3.bf16.msra.mxu0 %v5014_v33  ;;  %v594_v13 = vld [vmem:[%s6051_s30 + $0x228] sm:$0xff]  ;;  %v625_v14 = vld [vmem:[%s6051_s30 + $0x320] sm:$0xff]  ;;  %v5092_v16 = vpack.c.bf16 %v642_v8, %v641_v7  ;;  %v612_v19 = vld [vmem:[%s6051_s30 + $0x2b8] sm:$0xff] }
  0x37   : > { %5047 = vmatpush3.bf16.msra.mxu1 %v5046_v36  ;;  %5017 = vmatprep.subr.bf16.mxu0 %v5016_v37  ;;  %v626_v17 = vld [vmem:[%s6051_s30 + $0x328] sm:$0xff]  ;;  %v643_v20 = vld [vmem:[%s6051_s30 + $0x3b0] sm:$0xff]  ;;  %v644_v21 = vld [vmem:[%s6051_s30 + $0x3b8] sm:$0xff]  ;;  %v5062_v22 = vpack.c.bf16 %v594_v13, %v593_v12  ;;  %v5064_v25 = vpack.c.bf16 %v612_v19, %v611_v18 }
  0x38   : > { %5049 = vmatprep.subr.bf16.mxu1 %v5048_v41  ;;  %v595_v23 = vld [vmem:[%s6051_s30 + $0x230] sm:$0xff]  ;;  %v5094_v24 = vpack.c.bf16 %v626_v17, %v625_v14  ;;  %v596_v26 = vld [vmem:[%s6051_s30 + $0x238] sm:$0xff]  ;;  %v613_v30 = vld [vmem:[%s6051_s30 + $0x2c0] sm:$0xff] }
  0x39   : > { %v627_v27 = vld [vmem:[%s6051_s30 + $0x330] sm:$0xff]  ;;  %v628_v28 = vld [vmem:[%s6051_s30 + $0x338] sm:$0xff]  ;;  %v614_v31 = vld [vmem:[%s6051_s30 + $0x2c8] sm:$0xff]  ;;  %v5066_v37 = vpack.c.bf16 %v596_v26, %v595_v23 }
  0x3a   : > { %5019 = vmatpush3.bf16.msra.mxu0 %v5018_v48  ;;  %v513_v32 = vld [vmem:[%s6046_s26 + $0x8] sm:$0xff]  ;;  %v645_v33 = vld [vmem:[%s6051_s30 + $0x3c0] sm:$0xff]  ;;  %v5098_v38 = vpack.c.bf16 %v628_v28, %v627_v27  ;;  %v5068_v39 = vpack.c.bf16 %v614_v31, %v613_v30  ;;  %v615_v47 = vld [vmem:[%s6051_s30 + $0x2d0] sm:$0xff] }
  0x3b   : > { %5051 = vmatpush3.bf16.msra.mxu1 %v5050_v49  ;;  %5053 = vmatprep.subr.bf16.mxu0 %v5052_v50  ;;  %v646_v34 = vld [vmem:[%s6051_s30 + $0x3c8] sm:$0xff]  ;;  %v1339_v36 = vcombine.high %v513_v32, %v513_v32  ;;  %v597_v40 = vld [vmem:[%s6051_s30 + $0x240] sm:$0xff]  ;;  %v616_v48 = vld [vmem:[%s6051_s30 + $0x2d8] sm:$0xff] }
  0x3c   : > { %5085 = vmatprep.subr.bf16.mxu1 %v5084_v54  ;;  %v598_v41 = vld [vmem:[%s6051_s30 + $0x248] sm:$0xff]  ;;  %v629_v42 = vld [vmem:[%s6051_s30 + $0x340] sm:$0xff]  ;;  %v5100_v45 = vpack.c.bf16 %v646_v34, %v645_v33  ;;  %v647_v49 = vld [vmem:[%s6051_s30 + $0x3d0] sm:$0xff]  ;;  %v5072_v54 = vpack.c.bf16 %v616_v48, %v615_v47 }
  0x3d   : > { %1647 = vmatmul.mubr.f32.vlgmr.msra.gmra.mrb[0].mxu0 %v1329_v29  ;;  %v5096_v29 = vpack.c.bf16 %v644_v21, %v643_v20  ;;  %v6172_v44 = vrot.slane %v1339_v36, %v6107_v15  ;;  %v630_v46 = vld [vmem:[%s6051_s30 + $0x348] sm:$0xff]  ;;  %v648_v50 = vld [vmem:[%s6051_s30 + $0x3d8] sm:$0xff]  ;;  %v5070_v52 = vpack.c.bf16 %v598_v41, %v597_v40  ;;  %v599_v55 = vld [vmem:[%s6051_s30 + $0x250] sm:$0xff] }
  0x3e   : > { %1717 = vmatmul.mubr.f32.vlgmr.msra.gmra.mrb[0].mxu1 %v1336_v35  ;;  %5055 = vmatpush3.bf16.msra.mxu0 %v5054_v60  ;;  %v6164_v35 = vrot.slane %v513_v32, %v6107_v15  ;;  %v5102_v53 = vpack.c.bf16 %v630_v46, %v629_v42  ;;  %v600_v56 = vld [vmem:[%s6051_s30 + $0x258] sm:$0xff]  ;;  %v631_v57 = vld [vmem:[%s6051_s30 + $0x350] sm:$0xff]  ;;  %v5104_v58 = vpack.c.bf16 %v648_v50, %v647_v49  ;;  %v617_v60 = vld [vmem:[%s6051_s30 + $0x2e0] sm:$0xff] }
  0x3f   : > { %5087 = vmatpush3.bf16.msra.mxu1 %v5086_v61  ;;  %5057 = vmatprep.subr.bf16.mxu0 %v5056_v62  ;;  %v1355_v51 = vcombine.high %v6172_v44, %v6172_v44  ;;  %v632_v59 = vld [vmem:[%s6051_s30 + $0x358] sm:$0xff]  ;;  %v618_v61 = vld [vmem:[%s6051_s30 + $0x2e8] sm:$0xff]  ;;  %v649_v62 = vld [vmem:[%s6051_s30 + $0x3e0] sm:$0xff]  ;;  %v5074_v0 = vpack.c.bf16 %v600_v56, %v599_v55 }
  0x40   : > { %5089 = vmatprep.subr.bf16.mxu1 %v5088_v3  ;;  %v1354_v43 = vcombine.high %v6164_v35, %v6164_v35  ;;  %v650_v63 = vld [vmem:[%s6051_s30 + $0x3e8] sm:$0xff]  ;;  %v5106_v1 = vpack.c.bf16 %v632_v59, %v631_v57  ;;  %v5076_v3 = vpack.c.bf16 %v618_v61, %v617_v60  ;;  %v601_v4 = vld [vmem:[%s6051_s30 + $0x260] sm:$0xff]  ;;  %v652_v12 = vld [vmem:[%s6051_s30 + $0x3f8] sm:$0xff] }
  0x41   : > { %1856 = vmatprep.mubr.f32.mxu1 %v1355_v51  ;;  %v602_v5 = vld [vmem:[%s6051_s30 + $0x268] sm:$0xff]  ;;  %v633_v6 = vld [vmem:[%s6051_s30 + $0x360] sm:$0xff]  ;;  %v5108_v7 = vpack.c.bf16 %v650_v63, %v649_v62  ;;  %v603_v17 = vld [vmem:[%s6051_s30 + $0x270] sm:$0xff] }
  0x42   : > { %5059 = vmatpush3.bf16.msra.mxu0 %v5058_v9  ;;  %1786 = vmatprep.mubr.f32.mxu0 %v1354_v43  ;;  %v634_v8 = vld [vmem:[%s6051_s30 + $0x368] sm:$0xff]  ;;  %v619_v9 = vld [vmem:[%s6051_s30 + $0x2f0] sm:$0xff]  ;;  %v5078_v13 = vpack.c.bf16 %v602_v5, %v601_v4  ;;  %v604_v18 = vld [vmem:[%s6051_s30 + $0x278] sm:$0xff] }
  0x43   : > { %5091 = vmatpush3.bf16.msra.mxu1 %v5090_v10  ;;  %5061 = vmatprep.subr.bf16.mxu0 %v5060_v11  ;;  %v620_v10 = vld [vmem:[%s6051_s30 + $0x2f8] sm:$0xff]  ;;  %v651_v11 = vld [vmem:[%s6051_s30 + $0x3f0] sm:$0xff]  ;;  %v5110_v14 = vpack.c.bf16 %v634_v8, %v633_v6  ;;  %v670_v23 = vld [vmem:[%s6051_s30 + $0x488] sm:$0xff]  ;;  %v5082_v26 = vpack.c.bf16 %v604_v18, %v603_v17 }
  0x44   : > { %5093 = vmatprep.subr.bf16.mxu1 %v5092_v16  ;;  %v5080_v16 = vpack.c.bf16 %v620_v10, %v619_v9  ;;  %v635_v19 = vld [vmem:[%s6051_s30 + $0x370] sm:$0xff]  ;;  %v5112_v20 = vpack.c.bf16 %v652_v12, %v651_v11  ;;  %v636_v21 = vld [vmem:[%s6051_s30 + $0x378] sm:$0xff]  ;;  %v653_v27 = vld [vmem:[%s6051_s30 + $0x400] sm:$0xff] }
  0x45   : > { %v5114_v28 = vpack.c.bf16 %v636_v21, %v635_v19  ;;  %v654_v30 = vld [vmem:[%s6051_s30 + $0x408] sm:$0xff]  ;;  %v685_v31 = vld [vmem:[%s6051_s30 + $0x500] sm:$0xff]  ;;  %v671_v34 = vld [vmem:[%s6051_s30 + $0x490] sm:$0xff] }
  0x46   : > { %5063 = vmatpush3.bf16.msra.mxu0 %v5062_v22  ;;  %v669_v22 = vld [vmem:[%s6051_s30 + $0x480] sm:$0xff]  ;;  %v686_v32 = vld [vmem:[%s6051_s30 + $0x508] sm:$0xff]  ;;  %v672_v36 = vld [vmem:[%s6051_s30 + $0x498] sm:$0xff] }
  0x47   : > { %5095 = vmatpush3.bf16.msra.mxu1 %v5094_v24  ;;  %5065 = vmatprep.subr.bf16.mxu0 %v5064_v25  ;;  %v701_v24 = vld [vmem:[%s6051_s30 + $0x580] sm:$0xff]  ;;  %v702_v25 = vld [vmem:[%s6051_s30 + $0x588] sm:$0xff]  ;;  %v5150_v40 = vpack.c.bf16 %v686_v32, %v685_v31  ;;  %v514_v41 = vld [vmem:[%s6046_s26 + $0x10] sm:$0xff]  ;;  %v5120_v42 = vpack.c.bf16 %v672_v36, %v671_v34 }
  0x48   : > { %5097 = vmatprep.subr.bf16.mxu1 %v5096_v29  ;;  %v5116_v29 = vpack.c.bf16 %v670_v23, %v669_v22  ;;  %v5148_v33 = vpack.c.bf16 %v702_v25, %v701_v24  ;;  %v655_v43 = vld [vmem:[%s6051_s30 + $0x410] sm:$0xff]  ;;  %v6218_v47 = vrot.slane %v514_v41, %v6107_v15  ;;  %v1356_v48 = vcombine.high %v514_v41, %v514_v41  ;;  %v688_v50 = vld [vmem:[%s6051_s30 + $0x518] sm:$0xff]  ;;  %v673_v51 = vld [vmem:[%s6051_s30 + $0x4a0] sm:$0xff] }
  0x49   : > { %v687_v46 = vld [vmem:[%s6051_s30 + $0x510] sm:$0xff]  ;;  %v657_v59 = vld [vmem:[%s6051_s30 + $0x420] sm:$0xff]  ;;  %v658_v60 = vld [vmem:[%s6051_s30 + $0x428] sm:$0xff] }
  0x4a   : > { %5067 = vmatpush3.bf16.msra.mxu0 %v5066_v37  ;;  %v703_v37 = vld [vmem:[%s6051_s30 + $0x590] sm:$0xff]  ;;  %v1371_v55 = vcombine.high %v6218_v47, %v6218_v47  ;;  %v6229_v56 = vrot.slane %v1356_v48, %v6107_v15  ;;  %v689_v61 = vld [vmem:[%s6051_s30 + $0x520] sm:$0xff]  ;;  %v708_v4 = vld [vmem:[%s6051_s30 + $0x5b8] sm:$0xff]  ;;  %v5126_v5 = vpack.c.bf16 %v658_v60, %v657_v59 }
  0x4b   : > { %5099 = vmatpush3.bf16.msra.mxu1 %v5098_v38  ;;  %5069 = vmatprep.subr.bf16.mxu0 %v5068_v39  ;;  %v704_v38 = vld [vmem:[%s6051_s30 + $0x598] sm:$0xff]  ;;  %v5118_v39 = vpack.c.bf16 %v654_v30, %v653_v27  ;;  %v659_v8 = vld [vmem:[%s6051_s30 + $0x430] sm:$0xff]  ;;  %v710_v17 = vld [vmem:[%s6051_s30 + $0x5c8] sm:$0xff] }
  0x4c   : > { %5101 = vmatprep.subr.bf16.mxu1 %v5100_v45  ;;  %v656_v45 = vld [vmem:[%s6051_s30 + $0x418] sm:$0xff]  ;;  %v5152_v49 = vpack.c.bf16 %v704_v38, %v703_v37  ;;  %v1372_v62 = vcombine.high %v6229_v56, %v6229_v56  ;;  %v691_v10 = vld [vmem:[%s6051_s30 + $0x530] sm:$0xff]  ;;  %v661_v21 = vld [vmem:[%s6051_s30 + $0x440] sm:$0xff] }
  0x4d   : > { %v5122_v57 = vpack.c.bf16 %v656_v45, %v655_v43  ;;  %v660_v9 = vld [vmem:[%s6051_s30 + $0x438] sm:$0xff]  ;;  %v662_v22 = vld [vmem:[%s6051_s30 + $0x448] sm:$0xff]  ;;  %v693_v23 = vld [vmem:[%s6051_s30 + $0x540] sm:$0xff] }
  0x4e   : > { %5071 = vmatpush3.bf16.msra.mxu0 %v5070_v52  ;;  %v674_v52 = vld [vmem:[%s6051_s30 + $0x4a8] sm:$0xff]  ;;  %v692_v12 = vld [vmem:[%s6051_s30 + $0x538] sm:$0xff]  ;;  %v5130_v18 = vpack.c.bf16 %v660_v9, %v659_v8  ;;  %v5134_v30 = vpack.c.bf16 %v662_v22, %v661_v21  ;;  %v695_v36 = vld [vmem:[%s6051_s30 + $0x550] sm:$0xff] }
  0x4f   : > { %5103 = vmatpush3.bf16.msra.mxu1 %v5102_v53  ;;  %5073 = vmatprep.subr.bf16.mxu0 %v5072_v54  ;;  %v705_v53 = vld [vmem:[%s6051_s30 + $0x5a0] sm:$0xff]  ;;  %v706_v54 = vld [vmem:[%s6051_s30 + $0x5a8] sm:$0xff]  ;;  %v5162_v19 = vpack.c.bf16 %v692_v12, %v691_v10  ;;  %v680_v27 = vld [vmem:[%s6051_s30 + $0x4d8] sm:$0xff] }
  0x50   : > { %5105 = vmatprep.subr.bf16.mxu1 %v5104_v58  ;;  %v5124_v58 = vpack.c.bf16 %v674_v52, %v673_v51  ;;  %v5156_v63 = vpack.c.bf16 %v706_v54, %v705_v53  ;;  %v694_v25 = vld [vmem:[%s6051_s30 + $0x548] sm:$0xff]  ;;  %v664_v34 = vld [vmem:[%s6051_s30 + $0x458] sm:$0xff]  ;;  %v713_v41 = vld [vmem:[%s6051_s30 + $0x5e0] sm:$0xff] }
  0x51   : > { %v5166_v31 = vpack.c.bf16 %v694_v25, %v693_v23  ;;  %v696_v38 = vld [vmem:[%s6051_s30 + $0x558] sm:$0xff]  ;;  %v665_v48 = vld [vmem:[%s6051_s30 + $0x460] sm:$0xff]  ;;  %v698_v52 = vld [vmem:[%s6051_s30 + $0x568] sm:$0xff] }
  0x52   : > { %5075 = vmatpush3.bf16.msra.mxu0 %v5074_v0  ;;  %v690_v0 = vld [vmem:[%s6051_s30 + $0x528] sm:$0xff]  ;;  %v5170_v45 = vpack.c.bf16 %v696_v38, %v695_v36  ;;  %v683_v53 = vld [vmem:[%s6051_s30 + $0x4f0] sm:$0xff]  ;;  %v684_v54 = vld [vmem:[%s6051_s30 + $0x4f8] sm:$0xff] }
  0x53   : > { %5107 = vmatpush3.bf16.msra.mxu1 %v5106_v1  ;;  %5077 = vmatprep.subr.bf16.mxu0 %v5076_v3  ;;  %v676_v1 = vld [vmem:[%s6051_s30 + $0x4b8] sm:$0xff]  ;;  %v707_v3 = vld [vmem:[%s6051_s30 + $0x5b0] sm:$0xff]  ;;  %v5158_v6 = vpack.c.bf16 %v690_v0, %v689_v61  ;;  %v5144_v60 = vpack.c.bf16 %v684_v54, %v683_v53  ;;  %v717_v10 = vld [vmem:[%s6051_s30 + $0x600] sm:$0xff] }
  0x54   : > { %5109 = vmatprep.subr.bf16.mxu1 %v5108_v7  ;;  %v5160_v11 = vpack.c.bf16 %v708_v4, %v707_v3  ;;  %v667_v61 = vld [vmem:[%s6051_s30 + $0x470] sm:$0xff]  ;;  %v734_v3 = vld [vmem:[%s6051_s30 + $0x688] sm:$0xff]  ;;  %v765_v4 = vld [vmem:[%s6051_s30 + $0x780] sm:$0xff] }
  0x55   : > { %v749_v12 = vld [vmem:[%s6051_s30 + $0x700] sm:$0xff]  ;;  %v719_v25 = vld [vmem:[%s6051_s30 + $0x610] sm:$0xff]  ;;  %v724_v53 = vld [vmem:[%s6051_s30 + $0x638] sm:$0xff] }
  0x56   : > { %5079 = vmatpush3.bf16.msra.mxu0 %v5078_v13  ;;  %v677_v13 = vld [vmem:[%s6051_s30 + $0x4c0] sm:$0xff]  ;;  %v755_v54 = vld [vmem:[%s6051_s30 + $0x730] sm:$0xff] }
  0x57   : > { %5111 = vmatpush3.bf16.msra.mxu1 %v5110_v14  ;;  %5081 = vmatprep.subr.bf16.mxu0 %v5080_v16  ;;  %v678_v14 = vld [vmem:[%s6051_s30 + $0x4c8] sm:$0xff]  ;;  %v709_v16 = vld [vmem:[%s6051_s30 + $0x5c0] sm:$0xff] }
  0x58   : > { %5113 = vmatprep.subr.bf16.mxu1 %v5112_v20  ;;  %v5132_v20 = vpack.c.bf16 %v678_v14, %v677_v13  ;;  %v5164_v24 = vpack.c.bf16 %v710_v17, %v709_v16  ;;  %v750_v14 = vld [vmem:[%s6051_s30 + $0x708] sm:$0xff]  ;;  %v735_v16 = vld [vmem:[%s6051_s30 + $0x690] sm:$0xff]  ;;  %v736_v17 = vld [vmem:[%s6051_s30 + $0x698] sm:$0xff] }
  0x59   : > { %v5214_v23 = vpack.c.bf16 %v750_v14, %v749_v12  ;;  %v727_v12 = vld [vmem:[%s6051_s30 + $0x650] sm:$0xff] }
  0x5a   : > { %5083 = vmatpush3.bf16.msra.mxu0 %v5082_v26  ;;  %v679_v26 = vld [vmem:[%s6051_s30 + $0x4d0] sm:$0xff] }
  0x5b   : > { %5115 = vmatpush3.bf16.msra.mxu1 %v5114_v28  ;;  %5117 = vmatprep.subr.bf16.mxu0 %v5116_v29  ;;  %v711_v28 = vld [vmem:[%s6051_s30 + $0x5d0] sm:$0xff]  ;;  %v712_v29 = vld [vmem:[%s6051_s30 + $0x5d8] sm:$0xff]  ;;  %v5136_v32 = vpack.c.bf16 %v680_v27, %v679_v26 }
  0x5c   : > { %5149 = vmatprep.subr.bf16.mxu1 %v5148_v33  ;;  %v663_v33 = vld [vmem:[%s6051_s30 + $0x450] sm:$0xff]  ;;  %v5168_v37 = vpack.c.bf16 %v712_v29, %v711_v28  ;;  %v720_v26 = vld [vmem:[%s6051_s30 + $0x618] sm:$0xff] }
  0x5d   : > { %1787 = vmatmul.mubr.f32.vlgmr.msra.gmra.mrb[2].mxu0 %v6164_v35  ;;  %v5154_v35 = vpack.c.bf16 %v688_v50, %v687_v46  ;;  %v5138_v43 = vpack.c.bf16 %v664_v34, %v663_v33  ;;  %v697_v50 = vld [vmem:[%s6051_s30 + $0x560] sm:$0xff]  ;;  %v751_v27 = vld [vmem:[%s6051_s30 + $0x710] sm:$0xff]  ;;  %v752_v29 = vld [vmem:[%s6051_s30 + $0x718] sm:$0xff] }
  0x5e   : > { %5119 = vmatpush3.bf16.msra.mxu0 %v5118_v39  ;;  %1857 = vmatmul.mubr.f32.vlgmr.msra.gmra.mrb[2].mxu1 %v6172_v44  ;;  %v675_v44 = vld [vmem:[%s6051_s30 + $0x4b0] sm:$0xff]  ;;  %v681_v39 = vld [vmem:[%s6051_s30 + $0x4e0] sm:$0xff]  ;;  %v5174_v59 = vpack.c.bf16 %v698_v52, %v697_v50  ;;  %v770_v34 = vld [vmem:[%s6051_s30 + $0x7a8] sm:$0xff]  ;;  %v5218_v38 = vpack.c.bf16 %v752_v29, %v751_v27 }
  0x5f   : > { %5151 = vmatpush3.bf16.msra.mxu1 %v5150_v40  ;;  %5121 = vmatprep.subr.bf16.mxu0 %v5120_v42  ;;  %v5128_v7 = vpack.c.bf16 %v676_v1, %v675_v44  ;;  %v682_v40 = vld [vmem:[%s6051_s30 + $0x4e8] sm:$0xff]  ;;  %v700_v44 = vld [vmem:[%s6051_s30 + $0x578] sm:$0xff]  ;;  %v733_v1 = vld [vmem:[%s6051_s30 + $0x680] sm:$0xff] }
  0x60   : > { %5153 = vmatprep.subr.bf16.mxu1 %v5152_v49  ;;  %1926 = vmatprep.mubr.f32.mxu0 %v1371_v55  ;;  %v714_v42 = vld [vmem:[%s6051_s30 + $0x5e8] sm:$0xff]  ;;  %v5140_v46 = vpack.c.bf16 %v682_v40, %v681_v39  ;;  %v715_v55 = vld [vmem:[%s6051_s30 + $0x5f0] sm:$0xff]  ;;  %v5180_v9 = vpack.c.bf16 %v734_v3, %v733_v1  ;;  %v769_v33 = vld [vmem:[%s6051_s30 + $0x7a0] sm:$0xff] }
  0x61   : > { %1996 = vmatprep.mubr.f32.mxu1 %v1372_v62  ;;  %v666_v49 = vld [vmem:[%s6051_s30 + $0x468] sm:$0xff]  ;;  %v5172_v51 = vpack.c.bf16 %v714_v42, %v713_v41  ;;  %v668_v62 = vld [vmem:[%s6051_s30 + $0x478] sm:$0xff]  ;;  %v721_v40 = vld [vmem:[%s6051_s30 + $0x620] sm:$0xff]  ;;  %v5220_v42 = vpack.c.bf16 %v770_v34, %v769_v33 }
  0x62   : > { %5123 = vmatpush3.bf16.msra.mxu0 %v5122_v57  ;;  %v716_v57 = vld [vmem:[%s6051_s30 + $0x5f8] sm:$0xff]  ;;  %v753_v41 = vld [vmem:[%s6051_s30 + $0x720] sm:$0xff]  ;;  %v723_v52 = vld [vmem:[%s6051_s30 + $0x630] sm:$0xff] }
  0x63   : > { %5155 = vmatpush3.bf16.msra.mxu1 %v5154_v35  ;;  %5125 = vmatprep.subr.bf16.mxu0 %v5124_v58  ;;  %v5142_v35 = vpack.c.bf16 %v666_v49, %v665_v48  ;;  %v515_v58 = vld [vmem:[%s6046_s26 + $0x18] sm:$0xff]  ;;  %v5176_v0 = vpack.c.bf16 %v716_v57, %v715_v55  ;;  %v757_v1 = vld [vmem:[%s6051_s30 + $0x740] sm:$0xff]  ;;  %v759_v14 = vld [vmem:[%s6051_s30 + $0x750] sm:$0xff] }
  0x64   : > { %5157 = vmatprep.subr.bf16.mxu1 %v5156_v63  ;;  %v699_v63 = vld [vmem:[%s6051_s30 + $0x570] sm:$0xff]  ;;  %v772_v48 = vld [vmem:[%s6051_s30 + $0x7b8] sm:$0xff]  ;;  %v729_v27 = vld [vmem:[%s6051_s30 + $0x660] sm:$0xff] }
  0x65   : > { %v5178_v8 = vpack.c.bf16 %v700_v44, %v699_v63  ;;  %v756_v57 = vld [vmem:[%s6051_s30 + $0x738] sm:$0xff]  ;;  %v726_v44 = vld [vmem:[%s6051_s30 + $0x648] sm:$0xff]  ;;  %v761_v29 = vld [vmem:[%s6051_s30 + $0x760] sm:$0xff] }
  0x66   : > { %5127 = vmatpush3.bf16.msra.mxu0 %v5126_v5  ;;  %v766_v5 = vld [vmem:[%s6051_s30 + $0x788] sm:$0xff]  ;;  %v748_v33 = vld [vmem:[%s6051_s30 + $0x6f8] sm:$0xff]  ;;  %v779_v34 = vld [vmem:[%s6051_s30 + $0x7f0] sm:$0xff] }
  0x67   : > { %5159 = vmatpush3.bf16.msra.mxu1 %v5158_v6  ;;  %5129 = vmatprep.subr.bf16.mxu0 %v5128_v7  ;;  %v1373_v6 = vcombine.high %v515_v58, %v515_v58  ;;  %v5146_v7 = vpack.c.bf16 %v668_v62, %v667_v61  ;;  %v5212_v13 = vpack.c.bf16 %v766_v5, %v765_v4  ;;  %v758_v4 = vld [vmem:[%s6051_s30 + $0x748] sm:$0xff]  ;;  %v743_v5 = vld [vmem:[%s6051_s30 + $0x6d0] sm:$0xff] }
  0x68   : > { %5161 = vmatprep.subr.bf16.mxu1 %v5160_v11  ;;  %v718_v11 = vld [vmem:[%s6051_s30 + $0x608] sm:$0xff]  ;;  %v5194_v61 = vpack.c.bf16 %v724_v53, %v723_v52  ;;  %v5226_v62 = vpack.c.bf16 %v756_v57, %v755_v54  ;;  %v781_v54 = vld [vmem:[%s6051_s30 + $0x800] sm:$0xff] }
  0x69   : > { %v6295_v21 = vrot.slane %v1373_v6, %v6107_v15  ;;  %v5182_v22 = vpack.c.bf16 %v718_v11, %v717_v10  ;;  %v744_v6 = vld [vmem:[%s6051_s30 + $0x6d8] sm:$0xff]  ;;  %v5230_v10 = vpack.c.bf16 %v758_v4, %v757_v1  ;;  %v813_v57 = vld [vmem:[%s6051_s30 + $0x900] sm:$0xff]  ;;  %v783_v4 = vld [vmem:[%s6051_s30 + $0x810] sm:$0xff] }
  0x6a   : > { %5131 = vmatpush3.bf16.msra.mxu0 %v5130_v18  ;;  %v6290_v18 = vrot.slane %v515_v58, %v6107_v15  ;;  %v742_v58 = vld [vmem:[%s6051_s30 + $0x6c8] sm:$0xff]  ;;  %v5200_v11 = vpack.c.bf16 %v744_v6, %v743_v5  ;;  %v784_v5 = vld [vmem:[%s6051_s30 + $0x818] sm:$0xff]  ;;  %v815_v6 = vld [vmem:[%s6051_s30 + $0x910] sm:$0xff] }
  0x6b   : > { %5163 = vmatpush3.bf16.msra.mxu1 %v5162_v19  ;;  %5133 = vmatprep.subr.bf16.mxu0 %v5132_v20  ;;  %v767_v19 = vld [vmem:[%s6051_s30 + $0x790] sm:$0xff]  ;;  %v768_v20 = vld [vmem:[%s6051_s30 + $0x798] sm:$0xff]  ;;  %v1389_v36 = vcombine.high %v6295_v21, %v6295_v21 }
  0x6c   : > { %5165 = vmatprep.subr.bf16.mxu1 %v5164_v24  ;;  %v5184_v24 = vpack.c.bf16 %v736_v17, %v735_v16  ;;  %v5216_v28 = vpack.c.bf16 %v768_v20, %v767_v19  ;;  %v760_v17 = vld [vmem:[%s6051_s30 + $0x758] sm:$0xff]  ;;  %v745_v19 = vld [vmem:[%s6051_s30 + $0x6e0] sm:$0xff]  ;;  %v746_v20 = vld [vmem:[%s6051_s30 + $0x6e8] sm:$0xff] }
  0x6e   : > { %5135 = vmatpush3.bf16.msra.mxu0 %v5134_v30  ;;  %v737_v30 = vld [vmem:[%s6051_s30 + $0x6a0] sm:$0xff] }
  0x6f   : > { %5167 = vmatpush3.bf16.msra.mxu1 %v5166_v31  ;;  %5137 = vmatprep.subr.bf16.mxu0 %v5136_v32  ;;  %v738_v31 = vld [vmem:[%s6051_s30 + $0x6a8] sm:$0xff]  ;;  %v1388_v32 = vcombine.high %v6290_v18, %v6290_v18 }
  0x70   : > { %5169 = vmatprep.subr.bf16.mxu1 %v5168_v37  ;;  %v5186_v37 = vpack.c.bf16 %v720_v26, %v719_v25  ;;  %v5188_v39 = vpack.c.bf16 %v738_v31, %v737_v30  ;;  %v5234_v25 = vpack.c.bf16 %v760_v17, %v759_v14  ;;  %v5204_v26 = vpack.c.bf16 %v746_v20, %v745_v19  ;;  %v762_v31 = vld [vmem:[%s6051_s30 + $0x768] sm:$0xff]  ;;  %v785_v20 = vld [vmem:[%s6051_s30 + $0x820] sm:$0xff] }
  0x72   : > { %5139 = vmatpush3.bf16.msra.mxu0 %v5138_v43  ;;  %v754_v43 = vld [vmem:[%s6051_s30 + $0x728] sm:$0xff] }
  0x73   : > { %5171 = vmatpush3.bf16.msra.mxu1 %v5170_v45  ;;  %5141 = vmatprep.subr.bf16.mxu0 %v5140_v46  ;;  %v739_v45 = vld [vmem:[%s6051_s30 + $0x6b0] sm:$0xff]  ;;  %v740_v46 = vld [vmem:[%s6051_s30 + $0x6b8] sm:$0xff]  ;;  %v5222_v50 = vpack.c.bf16 %v754_v43, %v753_v41 }
  0x74   : > { %5173 = vmatprep.subr.bf16.mxu1 %v5172_v51  ;;  %v5192_v51 = vpack.c.bf16 %v740_v46, %v739_v45  ;;  %v732_v41 = vld [vmem:[%s6051_s30 + $0x678] sm:$0xff]  ;;  %v797_v46 = vld [vmem:[%s6051_s30 + $0x880] sm:$0xff] }
  0x75   : > { %v764_v45 = vld [vmem:[%s6051_s30 + $0x778] sm:$0xff] }
  0x76   : > { %5143 = vmatpush3.bf16.msra.mxu0 %v5142_v35  ;;  %v741_v35 = vld [vmem:[%s6051_s30 + $0x6c0] sm:$0xff] }
  0x77   : > { %5175 = vmatpush3.bf16.msra.mxu1 %v5174_v59  ;;  %5145 = vmatprep.subr.bf16.mxu0 %v5144_v60  ;;  %v773_v59 = vld [vmem:[%s6051_s30 + $0x7c0] sm:$0xff]  ;;  %v774_v60 = vld [vmem:[%s6051_s30 + $0x7c8] sm:$0xff]  ;;  %v5196_v63 = vpack.c.bf16 %v742_v58, %v741_v35 }
  0x78   : > { %5177 = vmatprep.subr.bf16.mxu1 %v5176_v0  ;;  %v725_v0 = vld [vmem:[%s6051_s30 + $0x640] sm:$0xff]  ;;  %v5228_v3 = vpack.c.bf16 %v774_v60, %v773_v59  ;;  %v814_v58 = vld [vmem:[%s6051_s30 + $0x908] sm:$0xff]  ;;  %v799_v59 = vld [vmem:[%s6051_s30 + $0x890] sm:$0xff] }
  0x79   : > { %v800_v60 = vld [vmem:[%s6051_s30 + $0x898] sm:$0xff]  ;;  %v5278_v1 = vpack.c.bf16 %v814_v58, %v813_v57  ;;  %v791_v57 = vld [vmem:[%s6051_s30 + $0x850] sm:$0xff] }
  0x7a   : > { %5147 = vmatpush3.bf16.msra.mxu0 %v5146_v7  ;;  %v775_v7 = vld [vmem:[%s6051_s30 + $0x7d0] sm:$0xff] }
  0x7b   : > { %5179 = vmatpush3.bf16.msra.mxu1 %v5178_v8  ;;  %5181 = vmatprep.subr.bf16.mxu0 %v5180_v9  ;;  %v776_v8 = vld [vmem:[%s6051_s30 + $0x7d8] sm:$0xff]  ;;  %v5198_v9 = vpack.c.bf16 %v726_v44, %v725_v0  ;;  %v823_v58 = vld [vmem:[%s6051_s30 + $0x950] sm:$0xff] }
  0x7c   : > { %5213 = vmatprep.subr.bf16.mxu1 %v5212_v13  ;;  %v728_v13 = vld [vmem:[%s6051_s30 + $0x658] sm:$0xff]  ;;  %v5232_v16 = vpack.c.bf16 %v776_v8, %v775_v7 }
  0x7d   : > { %1927 = vmatmul.mubr.f32.vlgmr.msra.gmra.mrb[4].mxu0 %v6218_v47  ;;  %v722_v47 = vld [vmem:[%s6051_s30 + $0x628] sm:$0xff]  ;;  %v816_v8 = vld [vmem:[%s6051_s30 + $0x918] sm:$0xff] }
  0x7e   : > { %5183 = vmatpush3.bf16.msra.mxu0 %v5182_v22  ;;  %1997 = vmatmul.mubr.f32.vlgmr.msra.gmra.mrb[4].mxu1 %v6229_v56  ;;  %v771_v56 = vld [vmem:[%s6051_s30 + $0x7b0] sm:$0xff]  ;;  %v5190_v49 = vpack.c.bf16 %v722_v47, %v721_v40  ;;  %v777_v22 = vld [vmem:[%s6051_s30 + $0x7e0] sm:$0xff]  ;;  %v5282_v17 = vpack.c.bf16 %v816_v8, %v815_v6 }
  0x7f   : > { %5215 = vmatpush3.bf16.msra.mxu1 %v5214_v23  ;;  %5185 = vmatprep.subr.bf16.mxu0 %v5184_v24  ;;  %v5224_v55 = vpack.c.bf16 %v772_v48, %v771_v56  ;;  %v778_v23 = vld [vmem:[%s6051_s30 + $0x7e8] sm:$0xff]  ;;  %v5202_v24 = vpack.c.bf16 %v728_v13, %v727_v12  ;;  %v731_v47 = vld [vmem:[%s6051_s30 + $0x670] sm:$0xff]  ;;  %v829_v48 = vld [vmem:[%s6051_s30 + $0x980] sm:$0xff] }
  0x80   : > { %5217 = vmatprep.subr.bf16.mxu1 %v5216_v28  ;;  %2066 = vmatprep.mubr.f32.mxu0 %v1388_v32  ;;  %v730_v28 = vld [vmem:[%s6051_s30 + $0x668] sm:$0xff]  ;;  %v5236_v30 = vpack.c.bf16 %v778_v23, %v777_v22  ;;  %v747_v32 = vld [vmem:[%s6051_s30 + $0x6f0] sm:$0xff]  ;;  %v833_v12 = vld [vmem:[%s6051_s30 + $0x9a0] sm:$0xff] }
  0x81   : > { %2136 = vmatprep.mubr.f32.mxu1 %v1389_v36  ;;  %v780_v36 = vld [vmem:[%s6051_s30 + $0x7f8] sm:$0xff]  ;;  %v5208_v40 = vpack.c.bf16 %v748_v33, %v747_v32  ;;  %v798_v56 = vld [vmem:[%s6051_s30 + $0x888] sm:$0xff]  ;;  %v817_v22 = vld [vmem:[%s6051_s30 + $0x920] sm:$0xff] }
  0x82   : > { %5187 = vmatpush3.bf16.msra.mxu0 %v5186_v37  ;;  %v5206_v37 = vpack.c.bf16 %v730_v28, %v729_v27  ;;  %v5240_v43 = vpack.c.bf16 %v780_v36, %v779_v34  ;;  %v5244_v53 = vpack.c.bf16 %v798_v56, %v797_v46  ;;  %v834_v13 = vld [vmem:[%s6051_s30 + $0x9a8] sm:$0xff]  ;;  %v836_v27 = vld [vmem:[%s6051_s30 + $0x9b8] sm:$0xff]  ;;  %v819_v33 = vld [vmem:[%s6051_s30 + $0x930] sm:$0xff] }
  0x83   : > { %5219 = vmatpush3.bf16.msra.mxu1 %v5218_v38  ;;  %5189 = vmatprep.subr.bf16.mxu0 %v5188_v39  ;;  %v516_v38 = vld [vmem:[%s6046_s26 + $0x20] sm:$0xff]  ;;  %v5238_v39 = vpack.c.bf16 %v762_v31, %v761_v29  ;;  %v5284_v23 = vpack.c.bf16 %v834_v13, %v833_v12  ;;  %v787_v31 = vld [vmem:[%s6051_s30 + $0x830] sm:$0xff]  ;;  %v788_v32 = vld [vmem:[%s6051_s30 + $0x838] sm:$0xff] }
  0x84   : > { %5221 = vmatprep.subr.bf16.mxu1 %v5220_v42  ;;  %v763_v42 = vld [vmem:[%s6051_s30 + $0x770] sm:$0xff]  ;;  %v820_v36 = vld [vmem:[%s6051_s30 + $0x938] sm:$0xff]  ;;  %v821_v46 = vld [vmem:[%s6051_s30 + $0x940] sm:$0xff] }
  0x85   : > { %v5242_v52 = vpack.c.bf16 %v764_v45, %v763_v42  ;;  %v790_v45 = vld [vmem:[%s6051_s30 + $0x848] sm:$0xff]  ;;  %v793_v6 = vld [vmem:[%s6051_s30 + $0x860] sm:$0xff]  ;;  %v812_v12 = vld [vmem:[%s6051_s30 + $0x8f8] sm:$0xff] }
  0x86   : > { %5191 = vmatpush3.bf16.msra.mxu0 %v5190_v49  ;;  %v830_v49 = vld [vmem:[%s6051_s30 + $0x988] sm:$0xff]  ;;  %v825_v8 = vld [vmem:[%s6051_s30 + $0x960] sm:$0xff]  ;;  %v843_v13 = vld [vmem:[%s6051_s30 + $0x9f0] sm:$0xff] }
  0x87   : > { %5223 = vmatpush3.bf16.msra.mxu1 %v5222_v50  ;;  %5193 = vmatprep.subr.bf16.mxu0 %v5192_v51  ;;  %v1390_v50 = vcombine.high %v516_v38, %v516_v38  ;;  %v5210_v51 = vpack.c.bf16 %v732_v41, %v731_v47  ;;  %v5276_v35 = vpack.c.bf16 %v830_v49, %v829_v48  ;;  %v822_v48 = vld [vmem:[%s6051_s30 + $0x948] sm:$0xff]  ;;  %v807_v49 = vld [vmem:[%s6051_s30 + $0x8d0] sm:$0xff] }
  0x88   : > { %5225 = vmatprep.subr.bf16.mxu1 %v5224_v55  ;;  %v782_v55 = vld [vmem:[%s6051_s30 + $0x808] sm:$0xff]  ;;  %v5258_v47 = vpack.c.bf16 %v788_v32, %v787_v31  ;;  %v5290_v41 = vpack.c.bf16 %v820_v36, %v819_v33  ;;  %v845_v33 = vld [vmem:[%s6051_s30 + $0xa00] sm:$0xff] }
  0x89   : > { %v6372_v0 = vrot.slane %v1390_v50, %v6107_v15  ;;  %v5246_v44 = vpack.c.bf16 %v782_v55, %v781_v54  ;;  %v808_v50 = vld [vmem:[%s6051_s30 + $0x8d8] sm:$0xff]  ;;  %v5294_v54 = vpack.c.bf16 %v822_v48, %v821_v46  ;;  %v877_v36 = vld [vmem:[%s6051_s30 + $0xb00] sm:$0xff]  ;;  %v847_v48 = vld [vmem:[%s6051_s30 + $0xa10] sm:$0xff] }
  0x8a   : > { %5195 = vmatpush3.bf16.msra.mxu0 %v5194_v61  ;;  %v6367_v61 = vrot.slane %v516_v38, %v6107_v15  ;;  %v806_v38 = vld [vmem:[%s6051_s30 + $0x8c8] sm:$0xff]  ;;  %v5264_v55 = vpack.c.bf16 %v808_v50, %v807_v49  ;;  %v848_v49 = vld [vmem:[%s6051_s30 + $0xa18] sm:$0xff]  ;;  %v879_v50 = vld [vmem:[%s6051_s30 + $0xb10] sm:$0xff] }
  0x8b   : > { %5227 = vmatpush3.bf16.msra.mxu1 %v5226_v62  ;;  %5197 = vmatprep.subr.bf16.mxu0 %v5196_v63  ;;  %v831_v62 = vld [vmem:[%s6051_s30 + $0x990] sm:$0xff]  ;;  %v832_v63 = vld [vmem:[%s6051_s30 + $0x998] sm:$0xff]  ;;  %v1406_v14 = vcombine.high %v6372_v0, %v6372_v0 }
  0x8c   : > { %5229 = vmatprep.subr.bf16.mxu1 %v5228_v3  ;;  %v5248_v3 = vpack.c.bf16 %v800_v60, %v799_v59  ;;  %v5280_v7 = vpack.c.bf16 %v832_v63, %v831_v62  ;;  %v824_v60 = vld [vmem:[%s6051_s30 + $0x958] sm:$0xff]  ;;  %v809_v62 = vld [vmem:[%s6051_s30 + $0x8e0] sm:$0xff]  ;;  %v810_v63 = vld [vmem:[%s6051_s30 + $0x8e8] sm:$0xff] }
  0x8e   : > { %5199 = vmatpush3.bf16.msra.mxu0 %v5198_v9  ;;  %v801_v9 = vld [vmem:[%s6051_s30 + $0x8a0] sm:$0xff] }
  0x8f   : > { %5231 = vmatpush3.bf16.msra.mxu1 %v5230_v10  ;;  %5201 = vmatprep.subr.bf16.mxu0 %v5200_v11  ;;  %v802_v10 = vld [vmem:[%s6051_s30 + $0x8a8] sm:$0xff]  ;;  %v1405_v11 = vcombine.high %v6367_v61, %v6367_v61 }
  0x90   : > { %5233 = vmatprep.subr.bf16.mxu1 %v5232_v16  ;;  %v5250_v16 = vpack.c.bf16 %v784_v5, %v783_v4  ;;  %v5252_v19 = vpack.c.bf16 %v802_v10, %v801_v9  ;;  %v5298_v4 = vpack.c.bf16 %v824_v60, %v823_v58  ;;  %v5268_v5 = vpack.c.bf16 %v810_v63, %v809_v62  ;;  %v826_v10 = vld [vmem:[%s6051_s30 + $0x968] sm:$0xff]  ;;  %v849_v63 = vld [vmem:[%s6051_s30 + $0xa20] sm:$0xff] }
  0x92   : > { %5203 = vmatpush3.bf16.msra.mxu0 %v5202_v24  ;;  %v818_v24 = vld [vmem:[%s6051_s30 + $0x928] sm:$0xff] }
  0x93   : > { %5235 = vmatpush3.bf16.msra.mxu1 %v5234_v25  ;;  %5205 = vmatprep.subr.bf16.mxu0 %v5204_v26  ;;  %v803_v25 = vld [vmem:[%s6051_s30 + $0x8b0] sm:$0xff]  ;;  %v804_v26 = vld [vmem:[%s6051_s30 + $0x8b8] sm:$0xff]  ;;  %v5286_v29 = vpack.c.bf16 %v818_v24, %v817_v22 }
  0x94   : > { %5237 = vmatprep.subr.bf16.mxu1 %v5236_v30  ;;  %v5256_v30 = vpack.c.bf16 %v804_v26, %v803_v25  ;;  %v796_v22 = vld [vmem:[%s6051_s30 + $0x878] sm:$0xff]  ;;  %v861_v26 = vld [vmem:[%s6051_s30 + $0xa80] sm:$0xff] }
  0x95   : > { %v828_v25 = vld [vmem:[%s6051_s30 + $0x978] sm:$0xff] }
  0x96   : > { %5207 = vmatpush3.bf16.msra.mxu0 %v5206_v37  ;;  %v805_v37 = vld [vmem:[%s6051_s30 + $0x8c0] sm:$0xff] }
  0x97   : > { %5239 = vmatpush3.bf16.msra.mxu1 %v5238_v39  ;;  %5209 = vmatprep.subr.bf16.mxu0 %v5208_v40  ;;  %v837_v39 = vld [vmem:[%s6051_s30 + $0x9c0] sm:$0xff]  ;;  %v838_v40 = vld [vmem:[%s6051_s30 + $0x9c8] sm:$0xff]  ;;  %v5260_v42 = vpack.c.bf16 %v806_v38, %v805_v37 }
  0x98   : > { %5241 = vmatprep.subr.bf16.mxu1 %v5240_v43  ;;  %v789_v43 = vld [vmem:[%s6051_s30 + $0x840] sm:$0xff]  ;;  %v5292_v56 = vpack.c.bf16 %v838_v40, %v837_v39  ;;  %v878_v38 = vld [vmem:[%s6051_s30 + $0xb08] sm:$0xff]  ;;  %v863_v39 = vld [vmem:[%s6051_s30 + $0xa90] sm:$0xff] }
  0x99   : > { %v864_v40 = vld [vmem:[%s6051_s30 + $0xa98] sm:$0xff]  ;;  %v5342_v46 = vpack.c.bf16 %v878_v38, %v877_v36  ;;  %v855_v36 = vld [vmem:[%s6051_s30 + $0xa50] sm:$0xff] }
  0x9a   : > { %5211 = vmatpush3.bf16.msra.mxu0 %v5210_v51  ;;  %v839_v51 = vld [vmem:[%s6051_s30 + $0x9d0] sm:$0xff] }
  0x9b   : > { %5243 = vmatpush3.bf16.msra.mxu1 %v5242_v52  ;;  %5245 = vmatprep.subr.bf16.mxu0 %v5244_v53  ;;  %v840_v52 = vld [vmem:[%s6051_s30 + $0x9d8] sm:$0xff]  ;;  %v5262_v53 = vpack.c.bf16 %v790_v45, %v789_v43  ;;  %v887_v38 = vld [vmem:[%s6051_s30 + $0xb50] sm:$0xff] }
  0x9c   : > { %5277 = vmatprep.subr.bf16.mxu1 %v5276_v35  ;;  %v792_v35 = vld [vmem:[%s6051_s30 + $0x858] sm:$0xff]  ;;  %v5296_v59 = vpack.c.bf16 %v840_v52, %v839_v51 }
  0x9d   : > { %2067 = vmatmul.mubr.f32.vlgmr.msra.gmra.mrb[6].mxu0 %v6290_v18  ;;  %v786_v18 = vld [vmem:[%s6051_s30 + $0x828] sm:$0xff]  ;;  %v880_v52 = vld [vmem:[%s6051_s30 + $0xb18] sm:$0xff] }
  0x9e   : > { %5247 = vmatpush3.bf16.msra.mxu0 %v5246_v44  ;;  %2137 = vmatmul.mubr.f32.vlgmr.msra.gmra.mrb[6].mxu1 %v6295_v21  ;;  %v835_v21 = vld [vmem:[%s6051_s30 + $0x9b0] sm:$0xff]  ;;  %v5254_v28 = vpack.c.bf16 %v786_v18, %v785_v20  ;;  %v841_v44 = vld [vmem:[%s6051_s30 + $0x9e0] sm:$0xff]  ;;  %v5346_v60 = vpack.c.bf16 %v880_v52, %v879_v50 }
  0x9f   : > { %5279 = vmatpush3.bf16.msra.mxu1 %v5278_v1  ;;  %5249 = vmatprep.subr.bf16.mxu0 %v5248_v3  ;;  %v5288_v34 = vpack.c.bf16 %v836_v27, %v835_v21  ;;  %v842_v1 = vld [vmem:[%s6051_s30 + $0x9e8] sm:$0xff]  ;;  %v5266_v3 = vpack.c.bf16 %v792_v35, %v791_v57  ;;  %v795_v18 = vld [vmem:[%s6051_s30 + $0x870] sm:$0xff]  ;;  %v893_v27 = vld [vmem:[%s6051_s30 + $0xb80] sm:$0xff] }
  0xa0   : > { %5281 = vmatprep.subr.bf16.mxu1 %v5280_v7  ;;  %2206 = vmatprep.mubr.f32.mxu0 %v1405_v11  ;;  %v794_v7 = vld [vmem:[%s6051_s30 + $0x868] sm:$0xff]  ;;  %v5300_v9 = vpack.c.bf16 %v842_v1, %v841_v44  ;;  %v811_v11 = vld [vmem:[%s6051_s30 + $0x8f0] sm:$0xff]  ;;  %v897_v57 = vld [vmem:[%s6051_s30 + $0xba0] sm:$0xff] }
  0xa1   : > { %2276 = vmatprep.mubr.f32.mxu1 %v1406_v14  ;;  %v844_v14 = vld [vmem:[%s6051_s30 + $0x9f8] sm:$0xff]  ;;  %v5272_v20 = vpack.c.bf16 %v812_v12, %v811_v11  ;;  %v862_v21 = vld [vmem:[%s6051_s30 + $0xa88] sm:$0xff]  ;;  %v881_v44 = vld [vmem:[%s6051_s30 + $0xb20] sm:$0xff] }
  0xa2   : > { %5251 = vmatpush3.bf16.msra.mxu0 %v5250_v16  ;;  %v5270_v16 = vpack.c.bf16 %v794_v7, %v793_v6  ;;  %v5304_v24 = vpack.c.bf16 %v844_v14, %v843_v13  ;;  %v5308_v32 = vpack.c.bf16 %v862_v21, %v861_v26  ;;  %v898_v35 = vld [vmem:[%s6051_s30 + $0xba8] sm:$0xff]  ;;  %v900_v6 = vld [vmem:[%s6051_s30 + $0xbb8] sm:$0xff]  ;;  %v883_v12 = vld [vmem:[%s6051_s30 + $0xb30] sm:$0xff] }
  0xa3   : > { %5283 = vmatpush3.bf16.msra.mxu1 %v5282_v17  ;;  %5253 = vmatprep.subr.bf16.mxu0 %v5252_v19  ;;  %v517_v17 = vld [vmem:[%s6046_s26 + $0x28] sm:$0xff]  ;;  %v5302_v19 = vpack.c.bf16 %v826_v10, %v825_v8  ;;  %v5348_v1 = vpack.c.bf16 %v898_v35, %v897_v57  ;;  %v851_v10 = vld [vmem:[%s6051_s30 + $0xa30] sm:$0xff]  ;;  %v852_v11 = vld [vmem:[%s6051_s30 + $0xa38] sm:$0xff] }
  0xa4   : > { %5285 = vmatprep.subr.bf16.mxu1 %v5284_v23  ;;  %v827_v23 = vld [vmem:[%s6051_s30 + $0x970] sm:$0xff]  ;;  %v884_v14 = vld [vmem:[%s6051_s30 + $0xb38] sm:$0xff]  ;;  %v885_v26 = vld [vmem:[%s6051_s30 + $0xb40] sm:$0xff] }
  0xa5   : > { %v5306_v31 = vpack.c.bf16 %v828_v25, %v827_v23  ;;  %v854_v25 = vld [vmem:[%s6051_s30 + $0xa48] sm:$0xff]  ;;  %v857_v50 = vld [vmem:[%s6051_s30 + $0xa60] sm:$0xff]  ;;  %v876_v57 = vld [vmem:[%s6051_s30 + $0xaf8] sm:$0xff] }
  0xa6   : > { %5255 = vmatpush3.bf16.msra.mxu0 %v5254_v28  ;;  %v894_v28 = vld [vmem:[%s6051_s30 + $0xb88] sm:$0xff]  ;;  %v889_v52 = vld [vmem:[%s6051_s30 + $0xb60] sm:$0xff]  ;;  %v907_v35 = vld [vmem:[%s6051_s30 + $0xbf0] sm:$0xff] }
  0xa7   : > { %5287 = vmatpush3.bf16.msra.mxu1 %v5286_v29  ;;  %5257 = vmatprep.subr.bf16.mxu0 %v5256_v30  ;;  %v1407_v29 = vcombine.high %v517_v17, %v517_v17  ;;  %v5274_v30 = vpack.c.bf16 %v796_v22, %v795_v18  ;;  %v5340_v37 = vpack.c.bf16 %v894_v28, %v893_v27  ;;  %v886_v27 = vld [vmem:[%s6051_s30 + $0xb48] sm:$0xff]  ;;  %v871_v28 = vld [vmem:[%s6051_s30 + $0xad0] sm:$0xff] }
  0xa8   : > { %5289 = vmatprep.subr.bf16.mxu1 %v5288_v34  ;;  %v846_v34 = vld [vmem:[%s6051_s30 + $0xa08] sm:$0xff]  ;;  %v5322_v18 = vpack.c.bf16 %v852_v11, %v851_v10  ;;  %v5354_v22 = vpack.c.bf16 %v884_v14, %v883_v12  ;;  %v909_v12 = vld [vmem:[%s6051_s30 + $0xc00] sm:$0xff] }
  0xa9   : > { %v6449_v43 = vrot.slane %v1407_v29, %v6107_v15  ;;  %v5310_v45 = vpack.c.bf16 %v846_v34, %v845_v33  ;;  %v872_v29 = vld [vmem:[%s6051_s30 + $0xad8] sm:$0xff]  ;;  %v5358_v33 = vpack.c.bf16 %v886_v27, %v885_v26  ;;  %v941_v14 = vld [vmem:[%s6051_s30 + $0xd00] sm:$0xff]  ;;  %v911_v27 = vld [vmem:[%s6051_s30 + $0xc10] sm:$0xff] }
  0xaa   : > { %5259 = vmatpush3.bf16.msra.mxu0 %v5258_v47  ;;  %v6444_v47 = vrot.slane %v517_v17, %v6107_v15  ;;  %v870_v17 = vld [vmem:[%s6051_s30 + $0xac8] sm:$0xff]  ;;  %v5328_v34 = vpack.c.bf16 %v872_v29, %v871_v28  ;;  %v912_v28 = vld [vmem:[%s6051_s30 + $0xc18] sm:$0xff]  ;;  %v943_v29 = vld [vmem:[%s6051_s30 + $0xd10] sm:$0xff] }
  0xab   : > { %5291 = vmatpush3.bf16.msra.mxu1 %v5290_v41  ;;  %5261 = vmatprep.subr.bf16.mxu0 %v5260_v42  ;;  %v895_v41 = vld [vmem:[%s6051_s30 + $0xb90] sm:$0xff]  ;;  %v896_v42 = vld [vmem:[%s6051_s30 + $0xb98] sm:$0xff]  ;;  %v1423_v58 = vcombine.high %v6449_v43, %v6449_v43 }
  0xac   : > { %5293 = vmatprep.subr.bf16.mxu1 %v5292_v56  ;;  %v5312_v56 = vpack.c.bf16 %v864_v40, %v863_v39  ;;  %v5344_v51 = vpack.c.bf16 %v896_v42, %v895_v41  ;;  %v888_v40 = vld [vmem:[%s6051_s30 + $0xb58] sm:$0xff]  ;;  %v873_v41 = vld [vmem:[%s6051_s30 + $0xae0] sm:$0xff]  ;;  %v874_v42 = vld [vmem:[%s6051_s30 + $0xae8] sm:$0xff] }
  0xae   : > { %5263 = vmatpush3.bf16.msra.mxu0 %v5262_v53  ;;  %v865_v53 = vld [vmem:[%s6051_s30 + $0xaa0] sm:$0xff] }
  0xaf   : > { %5295 = vmatpush3.bf16.msra.mxu1 %v5294_v54  ;;  %5265 = vmatprep.subr.bf16.mxu0 %v5264_v55  ;;  %v866_v54 = vld [vmem:[%s6051_s30 + $0xaa8] sm:$0xff]  ;;  %v1422_v55 = vcombine.high %v6444_v47, %v6444_v47 }
  0xb0   : > { %5297 = vmatprep.subr.bf16.mxu1 %v5296_v59  ;;  %v5314_v59 = vpack.c.bf16 %v848_v49, %v847_v48  ;;  %v5316_v62 = vpack.c.bf16 %v866_v54, %v865_v53  ;;  %v5362_v48 = vpack.c.bf16 %v888_v40, %v887_v38  ;;  %v5332_v49 = vpack.c.bf16 %v874_v42, %v873_v41  ;;  %v890_v54 = vld [vmem:[%s6051_s30 + $0xb68] sm:$0xff]  ;;  %v913_v42 = vld [vmem:[%s6051_s30 + $0xc20] sm:$0xff] }
  0xb2   : > { %5267 = vmatpush3.bf16.msra.mxu0 %v5266_v3  ;;  %v882_v3 = vld [vmem:[%s6051_s30 + $0xb28] sm:$0xff] }
  0xb3   : > { %5299 = vmatpush3.bf16.msra.mxu1 %v5298_v4  ;;  %5269 = vmatprep.subr.bf16.mxu0 %v5268_v5  ;;  %v867_v4 = vld [vmem:[%s6051_s30 + $0xab0] sm:$0xff]  ;;  %v868_v5 = vld [vmem:[%s6051_s30 + $0xab8] sm:$0xff]  ;;  %v5350_v8 = vpack.c.bf16 %v882_v3, %v881_v44 }
  0xb4   : > { %5301 = vmatprep.subr.bf16.mxu1 %v5300_v9  ;;  %v5320_v9 = vpack.c.bf16 %v868_v5, %v867_v4  ;;  %v860_v44 = vld [vmem:[%s6051_s30 + $0xa78] sm:$0xff]  ;;  %v925_v5 = vld [vmem:[%s6051_s30 + $0xc80] sm:$0xff] }
  0xb5   : > { %v892_v4 = vld [vmem:[%s6051_s30 + $0xb78] sm:$0xff] }
  0xb6   : > { %5271 = vmatpush3.bf16.msra.mxu0 %v5270_v16  ;;  %v869_v16 = vld [vmem:[%s6051_s30 + $0xac0] sm:$0xff] }
  0xb7   : > { %5303 = vmatpush3.bf16.msra.mxu1 %v5302_v19  ;;  %5273 = vmatprep.subr.bf16.mxu0 %v5272_v20  ;;  %v901_v19 = vld [vmem:[%s6051_s30 + $0xbc0] sm:$0xff]  ;;  %v902_v20 = vld [vmem:[%s6051_s30 + $0xbc8] sm:$0xff]  ;;  %v5324_v23 = vpack.c.bf16 %v870_v17, %v869_v16 }
  0xb8   : > { %5305 = vmatprep.subr.bf16.mxu1 %v5304_v24  ;;  %v853_v24 = vld [vmem:[%s6051_s30 + $0xa40] sm:$0xff]  ;;  %v5356_v21 = vpack.c.bf16 %v902_v20, %v901_v19  ;;  %v942_v17 = vld [vmem:[%s6051_s30 + $0xd08] sm:$0xff]  ;;  %v927_v19 = vld [vmem:[%s6051_s30 + $0xc90] sm:$0xff] }
  0xb9   : > { %v928_v20 = vld [vmem:[%s6051_s30 + $0xc98] sm:$0xff]  ;;  %v5406_v26 = vpack.c.bf16 %v942_v17, %v941_v14  ;;  %v919_v14 = vld [vmem:[%s6051_s30 + $0xc50] sm:$0xff] }
  0xba   : > { %5275 = vmatpush3.bf16.msra.mxu0 %v5274_v30  ;;  %v903_v30 = vld [vmem:[%s6051_s30 + $0xbd0] sm:$0xff] }
  0xbb   : > { %5307 = vmatpush3.bf16.msra.mxu1 %v5306_v31  ;;  %5309 = vmatprep.subr.bf16.mxu0 %v5308_v32  ;;  %v904_v31 = vld [vmem:[%s6051_s30 + $0xbd8] sm:$0xff]  ;;  %v5326_v32 = vpack.c.bf16 %v854_v25, %v853_v24  ;;  %v951_v17 = vld [vmem:[%s6051_s30 + $0xd50] sm:$0xff] }
  0xbc   : > { %5341 = vmatprep.subr.bf16.mxu1 %v5340_v37  ;;  %v856_v37 = vld [vmem:[%s6051_s30 + $0xa58] sm:$0xff]  ;;  %v5360_v39 = vpack.c.bf16 %v904_v31, %v903_v30 }
  0xbd   : > { %2207 = vmatmul.mubr.f32.vlgmr.msra.gmra.mrb[8].mxu0 %v6367_v61  ;;  %v850_v61 = vld [vmem:[%s6051_s30 + $0xa28] sm:$0xff]  ;;  %v944_v31 = vld [vmem:[%s6051_s30 + $0xd18] sm:$0xff] }
  0xbe   : > { %5311 = vmatpush3.bf16.msra.mxu0 %v5310_v45  ;;  %2277 = vmatmul.mubr.f32.vlgmr.msra.gmra.mrb[8].mxu1 %v6372_v0  ;;  %v899_v0 = vld [vmem:[%s6051_s30 + $0xbb0] sm:$0xff]  ;;  %v5318_v7 = vpack.c.bf16 %v850_v61, %v849_v63  ;;  %v905_v45 = vld [vmem:[%s6051_s30 + $0xbe0] sm:$0xff]  ;;  %v5410_v40 = vpack.c.bf16 %v944_v31, %v943_v29 }
  0xbf   : > { %5343 = vmatpush3.bf16.msra.mxu1 %v5342_v46  ;;  %5313 = vmatprep.subr.bf16.mxu0 %v5312_v56  ;;  %v5352_v13 = vpack.c.bf16 %v900_v6, %v899_v0  ;;  %v906_v46 = vld [vmem:[%s6051_s30 + $0xbe8] sm:$0xff]  ;;  %v5330_v56 = vpack.c.bf16 %v856_v37, %v855_v36  ;;  %v859_v61 = vld [vmem:[%s6051_s30 + $0xa70] sm:$0xff]  ;;  %v957_v6 = vld [vmem:[%s6051_s30 + $0xd80] sm:$0xff] }
  0xc0   : > { %5345 = vmatprep.subr.bf16.mxu1 %v5344_v51  ;;  %2346 = vmatprep.mubr.f32.mxu0 %v1422_v55  ;;  %v858_v51 = vld [vmem:[%s6051_s30 + $0xa68] sm:$0xff]  ;;  %v5364_v53 = vpack.c.bf16 %v906_v46, %v905_v45  ;;  %v875_v55 = vld [vmem:[%s6051_s30 + $0xaf0] sm:$0xff]  ;;  %v961_v36 = vld [vmem:[%s6051_s30 + $0xda0] sm:$0xff] }
  0xc1   : > { %2416 = vmatprep.mubr.f32.mxu1 %v1423_v58  ;;  %v908_v58 = vld [vmem:[%s6051_s30 + $0xbf8] sm:$0xff]  ;;  %v5336_v63 = vpack.c.bf16 %v876_v57, %v875_v55  ;;  %v926_v0 = vld [vmem:[%s6051_s30 + $0xc88] sm:$0xff]  ;;  %v945_v45 = vld [vmem:[%s6051_s30 + $0xd20] sm:$0xff] }
  0xc2   : > { %5315 = vmatpush3.bf16.msra.mxu0 %v5314_v59  ;;  %v5334_v59 = vpack.c.bf16 %v858_v51, %v857_v50  ;;  %v5368_v3 = vpack.c.bf16 %v908_v58, %v907_v35  ;;  %v5372_v11 = vpack.c.bf16 %v926_v0, %v925_v5  ;;  %v962_v37 = vld [vmem:[%s6051_s30 + $0xda8] sm:$0xff]  ;;  %v964_v50 = vld [vmem:[%s6051_s30 + $0xdb8] sm:$0xff]  ;;  %v947_v57 = vld [vmem:[%s6051_s30 + $0xd30] sm:$0xff] }
  0xc3   : > { %5347 = vmatpush3.bf16.msra.mxu1 %v5346_v60  ;;  %5317 = vmatprep.subr.bf16.mxu0 %v5316_v62  ;;  %v518_v60 = vld [vmem:[%s6046_s26 + $0x30] sm:$0xff]  ;;  %v5366_v62 = vpack.c.bf16 %v890_v54, %v889_v52  ;;  %v5412_v46 = vpack.c.bf16 %v962_v37, %v961_v36  ;;  %v916_v55 = vld [vmem:[%s6051_s30 + $0xc38] sm:$0xff]  ;;  %v949_v5 = vld [vmem:[%s6051_s30 + $0xd40] sm:$0xff] }
  0xc4   : > { %5349 = vmatprep.subr.bf16.mxu1 %v5348_v1  ;;  %v891_v1 = vld [vmem:[%s6051_s30 + $0xb70] sm:$0xff]  ;;  %v948_v58 = vld [vmem:[%s6051_s30 + $0xd38] sm:$0xff]  ;;  %v921_v29 = vld [vmem:[%s6051_s30 + $0xc60] sm:$0xff] }
  0xc5   : > { %v5370_v10 = vpack.c.bf16 %v892_v4, %v891_v1  ;;  %v915_v54 = vld [vmem:[%s6051_s30 + $0xc30] sm:$0xff]  ;;  %v918_v4 = vld [vmem:[%s6051_s30 + $0xc48] sm:$0xff]  ;;  %v953_v31 = vld [vmem:[%s6051_s30 + $0xd60] sm:$0xff] }
  0xc6   : > { %5319 = vmatpush3.bf16.msra.mxu0 %v5318_v7  ;;  %v958_v7 = vld [vmem:[%s6051_s30 + $0xd88] sm:$0xff]  ;;  %v940_v36 = vld [vmem:[%s6051_s30 + $0xcf8] sm:$0xff]  ;;  %v971_v37 = vld [vmem:[%s6051_s30 + $0xdf0] sm:$0xff] }
  0xc7   : > { %5351 = vmatpush3.bf16.msra.mxu1 %v5350_v8  ;;  %5321 = vmatprep.subr.bf16.mxu0 %v5320_v9  ;;  %v1424_v8 = vcombine.high %v518_v60, %v518_v60  ;;  %v5338_v9 = vpack.c.bf16 %v860_v44, %v859_v61  ;;  %v5404_v16 = vpack.c.bf16 %v958_v7, %v957_v6  ;;  %v950_v6 = vld [vmem:[%s6051_s30 + $0xd48] sm:$0xff]  ;;  %v935_v7 = vld [vmem:[%s6051_s30 + $0xcd0] sm:$0xff] }
  0xc8   : > { %5353 = vmatprep.subr.bf16.mxu1 %v5352_v13  ;;  %v910_v13 = vld [vmem:[%s6051_s30 + $0xc08] sm:$0xff]  ;;  %v5386_v61 = vpack.c.bf16 %v916_v55, %v915_v54  ;;  %v5418_v44 = vpack.c.bf16 %v948_v58, %v947_v57  ;;  %v973_v57 = vld [vmem:[%s6051_s30 + $0xe00] sm:$0xff] }
  0xc9   : > { %v6526_v24 = vrot.slane %v1424_v8, %v6107_v15  ;;  %v5374_v25 = vpack.c.bf16 %v910_v13, %v909_v12  ;;  %v936_v8 = vld [vmem:[%s6051_s30 + $0xcd8] sm:$0xff]  ;;  %v5422_v12 = vpack.c.bf16 %v950_v6, %v949_v5  ;;  %v1005_v58 = vld [vmem:[%s6051_s30 + $0xf00] sm:$0xff]  ;;  %v975_v6 = vld [vmem:[%s6051_s30 + $0xe10] sm:$0xff] }
  0xca   : > { %5323 = vmatpush3.bf16.msra.mxu0 %v5322_v18  ;;  %v6521_v18 = vrot.slane %v518_v60, %v6107_v15  ;;  %v934_v60 = vld [vmem:[%s6051_s30 + $0xcc8] sm:$0xff]  ;;  %v5392_v13 = vpack.c.bf16 %v936_v8, %v935_v7  ;;  %v976_v7 = vld [vmem:[%s6051_s30 + $0xe18] sm:$0xff]  ;;  %v1007_v8 = vld [vmem:[%s6051_s30 + $0xf10] sm:$0xff] }
  0xcb   : > { %5355 = vmatpush3.bf16.msra.mxu1 %v5354_v22  ;;  %5325 = vmatprep.subr.bf16.mxu0 %v5324_v23  ;;  %v959_v22 = vld [vmem:[%s6051_s30 + $0xd90] sm:$0xff]  ;;  %v960_v23 = vld [vmem:[%s6051_s30 + $0xd98] sm:$0xff]  ;;  %v1440_v38 = vcombine.high %v6526_v24, %v6526_v24 }
  0xcc   : > { %5357 = vmatprep.subr.bf16.mxu1 %v5356_v21  ;;  %v5376_v21 = vpack.c.bf16 %v928_v20, %v927_v19  ;;  %v5408_v30 = vpack.c.bf16 %v960_v23, %v959_v22  ;;  %v952_v20 = vld [vmem:[%s6051_s30 + $0xd58] sm:$0xff]  ;;  %v937_v22 = vld [vmem:[%s6051_s30 + $0xce0] sm:$0xff]  ;;  %v938_v23 = vld [vmem:[%s6051_s30 + $0xce8] sm:$0xff] }
  0xce   : > { %5327 = vmatpush3.bf16.msra.mxu0 %v5326_v32  ;;  %v929_v32 = vld [vmem:[%s6051_s30 + $0xca0] sm:$0xff] }
  0xcf   : > { %5359 = vmatpush3.bf16.msra.mxu1 %v5358_v33  ;;  %5329 = vmatprep.subr.bf16.mxu0 %v5328_v34  ;;  %v930_v33 = vld [vmem:[%s6051_s30 + $0xca8] sm:$0xff]  ;;  %v1439_v34 = vcombine.high %v6521_v18, %v6521_v18 }
  0xd0   : > { %5361 = vmatprep.subr.bf16.mxu1 %v5360_v39  ;;  %v5378_v39 = vpack.c.bf16 %v912_v28, %v911_v27  ;;  %v5380_v41 = vpack.c.bf16 %v930_v33, %v929_v32  ;;  %v5426_v27 = vpack.c.bf16 %v952_v20, %v951_v17  ;;  %v5396_v28 = vpack.c.bf16 %v938_v23, %v937_v22  ;;  %v954_v33 = vld [vmem:[%s6051_s30 + $0xd68] sm:$0xff]  ;;  %v977_v23 = vld [vmem:[%s6051_s30 + $0xe20] sm:$0xff] }
  0xd2   : > { %5331 = vmatpush3.bf16.msra.mxu0 %v5330_v56  ;;  %v946_v56 = vld [vmem:[%s6051_s30 + $0xd28] sm:$0xff] }
  0xd3   : > { %5363 = vmatpush3.bf16.msra.mxu1 %v5362_v48  ;;  %5333 = vmatprep.subr.bf16.mxu0 %v5332_v49  ;;  %v931_v48 = vld [vmem:[%s6051_s30 + $0xcb0] sm:$0xff]  ;;  %v932_v49 = vld [vmem:[%s6051_s30 + $0xcb8] sm:$0xff]  ;;  %v5414_v52 = vpack.c.bf16 %v946_v56, %v945_v45 }
  0xd4   : > { %5365 = vmatprep.subr.bf16.mxu1 %v5364_v53  ;;  %v5384_v53 = vpack.c.bf16 %v932_v49, %v931_v48  ;;  %v924_v45 = vld [vmem:[%s6051_s30 + $0xc78] sm:$0xff]  ;;  %v989_v49 = vld [vmem:[%s6051_s30 + $0xe80] sm:$0xff] }
  0xd5   : > { %v956_v48 = vld [vmem:[%s6051_s30 + $0xd78] sm:$0xff] }
  0xd6   : > { %5335 = vmatpush3.bf16.msra.mxu0 %v5334_v59  ;;  %v933_v59 = vld [vmem:[%s6051_s30 + $0xcc0] sm:$0xff] }
  0xd7   : > { %5367 = vmatpush3.bf16.msra.mxu1 %v5366_v62  ;;  %5337 = vmatprep.subr.bf16.mxu0 %v5336_v63  ;;  %v965_v62 = vld [vmem:[%s6051_s30 + $0xdc0] sm:$0xff]  ;;  %v966_v63 = vld [vmem:[%s6051_s30 + $0xdc8] sm:$0xff]  ;;  %v5388_v1 = vpack.c.bf16 %v934_v60, %v933_v59 }
  0xd8   : > { %5369 = vmatprep.subr.bf16.mxu1 %v5368_v3  ;;  %v917_v3 = vld [vmem:[%s6051_s30 + $0xc40] sm:$0xff]  ;;  %v5420_v0 = vpack.c.bf16 %v966_v63, %v965_v62  ;;  %v1006_v60 = vld [vmem:[%s6051_s30 + $0xf08] sm:$0xff]  ;;  %v991_v62 = vld [vmem:[%s6051_s30 + $0xe90] sm:$0xff] }
  0xd9   : > { %v992_v63 = vld [vmem:[%s6051_s30 + $0xe98] sm:$0xff]  ;;  %v5470_v5 = vpack.c.bf16 %v1006_v60, %v1005_v58  ;;  %v983_v58 = vld [vmem:[%s6051_s30 + $0xe50] sm:$0xff] }
  0xda   : > { %5339 = vmatpush3.bf16.msra.mxu0 %v5338_v9  ;;  %v967_v9 = vld [vmem:[%s6051_s30 + $0xdd0] sm:$0xff] }
  0xdb   : > { %5371 = vmatpush3.bf16.msra.mxu1 %v5370_v10  ;;  %5373 = vmatprep.subr.bf16.mxu0 %v5372_v11  ;;  %v968_v10 = vld [vmem:[%s6051_s30 + $0xdd8] sm:$0xff]  ;;  %v5390_v11 = vpack.c.bf16 %v918_v4, %v917_v3  ;;  %v1015_v60 = vld [vmem:[%s6051_s30 + $0xf50] sm:$0xff] }
  0xdc   : > { %5405 = vmatprep.subr.bf16.mxu1 %v5404_v16  ;;  %v920_v16 = vld [vmem:[%s6051_s30 + $0xc58] sm:$0xff]  ;;  %v5424_v19 = vpack.c.bf16 %v968_v10, %v967_v9 }
  0xdd   : > { %2347 = vmatmul.mubr.f32.vlgmr.msra.gmra.mrb[10].mxu0 %v6444_v47  ;;  %v914_v47 = vld [vmem:[%s6051_s30 + $0xc28] sm:$0xff]  ;;  %v1008_v10 = vld [vmem:[%s6051_s30 + $0xf18] sm:$0xff] }
  0xde   : > { %5375 = vmatpush3.bf16.msra.mxu0 %v5374_v25  ;;  %2417 = vmatmul.mubr.f32.vlgmr.msra.gmra.mrb[10].mxu1 %v6449_v43  ;;  %v963_v43 = vld [vmem:[%s6051_s30 + $0xdb0] sm:$0xff]  ;;  %v5382_v51 = vpack.c.bf16 %v914_v47, %v913_v42  ;;  %v969_v25 = vld [vmem:[%s6051_s30 + $0xde0] sm:$0xff]  ;;  %v5474_v20 = vpack.c.bf16 %v1008_v10, %v1007_v8 }
  0xdf   : > { %5407 = vmatpush3.bf16.msra.mxu1 %v5406_v26  ;;  %5377 = vmatprep.subr.bf16.mxu0 %v5376_v21  ;;  %v5416_v35 = vpack.c.bf16 %v964_v50, %v963_v43  ;;  %v970_v26 = vld [vmem:[%s6051_s30 + $0xde8] sm:$0xff]  ;;  %v5394_v21 = vpack.c.bf16 %v920_v16, %v919_v14  ;;  %v923_v47 = vld [vmem:[%s6051_s30 + $0xc70] sm:$0xff]  ;;  %v1021_v50 = vld [vmem:[%s6051_s30 + $0xf80] sm:$0xff] }
  0xe0   : > { %5409 = vmatprep.subr.bf16.mxu1 %v5408_v30  ;;  %2486 = vmatprep.mubr.f32.mxu0 %v1439_v34  ;;  %v922_v30 = vld [vmem:[%s6051_s30 + $0xc68] sm:$0xff]  ;;  %v5428_v32 = vpack.c.bf16 %v970_v26, %v969_v25  ;;  %v939_v34 = vld [vmem:[%s6051_s30 + $0xcf0] sm:$0xff]  ;;  %v1025_v14 = vld [vmem:[%s6051_s30 + $0xfa0] sm:$0xff] }
  0xe1   : > { %2556 = vmatprep.mubr.f32.mxu1 %v1440_v38  ;;  %v972_v38 = vld [vmem:[%s6051_s30 + $0xdf8] sm:$0xff]  ;;  %v5400_v42 = vpack.c.bf16 %v940_v36, %v939_v34  ;;  %v990_v43 = vld [vmem:[%s6051_s30 + $0xe88] sm:$0xff]  ;;  %v1009_v25 = vld [vmem:[%s6051_s30 + $0xf20] sm:$0xff] }
  0xe2   : > { %5379 = vmatpush3.bf16.msra.mxu0 %v5378_v39  ;;  %v5398_v39 = vpack.c.bf16 %v922_v30, %v921_v29  ;;  %v5432_v56 = vpack.c.bf16 %v972_v38, %v971_v37  ;;  %v5436_v55 = vpack.c.bf16 %v990_v43, %v989_v49  ;;  %v1026_v16 = vld [vmem:[%s6051_s30 + $0xfa8] sm:$0xff]  ;;  %v1028_v29 = vld [vmem:[%s6051_s30 + $0xfb8] sm:$0xff]  ;;  %v1011_v36 = vld [vmem:[%s6051_s30 + $0xf30] sm:$0xff] }
  0xe3   : > { %5411 = vmatpush3.bf16.msra.mxu1 %v5410_v40  ;;  %5381 = vmatprep.subr.bf16.mxu0 %v5380_v41  ;;  %v519_v40 = vld [vmem:[%s6046_s26 + $0x38] sm:$0xff]  ;;  %v5430_v41 = vpack.c.bf16 %v954_v33, %v953_v31  ;;  %v5476_v26 = vpack.c.bf16 %v1026_v16, %v1025_v14  ;;  %v979_v33 = vld [vmem:[%s6051_s30 + $0xe30] sm:$0xff]  ;;  %v1013_v49 = vld [vmem:[%s6051_s30 + $0xf40] sm:$0xff] }
  0xe4   : > { %5413 = vmatprep.subr.bf16.mxu1 %v5412_v46  ;;  %v955_v46 = vld [vmem:[%s6051_s30 + $0xd70] sm:$0xff]  ;;  %v980_v34 = vld [vmem:[%s6051_s30 + $0xe38] sm:$0xff]  ;;  %v985_v8 = vld [vmem:[%s6051_s30 + $0xe60] sm:$0xff] }
  0xe5   : > { %v5434_v54 = vpack.c.bf16 %v956_v48, %v955_v46  ;;  %v1012_v38 = vld [vmem:[%s6051_s30 + $0xf38] sm:$0xff]  ;;  %v982_v48 = vld [vmem:[%s6051_s30 + $0xe48] sm:$0xff]  ;;  %v1017_v10 = vld [vmem:[%s6051_s30 + $0xf60] sm:$0xff] }
  0xe6   : > { %5383 = vmatpush3.bf16.msra.mxu0 %v5382_v51  ;;  %v1022_v51 = vld [vmem:[%s6051_s30 + $0xf88] sm:$0xff]  ;;  %v1003_v14 = vld [vmem:[%s6051_s30 + $0xef0] sm:$0xff]  ;;  %v1004_v16 = vld [vmem:[%s6051_s30 + $0xef8] sm:$0xff] }
  0xe7   : > { %5415 = vmatpush3.bf16.msra.mxu1 %v5414_v52  ;;  %5385 = vmatprep.subr.bf16.mxu0 %v5384_v53  ;;  %v1441_v52 = vcombine.high %v519_v40, %v519_v40  ;;  %v5402_v53 = vpack.c.bf16 %v924_v45, %v923_v47  ;;  %v5468_v59 = vpack.c.bf16 %v1022_v51, %v1021_v50  ;;  %v1014_v50 = vld [vmem:[%s6051_s30 + $0xf48] sm:$0xff]  ;;  %v999_v51 = vld [vmem:[%s6051_s30 + $0xed0] sm:$0xff] }
  0xe8   : > { %5417 = vmatprep.subr.bf16.mxu1 %v5416_v35  ;;  %v974_v35 = vld [vmem:[%s6051_s30 + $0xe08] sm:$0xff]  ;;  %v5450_v47 = vpack.c.bf16 %v980_v34, %v979_v33  ;;  %v5482_v45 = vpack.c.bf16 %v1012_v38, %v1011_v36  ;;  %v1053_v33 = vld [vmem:[%s6051_s30 + $0x1080] sm:$0xff] }
  0xe9   : > { %v6603_v3 = vrot.slane %v1441_v52, %v6107_v15  ;;  %v5438_v4 = vpack.c.bf16 %v974_v35, %v973_v57  ;;  %v1000_v52 = vld [vmem:[%s6051_s30 + $0xed8] sm:$0xff]  ;;  %v5486_v57 = vpack.c.bf16 %v1014_v50, %v1013_v49  ;;  %v1054_v34 = vld [vmem:[%s6051_s30 + $0x1088] sm:$0xff]  ;;  %v1055_v49 = vld [vmem:[%s6051_s30 + $0x1090] sm:$0xff] }
  0xea   : > { %5387 = vmatpush3.bf16.msra.mxu0 %v5386_v61  ;;  %v6598_v61 = vrot.slane %v519_v40, %v6107_v15  ;;  %v998_v40 = vld [vmem:[%s6051_s30 + $0xec8] sm:$0xff]  ;;  %v5456_v35 = vpack.c.bf16 %v1000_v52, %v999_v51  ;;  %v1087_v51 = vld [vmem:[%s6051_s30 + $0x1190] sm:$0xff]  ;;  %v1088_v52 = vld [vmem:[%s6051_s30 + $0x1198] sm:$0xff] }
  0xeb   : > { %5419 = vmatpush3.bf16.msra.mxu1 %v5418_v44  ;;  %5389 = vmatprep.subr.bf16.mxu0 %v5388_v1  ;;  %v1023_v44 = vld [vmem:[%s6051_s30 + $0xf90] sm:$0xff]  ;;  %v1024_v1 = vld [vmem:[%s6051_s30 + $0xf98] sm:$0xff]  ;;  %v1457_v17 = vcombine.high %v6603_v3, %v6603_v3  ;;  %v1086_v38 = vld [vmem:[%s6051_s30 + $0x1188] sm:$0xff] }
  0xec   : > { %5421 = vmatprep.subr.bf16.mxu1 %v5420_v0  ;;  %v5440_v0 = vpack.c.bf16 %v992_v63, %v991_v62  ;;  %v5472_v9 = vpack.c.bf16 %v1024_v1, %v1023_v44  ;;  %v1016_v63 = vld [vmem:[%s6051_s30 + $0xf58] sm:$0xff]  ;;  %v1001_v44 = vld [vmem:[%s6051_s30 + $0xee0] sm:$0xff]  ;;  %v1002_v1 = vld [vmem:[%s6051_s30 + $0xee8] sm:$0xff] }
  0xee   : > { %5391 = vmatpush3.bf16.msra.mxu0 %v5390_v11  ;;  %v993_v11 = vld [vmem:[%s6051_s30 + $0xea0] sm:$0xff] }
  0xef   : > { %5423 = vmatpush3.bf16.msra.mxu1 %v5422_v12  ;;  %5393 = vmatprep.subr.bf16.mxu0 %v5392_v13  ;;  %v994_v12 = vld [vmem:[%s6051_s30 + $0xea8] sm:$0xff]  ;;  %v1456_v13 = vcombine.high %v6598_v61, %v6598_v61 }
  0xf0   : > { %5425 = vmatprep.subr.bf16.mxu1 %v5424_v19  ;;  %v5442_v19 = vpack.c.bf16 %v976_v7, %v975_v6  ;;  %v5444_v22 = vpack.c.bf16 %v994_v12, %v993_v11  ;;  %v5490_v6 = vpack.c.bf16 %v1016_v63, %v1015_v60  ;;  %v5460_v7 = vpack.c.bf16 %v1002_v1, %v1001_v44  ;;  %v1057_v63 = vld [vmem:[%s6051_s30 + $0x10a0] sm:$0xff]  ;;  %v1058_v44 = vld [vmem:[%s6051_s30 + $0x10a8] sm:$0xff] }
  0xf1   : > { %v5536_v60 = vpack.c.bf16 %v1088_v52, %v1087_v51  ;;  %v1080_v51 = vld [vmem:[%s6051_s30 + $0x1158] sm:$0xff]  ;;  %v1065_v52 = vld [vmem:[%s6051_s30 + $0x10e0] sm:$0xff] }
  0xf2   : > { %5395 = vmatpush3.bf16.msra.mxu0 %v5394_v21  ;;  %v1010_v21 = vld [vmem:[%s6051_s30 + $0xf28] sm:$0xff] }
  0xf3   : > { %5427 = vmatpush3.bf16.msra.mxu1 %v5426_v27  ;;  %5397 = vmatprep.subr.bf16.mxu0 %v5396_v28  ;;  %v995_v27 = vld [vmem:[%s6051_s30 + $0xeb0] sm:$0xff]  ;;  %v996_v28 = vld [vmem:[%s6051_s30 + $0xeb8] sm:$0xff]  ;;  %v5478_v31 = vpack.c.bf16 %v1010_v21, %v1009_v25 }
  0xf4   : > { %5429 = vmatprep.subr.bf16.mxu1 %v5428_v32  ;;  %v5448_v32 = vpack.c.bf16 %v996_v28, %v995_v27  ;;  %v5464_v28 = vpack.c.bf16 %v1004_v16, %v1003_v14  ;;  %v1060_v14 = vld [vmem:[%s6051_s30 + $0x10b8] sm:$0xff] }
  0xf5   : > { %v1092_v16 = vld [vmem:[%s6051_s30 + $0x11b8] sm:$0xff] }
  0xf6   : > { %5399 = vmatpush3.bf16.msra.mxu0 %v5398_v39  ;;  %v997_v39 = vld [vmem:[%s6051_s30 + $0xec0] sm:$0xff] }
  0xf7   : > { %5431 = vmatpush3.bf16.msra.mxu1 %v5430_v41  ;;  %5401 = vmatprep.subr.bf16.mxu0 %v5400_v42  ;;  %v1029_v41 = vld [vmem:[%s6051_s30 + $0xfc0] sm:$0xff]  ;;  %v1030_v42 = vld [vmem:[%s6051_s30 + $0xfc8] sm:$0xff]  ;;  %v5452_v46 = vpack.c.bf16 %v998_v40, %v997_v39 }
  0xf8   : > { %5433 = vmatprep.subr.bf16.mxu1 %v5432_v56  ;;  %v981_v56 = vld [vmem:[%s6051_s30 + $0xe40] sm:$0xff]  ;;  %v5484_v43 = vpack.c.bf16 %v1030_v42, %v1029_v41  ;;  %v5500_v42 = vpack.c.bf16 %v1054_v34, %v1053_v33  ;;  %v1046_v33 = vld [vmem:[%s6051_s30 + $0x1048] sm:$0xff] }
  0xf9   : > { %v1077_v34 = vld [vmem:[%s6051_s30 + $0x1140] sm:$0xff] }
  0xfa   : > { %5403 = vmatpush3.bf16.msra.mxu0 %v5402_v53  ;;  %v1031_v53 = vld [vmem:[%s6051_s30 + $0xfd0] sm:$0xff] }
  0xfb   : > { %5435 = vmatpush3.bf16.msra.mxu1 %v5434_v54  ;;  %5437 = vmatprep.subr.bf16.mxu0 %v5436_v55  ;;  %v1032_v54 = vld [vmem:[%s6051_s30 + $0xfd8] sm:$0xff]  ;;  %v5454_v55 = vpack.c.bf16 %v982_v48, %v981_v56  ;;  %v1070_v48 = vld [vmem:[%s6051_s30 + $0x1108] sm:$0xff] }
  0xfc   : > { %5469 = vmatprep.subr.bf16.mxu1 %v5468_v59  ;;  %v984_v59 = vld [vmem:[%s6051_s30 + $0xe58] sm:$0xff]  ;;  %v5488_v62 = vpack.c.bf16 %v1032_v54, %v1031_v53 }
  0xfd   : > { %2487 = vmatmul.mubr.f32.vlgmr.msra.gmra.mrb[12].mxu0 %v6521_v18  ;;  %v978_v18 = vld [vmem:[%s6051_s30 + $0xe28] sm:$0xff] }
  0xfe   : > { %5439 = vmatpush3.bf16.msra.mxu0 %v5438_v4  ;;  %2557 = vmatmul.mubr.f32.vlgmr.msra.gmra.mrb[12].mxu1 %v6526_v24  ;;  %v1027_v24 = vld [vmem:[%s6051_s30 + $0xfb0] sm:$0xff]  ;;  %v5446_v30 = vpack.c.bf16 %v978_v18, %v977_v23  ;;  %v1033_v4 = vld [vmem:[%s6051_s30 + $0xfe0] sm:$0xff] }
  0xff   : > { %5471 = vmatpush3.bf16.msra.mxu1 %v5470_v5  ;;  %5441 = vmatprep.subr.bf16.mxu0 %v5440_v0  ;;  %v5480_v37 = vpack.c.bf16 %v1028_v29, %v1027_v24  ;;  %v1034_v5 = vld [vmem:[%s6051_s30 + $0xfe8] sm:$0xff]  ;;  %v5458_v0 = vpack.c.bf16 %v984_v59, %v983_v58  ;;  %v987_v24 = vld [vmem:[%s6051_s30 + $0xe70] sm:$0xff]  ;;  %v988_v29 = vld [vmem:[%s6051_s30 + $0xe78] sm:$0xff] }
 0x100   : > { %5473 = vmatprep.subr.bf16.mxu1 %v5472_v9  ;;  %2626 = vmatprep.mubr.f32.mxu0 %v1456_v13  ;;  %v986_v9 = vld [vmem:[%s6051_s30 + $0xe68] sm:$0xff]  ;;  %v5492_v12 = vpack.c.bf16 %v1034_v5, %v1033_v4  ;;  %v5466_v40 = vpack.c.bf16 %v988_v29, %v987_v24  ;;  %v1040_v58 = vld [vmem:[%s6051_s30 + $0x1018] sm:$0xff]  ;;  %v1071_v59 = vld [vmem:[%s6051_s30 + $0x1110] sm:$0xff] }
 0x101   : > { %2696 = vmatprep.mubr.f32.mxu1 %v1457_v17  ;;  %v1018_v13 = vld [vmem:[%s6051_s30 + $0xf68] sm:$0xff]  ;;  %v5462_v25 = vpack.c.bf16 %v986_v9, %v985_v8  ;;  %v1089_v4 = vld [vmem:[%s6051_s30 + $0x11a0] sm:$0xff]  ;;  %v5508_v8 = vpack.c.bf16 %v1058_v44, %v1057_v63 }
 0x102   : > { %5443 = vmatpush3.bf16.msra.mxu0 %v5442_v19  ;;  %v5494_v27 = vpack.c.bf16 %v1018_v13, %v1017_v10  ;;  %v1090_v5 = vld [vmem:[%s6051_s30 + $0x11a8] sm:$0xff]  ;;  %v1041_v9 = vld [vmem:[%s6051_s30 + $0x1020] sm:$0xff]  ;;  %v1059_v13 = vld [vmem:[%s6051_s30 + $0x10b0] sm:$0xff] }
 0x103   : > { %5475 = vmatpush3.bf16.msra.mxu1 %v5474_v20  ;;  %5445 = vmatprep.subr.bf16.mxu0 %v5444_v22  ;;  %v1035_v20 = vld [vmem:[%s6051_s30 + $0xff0] sm:$0xff]  ;;  %v1036_v22 = vld [vmem:[%s6051_s30 + $0xff8] sm:$0xff]  ;;  %v1073_v10 = vld [vmem:[%s6051_s30 + $0x1120] sm:$0xff] }
 0x104   : > { %5477 = vmatprep.subr.bf16.mxu1 %v5476_v26  ;;  %v520_v26 = vld [vmem:[%s6046_s26 + $0x40] sm:$0xff]  ;;  %v1094_v24 = vld [vmem:[%s6051_s30 + $0x11c8] sm:$0xff] }
 0x105   : > { %v1458_v39 = vcombine.high %v520_v26, %v520_v26  ;;  %v6677_v50 = vrot.slane %v520_v26, %v6107_v15  ;;  %v1076_v26 = vld [vmem:[%s6051_s30 + $0x1138] sm:$0xff]  ;;  %v1081_v63 = vld [vmem:[%s6051_s30 + $0x1160] sm:$0xff] }
 0x106   : > { %5447 = vmatpush3.bf16.msra.mxu0 %v5446_v30  ;;  %v1019_v30 = vld [vmem:[%s6051_s30 + $0xf70] sm:$0xff] }
 0x107   : > { %5479 = vmatpush3.bf16.msra.mxu1 %v5478_v31  ;;  %5449 = vmatprep.subr.bf16.mxu0 %v5448_v32  ;;  %v5496_v31 = vpack.c.bf16 %v1036_v22, %v1035_v20  ;;  %v1020_v32 = vld [vmem:[%s6051_s30 + $0xf78] sm:$0xff]  ;;  %v6682_v53 = vrot.slane %v1458_v39, %v6107_v15  ;;  %v1473_v1 = vcombine.high %v6677_v50, %v6677_v50  ;;  %v1043_v22 = vld [vmem:[%s6051_s30 + $0x1030] sm:$0xff] }
 0x108   : > { %5481 = vmatprep.subr.bf16.mxu1 %v5480_v37  ;;  %v1085_v37 = vld [vmem:[%s6051_s30 + $0x1180] sm:$0xff]  ;;  %v5498_v41 = vpack.c.bf16 %v1020_v32, %v1019_v30  ;;  %v5512_v20 = vpack.c.bf16 %v1060_v14, %v1059_v13  ;;  %v1063_v39 = vld [vmem:[%s6051_s30 + $0x10d0] sm:$0xff] }
 0x109   : > { %v5532_v56 = vpack.c.bf16 %v1086_v38, %v1085_v37  ;;  %v1045_v32 = vld [vmem:[%s6051_s30 + $0x1040] sm:$0xff]  ;;  %v1078_v38 = vld [vmem:[%s6051_s30 + $0x1148] sm:$0xff] }
 0x10a   : > { %5451 = vmatpush3.bf16.msra.mxu0 %v5450_v47  ;;  %v1037_v47 = vld [vmem:[%s6051_s30 + $0x1000] sm:$0xff] }
 0x10b   : > { %5483 = vmatpush3.bf16.msra.mxu1 %v5482_v45  ;;  %5453 = vmatprep.subr.bf16.mxu0 %v5452_v46  ;;  %v1038_v45 = vld [vmem:[%s6051_s30 + $0x1008] sm:$0xff]  ;;  %v1069_v46 = vld [vmem:[%s6051_s30 + $0x1100] sm:$0xff] }
 0x10c   : > { %5485 = vmatprep.subr.bf16.mxu1 %v5484_v43  ;;  %v1056_v43 = vld [vmem:[%s6051_s30 + $0x1098] sm:$0xff]  ;;  %v5502_v54 = vpack.c.bf16 %v1038_v45, %v1037_v47  ;;  %v5518_v47 = vpack.c.bf16 %v1046_v33, %v1045_v32  ;;  %v5550_v45 = vpack.c.bf16 %v1078_v38, %v1077_v34  ;;  %v1133_v32 = vld [vmem:[%s6051_s30 + $0x1300] sm:$0xff]  ;;  %v1134_v34 = vld [vmem:[%s6051_s30 + $0x1308] sm:$0xff] }
 0x10d   : > { %v1120_v38 = vld [vmem:[%s6051_s30 + $0x1298] sm:$0xff] }
 0x10e   : > { %5455 = vmatpush3.bf16.msra.mxu0 %v5454_v55  ;;  %v5534_v55 = vpack.c.bf16 %v1070_v48, %v1069_v46  ;;  %v1048_v48 = vld [vmem:[%s6051_s30 + $0x1058] sm:$0xff] }
 0x10f   : > { %5487 = vmatpush3.bf16.msra.mxu1 %v5486_v57  ;;  %5457 = vmatprep.subr.bf16.mxu0 %v5456_v35  ;;  %v5504_v57 = vpack.c.bf16 %v1056_v43, %v1055_v49  ;;  %v1039_v35 = vld [vmem:[%s6051_s30 + $0x1010] sm:$0xff] }
 0x110   : > { %v4014_v11 = vpop.f32.mrb[0].mxu0  ;;  %5489 = vmatprep.subr.bf16.mxu1 %v5488_v62  ;;  %v1072_v62 = vld [vmem:[%s6051_s30 + $0x1118] sm:$0xff]  ;;  %v1079_v49 = vld [vmem:[%s6051_s30 + $0x1150] sm:$0xff] }
 0x111   : > { %v4049_v17 = vpop.f32.mrb[0].mxu1  ;;  %v4015_v19 = vpop.f32.mrb[1].mxu0 }
 0x112   : > { %v4016_v23 = vadd.f32 %v4015_v19, %v4014_v11  ;;  %v4050_v18 = vpop.f32.mrb[1].mxu1  ;;  %5459 = vmatpush3.bf16.msra.mxu0 %v5458_v0  ;;  %v1474_v0 = vcombine.high %v6682_v53, %v6682_v53  ;;  %v5540_v11 = vpack.c.bf16 %v1090_v5, %v1089_v4  ;;  %v1082_v4 = vld [vmem:[%s6051_s30 + $0x1168] sm:$0xff]  ;;  %v1067_v5 = vld [vmem:[%s6051_s30 + $0x10f0] sm:$0xff] }
 0x113   : > { %v4051_v21 = vadd.f32 %v4050_v18, %v4049_v17  ;;  %5491 = vmatpush3.bf16.msra.mxu1 %v5490_v6  ;;  %5461 = vmatprep.subr.bf16.mxu0 %v5460_v7  ;;  %v5506_v6 = vpack.c.bf16 %v1040_v58, %v1039_v35  ;;  %v5538_v7 = vpack.c.bf16 %v1072_v62, %v1071_v59  ;;  %v1075_v18 = vld [vmem:[%s6051_s30 + $0x1130] sm:$0xff]  ;;  %v1050_v62 = vld [vmem:[%s6051_s30 + $0x1068] sm:$0xff] }
 0x114   : > { %5493 = vmatprep.subr.bf16.mxu1 %v5492_v12  ;;  %v1074_v12 = vld [vmem:[%s6051_s30 + $0x1128] sm:$0xff]  ;;  %v5546_v30 = vpack.c.bf16 %v1076_v26, %v1075_v18  ;;  %v5554_v58 = vpack.c.bf16 %v1080_v51, %v1079_v49  ;;  %v5558_v14 = vpack.c.bf16 %v1082_v4, %v1081_v63  ;;  %v1117_v18 = vld [vmem:[%s6051_s30 + $0x1280] sm:$0xff]  ;;  %v1135_v49 = vld [vmem:[%s6051_s30 + $0x1310] sm:$0xff] }
 0x115   : > { %v6666_v36 = vadd.f32 %v4051_v21, %v4016_v23  ;;  %v5542_v19 = vpack.c.bf16 %v1074_v12, %v1073_v10  ;;  %v1044_v23 = vld [vmem:[%s6051_s30 + $0x1038] sm:$0xff]  ;;  %v1061_v21 = vld [vmem:[%s6051_s30 + $0x10c0] sm:$0xff]  ;;  %v521_v12 = vld [vmem:[%s6046_s26 + $0x48] sm:$0xff] }
 0x116   : > { %5463 = vmatpush3.bf16.msra.mxu0 %v5462_v25  ;;  %v5514_v29 = vpack.c.bf16 %v1044_v23, %v1043_v22  ;;  %v1084_v23 = vld [vmem:[%s6051_s30 + $0x1178] sm:$0xff]  ;;  %v1149_v26 = vld [vmem:[%s6051_s30 + $0x1380] sm:$0xff]  ;;  %v1138_v4 = vld [vmem:[%s6051_s30 + $0x1328] sm:$0xff] }
 0x117   : > { %5495 = vmatpush3.bf16.msra.mxu1 %v5494_v27  ;;  %5465 = vmatprep.subr.bf16.mxu0 %v5464_v28  ;;  %v1062_v27 = vld [vmem:[%s6051_s30 + $0x10c8] sm:$0xff]  ;;  %v1093_v28 = vld [vmem:[%s6051_s30 + $0x11c0] sm:$0xff]  ;;  %v1136_v51 = vld [vmem:[%s6051_s30 + $0x1318] sm:$0xff] }
 0x118   : > { %5497 = vmatprep.subr.bf16.mxu1 %v5496_v31  ;;  %v5516_v31 = vpack.c.bf16 %v1062_v27, %v1061_v21  ;;  %v5548_v37 = vpack.c.bf16 %v1094_v24, %v1093_v28  ;;  %v1150_v21 = vld [vmem:[%s6051_s30 + $0x1388] sm:$0xff]  ;;  %v1475_v27 = vcombine.high %v521_v12, %v521_v12  ;;  %v1105_v63 = vld [vmem:[%s6051_s30 + $0x1220] sm:$0xff] }
 0x119   : > { %v5596_v33 = vpack.c.bf16 %v1150_v21, %v1149_v26  ;;  %v1142_v21 = vld [vmem:[%s6051_s30 + $0x1348] sm:$0xff] }
 0x11a   : > { %5467 = vmatpush3.bf16.msra.mxu0 %v5466_v40  ;;  %v1064_v40 = vld [vmem:[%s6051_s30 + $0x10d8] sm:$0xff] }
 0x11b   : > { %5499 = vmatpush3.bf16.msra.mxu1 %v5498_v41  ;;  %5501 = vmatprep.subr.bf16.mxu0 %v5500_v42  ;;  %v1095_v41 = vld [vmem:[%s6051_s30 + $0x11d0] sm:$0xff]  ;;  %v1096_v42 = vld [vmem:[%s6051_s30 + $0x11d8] sm:$0xff]  ;;  %v5520_v46 = vpack.c.bf16 %v1064_v40, %v1063_v39  ;;  %v6757_v39 = vrot.slane %v521_v12, %v6107_v15 }
 0x11c   : > { %5533 = vmatprep.subr.bf16.mxu1 %v5532_v56  ;;  %v1047_v56 = vld [vmem:[%s6051_s30 + $0x1050] sm:$0xff]  ;;  %v5552_v43 = vpack.c.bf16 %v1096_v42, %v1095_v41  ;;  %v1152_v41 = vld [vmem:[%s6051_s30 + $0x1398] sm:$0xff]  ;;  %v6762_v42 = vrot.slane %v1475_v27, %v6107_v15 }
 0x11d   : > { %2627 = vmatmul.mubr.f32.vlgmr.msra.gmra.mrb[14].mxu0 %v6598_v61  ;;  %v1042_v61 = vld [vmem:[%s6051_s30 + $0x1028] sm:$0xff]  ;;  %v5522_v35 = vpack.c.bf16 %v1048_v48, %v1047_v56  ;;  %v1151_v40 = vld [vmem:[%s6051_s30 + $0x1390] sm:$0xff]  ;;  %v1104_v48 = vld [vmem:[%s6051_s30 + $0x1218] sm:$0xff] }
 0x11e   : > { %5503 = vmatpush3.bf16.msra.mxu0 %v5502_v54  ;;  %2697 = vmatmul.mubr.f32.vlgmr.msra.gmra.mrb[14].mxu1 %v6603_v3  ;;  %v1091_v3 = vld [vmem:[%s6051_s30 + $0x11b0] sm:$0xff]  ;;  %v5510_v17 = vpack.c.bf16 %v1042_v61, %v1041_v9  ;;  %v1066_v54 = vld [vmem:[%s6051_s30 + $0x10e8] sm:$0xff]  ;;  %v1100_v9 = vld [vmem:[%s6051_s30 + $0x11f8] sm:$0xff] }
 0x11f   : > { %5535 = vmatpush3.bf16.msra.mxu1 %v5534_v55  ;;  %5505 = vmatprep.subr.bf16.mxu0 %v5504_v57  ;;  %v5544_v25 = vpack.c.bf16 %v1092_v16, %v1091_v3  ;;  %v1097_v55 = vld [vmem:[%s6051_s30 + $0x11e0] sm:$0xff]  ;;  %v1098_v57 = vld [vmem:[%s6051_s30 + $0x11e8] sm:$0xff]  ;;  %v5524_v59 = vpack.c.bf16 %v1066_v54, %v1065_v52  ;;  %v1051_v16 = vld [vmem:[%s6051_s30 + $0x1070] sm:$0xff] }
 0x120   : > { %5537 = vmatprep.subr.bf16.mxu1 %v5536_v60  ;;  %2766 = vmatprep.mubr.f32.mxu0 %v1473_v1  ;;  %v1049_v60 = vld [vmem:[%s6051_s30 + $0x1060] sm:$0xff]  ;;  %v5556_v1 = vpack.c.bf16 %v1098_v57, %v1097_v55  ;;  %v1103_v56 = vld [vmem:[%s6051_s30 + $0x1210] sm:$0xff]  ;;  %v1122_v54 = vld [vmem:[%s6051_s30 + $0x12a8] sm:$0xff]  ;;  %v1490_v55 = vcombine.high %v6757_v39, %v6757_v39 }
 0x121   : > { %2836 = vmatprep.mubr.f32.mxu1 %v1474_v0  ;;  %v1068_v0 = vld [vmem:[%s6051_s30 + $0x10f8] sm:$0xff]  ;;  %v1121_v52 = vld [vmem:[%s6051_s30 + $0x12a0] sm:$0xff]  ;;  %v1127_v27 = vld [vmem:[%s6051_s30 + $0x12d0] sm:$0xff] }
 0x122   : > { %5507 = vmatpush3.bf16.msra.mxu0 %v5506_v6  ;;  %v5528_v3 = vpack.c.bf16 %v1068_v0, %v1067_v5  ;;  %v1153_v57 = vld [vmem:[%s6051_s30 + $0x13a0] sm:$0xff]  ;;  %v1123_v5 = vld [vmem:[%s6051_s30 + $0x12b0] sm:$0xff]  ;;  %v1124_v0 = vld [vmem:[%s6051_s30 + $0x12b8] sm:$0xff] }
 0x123   : > { %5539 = vmatpush3.bf16.msra.mxu1 %v5538_v7  ;;  %5509 = vmatprep.subr.bf16.mxu0 %v5508_v8  ;;  %v1099_v8 = vld [vmem:[%s6051_s30 + $0x11f0] sm:$0xff] }
 0x124   : > { %5541 = vmatprep.subr.bf16.mxu1 %v5540_v11  ;;  %v5526_v11 = vpack.c.bf16 %v1050_v62, %v1049_v60  ;;  %v5560_v22 = vpack.c.bf16 %v1100_v9, %v1099_v8  ;;  %v5602_v60 = vpack.c.bf16 %v1136_v51, %v1135_v49  ;;  %v5572_v62 = vpack.c.bf16 %v1122_v54, %v1121_v52  ;;  %v1114_v51 = vld [vmem:[%s6051_s30 + $0x1268] sm:$0xff]  ;;  %v1145_v52 = vld [vmem:[%s6051_s30 + $0x1360] sm:$0xff] }
 0x125   : > { %v5576_v9 = vpack.c.bf16 %v1124_v0, %v1123_v5 }
 0x126   : > { %5511 = vmatpush3.bf16.msra.mxu0 %v5510_v17  ;;  %v1052_v17 = vld [vmem:[%s6051_s30 + $0x1078] sm:$0xff] }
 0x127   : > { %5543 = vmatpush3.bf16.msra.mxu1 %v5542_v19  ;;  %5513 = vmatprep.subr.bf16.mxu0 %v5512_v20  ;;  %v1083_v19 = vld [vmem:[%s6051_s30 + $0x1170] sm:$0xff] }
 0x128   : > { %5545 = vmatprep.subr.bf16.mxu1 %v5544_v25  ;;  %v1118_v25 = vld [vmem:[%s6051_s30 + $0x1288] sm:$0xff]  ;;  %v5562_v24 = vpack.c.bf16 %v1084_v23, %v1083_v19  ;;  %v1109_v23 = vld [vmem:[%s6051_s30 + $0x1240] sm:$0xff] }
 0x12a   : > { %5515 = vmatpush3.bf16.msra.mxu0 %v5514_v29  ;;  %v5564_v29 = vpack.c.bf16 %v1118_v25, %v1117_v18  ;;  %v1110_v18 = vld [vmem:[%s6051_s30 + $0x1248] sm:$0xff]  ;;  %v1141_v25 = vld [vmem:[%s6051_s30 + $0x1340] sm:$0xff] }
 0x12b   : > { %5547 = vmatpush3.bf16.msra.mxu1 %v5546_v30  ;;  %5517 = vmatprep.subr.bf16.mxu0 %v5516_v31  ;;  %v1101_v30 = vld [vmem:[%s6051_s30 + $0x1200] sm:$0xff]  ;;  %v1102_v31 = vld [vmem:[%s6051_s30 + $0x1208] sm:$0xff] }
 0x12c   : > { %5549 = vmatprep.subr.bf16.mxu1 %v5548_v37  ;;  %v1119_v37 = vld [vmem:[%s6051_s30 + $0x1290] sm:$0xff] }
 0x12e   : > { %5519 = vmatpush3.bf16.msra.mxu0 %v5518_v47  ;;  %v5566_v47 = vpack.c.bf16 %v1102_v31, %v1101_v30  ;;  %v5582_v30 = vpack.c.bf16 %v1110_v18, %v1109_v23  ;;  %v5614_v31 = vpack.c.bf16 %v1142_v21, %v1141_v25  ;;  %v1197_v23 = vld [vmem:[%s6051_s30 + $0x1500] sm:$0xff]  ;;  %v1198_v25 = vld [vmem:[%s6051_s30 + $0x1508] sm:$0xff]  ;;  %v1184_v21 = vld [vmem:[%s6051_s30 + $0x1498] sm:$0xff] }
 0x12f   : > { %5551 = vmatpush3.bf16.msra.mxu1 %v5550_v45  ;;  %5521 = vmatprep.subr.bf16.mxu0 %v5520_v46  ;;  %v5598_v45 = vpack.c.bf16 %v1134_v34, %v1133_v32  ;;  %v5568_v46 = vpack.c.bf16 %v1120_v38, %v1119_v37  ;;  %v1112_v34 = vld [vmem:[%s6051_s30 + $0x1258] sm:$0xff]  ;;  %v1143_v37 = vld [vmem:[%s6051_s30 + $0x1350] sm:$0xff] }
 0x130   : > { %v4084_v44 = vpop.f32.mrb[2].mxu0  ;;  %5553 = vmatprep.subr.bf16.mxu1 %v5552_v43  ;;  %v5600_v43 = vpack.c.bf16 %v1152_v41, %v1151_v40  ;;  %v1144_v40 = vld [vmem:[%s6051_s30 + $0x1358] sm:$0xff]  ;;  %v1129_v41 = vld [vmem:[%s6051_s30 + $0x12e0] sm:$0xff] }
 0x131   : > { %v4085_v6 = vpop.f32.mrb[3].mxu0  ;;  %v4119_v7 = vpop.f32.mrb[2].mxu1 }
 0x132   : > { %v4086_v61 = vadd.f32 %v4085_v6, %v4084_v44  ;;  %5523 = vmatpush3.bf16.msra.mxu0 %v5522_v35  ;;  %v4120_v10 = vpop.f32.mrb[3].mxu1  ;;  %v1154_v35 = vld [vmem:[%s6051_s30 + $0x13a8] sm:$0xff]  ;;  %v1137_v44 = vld [vmem:[%s6051_s30 + $0x1320] sm:$0xff]  ;;  %v1156_v6 = vld [vmem:[%s6051_s30 + $0x13b8] sm:$0xff] }
 0x133   : > { %v4121_v13 = vadd.f32 %v4120_v10, %v4119_v7  ;;  %5555 = vmatpush3.bf16.msra.mxu1 %v5554_v58  ;;  %5525 = vmatprep.subr.bf16.mxu0 %v5524_v59  ;;  %v1491_v58 = vcombine.high %v6762_v42, %v6762_v42  ;;  %v5570_v59 = vpack.c.bf16 %v1104_v48, %v1103_v56  ;;  %v1108_v10 = vld [vmem:[%s6051_s30 + $0x1238] sm:$0xff] }
 0x134   : > { %v1789_v20 = vadd.f32 %v4086_v61, %v6666_v36  ;;  %5557 = vmatprep.subr.bf16.mxu1 %v5556_v1  ;;  %v5530_v36 = vpack.c.bf16 %v1052_v17, %v1051_v16  ;;  %v5604_v1 = vpack.c.bf16 %v1154_v35, %v1153_v57  ;;  %v5606_v8 = vpack.c.bf16 %v1138_v4, %v1137_v44  ;;  %v1107_v61 = vld [vmem:[%s6051_s30 + $0x1230] sm:$0xff]  ;;  %v1157_v16 = vld [vmem:[%s6051_s30 + $0x13c0] sm:$0xff]  ;;  %v1158_v17 = vld [vmem:[%s6051_s30 + $0x13c8] sm:$0xff] }
 0x135   : > { %v5578_v19 = vpack.c.bf16 %v1108_v10, %v1107_v61  ;;  %v5612_v26 = vpack.c.bf16 %v1158_v17, %v1157_v16  ;;  %v5618_v48 = vpack.c.bf16 %v1144_v40, %v1143_v37  ;;  %v1146_v57 = vld [vmem:[%s6051_s30 + $0x1368] sm:$0xff]  ;;  %v1131_v35 = vld [vmem:[%s6051_s30 + $0x12f0] sm:$0xff]  ;;  %v1148_v10 = vld [vmem:[%s6051_s30 + $0x1378] sm:$0xff] }
 0x136   : > { %v6748_v28 = vadd.f32 %v4121_v13, %v1789_v20  ;;  %5527 = vmatpush3.bf16.msra.mxu0 %v5526_v11  ;;  %v1139_v11 = vld [vmem:[%s6051_s30 + $0x1330] sm:$0xff]  ;;  %v1140_v13 = vld [vmem:[%s6051_s30 + $0x1338] sm:$0xff]  ;;  %v5622_v0 = vpack.c.bf16 %v1146_v57, %v1145_v52  ;;  %v1169_v52 = vld [vmem:[%s6051_s30 + $0x1420] sm:$0xff] }
 0x137   : > { %5559 = vmatpush3.bf16.msra.mxu1 %v5558_v14  ;;  %5529 = vmatprep.subr.bf16.mxu0 %v5528_v3  ;;  %v1125_v14 = vld [vmem:[%s6051_s30 + $0x12c0] sm:$0xff]  ;;  %v1126_v3 = vld [vmem:[%s6051_s30 + $0x12c8] sm:$0xff]  ;;  %v5610_v20 = vpack.c.bf16 %v1140_v13, %v1139_v11  ;;  %v522_v4 = vld [vmem:[%s6046_s26 + $0x50] sm:$0xff] }
 0x138   : > { %5561 = vmatprep.subr.bf16.mxu1 %v5560_v22  ;;  %v5580_v22 = vpack.c.bf16 %v1126_v3, %v1125_v14  ;;  %v1181_v11 = vld [vmem:[%s6051_s30 + $0x1480] sm:$0xff]  ;;  %v1214_v14 = vld [vmem:[%s6051_s30 + $0x1588] sm:$0xff]  ;;  %v1492_v3 = vcombine.high %v522_v4, %v522_v4  ;;  %v1199_v37 = vld [vmem:[%s6051_s30 + $0x1510] sm:$0xff] }
 0x139   : > { %v1213_v13 = vld [vmem:[%s6051_s30 + $0x1580] sm:$0xff]  ;;  %v1200_v40 = vld [vmem:[%s6051_s30 + $0x1518] sm:$0xff]  ;;  %v1202_v57 = vld [vmem:[%s6051_s30 + $0x1528] sm:$0xff] }
 0x13a   : > { %5531 = vmatpush3.bf16.msra.mxu0 %v5530_v36  ;;  %v1128_v36 = vld [vmem:[%s6051_s30 + $0x12d8] sm:$0xff]  ;;  %v5660_v18 = vpack.c.bf16 %v1214_v14, %v1213_v13  ;;  %v1206_v14 = vld [vmem:[%s6051_s30 + $0x1548] sm:$0xff] }
 0x13b   : > { %5563 = vmatpush3.bf16.msra.mxu1 %v5562_v24  ;;  %5565 = vmatprep.subr.bf16.mxu0 %v5564_v29  ;;  %v1159_v24 = vld [vmem:[%s6051_s30 + $0x13d0] sm:$0xff]  ;;  %v1160_v29 = vld [vmem:[%s6051_s30 + $0x13d8] sm:$0xff]  ;;  %v5584_v32 = vpack.c.bf16 %v1128_v36, %v1127_v27  ;;  %v6837_v27 = vrot.slane %v522_v4, %v6107_v15 }
 0x13c   : > { %5597 = vmatprep.subr.bf16.mxu1 %v5596_v33  ;;  %v1111_v33 = vld [vmem:[%s6051_s30 + $0x1250] sm:$0xff]  ;;  %v5616_v38 = vpack.c.bf16 %v1160_v29, %v1159_v24  ;;  %v1216_v24 = vld [vmem:[%s6051_s30 + $0x1598] sm:$0xff]  ;;  %v6842_v29 = vrot.slane %v1492_v3, %v6107_v15 }
 0x13d   : > { %2767 = vmatmul.mubr.f32.vlgmr.msra.gmra.mrb[16].mxu0 %v6677_v50  ;;  %v1106_v50 = vld [vmem:[%s6051_s30 + $0x1228] sm:$0xff]  ;;  %v5586_v56 = vpack.c.bf16 %v1112_v34, %v1111_v33  ;;  %v1215_v36 = vld [vmem:[%s6051_s30 + $0x1590] sm:$0xff]  ;;  %v1168_v34 = vld [vmem:[%s6051_s30 + $0x1418] sm:$0xff] }
 0x13e   : > { %5567 = vmatpush3.bf16.msra.mxu0 %v5566_v47  ;;  %2837 = vmatmul.mubr.f32.vlgmr.msra.gmra.mrb[16].mxu1 %v6682_v53  ;;  %v1155_v53 = vld [vmem:[%s6051_s30 + $0x13b0] sm:$0xff]  ;;  %v5574_v7 = vpack.c.bf16 %v1106_v50, %v1105_v63  ;;  %v1130_v47 = vld [vmem:[%s6051_s30 + $0x12e8] sm:$0xff]  ;;  %v1164_v63 = vld [vmem:[%s6051_s30 + $0x13f8] sm:$0xff] }
 0x13f   : > { %5599 = vmatpush3.bf16.msra.mxu1 %v5598_v45  ;;  %5569 = vmatprep.subr.bf16.mxu0 %v5568_v46  ;;  %v5608_v12 = vpack.c.bf16 %v1156_v6, %v1155_v53  ;;  %v1161_v45 = vld [vmem:[%s6051_s30 + $0x13e0] sm:$0xff]  ;;  %v1162_v46 = vld [vmem:[%s6051_s30 + $0x13e8] sm:$0xff]  ;;  %v5588_v49 = vpack.c.bf16 %v1130_v47, %v1129_v41  ;;  %v1115_v6 = vld [vmem:[%s6051_s30 + $0x1270] sm:$0xff] }
 0x140   : > { %5601 = vmatprep.subr.bf16.mxu1 %v5600_v43  ;;  %2906 = vmatprep.mubr.f32.mxu0 %v1490_v55  ;;  %v1113_v43 = vld [vmem:[%s6051_s30 + $0x1260] sm:$0xff]  ;;  %v5620_v55 = vpack.c.bf16 %v1162_v46, %v1161_v45  ;;  %v1167_v33 = vld [vmem:[%s6051_s30 + $0x1410] sm:$0xff]  ;;  %v1186_v47 = vld [vmem:[%s6051_s30 + $0x14a8] sm:$0xff]  ;;  %v1507_v45 = vcombine.high %v6837_v27, %v6837_v27 }
 0x141   : > { %2976 = vmatprep.mubr.f32.mxu1 %v1491_v58  ;;  %v1132_v58 = vld [vmem:[%s6051_s30 + $0x12f8] sm:$0xff]  ;;  %v1185_v41 = vld [vmem:[%s6051_s30 + $0x14a0] sm:$0xff]  ;;  %v1191_v3 = vld [vmem:[%s6051_s30 + $0x14d0] sm:$0xff] }
 0x142   : > { %5571 = vmatpush3.bf16.msra.mxu0 %v5570_v59  ;;  %v5592_v53 = vpack.c.bf16 %v1132_v58, %v1131_v35  ;;  %v1217_v46 = vld [vmem:[%s6051_s30 + $0x15a0] sm:$0xff]  ;;  %v1187_v35 = vld [vmem:[%s6051_s30 + $0x14b0] sm:$0xff]  ;;  %v1188_v58 = vld [vmem:[%s6051_s30 + $0x14b8] sm:$0xff] }
 0x143   : > { %5603 = vmatpush3.bf16.msra.mxu1 %v5602_v60  ;;  %5573 = vmatprep.subr.bf16.mxu0 %v5572_v62  ;;  %v1163_v62 = vld [vmem:[%s6051_s30 + $0x13f0] sm:$0xff] }
 0x144   : > { %5605 = vmatprep.subr.bf16.mxu1 %v5604_v1  ;;  %v5590_v1 = vpack.c.bf16 %v1114_v51, %v1113_v43  ;;  %v5624_v61 = vpack.c.bf16 %v1164_v63, %v1163_v62  ;;  %v5666_v43 = vpack.c.bf16 %v1200_v40, %v1199_v37  ;;  %v5636_v51 = vpack.c.bf16 %v1186_v47, %v1185_v41  ;;  %v1178_v40 = vld [vmem:[%s6051_s30 + $0x1468] sm:$0xff]  ;;  %v1209_v41 = vld [vmem:[%s6051_s30 + $0x1560] sm:$0xff] }
 0x145   : > { %v5640_v63 = vpack.c.bf16 %v1188_v58, %v1187_v35 }
 0x146   : > { %5575 = vmatpush3.bf16.msra.mxu0 %v5574_v7  ;;  %v1116_v7 = vld [vmem:[%s6051_s30 + $0x1278] sm:$0xff] }
 0x147   : > { %5607 = vmatpush3.bf16.msra.mxu1 %v5606_v8  ;;  %5577 = vmatprep.subr.bf16.mxu0 %v5576_v9  ;;  %v1147_v8 = vld [vmem:[%s6051_s30 + $0x1370] sm:$0xff] }
 0x148   : > { %5609 = vmatprep.subr.bf16.mxu1 %v5608_v12  ;;  %v1182_v12 = vld [vmem:[%s6051_s30 + $0x1488] sm:$0xff]  ;;  %v5626_v17 = vpack.c.bf16 %v1148_v10, %v1147_v8  ;;  %v1173_v10 = vld [vmem:[%s6051_s30 + $0x1440] sm:$0xff] }
 0x14a   : > { %5579 = vmatpush3.bf16.msra.mxu0 %v5578_v19  ;;  %v5628_v19 = vpack.c.bf16 %v1182_v12, %v1181_v11  ;;  %v1174_v11 = vld [vmem:[%s6051_s30 + $0x1448] sm:$0xff]  ;;  %v1205_v12 = vld [vmem:[%s6051_s30 + $0x1540] sm:$0xff] }
 0x14b   : > { %5611 = vmatpush3.bf16.msra.mxu1 %v5610_v20  ;;  %5581 = vmatprep.subr.bf16.mxu0 %v5580_v22  ;;  %v1165_v20 = vld [vmem:[%s6051_s30 + $0x1400] sm:$0xff]  ;;  %v1166_v22 = vld [vmem:[%s6051_s30 + $0x1408] sm:$0xff] }
 0x14c   : > { %5613 = vmatprep.subr.bf16.mxu1 %v5612_v26  ;;  %v1183_v26 = vld [vmem:[%s6051_s30 + $0x1490] sm:$0xff] }
 0x14e   : > { %5583 = vmatpush3.bf16.msra.mxu0 %v5582_v30  ;;  %v5630_v30 = vpack.c.bf16 %v1166_v22, %v1165_v20  ;;  %v5646_v20 = vpack.c.bf16 %v1174_v11, %v1173_v10  ;;  %v5678_v22 = vpack.c.bf16 %v1206_v14, %v1205_v12  ;;  %v1261_v10 = vld [vmem:[%s6051_s30 + $0x1700] sm:$0xff]  ;;  %v1262_v12 = vld [vmem:[%s6051_s30 + $0x1708] sm:$0xff]  ;;  %v1248_v14 = vld [vmem:[%s6051_s30 + $0x1698] sm:$0xff] }
 0x14f   : > { %5615 = vmatpush3.bf16.msra.mxu1 %v5614_v31  ;;  %5585 = vmatprep.subr.bf16.mxu0 %v5584_v32  ;;  %v5662_v31 = vpack.c.bf16 %v1198_v25, %v1197_v23  ;;  %v5632_v32 = vpack.c.bf16 %v1184_v21, %v1183_v26  ;;  %v1176_v25 = vld [vmem:[%s6051_s30 + $0x1458] sm:$0xff]  ;;  %v1207_v26 = vld [vmem:[%s6051_s30 + $0x1550] sm:$0xff] }
 0x150   : > { %v4154_v54 = vpop.f32.mrb[4].mxu0  ;;  %5617 = vmatprep.subr.bf16.mxu1 %v5616_v38  ;;  %v5664_v38 = vpack.c.bf16 %v1216_v24, %v1215_v36  ;;  %v1208_v36 = vld [vmem:[%s6051_s30 + $0x1558] sm:$0xff]  ;;  %v1193_v24 = vld [vmem:[%s6051_s30 + $0x14e0] sm:$0xff] }
 0x151   : > { %v4155_v59 = vpop.f32.mrb[5].mxu0  ;;  %v4189_v60 = vpop.f32.mrb[4].mxu1 }
 0x152   : > { %v4156_v50 = vadd.f32 %v4155_v59, %v4154_v54  ;;  %5587 = vmatpush3.bf16.msra.mxu0 %v5586_v56  ;;  %v4190_v44 = vpop.f32.mrb[5].mxu1  ;;  %v1218_v56 = vld [vmem:[%s6051_s30 + $0x15a8] sm:$0xff]  ;;  %v1201_v54 = vld [vmem:[%s6051_s30 + $0x1520] sm:$0xff]  ;;  %v1220_v59 = vld [vmem:[%s6051_s30 + $0x15b8] sm:$0xff] }
 0x153   : > { %v4191_v5 = vadd.f32 %v4190_v44, %v4189_v60  ;;  %5619 = vmatpush3.bf16.msra.mxu1 %v5618_v48  ;;  %5589 = vmatprep.subr.bf16.mxu0 %v5588_v49  ;;  %v1508_v48 = vcombine.high %v6842_v29, %v6842_v29  ;;  %v5634_v49 = vpack.c.bf16 %v1168_v34, %v1167_v33  ;;  %v1172_v44 = vld [vmem:[%s6051_s30 + $0x1438] sm:$0xff] }
 0x154   : > { %v1929_v9 = vadd.f32 %v4156_v50, %v6748_v28  ;;  %5621 = vmatprep.subr.bf16.mxu1 %v5620_v55  ;;  %v5594_v28 = vpack.c.bf16 %v1116_v7, %v1115_v6  ;;  %v5668_v55 = vpack.c.bf16 %v1218_v56, %v1217_v46  ;;  %v5670_v62 = vpack.c.bf16 %v1202_v57, %v1201_v54  ;;  %v1171_v50 = vld [vmem:[%s6051_s30 + $0x1430] sm:$0xff]  ;;  %v1221_v6 = vld [vmem:[%s6051_s30 + $0x15c0] sm:$0xff]  ;;  %v1222_v7 = vld [vmem:[%s6051_s30 + $0x15c8] sm:$0xff] }
 0x155   : > { %v5642_v8 = vpack.c.bf16 %v1172_v44, %v1171_v50  ;;  %v5676_v13 = vpack.c.bf16 %v1222_v7, %v1221_v6  ;;  %v5682_v34 = vpack.c.bf16 %v1208_v36, %v1207_v26  ;;  %v1210_v46 = vld [vmem:[%s6051_s30 + $0x1568] sm:$0xff]  ;;  %v1195_v56 = vld [vmem:[%s6051_s30 + $0x14f0] sm:$0xff]  ;;  %v523_v57 = vld [vmem:[%s6046_s26 + $0x58] sm:$0xff] }
 0x156   : > { %v6828_v16 = vadd.f32 %v4191_v5, %v1929_v9  ;;  %5591 = vmatpush3.bf16.msra.mxu0 %v5590_v1  ;;  %v1203_v1 = vld [vmem:[%s6051_s30 + $0x1530] sm:$0xff]  ;;  %v1204_v5 = vld [vmem:[%s6051_s30 + $0x1538] sm:$0xff]  ;;  %v5686_v58 = vpack.c.bf16 %v1210_v46, %v1209_v41  ;;  %v1265_v41 = vld [vmem:[%s6051_s30 + $0x1720] sm:$0xff] }
 0x157   : > { %5623 = vmatpush3.bf16.msra.mxu1 %v5622_v0  ;;  %5593 = vmatprep.subr.bf16.mxu0 %v5592_v53  ;;  %v1189_v0 = vld [vmem:[%s6051_s30 + $0x14c0] sm:$0xff]  ;;  %v1190_v53 = vld [vmem:[%s6051_s30 + $0x14c8] sm:$0xff]  ;;  %v5674_v9 = vpack.c.bf16 %v1204_v5, %v1203_v1  ;;  %v1212_v44 = vld [vmem:[%s6051_s30 + $0x1578] sm:$0xff] }
 0x158   : > { %5625 = vmatprep.subr.bf16.mxu1 %v5624_v61  ;;  %v5644_v61 = vpack.c.bf16 %v1190_v53, %v1189_v0  ;;  %v1245_v1 = vld [vmem:[%s6051_s30 + $0x1680] sm:$0xff]  ;;  %v1278_v0 = vld [vmem:[%s6051_s30 + $0x1788] sm:$0xff]  ;;  %v1509_v53 = vcombine.high %v523_v57, %v523_v57  ;;  %v1263_v26 = vld [vmem:[%s6051_s30 + $0x1710] sm:$0xff] }
 0x159   : > { %v1277_v5 = vld [vmem:[%s6051_s30 + $0x1780] sm:$0xff]  ;;  %v1264_v36 = vld [vmem:[%s6051_s30 + $0x1718] sm:$0xff]  ;;  %v1251_v46 = vld [vmem:[%s6051_s30 + $0x16b0] sm:$0xff] }
 0x15a   : > { %5595 = vmatpush3.bf16.msra.mxu0 %v5594_v28  ;;  %v1192_v28 = vld [vmem:[%s6051_s30 + $0x14d8] sm:$0xff]  ;;  %v5724_v11 = vpack.c.bf16 %v1278_v0, %v1277_v5  ;;  %v1270_v5 = vld [vmem:[%s6051_s30 + $0x1748] sm:$0xff]  ;;  %v1255_v0 = vld [vmem:[%s6051_s30 + $0x16d0] sm:$0xff] }
 0x15b   : > { %5627 = vmatpush3.bf16.msra.mxu1 %v5626_v17  ;;  %5629 = vmatprep.subr.bf16.mxu0 %v5628_v19  ;;  %v1223_v17 = vld [vmem:[%s6051_s30 + $0x15d0] sm:$0xff]  ;;  %v1224_v19 = vld [vmem:[%s6051_s30 + $0x15d8] sm:$0xff]  ;;  %v5648_v23 = vpack.c.bf16 %v1192_v28, %v1191_v3  ;;  %v6917_v3 = vrot.slane %v523_v57, %v6107_v15 }
 0x15c   : > { %5661 = vmatprep.subr.bf16.mxu1 %v5660_v18  ;;  %v1175_v18 = vld [vmem:[%s6051_s30 + $0x1450] sm:$0xff]  ;;  %v5680_v21 = vpack.c.bf16 %v1224_v19, %v1223_v17  ;;  %v1280_v17 = vld [vmem:[%s6051_s30 + $0x1798] sm:$0xff]  ;;  %v6922_v19 = vrot.slane %v1509_v53, %v6107_v15  ;;  %v1250_v15 = vld [vmem:[%s6051_s30 + $0x16a8] sm:$0xff] }
 0x15d   : > { %2907 = vmatmul.mubr.f32.vlgmr.msra.gmra.mrb[18].mxu0 %v6757_v39  ;;  %v1170_v39 = vld [vmem:[%s6051_s30 + $0x1428] sm:$0xff]  ;;  %v5650_v33 = vpack.c.bf16 %v1176_v25, %v1175_v18  ;;  %v1279_v28 = vld [vmem:[%s6051_s30 + $0x1790] sm:$0xff]  ;;  %v1232_v25 = vld [vmem:[%s6051_s30 + $0x1618] sm:$0xff] }
 0x15e   : > { %5631 = vmatpush3.bf16.msra.mxu0 %v5630_v30  ;;  %2977 = vmatmul.mubr.f32.vlgmr.msra.gmra.mrb[18].mxu1 %v6762_v42  ;;  %v1219_v42 = vld [vmem:[%s6051_s30 + $0x15b0] sm:$0xff]  ;;  %v5638_v60 = vpack.c.bf16 %v1170_v39, %v1169_v52  ;;  %v1194_v30 = vld [vmem:[%s6051_s30 + $0x14e8] sm:$0xff]  ;;  %v1228_v52 = vld [vmem:[%s6051_s30 + $0x15f8] sm:$0xff] }
 0x15f   : > { %5663 = vmatpush3.bf16.msra.mxu1 %v5662_v31  ;;  %5633 = vmatprep.subr.bf16.mxu0 %v5632_v32  ;;  %v5672_v4 = vpack.c.bf16 %v1220_v59, %v1219_v42  ;;  %v1225_v31 = vld [vmem:[%s6051_s30 + $0x15e0] sm:$0xff]  ;;  %v1226_v32 = vld [vmem:[%s6051_s30 + $0x15e8] sm:$0xff]  ;;  %v5652_v37 = vpack.c.bf16 %v1194_v30, %v1193_v24  ;;  %v1179_v59 = vld [vmem:[%s6051_s30 + $0x1470] sm:$0xff]  ;;  %v1524_v30 = vcombine.high %v6917_v3, %v6917_v3 }
 0x160   : > { %5665 = vmatprep.subr.bf16.mxu1 %v5664_v38  ;;  %3046 = vmatprep.mubr.f32.mxu0 %v1507_v45  ;;  %v1177_v38 = vld [vmem:[%s6051_s30 + $0x1460] sm:$0xff]  ;;  %v5684_v45 = vpack.c.bf16 %v1226_v32, %v1225_v31  ;;  %v1231_v18 = vld [vmem:[%s6051_s30 + $0x1610] sm:$0xff]  ;;  %v1282_v32 = vld [vmem:[%s6051_s30 + $0x17a8] sm:$0xff] }
 0x161   : > { %3116 = vmatprep.mubr.f32.mxu1 %v1508_v48  ;;  %v1196_v48 = vld [vmem:[%s6051_s30 + $0x14f8] sm:$0xff]  ;;  %v1249_v24 = vld [vmem:[%s6051_s30 + $0x16a0] sm:$0xff] }
 0x162   : > { %5635 = vmatpush3.bf16.msra.mxu0 %v5634_v49  ;;  %v5656_v42 = vpack.c.bf16 %v1196_v48, %v1195_v56  ;;  %v1281_v31 = vld [vmem:[%s6051_s30 + $0x17a0] sm:$0xff]  ;;  %v1252_v56 = vld [vmem:[%s6051_s30 + $0x16b8] sm:$0xff] }
 0x163   : > { %5667 = vmatpush3.bf16.msra.mxu1 %v5666_v43  ;;  %5637 = vmatprep.subr.bf16.mxu0 %v5636_v51  ;;  %v1227_v51 = vld [vmem:[%s6051_s30 + $0x15f0] sm:$0xff]  ;;  %v1284_v48 = vld [vmem:[%s6051_s30 + $0x17b8] sm:$0xff] }
 0x164   : > { %5669 = vmatprep.subr.bf16.mxu1 %v5668_v55  ;;  %v5654_v55 = vpack.c.bf16 %v1178_v40, %v1177_v38  ;;  %v5688_v50 = vpack.c.bf16 %v1228_v52, %v1227_v51  ;;  %v5700_v38 = vpack.c.bf16 %v1250_v15, %v1249_v24  ;;  %v1233_v40 = vld [vmem:[%s6051_s30 + $0x1620] sm:$0xff]  ;;  %v5704_v51 = vpack.c.bf16 %v1252_v56, %v1251_v46  ;;  %v1235_v52 = vld [vmem:[%s6051_s30 + $0x1630] sm:$0xff]  ;;  %v1268_v57 = vld [vmem:[%s6051_s30 + $0x1738] sm:$0xff] }
 0x165   : > { %v1256_v53 = vld [vmem:[%s6051_s30 + $0x16d8] sm:$0xff]  ;;  %v1243_v56 = vld [vmem:[%s6051_s30 + $0x1670] sm:$0xff] }
 0x166   : > { %5639 = vmatpush3.bf16.msra.mxu0 %v5638_v60  ;;  %v1180_v60 = vld [vmem:[%s6051_s30 + $0x1478] sm:$0xff] }
 0x167   : > { %5671 = vmatpush3.bf16.msra.mxu1 %v5670_v62  ;;  %5641 = vmatprep.subr.bf16.mxu0 %v5640_v63  ;;  %v1211_v62 = vld [vmem:[%s6051_s30 + $0x1570] sm:$0xff] }
 0x168   : > { %5673 = vmatprep.subr.bf16.mxu1 %v5672_v4  ;;  %v1246_v4 = vld [vmem:[%s6051_s30 + $0x1688] sm:$0xff]  ;;  %v5690_v7 = vpack.c.bf16 %v1212_v44, %v1211_v62 }
 0x169   : > { %v1238_v44 = vld [vmem:[%s6051_s30 + $0x1648] sm:$0xff] }
 0x16a   : > { %5643 = vmatpush3.bf16.msra.mxu0 %v5642_v8  ;;  %v5692_v8 = vpack.c.bf16 %v1246_v4, %v1245_v1  ;;  %v1269_v1 = vld [vmem:[%s6051_s30 + $0x1740] sm:$0xff] }
 0x16b   : > { %5675 = vmatpush3.bf16.msra.mxu1 %v5674_v9  ;;  %5645 = vmatprep.subr.bf16.mxu0 %v5644_v61  ;;  %v1229_v9 = vld [vmem:[%s6051_s30 + $0x1600] sm:$0xff]  ;;  %v1230_v61 = vld [vmem:[%s6051_s30 + $0x1608] sm:$0xff] }
 0x16c   : > { %5677 = vmatprep.subr.bf16.mxu1 %v5676_v13  ;;  %v1247_v13 = vld [vmem:[%s6051_s30 + $0x1690] sm:$0xff] }
 0x16e   : > { %5647 = vmatpush3.bf16.msra.mxu0 %v5646_v20  ;;  %v5694_v20 = vpack.c.bf16 %v1230_v61, %v1229_v9  ;;  %v5742_v9 = vpack.c.bf16 %v1270_v5, %v1269_v1  ;;  %v5712_v61 = vpack.c.bf16 %v1256_v53, %v1255_v0  ;;  %v1301_v1 = vld [vmem:[%s6051_s30 + $0x1840] sm:$0xff]  ;;  %v1303_v0 = vld [vmem:[%s6051_s30 + $0x1850] sm:$0xff]  ;;  %v1304_v53 = vld [vmem:[%s6051_s30 + $0x1858] sm:$0xff] }
 0x16f   : > { %5679 = vmatpush3.bf16.msra.mxu1 %v5678_v22  ;;  %5649 = vmatprep.subr.bf16.mxu0 %v5648_v23  ;;  %v5726_v22 = vpack.c.bf16 %v1262_v12, %v1261_v10  ;;  %v5696_v23 = vpack.c.bf16 %v1248_v14, %v1247_v13  ;;  %v1239_v10 = vld [vmem:[%s6051_s30 + $0x1650] sm:$0xff]  ;;  %v1272_v14 = vld [vmem:[%s6051_s30 + $0x1758] sm:$0xff] }
 0x170   : > { %v4224_v47 = vpop.f32.mrb[6].mxu0  ;;  %5681 = vmatprep.subr.bf16.mxu1 %v5680_v21  ;;  %v5728_v21 = vpack.c.bf16 %v1280_v17, %v1279_v28  ;;  %v1271_v12 = vld [vmem:[%s6051_s30 + $0x1750] sm:$0xff]  ;;  %v1257_v28 = vld [vmem:[%s6051_s30 + $0x16e0] sm:$0xff]  ;;  %v1258_v17 = vld [vmem:[%s6051_s30 + $0x16e8] sm:$0xff] }
 0x171   : > { %v4225_v49 = vpop.f32.mrb[7].mxu0  ;;  %v4259_v43 = vpop.f32.mrb[6].mxu1 }
 0x172   : > { %v4226_v39 = vadd.f32 %v4225_v49, %v4224_v47  ;;  %5651 = vmatpush3.bf16.msra.mxu0 %v5650_v33  ;;  %v4260_v54 = vpop.f32.mrb[7].mxu1  ;;  %v1525_v33 = vcombine.high %v6922_v19, %v6922_v19  ;;  %v5732_v47 = vpack.c.bf16 %v1282_v32, %v1281_v31  ;;  %v1259_v31 = vld [vmem:[%s6051_s30 + $0x16f0] sm:$0xff]  ;;  %v1260_v32 = vld [vmem:[%s6051_s30 + $0x16f8] sm:$0xff] }
 0x173   : > { %v4261_v35 = vadd.f32 %v4260_v54, %v4259_v43  ;;  %5683 = vmatpush3.bf16.msra.mxu1 %v5682_v34  ;;  %5653 = vmatprep.subr.bf16.mxu0 %v5652_v37  ;;  %v5698_v34 = vpack.c.bf16 %v1232_v25, %v1231_v18  ;;  %v5730_v37 = vpack.c.bf16 %v1264_v36, %v1263_v26  ;;  %v1267_v54 = vld [vmem:[%s6051_s30 + $0x1730] sm:$0xff]  ;;  %v1241_v26 = vld [vmem:[%s6051_s30 + $0x1660] sm:$0xff] }
 0x174   : > { %v2069_v63 = vadd.f32 %v4226_v39, %v6828_v16  ;;  %5685 = vmatprep.subr.bf16.mxu1 %v5684_v45  ;;  %v5658_v16 = vpack.c.bf16 %v1180_v60, %v1179_v59  ;;  %v1266_v45 = vld [vmem:[%s6051_s30 + $0x1728] sm:$0xff]  ;;  %v1236_v39 = vld [vmem:[%s6051_s30 + $0x1638] sm:$0xff]  ;;  %v5738_v62 = vpack.c.bf16 %v1268_v57, %v1267_v54  ;;  %v5746_v18 = vpack.c.bf16 %v1272_v14, %v1271_v12  ;;  %v1273_v36 = vld [vmem:[%s6051_s30 + $0x1760] sm:$0xff] }
 0x175   : > { %v5734_v43 = vpack.c.bf16 %v1266_v45, %v1265_v41  ;;  %v1286_v59 = vld [vmem:[%s6051_s30 + $0x17c8] sm:$0xff]  ;;  %v5706_v60 = vpack.c.bf16 %v1236_v39, %v1235_v52  ;;  %v5716_v25 = vpack.c.bf16 %v1258_v17, %v1257_v28  ;;  %v5720_v46 = vpack.c.bf16 %v1260_v32, %v1259_v31  ;;  %v1307_v28 = vld [vmem:[%s6051_s30 + $0x1870] sm:$0xff]  ;;  %v1308_v17 = vld [vmem:[%s6051_s30 + $0x1878] sm:$0xff] }
 0x176   : > { %v6908_v6 = vadd.f32 %v4261_v35, %v2069_v63  ;;  %5655 = vmatpush3.bf16.msra.mxu0 %v5654_v55  ;;  %v1253_v35 = vld [vmem:[%s6051_s30 + $0x16c0] sm:$0xff]  ;;  %v1294_v57 = vld [vmem:[%s6051_s30 + $0x1808] sm:$0xff] }
 0x177   : > { %5687 = vmatpush3.bf16.msra.mxu1 %v5686_v58  ;;  %5657 = vmatprep.subr.bf16.mxu0 %v5656_v42  ;;  %v1254_v58 = vld [vmem:[%s6051_s30 + $0x16c8] sm:$0xff]  ;;  %v1285_v42 = vld [vmem:[%s6051_s30 + $0x17c0] sm:$0xff] }
 0x178   : > { %5689 = vmatprep.subr.bf16.mxu1 %v5688_v50  ;;  %v5708_v63 = vpack.c.bf16 %v1254_v58, %v1253_v35  ;;  %v1237_v50 = vld [vmem:[%s6051_s30 + $0x1640] sm:$0xff]  ;;  %v5740_v4 = vpack.c.bf16 %v1286_v59, %v1285_v42  ;;  %v1295_v58 = vld [vmem:[%s6051_s30 + $0x1810] sm:$0xff]  ;;  %v1296_v42 = vld [vmem:[%s6051_s30 + $0x1818] sm:$0xff] }
 0x179   : > { %v5760_v59 = vpack.c.bf16 %v1296_v42, %v1295_v58 }
 0x17a   : > { %5659 = vmatpush3.bf16.msra.mxu0 %v5658_v16  ;;  %v1287_v16 = vld [vmem:[%s6051_s30 + $0x17d0] sm:$0xff] }
 0x17b   : > { %5691 = vmatpush3.bf16.msra.mxu1 %v5690_v7  ;;  %5693 = vmatprep.subr.bf16.mxu0 %v5692_v8  ;;  %v1288_v7 = vld [vmem:[%s6051_s30 + $0x17d8] sm:$0xff]  ;;  %v5710_v8 = vpack.c.bf16 %v1238_v44, %v1237_v50  ;;  %v1299_v44 = vld [vmem:[%s6051_s30 + $0x1830] sm:$0xff] }
 0x17c   : > { %5725 = vmatprep.subr.bf16.mxu1 %v5724_v11  ;;  %v1240_v11 = vld [vmem:[%s6051_s30 + $0x1658] sm:$0xff]  ;;  %v5744_v13 = vpack.c.bf16 %v1288_v7, %v1287_v16  ;;  %v5772_v16 = vpack.c.bf16 %v1304_v53, %v1303_v0  ;;  %v1305_v7 = vld [vmem:[%s6051_s30 + $0x1860] sm:$0xff] }
 0x17d   : > { %3047 = vmatmul.mubr.f32.vlgmr.msra.gmra.mrb[20].mxu0 %v6837_v27  ;;  %v1234_v27 = vld [vmem:[%s6051_s30 + $0x1628] sm:$0xff] }
 0x17e   : > { %5695 = vmatpush3.bf16.msra.mxu0 %v5694_v20  ;;  %3117 = vmatmul.mubr.f32.vlgmr.msra.gmra.mrb[20].mxu1 %v6842_v29  ;;  %v1283_v29 = vld [vmem:[%s6051_s30 + $0x17b0] sm:$0xff]  ;;  %v5702_v49 = vpack.c.bf16 %v1234_v27, %v1233_v40  ;;  %v1289_v20 = vld [vmem:[%s6051_s30 + $0x17e0] sm:$0xff] }
 0x17f   : > { %5727 = vmatpush3.bf16.msra.mxu1 %v5726_v22  ;;  %5697 = vmatprep.subr.bf16.mxu0 %v5696_v23  ;;  %v5736_v55 = vpack.c.bf16 %v1284_v48, %v1283_v29  ;;  %v1290_v22 = vld [vmem:[%s6051_s30 + $0x17e8] sm:$0xff]  ;;  %v5714_v23 = vpack.c.bf16 %v1240_v11, %v1239_v10  ;;  %v1244_v29 = vld [vmem:[%s6051_s30 + $0x1678] sm:$0xff] }
 0x180   : > { %5729 = vmatprep.subr.bf16.mxu1 %v5728_v21  ;;  %3186 = vmatprep.mubr.f32.mxu0 %v1524_v30  ;;  %v1242_v21 = vld [vmem:[%s6051_s30 + $0x1668] sm:$0xff]  ;;  %v5748_v15 = vpack.c.bf16 %v1290_v22, %v1289_v20  ;;  %v5722_v39 = vpack.c.bf16 %v1244_v29, %v1243_v56 }
 0x181   : > { %3256 = vmatprep.mubr.f32.mxu1 %v1525_v33  ;;  %v1274_v30 = vld [vmem:[%s6051_s30 + $0x1768] sm:$0xff]  ;;  %v5718_v41 = vpack.c.bf16 %v1242_v21, %v1241_v26 }
 0x182   : > { %5699 = vmatpush3.bf16.msra.mxu0 %v5698_v34  ;;  %v5750_v45 = vpack.c.bf16 %v1274_v30, %v1273_v36 }
 0x183   : > { %5731 = vmatpush3.bf16.msra.mxu1 %v5730_v37  ;;  %5701 = vmatprep.subr.bf16.mxu0 %v5700_v38  ;;  %v1291_v37 = vld [vmem:[%s6051_s30 + $0x17f0] sm:$0xff]  ;;  %v1292_v38 = vld [vmem:[%s6051_s30 + $0x17f8] sm:$0xff] }
 0x184   : > { %5733 = vmatprep.subr.bf16.mxu1 %v5732_v47 }
 0x186   : > { %5703 = vmatpush3.bf16.msra.mxu0 %v5702_v49  ;;  %v5752_v49 = vpack.c.bf16 %v1292_v38, %v1291_v37 }
 0x187   : > { %5735 = vmatpush3.bf16.msra.mxu1 %v5734_v43  ;;  %5705 = vmatprep.subr.bf16.mxu0 %v5704_v51  ;;  %v1275_v43 = vld [vmem:[%s6051_s30 + $0x1770] sm:$0xff]  ;;  %v1276_v51 = vld [vmem:[%s6051_s30 + $0x1778] sm:$0xff] }
 0x188   : > { %5737 = vmatprep.subr.bf16.mxu1 %v5736_v55  ;;  %v5754_v54 = vpack.c.bf16 %v1276_v51, %v1275_v43  ;;  %v1293_v55 = vld [vmem:[%s6051_s30 + $0x1800] sm:$0xff] }
 0x189   : > { %v5757_v35 = vpack.c.bf16 %v1294_v57, %v1293_v55 }
 0x18a   : > { %5707 = vmatpush3.bf16.msra.mxu0 %v5706_v60  ;;  %v1297_v60 = vld [vmem:[%s6051_s30 + $0x1820] sm:$0xff] }
 0x18b   : > { %5739 = vmatpush3.bf16.msra.mxu1 %v5738_v62  ;;  %5709 = vmatprep.subr.bf16.mxu0 %v5708_v63  ;;  %v1298_v62 = vld [vmem:[%s6051_s30 + $0x1828] sm:$0xff]  ;;  %v5946_v63 = vmov 0.0  }
 0x18c   : > { %5741 = vmatprep.subr.bf16.mxu1 %v5740_v4  ;;  %v5763_v50 = vpack.c.bf16 %v1298_v62, %v1297_v60  ;;  %v1302_v4 = vld [vmem:[%s6051_s30 + $0x1848] sm:$0xff] }
 0x18d   : > { %v5769_v5 = vpack.c.bf16 %v1302_v4, %v1301_v1 }
 0x18e   : > { %5711 = vmatpush3.bf16.msra.mxu0 %v5710_v8  ;;  %v1306_v8 = vld [vmem:[%s6051_s30 + $0x1868] sm:$0xff] }
 0x18f   : > { %5743 = vmatpush3.bf16.msra.mxu1 %v5742_v9  ;;  %5713 = vmatprep.subr.bf16.mxu0 %v5712_v61 }
 0x190   : > { %v4294_v24 = vpop.f32.mrb[8].mxu0  ;;  %5745 = vmatprep.subr.bf16.mxu1 %v5744_v13  ;;  %v5775_v13 = vpack.c.bf16 %v1306_v8, %v1305_v7  ;;  %v511_v7 = vld [vmem:[#allocation2] sm:$0x3] }
 0x191   : > { %v4295_v33 = vpop.f32.mrb[9].mxu0  ;;  %v4329_v34 = vpop.f32.mrb[8].mxu1 }
 0x192   : > { %v4296_v40 = vadd.f32 %v4295_v33, %v4294_v24  ;;  %5715 = vmatpush3.bf16.msra.mxu0 %v5714_v23  ;;  %v4330_v27 = vpop.f32.mrb[9].mxu1  ;;  %v5778_v23 = vpack.c.bf16 %v1308_v17, %v1307_v28  ;;  %v3350_v28 = vld [vmem:[%s7341_s3 + $0x10] sm:$0xff] (!%p3971_p6)  ;;  %v3353_v17 = vld [vmem:[%s7341_s3 + $0x28] sm:$0xff] (!%p3971_p6) }
 0x193   : > { %v4331_v47 = vadd.f32 %v4330_v27, %v4329_v34  ;;  %5747 = vmatpush3.bf16.msra.mxu1 %v5746_v18  ;;  %5717 = vmatprep.subr.bf16.mxu0 %v5716_v25  ;;  %v3970_v18 = vld.sshfl [vmem:[%s6046_s26 + $0x60] sm:$0x3 pattern:$0x76325410] }
 0x194   : > { %v2209_v48 = vadd.f32 %v4296_v40, %v6908_v6  ;;  %5749 = vmatprep.subr.bf16.mxu1 %v5748_v15  ;;  %v5944_v6 = vmov 0.0|0.0  }
 0x196   : > { %v2279_v52 = vadd.f32 %v4331_v47, %v2209_v48  ;;  %5719 = vmatpush3.bf16.msra.mxu0 %v5718_v41 }
 0x197   : > { %5751 = vmatpush3.bf16.msra.mxu1 %v5750_v45  ;;  %5721 = vmatprep.subr.bf16.mxu0 %v5720_v46 }
 0x198   : > { %5753 = vmatprep.subr.bf16.mxu1 %v5752_v49 }
 0x19a   : > { %5723 = vmatpush3.bf16.msra.mxu0 %v5722_v39 }
 0x19b   : > { %5755 = vmatpush3.bf16.msra.mxu1 %v5754_v54  ;;  %5756 = vmatprep.subr.bf16.mxu0 %v5944_v6 }
 0x19d   : > { %3187 = vmatmul.mubr.f32.vlgmr.msra.gmra.mrb[22].mxu0 %v6917_v3  ;;  %v1300_v3 = vld [vmem:[%s6051_s30 + $0x1838] sm:$0xff] }
 0x19e   : > { %5758 = vmatpush3.bf16.msra.mxu0 %v5757_v35  ;;  %3257 = vmatmul.mubr.f32.vlgmr.msra.gmra.mrb[22].mxu1 %v6922_v19  ;;  %v5766_v19 = vpack.c.bf16 %v1300_v3, %v1299_v44 }
 0x19f   : > { %5759 = vmatprep.subr.bf16.mxu0 %v5944_v6  ;;  %4910 = vmatprep.mubr.msk.f32.mxu0 %vm5945_vm0, %v5946_v63 }
 0x1a2   : > { %5761 = vmatpush3.bf16.msra.mxu0 %v5760_v59 }
 0x1a3   : > { %5762 = vmatprep.subr.bf16.mxu0 %v5944_v6 }
 0x1a6   : > { %5764 = vmatpush3.bf16.msra.mxu0 %v5763_v50 }
 0x1a7   : > { %5765 = vmatprep.subr.bf16.mxu0 %v5944_v6 }
 0x1aa   : > { %5767 = vmatpush3.bf16.msra.mxu0 %v5766_v19 }
 0x1ab   : > { %5768 = vmatprep.subr.bf16.mxu0 %v5944_v6 }
 0x1ae   : > { %5770 = vmatpush3.bf16.msra.mxu0 %v5769_v5 }
 0x1af   : > { %5771 = vmatprep.subr.bf16.mxu0 %v5944_v6 }
 0x1b0   : > { %v4364_v9 = vpop.f32.mrb[10].mxu0 }
 0x1b1   : > { %v4365_v61 = vpop.f32.mrb[11].mxu0  ;;  %v4399_v10 = vpop.f32.mrb[10].mxu1 }
 0x1b2   : > { %v4366_v11 = vadd.f32 %v4365_v61, %v4364_v9  ;;  %5773 = vmatpush3.bf16.msra.mxu0 %v5772_v16  ;;  %v4400_v12 = vpop.f32.mrb[11].mxu1 }
 0x1b3   : > { %v4401_v14 = vadd.f32 %v4400_v12, %v4399_v10  ;;  %5774 = vmatprep.subr.bf16.mxu0 %v5944_v6  ;;  %v3351_v12 = vld [vmem:[%s7341_s3 + $0x18] sm:$0xff] (!%p3971_p6) }
 0x1b4   : > { %v2349_v20 = vadd.f32 %v4366_v11, %v2279_v52  ;;  %v3349_v11 = vld [vmem:[%s7341_s3 + $0x8] sm:$0xff] (!%p3971_p6) }
 0x1b6   : > { %v2419_v22 = vadd.f32 %v4401_v14, %v2349_v20  ;;  %5776 = vmatpush3.bf16.msra.mxu0 %v5775_v13  ;;  %v3348_v13 = vld [vmem:[%s7341_s3] sm:$0xff] (!%p3971_p6)  ;;  %v5780_v14 = vpack.c.bf16 (!%p3971_p6), %v3351_v12, %v3349_v11  ;;  %v3355_v20 = vld [vmem:[%s7341_s3 + $0x38] sm:$0xff] (!%p3971_p6)  ;;  %v3378_v11 = vld [vmem:[%s7341_s3 + $0xf0] sm:$0xff] (!%p3971_p6) }
 0x1b7   : > { %5777 = vmatprep.subr.bf16.mxu0 %v5944_v6 }
 0x1ba   : > { %5779 = vmatpush3.bf16.msra.mxu0 %v5778_v23  ;;  %v5782_v23 = vpack.c.bf16 (!%p3971_p6), %v3350_v28, %v3348_v13  ;;  %v3567_v13 = vld [vmem:[%s7346_s8 + $0x50] sm:$0xff] (!%p3971_p6) }
 0x1bb   : > { %5781 = vmatprep.subr.bf16.mxu0 (!%p3971_p6), %v5780_v14  ;;  %v3568_v14 = vld [vmem:[%s7346_s8 + $0x58] sm:$0xff] (!%p3971_p6) }
 0x1bd   : > { %4911 = vmatmul.mubr.f32.vlgmr.msra.gmra.mrb[24].mxu0 %v3970_v18  ;;  %v5784_v18 = vpack.c.bf16 (!%p3971_p6), %v3355_v20, %v3353_v17  ;;  %v5832_v20 = vpack.c.bf16 (!%p3971_p6), %v3568_v14, %v3567_v13  ;;  %v3765_v14 = vld [vmem:[%s7350_s12 + $0x40] sm:$0xff] (!%p3971_p6) }
 0x1be   : > { %5783 = vmatpush1.bf16.msra.mxu0 (!%p3971_p6), %v5782_v23  ;;  %v3465_v23 = vld [vmem:[%s7344_s6] sm:$0xff] (!%p3971_p6) }
 0x1bf   : > { %5785 = vmatprep.subr.bf16.mxu0 (!%p3971_p6), %v5784_v18 }
 0x1d0   : > { %v4434_v25 = vpop.f32.mrb[12].mxu0 }
 0x1d1   : > { %v4435_v26 = vpop.f32.mrb[13].mxu0  ;;  %v4469_v21 = vpop.f32.mrb[12].mxu1 }
 0x1d2   : > { %v4436_v36 = vadd.f32 %v4435_v26, %v4434_v25  ;;  %v4470_v24 = vpop.f32.mrb[13].mxu1  ;;  %v3352_v25 = vld [vmem:[%s7341_s3 + $0x20] sm:$0xff] (!%p3971_p6)  ;;  %v3354_v26 = vld [vmem:[%s7341_s3 + $0x30] sm:$0xff] (!%p3971_p6) }
 0x1d3   : > { %v4471_v15 = vadd.f32 %v4470_v24, %v4469_v21  ;;  %v3357_v21 = vld [vmem:[%s7341_s3 + $0x48] sm:$0xff] (!%p3971_p6)  ;;  %v5786_v24 = vpack.c.bf16 (!%p3971_p6), %v3354_v26, %v3352_v25  ;;  %v3463_v25 = vld [vmem:[%s7343_s5] sm:$0xff] (!%p3971_p6) }
 0x1d4   : > { %v2489_v30 = vadd.f32 %v4436_v36, %v2419_v22  ;;  %v5947_v22 = vmov (!%p3971_p6), 0.0   ;;  %v3359_v36 = vld [vmem:[%s7341_s3 + $0x58] sm:$0xff] (!%p3971_p6)  ;;  %v3464_v26 = vld [vmem:[%s7343_s5 + $0x8] sm:$0xff] (!%p3971_p6) }
 0x1d5   : > { %3456 = vmatprep.mubr.f32.mxu0 (!%p3971_p6), %v5947_v22  ;;  %5787 = vmatpush1.bf16.msra.mxu0 (!%p3971_p6), %v5786_v24 }
 0x1d6   : > { %v2559_v31 = vadd.f32 %v4471_v15, %v2489_v30  ;;  %v5788_v15 = vpack.c.bf16 (!%p3971_p6), %v3359_v36, %v3357_v21  ;;  %v3356_v30 = vld [vmem:[%s7341_s3 + $0x40] sm:$0xff] (!%p3971_p6)  ;;  %v3570_v36 = vld [vmem:[%s7346_s8 + $0x68] sm:$0xff] (!%p3971_p6) }
 0x1d7   : > { %v3569_v21 = vld [vmem:[%s7346_s8 + $0x60] sm:$0xff] (!%p3971_p6) }
 0x1d8   : > { %5789 = vmatprep.subr.bf16.mxu0 (!%p3971_p6), %v5788_v15  ;;  %v5836_v24 = vpack.c.bf16 (!%p3971_p6), %v3570_v36, %v3569_v21  ;;  %v3571_v15 = vld [vmem:[%s7346_s8 + $0x70] sm:$0xff] (!%p3971_p6)  ;;  %v3774_v21 = vld [vmem:[%s7350_s12 + $0x88] sm:$0xff] (!%p3971_p6)  ;;  %v3776_v36 = vld [vmem:[%s7350_s12 + $0x98] sm:$0xff] (!%p3971_p6) }
 0x1f0   : > { %v4504_v32 = vpop.f32.mrb[14].mxu0 }
 0x1f1   : > { %v4505_v33 = vpop.f32.mrb[15].mxu0  ;;  %v4539_v34 = vpop.f32.mrb[14].mxu1 }
 0x1f2   : > { %v4506_v37 = vadd.f32 %v4505_v33, %v4504_v32  ;;  %v4540_v38 = vpop.f32.mrb[15].mxu1  ;;  %v3361_v32 = vld [vmem:[%s7341_s3 + $0x68] sm:$0xff] (!%p3971_p6)  ;;  %v3363_v33 = vld [vmem:[%s7341_s3 + $0x78] sm:$0xff] (!%p3971_p6) }
 0x1f3   : > { %v4541_v40 = vadd.f32 %v4540_v38, %v4539_v34  ;;  %v3360_v38 = vld [vmem:[%s7341_s3 + $0x60] sm:$0xff] (!%p3971_p6) }
 0x1f4   : > { %v2629_v27 = vadd.f32 %v4506_v37, %v2559_v31  ;;  %v3358_v31 = vld [vmem:[%s7341_s3 + $0x50] sm:$0xff] (!%p3971_p6)  ;;  %v5792_v37 = vpack.c.bf16 (!%p3971_p6), %v3363_v33, %v3361_v32  ;;  %v3657_v32 = vld [vmem:[%s7348_s10] sm:$0xff] (!%p3971_p6)  ;;  %v3658_v33 = vld [vmem:[%s7348_s10 + $0x8] sm:$0xff] (!%p3971_p6) }
 0x1f5   : > { %v5790_v34 = vpack.c.bf16 (!%p3971_p6), %v3358_v31, %v3356_v30  ;;  %v3572_v30 = vld [vmem:[%s7346_s8 + $0x78] sm:$0xff] (!%p3971_p6) }
 0x1f6   : > { %v2699_v41 = vadd.f32 %v4541_v40, %v2629_v27  ;;  %v3362_v40 = vld [vmem:[%s7341_s3 + $0x70] sm:$0xff] (!%p3971_p6)  ;;  %v3365_v27 = vld [vmem:[%s7341_s3 + $0x88] sm:$0xff] (!%p3971_p6)  ;;  %v5840_v31 = vpack.c.bf16 (!%p3971_p6), %v3572_v30, %v3571_v15  ;;  %v5892_v15 = vpack.c.bf16 (!%p3971_p6), %v3776_v36, %v3774_v21  ;;  %v3773_v30 = vld [vmem:[%s7350_s12 + $0x80] sm:$0xff] (!%p3971_p6) }
 0x1f7   : > { %5791 = vmatpush1.bf16.msra.mxu0 (!%p3971_p6), %v5790_v34  ;;  %v3659_v34 = vld [vmem:[%s7348_s10 + $0x10] sm:$0xff] (!%p3971_p6) }
 0x1f8   : > { %5793 = vmatprep.subr.bf16.mxu0 (!%p3971_p6), %v5792_v37  ;;  %v5844_v37 = vpack.c.bf16 (!%p3971_p6), %v3658_v33, %v3657_v32  ;;  %v3778_v32 = vld [vmem:[%s7350_s12 + $0xa8] sm:$0xff] (!%p3971_p6)  ;;  %v3780_v33 = vld [vmem:[%s7350_s12 + $0xb8] sm:$0xff] (!%p3971_p6) }
 0x210   : > { %v4574_v47 = vpop.f32.mrb[16].mxu0 }
 0x211   : > { %v4575_v45 = vpop.f32.mrb[17].mxu0  ;;  %v4609_v46 = vpop.f32.mrb[16].mxu1 }
 0x212   : > { %v4576_v56 = vadd.f32 %v4575_v45, %v4574_v47  ;;  %v4610_v29 = vpop.f32.mrb[17].mxu1  ;;  %v3364_v47 = vld [vmem:[%s7341_s3 + $0x80] sm:$0xff] (!%p3971_p6)  ;;  %v5794_v45 = vpack.c.bf16 (!%p3971_p6), %v3362_v40, %v3360_v38  ;;  %v3660_v38 = vld [vmem:[%s7348_s10 + $0x18] sm:$0xff] (!%p3971_p6) }
 0x213   : > { %v4611_v48 = vadd.f32 %v4610_v29, %v4609_v46  ;;  %v3366_v46 = vld [vmem:[%s7341_s3 + $0x90] sm:$0xff] (!%p3971_p6)  ;;  %v3558_v29 = vld [vmem:[%s7346_s8 + $0x8] sm:$0xff] (!%p3971_p6)  ;;  %v5848_v40 = vpack.c.bf16 (!%p3971_p6), %v3660_v38, %v3659_v34  ;;  %v3777_v38 = vld [vmem:[%s7350_s12 + $0xa0] sm:$0xff] (!%p3971_p6) }
 0x214   : > { %v2769_v49 = vadd.f32 %v4576_v56, %v2699_v41  ;;  %v3367_v41 = vld [vmem:[%s7341_s3 + $0x98] sm:$0xff] (!%p3971_p6)  ;;  %v3557_v56 = vld [vmem:[%s7346_s8] sm:$0xff] (!%p3971_p6)  ;;  %5795 = vmatpush1.bf16.msra.mxu0 (!%p3971_p6), %v5794_v45  ;;  %v3663_v45 = vld [vmem:[%s7348_s10 + $0x30] sm:$0xff] (!%p3971_p6) }
 0x216   : > { %v2839_v43 = vadd.f32 %v4611_v48, %v2769_v49  ;;  %v5796_v48 = vpack.c.bf16 (!%p3971_p6), %v3367_v41, %v3365_v27  ;;  %v3369_v49 = vld [vmem:[%s7341_s3 + $0xa8] sm:$0xff] (!%p3971_p6)  ;;  %v3661_v27 = vld [vmem:[%s7348_s10 + $0x20] sm:$0xff] (!%p3971_p6) }
 0x217   : > { %v3662_v41 = vld [vmem:[%s7348_s10 + $0x28] sm:$0xff] (!%p3971_p6) }
 0x218   : > { %5797 = vmatprep.subr.bf16.mxu0 (!%p3971_p6), %v5796_v48  ;;  %v3666_v48 = vld [vmem:[%s7348_s10 + $0x48] sm:$0xff] (!%p3971_p6) }
 0x230   : > { %v4644_v51 = vpop.f32.mrb[18].mxu0 }
 0x231   : > { %v4645_v52 = vpop.f32.mrb[19].mxu0  ;;  %v4679_v39 = vpop.f32.mrb[18].mxu1 }
 0x232   : > { %v4646_v54 = vadd.f32 %v4645_v52, %v4644_v51  ;;  %v4680_v55 = vpop.f32.mrb[19].mxu1  ;;  %v3559_v51 = vld [vmem:[%s7346_s8 + $0x10] sm:$0xff] (!%p3971_p6)  ;;  %v3560_v52 = vld [vmem:[%s7346_s8 + $0x18] sm:$0xff] (!%p3971_p6) }
 0x233   : > { %v4681_v57 = vadd.f32 %v4680_v55, %v4679_v39  ;;  %v3371_v39 = vld [vmem:[%s7341_s3 + $0xb8] sm:$0xff] (!%p3971_p6)  ;;  %v3561_v55 = vld [vmem:[%s7346_s8 + $0x20] sm:$0xff] (!%p3971_p6) }
 0x234   : > { %v2909_v35 = vadd.f32 %v4646_v54, %v2839_v43  ;;  %v5812_v43 = vpack.c.bf16 (!%p3971_p6), %v3558_v29, %v3557_v56  ;;  %v5816_v54 = vpack.c.bf16 (!%p3971_p6), %v3560_v52, %v3559_v51  ;;  %v3665_v29 = vld [vmem:[%s7348_s10 + $0x40] sm:$0xff] (!%p3971_p6)  ;;  %v3668_v51 = vld [vmem:[%s7348_s10 + $0x58] sm:$0xff] (!%p3971_p6) }
 0x236   : > { %v2979_v6 = vadd.f32 %v4681_v57, %v2909_v35  ;;  %v3562_v57 = vld [vmem:[%s7346_s8 + $0x28] sm:$0xff] (!%p3971_p6)  ;;  %5813 = vmatprep.subr.bf16.mxu1 (!%p3971_p6), %v5812_v43  ;;  %v5798_v35 = vpack.c.bf16 (!%p3971_p6), %v3366_v46, %v3364_v47  ;;  %v5852_v47 = vpack.c.bf16 (!%p3971_p6), %v3662_v41, %v3661_v27  ;;  %v3664_v46 = vld [vmem:[%s7348_s10 + $0x38] sm:$0xff] (!%p3971_p6) }
 0x237   : > { %5815 = vmatpush3.bf16.msra.mxu1 (!%p3971_p6), %v5812_v43  ;;  %v5856_v56 = vpack.c.bf16 (!%p3971_p6), %v3664_v46, %v3663_v45  ;;  %v3667_v43 = vld [vmem:[%s7348_s10 + $0x50] sm:$0xff] (!%p3971_p6)  ;;  %v3782_v27 = vld [vmem:[%s7350_s12 + $0xc8] sm:$0xff] (!%p3971_p6)  ;;  %v3784_v41 = vld [vmem:[%s7350_s12 + $0xd8] sm:$0xff] (!%p3971_p6) }
 0x238   : > { %5817 = vmatprep.subr.bf16.mxu1 (!%p3971_p6), %v5816_v54  ;;  %5799 = vmatpush1.bf16.msra.mxu0 (!%p3971_p6), %v5798_v35  ;;  %v5864_v52 = vpack.c.bf16 (!%p3971_p6), %v3668_v51, %v3667_v43  ;;  %v5900_v45 = vpack.c.bf16 (!%p3971_p6), %v3784_v41, %v3782_v27  ;;  %v3781_v46 = vld [vmem:[%s7350_s12 + $0xc0] sm:$0xff] (!%p3971_p6) }
 0x23b   : > { %5819 = vmatpush3.bf16.msra.mxu1 (!%p3971_p6), %v5816_v54  ;;  %v3670_v54 = vld [vmem:[%s7348_s10 + $0x68] sm:$0xff] (!%p3971_p6) }
 0x250   : > { %v4714_v58 = vpop.f32.mrb[20].mxu0 }
 0x251   : > { %v4715_v42 = vpop.f32.mrb[21].mxu0  ;;  %v4749_v59 = vpop.f32.mrb[20].mxu1 }
 0x252   : > { %v4716_v60 = vadd.f32 %v4715_v42, %v4714_v58  ;;  %v4750_v62 = vpop.f32.mrb[21].mxu1  ;;  %v3368_v58 = vld [vmem:[%s7341_s3 + $0xa0] sm:$0xff] (!%p3971_p6)  ;;  %v3370_v42 = vld [vmem:[%s7341_s3 + $0xb0] sm:$0xff] (!%p3971_p6) }
 0x253   : > { %v4751_v63 = vadd.f32 %v4750_v62, %v4749_v59  ;;  %v3373_v59 = vld [vmem:[%s7341_s3 + $0xc8] sm:$0xff] (!%p3971_p6)  ;;  %v3375_v62 = vld [vmem:[%s7341_s3 + $0xd8] sm:$0xff] (!%p3971_p6) }
 0x254   : > { %v3049_v50 = vadd.f32 %v4716_v60, %v2979_v6  ;;  %v5800_v6 = vpack.c.bf16 (!%p3971_p6), %v3371_v39, %v3369_v49  ;;  %v5820_v60 = vpack.c.bf16 (!%p3971_p6), %v3562_v57, %v3561_v55  ;;  %v5860_v49 = vpack.c.bf16 (!%p3971_p6), %v3666_v48, %v3665_v29  ;;  %v3669_v39 = vld [vmem:[%s7348_s10 + $0x60] sm:$0xff] (!%p3971_p6) }
 0x255   : > { %v5868_v55 = vpack.c.bf16 (!%p3971_p6), %v3670_v54, %v3669_v39  ;;  %v3976_v48 = vld [vmem:[%s7347_s9] ss:$0 sm:$0xff] (!%p3971_p6) }
 0x256   : > { %v3119_v44 = vadd.f32 %v4751_v63, %v3049_v50  ;;  %v3563_v63 = vld [vmem:[%s7346_s8 + $0x30] sm:$0xff] (!%p3971_p6)  ;;  %v3564_v50 = vld [vmem:[%s7346_s8 + $0x38] sm:$0xff] (!%p3971_p6)  ;;  %5801 = vmatprep.subr.bf16.mxu0 (!%p3971_p6), %v5800_v6  ;;  %5821 = vmatprep.subr.bf16.mxu1 (!%p3971_p6), %v5820_v60  ;;  %v3973_v6 = vld [vmem:[%s7345_s7] ss:$0 sm:$0xff] (!%p3971_p6) }
 0x257   : > { %5823 = vmatpush3.bf16.msra.mxu1 (!%p3971_p6), %v5820_v60 }
 0x270   : > { %v4784_v3 = vpop.f32.mrb[22].mxu0 }
 0x271   : > { %v4785_v19 = vpop.f32.mrb[23].mxu0  ;;  %v4819_v1 = vpop.f32.mrb[22].mxu1 }
 0x272   : > { %v4786_v4 = vadd.f32 %v4785_v19, %v4784_v3  ;;  %v4820_v5 = vpop.f32.mrb[23].mxu1  ;;  %v5804_v3 = vpack.c.bf16 (!%p3971_p6), %v3375_v62, %v3373_v59  ;;  %v3372_v19 = vld [vmem:[%s7341_s3 + $0xc0] sm:$0xff] (!%p3971_p6) }
 0x273   : > { %v4821_v0 = vadd.f32 %v4820_v5, %v4819_v1  ;;  %v3374_v1 = vld [vmem:[%s7341_s3 + $0xd0] sm:$0xff] (!%p3971_p6)  ;;  %v5824_v5 = vpack.c.bf16 (!%p3971_p6), %v3564_v50, %v3563_v63 }
 0x274   : > { %v3189_v53 = vadd.f32 %v4786_v4, %v3119_v44  ;;  %v5802_v44 = vpack.c.bf16 (!%p3971_p6), %v3370_v42, %v3368_v58  ;;  %v3377_v4 = vld [vmem:[%s7341_s3 + $0xe8] sm:$0xff] (!%p3971_p6)  ;;  %v3671_v50 = vld [vmem:[%s7348_s10 + $0x70] sm:$0xff] (!%p3971_p6) }
 0x275   : > { %5825 = vmatprep.subr.bf16.mxu1 (!%p3971_p6), %v5824_v5 }
 0x276   : > { %v3259_v16 = vadd.f32 %v4821_v0, %v3189_v53  ;;  %v3379_v0 = vld [vmem:[%s7341_s3 + $0xf8] sm:$0xff] (!%p3971_p6)  ;;  %v3565_v53 = vld [vmem:[%s7346_s8 + $0x40] sm:$0xff] (!%p3971_p6)  ;;  %5803 = vmatpush1.bf16.msra.mxu0 (!%p3971_p6), %v5802_v44  ;;  %5827 = vmatpush3.bf16.msra.mxu1 (!%p3971_p6), %v5824_v5 }
 0x277   : > { %5805 = vmatprep.subr.bf16.mxu0 (!%p3971_p6), %v5804_v3  ;;  %v3672_v44 = vld [vmem:[%s7348_s10 + $0x78] sm:$0xff] (!%p3971_p6) }
 0x278   : > { %v5872_v3 = vpack.c.bf16 (!%p3971_p6), %v3672_v44, %v3671_v50 }
 0x28f   : > { %3337 = sbr.rel (%p3971_p6) target bundleno = 1698 (0x6a2), region = 88 }
 0x290   : > { %v3328_v8 = vpop.f32.mrb[24].mxu0 }
 0x291   : > { %v3329_v9 = vadd.f32 %v3328_v8, %v3259_v16  ;;  %v4912_v61 = vpop.f32.mrb[25].mxu0  ;;  %v3566_v16 = vld [vmem:[%s7346_s8 + $0x48] sm:$0xff] (!%p3971_p6) }
 0x292   : > { %v5808_v61 = vpack.c.bf16 (!%p3971_p6), %v3379_v0, %v3377_v4  ;;  %v5828_v12 = vpack.c.bf16 (!%p3971_p6), %v3566_v16, %v3565_v53  ;;  %v3757_v4 = vld [vmem:[%s7350_s12] sm:$0xff] (!%p3971_p6)  ;;  %v3759_v0 = vld [vmem:[%s7350_s12 + $0x10] sm:$0xff] (!%p3971_p6)  ;;  %v3762_v53 = vld [vmem:[%s7350_s12 + $0x28] sm:$0xff] (!%p3971_p6) }
 0x293   : > { %v3332_v10 = vadd.f32 %v3329_v9, %v511_v7  ;;  %v5806_v7 = vpack.c.bf16 (!%p3971_p6), %v3374_v1, %v3372_v19  ;;  %v3972_v9 = vld [vmem:[%s7340_s2] ss:$0 sm:$0xff] (!%p3971_p6)  ;;  %v3758_v19 = vld [vmem:[%s7350_s12 + $0x8] sm:$0xff] (!%p3971_p6)  ;;  %v3760_v1 = vld [vmem:[%s7350_s12 + $0x18] sm:$0xff] (!%p3971_p6) }
 0x294   : > { %5829 = vmatprep.subr.bf16.mxu1 (!%p3971_p6), %v5828_v12  ;;  %v5876_v5 = vpack.c.bf16 (!%p3971_p6), %v3760_v1, %v3758_v19  ;;  %v3764_v16 = vld [vmem:[%s7350_s12 + $0x38] sm:$0xff] (!%p3971_p6) }
 0x295   : > { %3333 = vst [vmem:[#allocation2] sm:$0x3] %v3332_v10  ;;  %v3376_v10 = vld [vmem:[%s7341_s3 + $0xe0] sm:$0xff] (!%p3971_p6)  ;;  %5807 = vmatpush1.bf16.msra.mxu0 (!%p3971_p6), %v5806_v7  ;;  %5831 = vmatpush3.bf16.msra.mxu1 (!%p3971_p6), %v5828_v12  ;;  %v5878_v7 = vpack.c.bf16 (!%p3971_p6), %v3759_v0, %v3757_v4  ;;  %v3384_v4 = vsub.s32 (!%p3971_p6), 0, %v6096_v2  ;;  %v3388_v0 = vsub.s32 (!%p3971_p6), 1, %v6096_v2 }
 0x296   : > { %v5810_v17 = vpack.c.bf16 %v3378_v11, %v3376_v10  ;;  %5809 = vmatprep.subr.bf16.mxu0 %v5808_v61  ;;  %5833 = vmatprep.subr.bf16.mxu1 %v5832_v20  ;;  %v3763_v61 = vld [vmem:[%s7350_s12 + $0x30] sm:$0xff]  ;;  %v3766_v10 = vld [vmem:[%s7350_s12 + $0x48] sm:$0xff]  ;;  %v3768_v11 = vld [vmem:[%s7350_s12 + $0x58] sm:$0xff] }
 0x297   : > { %v5884_v13 = vpack.c.bf16 %v3768_v11, %v3766_v10 }
 0x299   : > { %5811 = vmatpush1.bf16.msra.mxu0 %v5810_v17  ;;  %5835 = vmatpush3.bf16.msra.mxu1 %v5832_v20  ;;  %v3770_v17 = vld [vmem:[%s7350_s12 + $0x68] sm:$0xff]  ;;  %v3772_v20 = vld [vmem:[%s7350_s12 + $0x78] sm:$0xff] }
 0x29a   : > { %4913 = vmatprep.subr.mxu0 %v3465_v23  ;;  %5837 = vmatprep.subr.bf16.mxu1 %v5836_v24 }
 0x29c   : > { %v3338_v8 = vld [vmem:[#allocation2] sm:$0x3] }
 0x29d   : > { %v3346_v28 = vadd.f32 %v3972_v9, %v3338_v8  ;;  %5839 = vmatpush3.bf16.msra.mxu1 %v5836_v24  ;;  %v5880_v8 = vpack.c.bf16 %v3764_v16, %v3762_v53  ;;  %v3761_v9 = vld [vmem:[%s7350_s12 + $0x20] sm:$0xff] }
 0x29e   : > { %5841 = vmatprep.subr.bf16.mxu1 %v5840_v31  ;;  %v5882_v12 = vpack.c.bf16 %v3763_v61, %v3761_v9 }
 0x29f   : > { %v3347_v18 = vmax.f32 %v3346_v28, 0.0  ;;  %v3767_v28 = vld [vmem:[%s7350_s12 + $0x50] sm:$0xff] }
 0x2a1   : > { %3457 = vmatmul.mubr.f32.vlgmr.msra.gmra.mrb[0].mxu0 %v3347_v18  ;;  %5843 = vmatpush3.bf16.msra.mxu1 %v5840_v31  ;;  %v5888_v18 = vpack.c.bf16 %v3772_v20, %v3770_v17  ;;  %v3775_v31 = vld [vmem:[%s7350_s12 + $0x90] sm:$0xff] }
 0x2a2   : > { %4914 = vmatpush3.msra.mxu0 %v3465_v23  ;;  %4915 = vmatprep.mubr.msk.f32.mxu0 %vm3473_vm1, %v3463_v25  ;;  %v5886_v23 = vpack.c.bf16 %v3767_v28, %v3765_v14  ;;  %v3769_v25 = vld [vmem:[%s7350_s12 + $0x60] sm:$0xff]  ;;  %v5894_v34 = vpack.c.bf16 %v3775_v31, %v3773_v30 }
 0x2a3   : > { %5845 = vmatprep.subr.bf16.mxu0 %v5844_v37  ;;  %5877 = vmatprep.subr.bf16.mxu1 %v5876_v5  ;;  %v3380_v5 = vld [vmem:[%s7342_s4] sm:$0x3] }
 0x2a4   : > { %v3385_v53 = vrot.slane %v3380_v5, %v3384_v4  ;;  %v3389_v16 = vrot.slane %v3380_v5, %v3388_v0 }
 0x2a5   : > { %4916 = vmatmul.mubr.msk.f32.vlgmr.msra.gmra.mrb[2].mxu0 %vm3473_vm1, %v3464_v26  ;;  %v3771_v26 = vld [vmem:[%s7350_s12 + $0x70] sm:$0xff] }
 0x2a6   : > { %5847 = vmatpush3.bf16.msra.mxu0 %v5844_v37  ;;  %v5890_v24 = vpack.c.bf16 %v3771_v26, %v3769_v25  ;;  %v5896_v37 = vpack.c.bf16 %v3780_v33, %v3778_v32 }
 0x2a7   : > { %5849 = vmatprep.subr.bf16.mxu0 %v5848_v40 }
 0x2aa   : > { %5851 = vmatpush3.bf16.msra.mxu0 %v5848_v40  ;;  %v3779_v40 = vld [vmem:[%s7350_s12 + $0xb0] sm:$0xff] }
 0x2ab   : > { %5853 = vmatprep.subr.bf16.mxu0 %v5852_v47 }
 0x2ae   : > { %5855 = vmatpush3.bf16.msra.mxu0 %v5852_v47  ;;  %v5898_v47 = vpack.c.bf16 %v3779_v40, %v3777_v38 }
 0x2af   : > { %5857 = vmatprep.subr.bf16.mxu0 %v5856_v56 }
 0x2b2   : > { %5859 = vmatpush3.bf16.msra.mxu0 %v5856_v56  ;;  %v3783_v56 = vld [vmem:[%s7350_s12 + $0xd0] sm:$0xff] }
 0x2b3   : > { %5861 = vmatprep.subr.bf16.mxu0 %v5860_v49  ;;  %v5902_v29 = vpack.c.bf16 %v3783_v56, %v3781_v46 }
 0x2b6   : > { %5863 = vmatpush3.bf16.msra.mxu0 %v5860_v49 }
 0x2b7   : > { %5865 = vmatprep.subr.bf16.mxu0 %v5864_v52 }
 0x2ba   : > { %5867 = vmatpush3.bf16.msra.mxu0 %v5864_v52 }
 0x2bb   : > { %5869 = vmatprep.subr.bf16.mxu0 %v5868_v55 }
 0x2be   : > { %5871 = vmatpush3.bf16.msra.mxu0 %v5868_v55  ;;  %v3786_v55 = vld [vmem:[%s7350_s12 + $0xe8] sm:$0xff] }
 0x2bf   : > { %5873 = vmatprep.subr.bf16.mxu0 %v5872_v3 }
 0x2c2   : > { %5875 = vmatpush3.bf16.msra.mxu0 %v5872_v3 }
 0x374   : > { %v7202_v57 = vpop.f32.mrb[0].mxu0 }
 0x375   : > { %v7204_v35 = vpop.f32.mrb[1].mxu0 }
 0x378   : > { %v4917_v58 = vpop.f32.mrb[2].mxu0 }
 0x379   : > { %v3552_v42 = vadd.f32 %v4917_v58, %v3973_v6  ;;  %v3546_v59 = vpop.f32.mrb[3].mxu0 }
 0x37a   : > { %v3547_v60 = vadd.f32 %v3973_v6, %v3546_v59  ;;  %v3788_v6 = vld [vmem:[%s7350_s12 + $0xf8] sm:$0xff]  ;;  %v3787_v59 = vld [vmem:[%s7350_s12 + $0xf0] sm:$0xff] }
 0x37b   : > { %v3556_v63 = vmax.f32 %v3552_v42, 0.0  ;;  %v5904_v58 = vpack.c.bf16 %v3788_v6, %v3786_v55  ;;  %v3785_v42 = vld [vmem:[%s7350_s12 + $0xe0] sm:$0xff] }
 0x37c   : > { %v3555_v62 = vmax.f32 %v3547_v60, 0.0  ;;  %v5906_v60 = vpack.c.bf16 %v3787_v59, %v3785_v42 }
 0x37e   : > { %4950 = vmatprep.mubr.f32.mxu1 %v3555_v62  ;;  %v3977_v62 = vld [vmem:[%s7349_s11] ss:$0 sm:$0xff] }
 0x37f   : > { %4951 = vmatmul.mubr.f32.vlgmr.msra.gmra.mrb[0].mxu1 %v3556_v63 }
 0x380   : > { %3865 = vmatprep.mubr.f32.mxu1 %v5947_v22  ;;  %5879 = vmatpush1.bf16.msra.mxu1 %v5878_v7  ;;  %v3789_v7 = vld [vmem:[%s7351_s13] sm:$0x3] }
 0x381   : > { %5881 = vmatprep.subr.bf16.mxu1 %v5880_v8  ;;  %v3459_v8 = vadd.f32 %v7202_v57, %v3385_v53  ;;  %v3794_v9 = vrot.slane %v3789_v7, %v3384_v4  ;;  %v3798_v61 = vrot.slane %v3789_v7, %v3388_v0 }
 0x383   : > { %v3881_v11 = vrot.slane %v3459_v8, %v3384_v4 }
 0x384   : > { %5883 = vmatpush1.bf16.msra.mxu1 %v5882_v12 }
 0x385   : > { %5885 = vmatprep.subr.bf16.mxu1 %v5884_v13 }
 0x388   : > { %5887 = vmatpush1.bf16.msra.mxu1 %v5886_v23  ;;  %v3904_v23 = vrot.slane %v3459_v8, %v3388_v0 }
 0x389   : > { %5889 = vmatprep.subr.bf16.mxu1 %v5888_v18 }
 0x38c   : > { %5891 = vmatpush1.bf16.msra.mxu1 %v5890_v24 }
 0x38d   : > { %5893 = vmatprep.subr.bf16.mxu1 %v5892_v15  ;;  %v3978_v15 = vld [vmem:[#allocation3] ss:$0 sm:$0xff] }
 0x390   : > { %5895 = vmatpush1.bf16.msra.mxu1 %v5894_v34 }
 0x391   : > { %5897 = vmatprep.subr.bf16.mxu1 %v5896_v37 }
 0x394   : > { %5899 = vmatpush1.bf16.msra.mxu1 %v5898_v47 }
 0x395   : > { %5901 = vmatprep.subr.bf16.mxu1 %v5900_v45 }
 0x398   : > { %5903 = vmatpush1.bf16.msra.mxu1 %v5902_v29 }
 0x399   : > { %5905 = vmatprep.subr.bf16.mxu1 %v5904_v58 }
 0x39c   : > { %5907 = vmatpush1.bf16.msra.mxu1 %v5906_v60 }
 0x452   : > { %v4952_v49 = vpop.f32.mrb[0].mxu1 }
 0x453   : > { %v3652_v43 = vadd.f32 %v4952_v49, %v3976_v48  ;;  %v3646_v51 = vpop.f32.mrb[1].mxu1 }
 0x454   : > { %v3647_v52 = vadd.f32 %v3976_v48, %v3646_v51 }
 0x455   : > { %v3656_v54 = vmax.f32 %v3652_v43, 0.0 }
 0x456   : > { %v3655_v39 = vmax.f32 %v3647_v52, 0.0 }
 0x458   : > { %4985 = vmatprep.mubr.f32.mxu0 %v3655_v39 }
 0x459   : > { %4986 = vmatmul.mubr.f32.vlgmr.msra.gmra.mrb[4].mxu0 %v3656_v54 }
 0x52c   : > { %v4987_v63 = vpop.f32.mrb[4].mxu0 }
 0x52d   : > { %v3746_v50 = vpop.f32.mrb[5].mxu0  ;;  %v3752_v3 = vadd.f32 %v4987_v63, %v3977_v62 }
 0x52e   : > { %v3747_v44 = vadd.f32 %v3977_v62, %v3746_v50 }
 0x52f   : > { %v3756_v1 = vmax.f32 %v3752_v3, 0.0 }
 0x530   : > { %v3755_v19 = vmax.f32 %v3747_v44, 0.0 }
 0x532   : > { %3866 = vmatmul.mubr.f32.vlgmr.msra.gmra.mrb[2].mxu1 %v3755_v19 }
 0x533   : > { %3871 = vmatprep.mubr.f32.mxu1 %v5947_v22  ;;  %v3461_v22 = vadd.f32 %v7204_v35, %v3389_v16 }
 0x535   : > { %v3885_v14 = vrot.slane %v3461_v22, %v3384_v4  ;;  %v3908_v26 = vrot.slane %v3461_v22, %v3388_v0 }
 0x536   : > { %3872 = vmatmul.mubr.f32.gmra.mrb[4].mxu1 %v3756_v1 }
 0x605   : > { %v3867_v10 = vpop.f32.mrb[2].mxu1 }
 0x606   : > { %v3868_v12 = vadd.f32 %v3867_v10, %v3794_v9  ;;  %v3869_v13 = vpop.f32.mrb[3].mxu1 }
 0x607   : > { %v3870_v28 = vadd.f32 %v3869_v13, %v3798_v61 }
 0x608   : > { %v3886_v17 = vmul.f32 %v3881_v11, %v3868_v12 }
 0x609   : > { %v3873_v2 = vpop.f32.mrb[4].mxu1  ;;  %v3887_v20 = vmul.f32 %v3885_v14, %v3870_v28 }
 0x60a   : > { %v3874_v18 = vadd.f32 %v3873_v2, %v3794_v9  ;;  %v3875_v25 = vpop.f32.mrb[5].mxu1 }
 0x60b   : > { %v3876_v21 = vadd.f32 %v3875_v25, %v3798_v61  ;;  %v3888_v36 = vadd.f32 %v3887_v20, %v3886_v17 }
 0x60c   : > { %v3909_v57 = vmul.f32 %v3904_v23, %v3874_v18 }
 0x60d   : > { %v3910_v24 = vmul.f32 %v3908_v26, %v3876_v21  ;;  %3889 = vadd.xlane.f32.xlu0 %v3888_v36 }
 0x60f   : > { %v3911_v35 = vadd.f32 %v3910_v24, %v3909_v57 }
 0x611   : > { %3912 = vadd.xlane.f32.xlu0 %v3911_v35 }
 0x69a   : > { %v3890_v30 = vpop.xlane.xlu0 %3889 }
 0x69b   : > { %v3898_v31 = vadd.f32 %v3978_v15, %v3890_v30 }
 0x69d   : > { %3900 = vst.msk [vmem:[%s7353_s15] sm:$0xff] %vm3899_vm2, %v3898_v31 }
 0x69e   : > { %v3913_v32 = vpop.xlane.xlu0 %3912 }
 0x69f   : > { %v3921_v33 = vadd.f32 %v3978_v15, %v3913_v32 }
 0x6a1   : > { %3922 = vst.msk [vmem:[%s7353_s15 + $0x8] sm:$0xff] %vm3899_vm2, %v3921_v33 }
 0x6a2 PF: > { %s27_s20 = sadd.s32 1, %s5940_s20  }
 0x6a3   : > { %p24_p7 = scmp.ge.s32.totalorder %s27_s20, 6  }
 0x6a5   :  { %26 = sbr.rel (!%p24_p7) target bundleno = 3 (0x3), region = 117 }

</bundles_post_ra>
